<compile_context>
chip_gen: v7x
topology: tpu7x:2x2x1
jax: 0.10.0
libtpu: 0.0.40
codegen_flags: <defaults>
</compile_context>

<pallas_src>
import functools

import jax
import jax.numpy as jnp
import numpy as np
from jax.experimental import pallas as pl
from jax.experimental.pallas import tpu as pltpu

BN_EPS = 1e-5
FC1_TK = 3200        # K tile for fc1 (2 steps over the 6400-row padded weight)


def _round_up(x, m):
    return (x + m - 1) // m * m


def _choose_tile(dim, target, align=8):
    """Pick (padded_dim, tile): tile % align == 0 and tile | padded_dim.

    Prefers a divisor of `dim` (no padding / no output slice); otherwise pads.
    """
    target = max(align, (target // align) * align)
    if dim % align == 0:
        t = min(target, dim)
        while t >= align:
            if dim % t == 0:
                return dim, t
            t -= align
    tile = min(target, _round_up(dim, align))
    return _round_up(dim, tile), tile


def _choose_k(K, target):
    """Single K step when K <= target; else a 128-multiple tile (pad if needed)."""
    if K <= target:
        return K, K                      # block dim == full dim is always legal
    t = max(128, (target // 128) * 128)
    for cand in range(t, 127, -128):     # prefer a divisor of K: no padding
        if K % cand == 0:
            return K, cand
    return _round_up(K, t), t


# ----------------------------------------------------------------------------
# Pallas kernels
# ----------------------------------------------------------------------------
def _matmul_bias_kernel(a_ref, w_ref, b_ref, o_ref, acc_ref, *, relu):
    """o = relu_opt(A @ W + b).  bf16 operands, f32 scratch accumulator."""
    k = pl.program_id(2)

    @pl.when(k == 0)
    def _():
        acc_ref[...] = jnp.zeros_like(acc_ref)

    acc_ref[...] += jnp.dot(a_ref[...], w_ref[...],
                            preferred_element_type=jnp.float32)

    @pl.when(k == pl.num_programs(2) - 1)
    def _():
        y = acc_ref[...] + b_ref[...]
        if relu:
            y = jnp.maximum(y, 0.0)
        o_ref[...] = y.astype(o_ref.dtype)


def _fc_head_kernel(a_ref, w1_ref, b1_ref, w2_ref, b2_ref, o_ref, acc_ref):
    """logits = relu(A @ W1 + b1) @ W2 + b2, with fc2 fused into the epilogue."""
    k = pl.program_id(1)

    @pl.when(k == 0)
    def _():
        acc_ref[...] = jnp.zeros_like(acc_ref)

    acc_ref[...] += jnp.dot(a_ref[...], w1_ref[...],
                            preferred_element_type=jnp.float32)

    @pl.when(k == pl.num_programs(1) - 1)
    def _():
        h = jnp.maximum(acc_ref[...] + b1_ref[...], 0.0)        # fc1 + ReLU
        o_ref[...] = (jnp.dot(h.astype(jnp.bfloat16), w2_ref[...],
                              preferred_element_type=jnp.float32)
                      + b2_ref[...])                            # fused fc2


def _maxpool_kernel(x_ref, o_ref):
    """2x2 max pool on a (rows, 2, Wo, 2*C) block: dim1 is h-parity, the
    trailing 2*C lanes hold (w-even C, w-odd C)."""
    c = o_ref.shape[-1]
    v = x_ref[...]                                  # (tr, 2, Wo, 2*C)
    m = jnp.maximum(v[:, 0], v[:, 1])               # (tr, Wo, 2*C)
    o_ref[...] = jnp.maximum(m[..., :c], m[..., c:])


# ----------------------------------------------------------------------------
# Wrappers
# ----------------------------------------------------------------------------
def matmul_bias_act(a, w, bias, *, relu=True, out_dtype=jnp.bfloat16,
                    tm_cap=784, tk_target=1024):
    """(M, K) @ (K, N) + bias (per output column), optional ReLU.

    bf16 operands on the MXU, f32 accumulation in a VMEM scratch, bf16 output.
    """
    M, K = a.shape
    Kw, N = w.shape
    assert Kw == K and bias.shape == (N,)
    assert N <= 512, "tile N for wider layers"
    tn = N

    a = a.astype(jnp.bfloat16)
    w = w.astype(jnp.bfloat16)

    # >= 2 M blocks whenever M allows -> both v7x TensorCores get work.
    tm_target = min(tm_cap, max(16, _round_up((M + 1) // 2, 16)))
    Mp, tm = _choose_tile(M, tm_target, align=16)
    Kp, tk = _choose_k(K, tk_target)

    if (Mp, Kp) != (M, K):
        a = jnp.pad(a, ((0, Mp - M), (0, Kp - K)))
    if Kp != K:
        w = jnp.pad(w, ((0, Kp - K), (0, 0)))

    out = pl.pallas_call(
        functools.partial(_matmul_bias_kernel, relu=relu),
        out_shape=jax.ShapeDtypeStruct((Mp, N), out_dtype),
        grid_spec=pltpu.PrefetchScalarGridSpec(
            num_scalar_prefetch=0,
            grid=(Mp // tm, N // tn, Kp // tk),          # K last (reduction)
            in_specs=[
                pl.BlockSpec((tm, tk), lambda i, j, k: (i, k)),
                pl.BlockSpec((tk, tn), lambda i, j, k: (k, j)),
                pl.BlockSpec((1, tn), lambda i, j, k: (0, j)),
            ],
            out_specs=pl.BlockSpec((tm, tn), lambda i, j, k: (i, j)),
            scratch_shapes=[pltpu.VMEM((tm, tn), jnp.float32)],
        ),
        compiler_params=pltpu.CompilerParams(
            dimension_semantics=("parallel", "parallel", "arbitrary")),
    )(a, w, bias.reshape(1, N).astype(jnp.float32))

    return out[:M] if Mp != M else out


def fc_head(a, w1, b1, w2, b2, *, tm_target=256, tk_target=FC1_TK):
    """relu(a @ w1 + b1) @ w2 + b2 in ONE kernel (fc2 fused into the epilogue)."""
    M, K = a.shape
    Kw, H = w1.shape
    Hw, O = w2.shape
    assert Kw >= K and Hw == H and H <= 512

    a = a.astype(jnp.bfloat16)
    w1 = w1.astype(jnp.bfloat16)
    w2 = w2.astype(jnp.bfloat16)

    Mp, tm = _choose_tile(M, tm_target, align=16)
    Kp, tk = _choose_k(Kw, tk_target)
    if (Mp, Kp) != (M, K):
        a = jnp.pad(a, ((0, Mp - M), (0, Kp - K)))
    if Kp != Kw:
        w1 = jnp.pad(w1, ((0, Kp - Kw), (0, 0)))

    out = pl.pallas_call(
        _fc_head_kernel,
        out_shape=jax.ShapeDtypeStruct((Mp, O), jnp.float32),
        grid_spec=pltpu.PrefetchScalarGridSpec(
            num_scalar_prefetch=0,
            grid=(Mp // tm, Kp // tk),                   # K last (reduction)
            in_specs=[
                pl.BlockSpec((tm, tk), lambda i, k: (i, k)),
                pl.BlockSpec((tk, H), lambda i, k: (k, 0)),
                pl.BlockSpec((1, H), lambda i, k: (0, 0)),
                pl.BlockSpec((H, O), lambda i, k: (0, 0)),
                pl.BlockSpec((1, O), lambda i, k: (0, 0)),
            ],
            out_specs=pl.BlockSpec((tm, O), lambda i, k: (i, 0)),
            scratch_shapes=[pltpu.VMEM((tm, H), jnp.float32)],
        ),
        compiler_params=pltpu.CompilerParams(
            dimension_semantics=("parallel", "arbitrary")),
    )(a, w1, b1.reshape(1, H).astype(jnp.float32),
      w2, b2.reshape(1, O).astype(jnp.float32))

    return out[:M] if Mp != M else out


def conv3x3_bn_relu(x_nhwc, wm, shift):
    """3x3 'same' conv with BatchNorm folded into (wm, shift), then ReLU.

    wm: (9*Cin, Cout) bf16, patch order (dy, dx, cin).  shift: (Cout,) f32.
    """
    N, H, W, Cin = x_nhwc.shape
    Cout = wm.shape[1]
    # TODO(synk): im2col still at the XLA level (see header note).
    xp = jnp.pad(x_nhwc, ((0, 0), (1, 1), (1, 1), (0, 0)))
    patches = jnp.concatenate(
        [xp[:, dy:dy + H, dx:dx + W, :] for dy in range(3) for dx in range(3)],
        axis=-1)
    a = patches.reshape(N * H * W, 9 * Cin)
    y = matmul_bias_act(a, wm, shift, relu=True)
    return y.reshape(N, H, W, Cout)


def maxpool2x2(x_nhwc, *, tr_target=512):
    """MaxPool2d(2,2): one pallas_call over a free (N*Ho, 2, Wo, 2*C) view.

    No XLA strided gathers: both the h-parity and w-parity reductions happen
    on value slices inside the kernel.
    """
    N, H, W, C = x_nhwc.shape
    Ho, Wo = H // 2, W // 2
    rows = N * Ho
    x4 = x_nhwc.reshape(rows, 2, Wo, 2 * C)              # free contiguous view

    rows_p, tr = _choose_tile(rows, tr_target, align=1)  # leading dim: no (8,128) rule
    if rows_p != rows:
        x4 = jnp.pad(x4, ((0, rows_p - rows), (0, 0), (0, 0), (0, 0)))

    out = pl.pallas_call(
        _maxpool_kernel,
        out_shape=jax.ShapeDtypeStruct((rows_p, Wo, C), x_nhwc.dtype),
        grid_spec=pltpu.PrefetchScalarGridSpec(
            num_scalar_prefetch=0,
            grid=(rows_p // tr,),
            in_specs=[pl.BlockSpec((tr, 2, Wo, 2 * C), lambda i: (i, 0, 0, 0))],
            out_specs=pl.BlockSpec((tr, Wo, C), lambda i: (i, 0, 0)),
        ),
        compiler_params=pltpu.CompilerParams(
            dimension_semantics=("parallel",)),
    )(x4)
    return out[:rows].reshape(N, Ho, Wo, C)


# ----------------------------------------------------------------------------
# Parameters (deterministic synthetic init matching nn.Module shapes)
# ----------------------------------------------------------------------------
class _KeyGen:
    def __init__(self, seed):
        self._key = jax.random.PRNGKey(seed)

    def __call__(self):
        self._key, sub = jax.random.split(self._key)
        return sub


def init_params(seed=42):
    nk = _KeyGen(seed)

    def conv(cout, cin):
        w = 0.1 * jax.random.normal(nk(), (cout, cin, 3, 3), jnp.float32)
        b = 0.1 * jax.random.normal(nk(), (cout,), jnp.float32)
        return w, b

    def bn(c):
        gamma = 1.0 + 0.1 * jax.random.normal(nk(), (c,), jnp.float32)
        beta = 0.1 * jax.random.normal(nk(), (c,), jnp.float32)
        mean = 0.1 * jax.random.normal(nk(), (c,), jnp.float32)
        var = 0.5 + jax.random.uniform(nk(), (c,), jnp.float32)
        return gamma, beta, mean, var

    p = {}
    p["conv1_w"], p["conv1_b"] = conv(32, 1)
    p["bn1"] = bn(32)
    p["conv2_w"], p["conv2_b"] = conv(64, 32)
    p["bn2"] = bn(64)
    p["conv3_w"], p["conv3_b"] = conv(128, 64)
    p["bn3"] = bn(128)
    p["fc1_w"] = 0.05 * jax.random.normal(nk(), (512, 128 * 7 * 7), jnp.float32)
    p["fc1_b"] = 0.05 * jax.random.normal(nk(), (512,), jnp.float32)
    p["fc2_w"] = 0.05 * jax.random.normal(nk(), (10, 512), jnp.float32)
    p["fc2_b"] = 0.05 * jax.random.normal(nk(), (10,), jnp.float32)
    return p


def prepare_params(p):
    """One-time weight prep (layouts, BN folding, bf16 narrowing), hoisted out
    of the forward path.  Matmul weights are bf16; biases stay f32."""
    q = {}

    def conv_prep(w, b, bn):
        gamma, beta, mean, var = bn
        cout, cin = w.shape[0], w.shape[1]
        # (Cout, Cin, 3, 3) -> (3, 3, Cin, Cout) -> (9*Cin, Cout)
        wm = jnp.transpose(w, (2, 3, 1, 0)).reshape(9 * cin, cout)
        s = gamma / jnp.sqrt(var + BN_EPS)               # fold BN into weights
        return ((wm * s[None, :]).astype(jnp.bfloat16),
                ((b - mean) * s + beta).astype(jnp.float32))

    q["conv1_wm"], q["conv1_shift"] = conv_prep(p["conv1_w"], p["conv1_b"], p["bn1"])
    q["conv2_wm"], q["conv2_shift"] = conv_prep(p["conv2_w"], p["conv2_b"], p["bn2"])
    q["conv3_wm"], q["conv3_shift"] = conv_prep(p["conv3_w"], p["conv3_b"], p["bn3"])

    # fc1: PyTorch view(N,-1) flattens NCHW (c,h,w); our activation flatten is
    # NHWC (h,w,c) -> permute the weight columns once here.  Rows are
    # zero-padded 6272 -> 6400 so fc1 runs 2 x 3200 K steps (128-aligned).
    w1 = p["fc1_w"].reshape(512, 128, 7, 7)
    w1 = jnp.transpose(w1, (0, 2, 3, 1)).reshape(512, 7 * 7 * 128).T   # (6272, 512)
    kpad = _round_up(w1.shape[0], FC1_TK) - w1.shape[0]
    q["fc1_wm"] = jnp.pad(w1, ((0, kpad), (0, 0))).astype(jnp.bfloat16)
    q["fc1_b"] = p["fc1_b"].astype(jnp.float32)
    q["fc2_wm"] = p["fc2_w"].T.astype(jnp.bfloat16)                    # (512, 10)
    q["fc2_b"] = p["fc2_b"].astype(jnp.float32)
    return q


# ----------------------------------------------------------------------------
# Forward pass (Pallas)
# ----------------------------------------------------------------------------
def cnn_forward(x_nchw, q):
    x = jnp.transpose(x_nchw, (0, 2, 3, 1)).astype(jnp.bfloat16)  # NCHW -> NHWC bf16

    x = conv3x3_bn_relu(x, q["conv1_wm"], q["conv1_shift"])       # (N,28,28,32)
    x = conv3x3_bn_relu(x, q["conv2_wm"], q["conv2_shift"])       # (N,28,28,64)
    x = maxpool2x2(x)                                             # (N,14,14,64)
    # Dropout(0.25): identity in eval mode.
    x = conv3x3_bn_relu(x, q["conv3_wm"], q["conv3_shift"])       # (N,14,14,128)
    x = maxpool2x2(x)                                             # (N,7,7,128)
    # Dropout(0.25): identity in eval mode.

    n = x.shape[0]
    x = x.reshape(n, 7 * 7 * 128)   # free NHWC flatten; permutation is in fc1_wm
    # fc1 + ReLU + (Dropout(0.5): identity) + fc2, fused into one kernel.
    return fc_head(x, q["fc1_wm"], q["fc1_b"], q["fc2_wm"], q["fc2_b"])  # (N, 10)


# ----------------------------------------------------------------------------
# Pure-JAX reference (for correctness check)
# ----------------------------------------------------------------------------
def reference_forward(x, p):
    def conv_bn_relu(x, w, b, bn):
        y = jax.lax.conv_general_dilated(
            x, w, (1, 1), "SAME",
            dimension_numbers=("NCHW", "OIHW", "NCHW"),
            precision=jax.lax.Precision.HIGHEST)
        y = y + b[None, :, None, None]
        gamma, beta, mean, var = bn
        y = (y - mean[None, :, None, None]) / jnp.sqrt(var[None, :, None, None] + BN_EPS)
        y = y * gamma[None, :, None, None] + beta[None, :, None, None]
        return jnp.maximum(y, 0.0)

    def maxpool(x):
        N, C, H, W = x.shape
        return x.reshape(N, C, H // 2, 2, W // 2, 2).max(axis=(3, 5))

    y = conv_bn_relu(x, p["conv1_w"], p["conv1_b"], p["bn1"])
    y = conv_bn_relu(y, p["conv2_w"], p["conv2_b"], p["bn2"])
    y = maxpool(y)
    y = conv_bn_relu(y, p["conv3_w"], p["conv3_b"], p["bn3"])
    y = maxpool(y)
    y = y.reshape(y.shape[0], -1)
    y = jnp.maximum(y @ p["fc1_w"].T + p["fc1_b"], 0.0)
    y = y @ p["fc2_w"].T + p["fc2_b"]
    return y


# ----------------------------------------------------------------------------
if __name__ == "__main__":
    # 28x28 single-channel input is implied by the fc layer (128 * 7 * 7).
    x = jax.random.normal(jax.random.PRNGKey(0), (2, 1, 28, 28), jnp.float32)
    params = init_params()
    prepped = prepare_params(params)          # weight prep hoisted out of fwd

    fwd = jax.jit(cnn_forward)
    out = jax.block_until_ready(fwd(x, prepped))
    assert out.shape == (2, 10), out.shape

    ref = jax.block_until_ready(reference_forward(x, params))
    # bf16 MXU inputs / bf16 inter-layer activations vs the f32 HIGHEST
    # reference -> loose-ish tolerance.
    if not np.allclose(np.asarray(out), np.asarray(ref), rtol=5e-2, atol=2e-1):
        raise AssertionError("Pallas output does not match JAX reference")

    print("KERNEL_OK")
</pallas_src>

<mosaic_0001>
module attributes {stable_mosaic.version = 11 : i64} {
  func.func @_matmul_bias_kernel(%arg0: i32, %arg1: i32, %arg2: i32, %arg3: memref<784x9xbf16, #tpu.memory_space<vmem>>, %arg4: memref<9x32xbf16, #tpu.memory_space<vmem>>, %arg5: memref<1x32xf32, #tpu.memory_space<vmem>>, %arg6: memref<784x32xbf16, #tpu.memory_space<vmem>>, %arg7: memref<784x32xf32, #tpu.memory_space<vmem>>) attributes {dimension_semantics = [#tpu.dimension_semantics<parallel>, #tpu.dimension_semantics<parallel>, #tpu.dimension_semantics<arbitrary>], iteration_bounds = array<i64: 2, 1, 1>, scalar_prefetch = 0 : i64, scratch_operands = 1 : i64, tpu.core_type = #tpu.core_type<tc>, window_params = [{transform_indices = @transform_0, window_bounds = array<i64: 784, 9>}, {transform_indices = @transform_1, window_bounds = array<i64: 9, 32>}, {transform_indices = @transform_2, window_bounds = array<i64: 1, 32>}, {transform_indices = @transform_3, window_bounds = array<i64: 784, 32>}]} {
    %c0_i32 = arith.constant 0 : i32
    %0 = arith.cmpi eq, %arg2, %c0_i32 : i32
    %1 = arith.extui %0 : i1 to i32
    %c0_i32_0 = arith.constant 0 : i32
    %2 = arith.cmpi ne, %1, %c0_i32_0 : i32
    scf.if %2 {
      %cst_10 = arith.constant 0.000000e+00 : f32
      %12 = vector.broadcast %cst_10 : f32 to vector<784x32xf32>
      %c0_11 = arith.constant 0 : index
      %c0_12 = arith.constant 0 : index
      %13 = vector.load %arg7[%c0_11, %c0_12] : memref<784x32xf32, #tpu.memory_space<vmem>>, vector<784x32xf32>
      tpu.vector_store %arg7[%c0_11, %c0_12], %12 {strides = array<i32>} : memref<784x32xf32, #tpu.memory_space<vmem>>, vector<784x32xf32>,
    } else {
    }
    %c0 = arith.constant 0 : index
    %c0_1 = arith.constant 0 : index
    %3 = vector.load %arg7[%c0, %c0_1] : memref<784x32xf32, #tpu.memory_space<vmem>>, vector<784x32xf32>
    %c0_2 = arith.constant 0 : index
    %c0_3 = arith.constant 0 : index
    %4 = vector.load %arg3[%c0_2, %c0_3] : memref<784x9xbf16, #tpu.memory_space<vmem>>, vector<784x9xbf16>
    %c0_4 = arith.constant 0 : index
    %c0_5 = arith.constant 0 : index
    %5 = vector.load %arg4[%c0_4, %c0_5] : memref<9x32xbf16, #tpu.memory_space<vmem>>, vector<9x32xbf16>
    %cst = arith.constant dense<0.000000e+00> : vector<784x32xf32>
    %6 = tpu.matmul %4, %5, %cst {dimension_numbers = #tpu.dot_dimension_numbers<[1], [0], [0], [1], [0, 0, 1, 1], [], []>} : vector<784x9xbf16>, vector<9x32xbf16>, vector<784x32xf32> -> vector<784x32xf32>
    %7 = arith.addf %3, %6 : vector<784x32xf32>
    %c0_6 = arith.constant 0 : index
    %c0_7 = arith.constant 0 : index
    %8 = vector.load %arg7[%c0_6, %c0_7] : memref<784x32xf32, #tpu.memory_space<vmem>>, vector<784x32xf32>
    tpu.vector_store %arg7[%c0_6, %c0_7], %7 {strides = array<i32>} : memref<784x32xf32, #tpu.memory_space<vmem>>, vector<784x32xf32>,
    %c0_i32_8 = arith.constant 0 : i32
    %9 = arith.cmpi eq, %arg2, %c0_i32_8 : i32
    %10 = arith.extui %9 : i1 to i32
    %c0_i32_9 = arith.constant 0 : i32
    %11 = arith.cmpi ne, %10, %c0_i32_9 : i32
    scf.if %11 {
      %c0_10 = arith.constant 0 : index
      %c0_11 = arith.constant 0 : index
      %12 = vector.load %arg7[%c0_10, %c0_11] : memref<784x32xf32, #tpu.memory_space<vmem>>, vector<784x32xf32>
      %c0_12 = arith.constant 0 : index
      %c0_13 = arith.constant 0 : index
      %13 = vector.load %arg5[%c0_12, %c0_13] : memref<1x32xf32, #tpu.memory_space<vmem>>, vector<1x32xf32>
      %14 = vector.broadcast %13 : vector<1x32xf32> to vector<784x32xf32>
      %15 = arith.addf %12, %14 : vector<784x32xf32>
      %cst_14 = arith.constant 0.000000e+00 : f32
      %16 = vector.broadcast %cst_14 : f32 to vector<784x32xf32>
      %17 = arith.maximumf %15, %16 : vector<784x32xf32>
      %18 = arith.truncf %17 : vector<784x32xf32> to vector<784x32xbf16>
      %c0_15 = arith.constant 0 : index
      %c0_16 = arith.constant 0 : index
      %19 = vector.load %arg6[%c0_15, %c0_16] : memref<784x32xbf16, #tpu.memory_space<vmem>>, vector<784x32xbf16>
      tpu.vector_store %arg6[%c0_15, %c0_16], %18 {strides = array<i32>} : memref<784x32xbf16, #tpu.memory_space<vmem>>, vector<784x32xbf16>,
    } else {
    }
    return
  }
  func.func @transform_0(%arg0: i32, %arg1: i32, %arg2: i32) -> (i32, i32) {
    %c0_i32 = arith.constant 0 : i32
    return %arg0, %arg2 : i32, i32
  }
  func.func @transform_1(%arg0: i32, %arg1: i32, %arg2: i32) -> (i32, i32) {
    %c0_i32 = arith.constant 0 : i32
    return %arg2, %arg1 : i32, i32
  }
  func.func @transform_2(%arg0: i32, %arg1: i32, %arg2: i32) -> (i32, i32) {
    %c0_i32 = arith.constant 0 : i32
    %c0_i32_0 = arith.constant 0 : i32
    return %c0_i32, %arg1 : i32, i32
  }
  func.func @transform_3(%arg0: i32, %arg1: i32, %arg2: i32) -> (i32, i32) {
    %c0_i32 = arith.constant 0 : i32
    return %arg0, %arg1 : i32, i32
  }
}

module attributes {stable_mosaic.version = 11 : i64} {
  func.func @_matmul_bias_kernel(%arg0: i32, %arg1: i32, %arg2: i32, %arg3: memref<784x288xbf16, #tpu.memory_space<vmem>>, %arg4: memref<288x64xbf16, #tpu.memory_space<vmem>>, %arg5: memref<1x64xf32, #tpu.memory_space<vmem>>, %arg6: memref<784x64xbf16, #tpu.memory_space<vmem>>, %arg7: memref<784x64xf32, #tpu.memory_space<vmem>>) attributes {dimension_semantics = [#tpu.dimension_semantics<parallel>, #tpu.dimension_semantics<parallel>, #tpu.dimension_semantics<arbitrary>], iteration_bounds = array<i64: 2, 1, 1>, scalar_prefetch = 0 : i64, scratch_operands = 1 : i64, tpu.core_type = #tpu.core_type<tc>, window_params = [{transform_indices = @transform_0, window_bounds = array<i64: 784, 288>}, {transform_indices = @transform_1, window_bounds = array<i64: 288, 64>}, {transform_indices = @transform_2, window_bounds = array<i64: 1, 64>}, {transform_indices = @transform_3, window_bounds = array<i64: 784, 64>}]} {
    %c0_i32 = arith.constant 0 : i32
    %0 = arith.cmpi eq, %arg2, %c0_i32 : i32
    %1 = arith.extui %0 : i1 to i32
    %c0_i32_0 = arith.constant 0 : i32
    %2 = arith.cmpi ne, %1, %c0_i32_0 : i32
    scf.if %2 {
      %cst_10 = arith.constant 0.000000e+00 : f32
      %12 = vector.broadcast %cst_10 : f32 to vector<784x64xf32>
      %c0_11 = arith.constant 0 : index
      %c0_12 = arith.constant 0 : index
      %13 = vector.load %arg7[%c0_11, %c0_12] : memref<784x64xf32, #tpu.memory_space<vmem>>, vector<784x64xf32>
      tpu.vector_store %arg7[%c0_11, %c0_12], %12 {strides = array<i32>} : memref<784x64xf32, #tpu.memory_space<vmem>>, vector<784x64xf32>,
    } else {
    }
    %c0 = arith.constant 0 : index
    %c0_1 = arith.constant 0 : index
    %3 = vector.load %arg7[%c0, %c0_1] : memref<784x64xf32, #tpu.memory_space<vmem>>, vector<784x64xf32>
    %c0_2 = arith.constant 0 : index
    %c0_3 = arith.constant 0 : index
    %4 = vector.load %arg3[%c0_2, %c0_3] : memref<784x288xbf16, #tpu.memory_space<vmem>>, vector<784x288xbf16>
    %c0_4 = arith.constant 0 : index
    %c0_5 = arith.constant 0 : index
    %5 = vector.load %arg4[%c0_4, %c0_5] : memref<288x64xbf16, #tpu.memory_space<vmem>>, vector<288x64xbf16>
    %cst = arith.constant dense<0.000000e+00> : vector<784x64xf32>
    %6 = tpu.matmul %4, %5, %cst {dimension_numbers = #tpu.dot_dimension_numbers<[1], [0], [0], [1], [0, 0, 1, 1], [], []>} : vector<784x288xbf16>, vector<288x64xbf16>, vector<784x64xf32> -> vector<784x64xf32>
    %7 = arith.addf %3, %6 : vector<784x64xf32>
    %c0_6 = arith.constant 0 : index
    %c0_7 = arith.constant 0 : index
    %8 = vector.load %arg7[%c0_6, %c0_7] : memref<784x64xf32, #tpu.memory_space<vmem>>, vector<784x64xf32>
    tpu.vector_store %arg7[%c0_6, %c0_7], %7 {strides = array<i32>} : memref<784x64xf32, #tpu.memory_space<vmem>>, vector<784x64xf32>,
    %c0_i32_8 = arith.constant 0 : i32
    %9 = arith.cmpi eq, %arg2, %c0_i32_8 : i32
    %10 = arith.extui %9 : i1 to i32
    %c0_i32_9 = arith.constant 0 : i32
    %11 = arith.cmpi ne, %10, %c0_i32_9 : i32
    scf.if %11 {
      %c0_10 = arith.constant 0 : index
      %c0_11 = arith.constant 0 : index
      %12 = vector.load %arg7[%c0_10, %c0_11] : memref<784x64xf32, #tpu.memory_space<vmem>>, vector<784x64xf32>
      %c0_12 = arith.constant 0 : index
      %c0_13 = arith.constant 0 : index
      %13 = vector.load %arg5[%c0_12, %c0_13] : memref<1x64xf32, #tpu.memory_space<vmem>>, vector<1x64xf32>
      %14 = vector.broadcast %13 : vector<1x64xf32> to vector<784x64xf32>
      %15 = arith.addf %12, %14 : vector<784x64xf32>
      %cst_14 = arith.constant 0.000000e+00 : f32
      %16 = vector.broadcast %cst_14 : f32 to vector<784x64xf32>
      %17 = arith.maximumf %15, %16 : vector<784x64xf32>
      %18 = arith.truncf %17 : vector<784x64xf32> to vector<784x64xbf16>
      %c0_15 = arith.constant 0 : index
      %c0_16 = arith.constant 0 : index
      %19 = vector.load %arg6[%c0_15, %c0_16] : memref<784x64xbf16, #tpu.memory_space<vmem>>, vector<784x64xbf16>
      tpu.vector_store %arg6[%c0_15, %c0_16], %18 {strides = array<i32>} : memref<784x64xbf16, #tpu.memory_space<vmem>>, vector<784x64xbf16>,
    } else {
    }
    return
  }
  func.func @transform_0(%arg0: i32, %arg1: i32, %arg2: i32) -> (i32, i32) {
    %c0_i32 = arith.constant 0 : i32
    return %arg0, %arg2 : i32, i32
  }
  func.func @transform_1(%arg0: i32, %arg1: i32, %arg2: i32) -> (i32, i32) {
    %c0_i32 = arith.constant 0 : i32
    return %arg2, %arg1 : i32, i32
  }
  func.func @transform_2(%arg0: i32, %arg1: i32, %arg2: i32) -> (i32, i32) {
    %c0_i32 = arith.constant 0 : i32
    %c0_i32_0 = arith.constant 0 : i32
    return %c0_i32, %arg1 : i32, i32
  }
  func.func @transform_3(%arg0: i32, %arg1: i32, %arg2: i32) -> (i32, i32) {
    %c0_i32 = arith.constant 0 : i32
    return %arg0, %arg1 : i32, i32
  }
}

module attributes {stable_mosaic.version = 11 : i64} {
  func.func @_maxpool_kernel(%arg0: i32, %arg1: memref<28x2x14x128xbf16, #tpu.memory_space<vmem>>, %arg2: memref<28x14x64xbf16, #tpu.memory_space<vmem>>) attributes {dimension_semantics = [#tpu.dimension_semantics<parallel>], iteration_bounds = array<i64: 1>, scalar_prefetch = 0 : i64, scratch_operands = 0 : i64, tpu.core_type = #tpu.core_type<tc>, window_params = [{transform_indices = @transform_0, window_bounds = array<i64: 28, 2, 14, 128>}, {transform_indices = @transform_1, window_bounds = array<i64: 28, 14, 64>}]} {
    %c0 = arith.constant 0 : index
    %c0_0 = arith.constant 0 : index
    %c0_1 = arith.constant 0 : index
    %c0_2 = arith.constant 0 : index
    %0 = vector.load %arg1[%c0, %c0_0, %c0_1, %c0_2] : memref<28x2x14x128xbf16, #tpu.memory_space<vmem>>, vector<28x2x14x128xbf16>
    %1 = vector.extract_strided_slice %0 {offsets = [0, 0, 0, 0], sizes = [28, 1, 14, 128], strides = [1, 1, 1, 1]} : vector<28x2x14x128xbf16> to vector<28x1x14x128xbf16>
    %2 = vector.shape_cast %1 : vector<28x1x14x128xbf16> to vector<28x14x128xbf16>
    %3 = vector.extract_strided_slice %0 {offsets = [0, 1, 0, 0], sizes = [28, 1, 14, 128], strides = [1, 1, 1, 1]} : vector<28x2x14x128xbf16> to vector<28x1x14x128xbf16>
    %4 = vector.shape_cast %3 : vector<28x1x14x128xbf16> to vector<28x14x128xbf16>
    %5 = arith.maximumf %2, %4 : vector<28x14x128xbf16>
    %6 = vector.extract_strided_slice %5 {offsets = [0, 0, 0], sizes = [28, 14, 64], strides = [1, 1, 1]} : vector<28x14x128xbf16> to vector<28x14x64xbf16>
    %7 = vector.extract_strided_slice %5 {offsets = [0, 0, 64], sizes = [28, 14, 64], strides = [1, 1, 1]} : vector<28x14x128xbf16> to vector<28x14x64xbf16>
    %8 = arith.maximumf %6, %7 : vector<28x14x64xbf16>
    %c0_3 = arith.constant 0 : index
    %c0_4 = arith.constant 0 : index
    %c0_5 = arith.constant 0 : index
    %9 = vector.load %arg2[%c0_3, %c0_4, %c0_5] : memref<28x14x64xbf16, #tpu.memory_space<vmem>>, vector<28x14x64xbf16>
    tpu.vector_store %arg2[%c0_3, %c0_4, %c0_5], %8 {strides = array<i32>} : memref<28x14x64xbf16, #tpu.memory_space<vmem>>, vector<28x14x64xbf16>,
    return
  }
  func.func @transform_0(%arg0: i32) -> (i32, i32, i32, i32) {
    %c0_i32 = arith.constant 0 : i32
    %c0_i32_0 = arith.constant 0 : i32
    %c0_i32_1 = arith.constant 0 : i32
    %c0_i32_2 = arith.constant 0 : i32
    return %arg0, %c0_i32, %c0_i32_0, %c0_i32_1 : i32, i32, i32, i32
  }
  func.func @transform_1(%arg0: i32) -> (i32, i32, i32) {
    %c0_i32 = arith.constant 0 : i32
    %c0_i32_0 = arith.constant 0 : i32
    %c0_i32_1 = arith.constant 0 : i32
    return %arg0, %c0_i32, %c0_i32_0 : i32, i32, i32
  }
}

module attributes {stable_mosaic.version = 11 : i64} {
  func.func @_matmul_bias_kernel(%arg0: i32, %arg1: i32, %arg2: i32, %arg3: memref<208x576xbf16, #tpu.memory_space<vmem>>, %arg4: memref<576x128xbf16, #tpu.memory_space<vmem>>, %arg5: memref<1x128xf32, #tpu.memory_space<vmem>>, %arg6: memref<208x128xbf16, #tpu.memory_space<vmem>>, %arg7: memref<208x128xf32, #tpu.memory_space<vmem>>) attributes {dimension_semantics = [#tpu.dimension_semantics<parallel>, #tpu.dimension_semantics<parallel>, #tpu.dimension_semantics<arbitrary>], iteration_bounds = array<i64: 2, 1, 1>, scalar_prefetch = 0 : i64, scratch_operands = 1 : i64, tpu.core_type = #tpu.core_type<tc>, window_params = [{transform_indices = @transform_0, window_bounds = array<i64: 208, 576>}, {transform_indices = @transform_1, window_bounds = array<i64: 576, 128>}, {transform_indices = @transform_2, window_bounds = array<i64: 1, 128>}, {transform_indices = @transform_3, window_bounds = array<i64: 208, 128>}]} {
    %c0_i32 = arith.constant 0 : i32
    %0 = arith.cmpi eq, %arg2, %c0_i32 : i32
    %1 = arith.extui %0 : i1 to i32
    %c0_i32_0 = arith.constant 0 : i32
    %2 = arith.cmpi ne, %1, %c0_i32_0 : i32
    scf.if %2 {
      %cst_10 = arith.constant 0.000000e+00 : f32
      %12 = vector.broadcast %cst_10 : f32 to vector<208x128xf32>
      %c0_11 = arith.constant 0 : index
      %c0_12 = arith.constant 0 : index
      %13 = vector.load %arg7[%c0_11, %c0_12] : memref<208x128xf32, #tpu.memory_space<vmem>>, vector<208x128xf32>
      tpu.vector_store %arg7[%c0_11, %c0_12], %12 {strides = array<i32>} : memref<208x128xf32, #tpu.memory_space<vmem>>, vector<208x128xf32>,
    } else {
    }
    %c0 = arith.constant 0 : index
    %c0_1 = arith.constant 0 : index
    %3 = vector.load %arg7[%c0, %c0_1] : memref<208x128xf32, #tpu.memory_space<vmem>>, vector<208x128xf32>
    %c0_2 = arith.constant 0 : index
    %c0_3 = arith.constant 0 : index
    %4 = vector.load %arg3[%c0_2, %c0_3] : memref<208x576xbf16, #tpu.memory_space<vmem>>, vector<208x576xbf16>
    %c0_4 = arith.constant 0 : index
    %c0_5 = arith.constant 0 : index
    %5 = vector.load %arg4[%c0_4, %c0_5] : memref<576x128xbf16, #tpu.memory_space<vmem>>, vector<576x128xbf16>
    %cst = arith.constant dense<0.000000e+00> : vector<208x128xf32>
    %6 = tpu.matmul %4, %5, %cst {dimension_numbers = #tpu.dot_dimension_numbers<[1], [0], [0], [1], [0, 0, 1, 1], [], []>} : vector<208x576xbf16>, vector<576x128xbf16>, vector<208x128xf32> -> vector<208x128xf32>
    %7 = arith.addf %3, %6 : vector<208x128xf32>
    %c0_6 = arith.constant 0 : index
    %c0_7 = arith.constant 0 : index
    %8 = vector.load %arg7[%c0_6, %c0_7] : memref<208x128xf32, #tpu.memory_space<vmem>>, vector<208x128xf32>
    tpu.vector_store %arg7[%c0_6, %c0_7], %7 {strides = array<i32>} : memref<208x128xf32, #tpu.memory_space<vmem>>, vector<208x128xf32>,
    %c0_i32_8 = arith.constant 0 : i32
    %9 = arith.cmpi eq, %arg2, %c0_i32_8 : i32
    %10 = arith.extui %9 : i1 to i32
    %c0_i32_9 = arith.constant 0 : i32
    %11 = arith.cmpi ne, %10, %c0_i32_9 : i32
    scf.if %11 {
      %c0_10 = arith.constant 0 : index
      %c0_11 = arith.constant 0 : index
      %12 = vector.load %arg7[%c0_10, %c0_11] : memref<208x128xf32, #tpu.memory_space<vmem>>, vector<208x128xf32>
      %c0_12 = arith.constant 0 : index
      %c0_13 = arith.constant 0 : index
      %13 = vector.load %arg5[%c0_12, %c0_13] : memref<1x128xf32, #tpu.memory_space<vmem>>, vector<1x128xf32>
      %14 = vector.broadcast %13 : vector<1x128xf32> to vector<208x128xf32>
      %15 = arith.addf %12, %14 : vector<208x128xf32>
      %cst_14 = arith.constant 0.000000e+00 : f32
      %16 = vector.broadcast %cst_14 : f32 to vector<208x128xf32>
      %17 = arith.maximumf %15, %16 : vector<208x128xf32>
      %18 = arith.truncf %17 : vector<208x128xf32> to vector<208x128xbf16>
      %c0_15 = arith.constant 0 : index
      %c0_16 = arith.constant 0 : index
      %19 = vector.load %arg6[%c0_15, %c0_16] : memref<208x128xbf16, #tpu.memory_space<vmem>>, vector<208x128xbf16>
      tpu.vector_store %arg6[%c0_15, %c0_16], %18 {strides = array<i32>} : memref<208x128xbf16, #tpu.memory_space<vmem>>, vector<208x128xbf16>,
    } else {
    }
    return
  }
  func.func @transform_0(%arg0: i32, %arg1: i32, %arg2: i32) -> (i32, i32) {
    %c0_i32 = arith.constant 0 : i32
    return %arg0, %arg2 : i32, i32
  }
  func.func @transform_1(%arg0: i32, %arg1: i32, %arg2: i32) -> (i32, i32) {
    %c0_i32 = arith.constant 0 : i32
    return %arg2, %arg1 : i32, i32
  }
  func.func @transform_2(%arg0: i32, %arg1: i32, %arg2: i32) -> (i32, i32) {
    %c0_i32 = arith.constant 0 : i32
    %c0_i32_0 = arith.constant 0 : i32
    return %c0_i32, %arg1 : i32, i32
  }
  func.func @transform_3(%arg0: i32, %arg1: i32, %arg2: i32) -> (i32, i32) {
    %c0_i32 = arith.constant 0 : i32
    return %arg0, %arg1 : i32, i32
  }
}

module attributes {stable_mosaic.version = 11 : i64} {
  func.func @_maxpool_kernel(%arg0: i32, %arg1: memref<14x2x7x256xbf16, #tpu.memory_space<vmem>>, %arg2: memref<14x7x128xbf16, #tpu.memory_space<vmem>>) attributes {dimension_semantics = [#tpu.dimension_semantics<parallel>], iteration_bounds = array<i64: 1>, scalar_prefetch = 0 : i64, scratch_operands = 0 : i64, tpu.core_type = #tpu.core_type<tc>, window_params = [{transform_indices = @transform_0, window_bounds = array<i64: 14, 2, 7, 256>}, {transform_indices = @transform_1, window_bounds = array<i64: 14, 7, 128>}]} {
    %c0 = arith.constant 0 : index
    %c0_0 = arith.constant 0 : index
    %c0_1 = arith.constant 0 : index
    %c0_2 = arith.constant 0 : index
    %0 = vector.load %arg1[%c0, %c0_0, %c0_1, %c0_2] : memref<14x2x7x256xbf16, #tpu.memory_space<vmem>>, vector<14x2x7x256xbf16>
    %1 = vector.extract_strided_slice %0 {offsets = [0, 0, 0, 0], sizes = [14, 1, 7, 256], strides = [1, 1, 1, 1]} : vector<14x2x7x256xbf16> to vector<14x1x7x256xbf16>
    %2 = vector.shape_cast %1 : vector<14x1x7x256xbf16> to vector<14x7x256xbf16>
    %3 = vector.extract_strided_slice %0 {offsets = [0, 1, 0, 0], sizes = [14, 1, 7, 256], strides = [1, 1, 1, 1]} : vector<14x2x7x256xbf16> to vector<14x1x7x256xbf16>
    %4 = vector.shape_cast %3 : vector<14x1x7x256xbf16> to vector<14x7x256xbf16>
    %5 = arith.maximumf %2, %4 : vector<14x7x256xbf16>
    %6 = vector.extract_strided_slice %5 {offsets = [0, 0, 0], sizes = [14, 7, 128], strides = [1, 1, 1]} : vector<14x7x256xbf16> to vector<14x7x128xbf16>
    %7 = vector.extract_strided_slice %5 {offsets = [0, 0, 128], sizes = [14, 7, 128], strides = [1, 1, 1]} : vector<14x7x256xbf16> to vector<14x7x128xbf16>
    %8 = arith.maximumf %6, %7 : vector<14x7x128xbf16>
    %c0_3 = arith.constant 0 : index
    %c0_4 = arith.constant 0 : index
    %c0_5 = arith.constant 0 : index
    %9 = vector.load %arg2[%c0_3, %c0_4, %c0_5] : memref<14x7x128xbf16, #tpu.memory_space<vmem>>, vector<14x7x128xbf16>
    tpu.vector_store %arg2[%c0_3, %c0_4, %c0_5], %8 {strides = array<i32>} : memref<14x7x128xbf16, #tpu.memory_space<vmem>>, vector<14x7x128xbf16>,
    return
  }
  func.func @transform_0(%arg0: i32) -> (i32, i32, i32, i32) {
    %c0_i32 = arith.constant 0 : i32
    %c0_i32_0 = arith.constant 0 : i32
    %c0_i32_1 = arith.constant 0 : i32
    %c0_i32_2 = arith.constant 0 : i32
    return %arg0, %c0_i32, %c0_i32_0, %c0_i32_1 : i32, i32, i32, i32
  }
  func.func @transform_1(%arg0: i32) -> (i32, i32, i32) {
    %c0_i32 = arith.constant 0 : i32
    %c0_i32_0 = arith.constant 0 : i32
    %c0_i32_1 = arith.constant 0 : i32
    return %arg0, %c0_i32, %c0_i32_0 : i32, i32, i32
  }
}

module attributes {stable_mosaic.version = 11 : i64} {
  func.func @_fc_head_kernel(%arg0: i32, %arg1: i32, %arg2: memref<16x3200xbf16, #tpu.memory_space<vmem>>, %arg3: memref<3200x512xbf16, #tpu.memory_space<vmem>>, %arg4: memref<1x512xf32, #tpu.memory_space<vmem>>, %arg5: memref<512x10xbf16, #tpu.memory_space<vmem>>, %arg6: memref<1x10xf32, #tpu.memory_space<vmem>>, %arg7: memref<16x10xf32, #tpu.memory_space<vmem>>, %arg8: memref<16x512xf32, #tpu.memory_space<vmem>>) attributes {dimension_semantics = [#tpu.dimension_semantics<parallel>, #tpu.dimension_semantics<arbitrary>], iteration_bounds = array<i64: 1, 2>, scalar_prefetch = 0 : i64, scratch_operands = 1 : i64, tpu.core_type = #tpu.core_type<tc>, window_params = [{transform_indices = @transform_0, window_bounds = array<i64: 16, 3200>}, {transform_indices = @transform_1, window_bounds = array<i64: 3200, 512>}, {pipeline_mode = #tpu.pipeline_mode<synchronous>, transform_indices = @transform_2, window_bounds = array<i64: 1, 512>}, {pipeline_mode = #tpu.pipeline_mode<synchronous>, transform_indices = @transform_3, window_bounds = array<i64: 512, 10>}, {pipeline_mode = #tpu.pipeline_mode<synchronous>, transform_indices = @transform_4, window_bounds = array<i64: 1, 10>}, {transform_indices = @transform_5, window_bounds = array<i64: 16, 10>}]} {
    %c0_i32 = arith.constant 0 : i32
    %0 = arith.cmpi eq, %arg1, %c0_i32 : i32
    %1 = arith.extui %0 : i1 to i32
    %c0_i32_0 = arith.constant 0 : i32
    %2 = arith.cmpi ne, %1, %c0_i32_0 : i32
    scf.if %2 {
      %cst_9 = arith.constant 0.000000e+00 : f32
      %12 = vector.broadcast %cst_9 : f32 to vector<16x512xf32>
      %c0_10 = arith.constant 0 : index
      %c0_11 = arith.constant 0 : index
      %13 = vector.load %arg8[%c0_10, %c0_11] : memref<16x512xf32, #tpu.memory_space<vmem>>, vector<16x512xf32>
      tpu.vector_store %arg8[%c0_10, %c0_11], %12 {strides = array<i32>} : memref<16x512xf32, #tpu.memory_space<vmem>>, vector<16x512xf32>,
    } else {
    }
    %c0 = arith.constant 0 : index
    %c0_1 = arith.constant 0 : index
    %3 = vector.load %arg8[%c0, %c0_1] : memref<16x512xf32, #tpu.memory_space<vmem>>, vector<16x512xf32>
    %c0_2 = arith.constant 0 : index
    %c0_3 = arith.constant 0 : index
    %4 = vector.load %arg2[%c0_2, %c0_3] : memref<16x3200xbf16, #tpu.memory_space<vmem>>, vector<16x3200xbf16>
    %c0_4 = arith.constant 0 : index
    %c0_5 = arith.constant 0 : index
    %5 = vector.load %arg3[%c0_4, %c0_5] : memref<3200x512xbf16, #tpu.memory_space<vmem>>, vector<3200x512xbf16>
    %cst = arith.constant dense<0.000000e+00> : vector<16x512xf32>
    %6 = tpu.matmul %4, %5, %cst {dimension_numbers = #tpu.dot_dimension_numbers<[1], [0], [0], [1], [0, 0, 1, 1], [], []>} : vector<16x3200xbf16>, vector<3200x512xbf16>, vector<16x512xf32> -> vector<16x512xf32>
    %7 = arith.addf %3, %6 : vector<16x512xf32>
    %c0_6 = arith.constant 0 : index
    %c0_7 = arith.constant 0 : index
    %8 = vector.load %arg8[%c0_6, %c0_7] : memref<16x512xf32, #tpu.memory_space<vmem>>, vector<16x512xf32>
    tpu.vector_store %arg8[%c0_6, %c0_7], %7 {strides = array<i32>} : memref<16x512xf32, #tpu.memory_space<vmem>>, vector<16x512xf32>,
    %c1_i32 = arith.constant 1 : i32
    %9 = arith.cmpi eq, %arg1, %c1_i32 : i32
    %10 = arith.extui %9 : i1 to i32
    %c0_i32_8 = arith.constant 0 : i32
    %11 = arith.cmpi ne, %10, %c0_i32_8 : i32
    scf.if %11 {
      %c0_9 = arith.constant 0 : index
      %c0_10 = arith.constant 0 : index
      %12 = vector.load %arg8[%c0_9, %c0_10] : memref<16x512xf32, #tpu.memory_space<vmem>>, vector<16x512xf32>
      %c0_11 = arith.constant 0 : index
      %c0_12 = arith.constant 0 : index
      %13 = vector.load %arg4[%c0_11, %c0_12] : memref<1x512xf32, #tpu.memory_space<vmem>>, vector<1x512xf32>
      %14 = vector.broadcast %13 : vector<1x512xf32> to vector<16x512xf32>
      %15 = arith.addf %12, %14 : vector<16x512xf32>
      %cst_13 = arith.constant 0.000000e+00 : f32
      %16 = vector.broadcast %cst_13 : f32 to vector<16x512xf32>
      %17 = arith.maximumf %15, %16 : vector<16x512xf32>
      %18 = arith.truncf %17 : vector<16x512xf32> to vector<16x512xbf16>
      %c0_14 = arith.constant 0 : index
      %c0_15 = arith.constant 0 : index
      %19 = vector.load %arg5[%c0_14, %c0_15] : memref<512x10xbf16, #tpu.memory_space<vmem>>, vector<512x10xbf16>
      %cst_16 = arith.constant dense<0.000000e+00> : vector<16x10xf32>
      %20 = tpu.matmul %18, %19, %cst_16 {dimension_numbers = #tpu.dot_dimension_numbers<[1], [0], [0], [1], [0, 0, 1, 1], [], []>} : vector<16x512xbf16>, vector<512x10xbf16>, vector<16x10xf32> -> vector<16x10xf32>
      %c0_17 = arith.constant 0 : index
      %c0_18 = arith.constant 0 : index
      %21 = vector.load %arg6[%c0_17, %c0_18] : memref<1x10xf32, #tpu.memory_space<vmem>>, vector<1x10xf32>
      %22 = vector.broadcast %21 : vector<1x10xf32> to vector<16x10xf32>
      %23 = arith.addf %20, %22 : vector<16x10xf32>
      %c0_19 = arith.constant 0 : index
      %c0_20 = arith.constant 0 : index
      %24 = vector.load %arg7[%c0_19, %c0_20] : memref<16x10xf32, #tpu.memory_space<vmem>>, vector<16x10xf32>
      tpu.vector_store %arg7[%c0_19, %c0_20], %23 {strides = array<i32>} : memref<16x10xf32, #tpu.memory_space<vmem>>, vector<16x10xf32>,
    } else {
    }
    return
  }
  func.func @transform_0(%arg0: i32, %arg1: i32) -> (i32, i32) {
    %c0_i32 = arith.constant 0 : i32
    return %arg0, %arg1 : i32, i32
  }
  func.func @transform_1(%arg0: i32, %arg1: i32) -> (i32, i32) {
    %c0_i32 = arith.constant 0 : i32
    %c0_i32_0 = arith.constant 0 : i32
    return %arg1, %c0_i32 : i32, i32
  }
  func.func @transform_2(%arg0: i32, %arg1: i32) -> (i32, i32) {
    %c0_i32 = arith.constant 0 : i32
    %c0_i32_0 = arith.constant 0 : i32
    %c0_i32_1 = arith.constant 0 : i32
    return %c0_i32, %c0_i32_0 : i32, i32
  }
  func.func @transform_3(%arg0: i32, %arg1: i32) -> (i32, i32) {
    %c0_i32 = arith.constant 0 : i32
    %c0_i32_0 = arith.constant 0 : i32
    %c0_i32_1 = arith.constant 0 : i32
    return %c0_i32, %c0_i32_0 : i32, i32
  }
  func.func @transform_4(%arg0: i32, %arg1: i32) -> (i32, i32) {
    %c0_i32 = arith.constant 0 : i32
    %c0_i32_0 = arith.constant 0 : i32
    %c0_i32_1 = arith.constant 0 : i32
    return %c0_i32, %c0_i32_0 : i32, i32
  }
  func.func @transform_5(%arg0: i32, %arg1: i32) -> (i32, i32) {
    %c0_i32 = arith.constant 0 : i32
    %c0_i32_0 = arith.constant 0 : i32
    return %arg0, %c0_i32 : i32, i32
  }
}

</mosaic_0001>

<bundles_post_ra>
// kernel: cnn_forward.6
= control target key start
LH: loop header
LB: loop body
LE: loop exit
PB: predicated region body
PF: predicated region fallthrough
CT: control target
= control target key end

     0   :  { %8 = vsyncpa [#allocation4], 0  ;;  %s4181_s0 = inlined_call_operand.vmem [shape: bf16[1568,9], index: 0, kind: input, shape index: {}]   ;;  %s4182_s1 = inlined_call_operand.hbm [shape: bf16[9,32], index: 1, kind: input, shape index: {}]   ;;  %s4183_s2 = inlined_call_operand.hbm [shape: f32[1,32], index: 2, kind: input, shape index: {}]   ;;  %s4184_s3 = inlined_call_operand.vmem [shape: bf16[1568,32], index: 3, kind: output, shape index: {}]  }
   0x1   :  { %9 = vsyncpa [#allocation6], 0  ;;  %s3267_s12 = smov 0   ;;  %s3269_s13 = smov 0  }
   0x2   :  { %s3271_s14 = smov 0  }
   0x3 LB: > { %s2492_s15 = sadd.s32 4294967295, %s3238_s14   ;;  %s34_s16 = sadd.s32 1, %s3234_s13  ;;  %s3238_s14 = sphi %s3271_s14, %s15_s14   ;;  %s3234_s13 = sphi %s3269_s13, %s4194_s13   ;;  %s3230_s12 = sphi %s3267_s12, %s4193_s12  }
   0x4   : > { %p36_p0 = scmp.ge.s32.totalorder %s34_s16, 2  ;;  %p2494_p1 = scmp.ge.s32.totalorder %s3238_s14, 1 }
   0x5   : > { %p149_p2 = scmp.lt.s32.totalorder %s3238_s14, 3  ;;  %p3292_p4 = scmp.eq.s32.totalorder %s2492_s15, 0 }
   0x6   : > { %s4196_s16 = smov (%p36_p0, %s34_s16), 0  ;;  %s3240_s19 = smov [#allocation3]  }
   0x7   : > { %p3288_p3 = pnand %p2494_p1, %p149_p2  ;;  %s165_s20 = sshll.u32 %s3240_s19, 4  ;;  %s166_s20 = int_to_ptr.vmem [resolvable:$true] %s165_s20 }
   0x8   : > { %s4189_s18 = scalar_select %p3292_p4, 1, 0 }
   0x9   : > { %s4188_s17 = scalar_select %p3288_p3, 1, 0 }
   0xa   : > { %p3059_p5 = pneg %p3288_p3  ;;  %s3241_s22 = smov [#allocation5]  }
   0xb   : > { %s181_s23 = sshll.u32 %s3241_s22, 4  ;;  %s3152_s26 = scalar_lea.hbm %s4182_s1, 128  ;;  %s3304_s23 = int_to_ptr.vmem [resolvable:$true] %s181_s23 }
   0xc   : > { %p3300_p6 = pnand %p3292_p4, %p3059_p5  ;;  %p3153_p7 = scmp.ne.s32.totalorder %s4182_s1, %s3152_s26 }
   0xd   : > { %p3159_p11 = scmp.lt.u32.totalorder %s3152_s26, %s4182_s1 }
   0xe   : > { %p3154_p8 = pneg %p3300_p6 }
  0x10   : > { %p3155_p9 = pnand %p3154_p8, %p3153_p7 }
  0x12   : > { %p3156_p10 = pneg %p3155_p9 }
  0x14   : > { %p3161_p12 = pnand %p3159_p11, %p3156_p10 }
  0x16   : > { %3164 = shalt.err (!%p3161_p12)
}
  0x17   : > { %s3165_s4 = scalar_lea.vmem %s166_s20, 128  ;;  %p3173_p2 = scmp.lt.s32.totalorder %s166_s20, %s166_s20 }
  0x18   : > { %p3166_p13 = scmp.ne.s32.totalorder %s166_s20, %s3165_s4  ;;  %p3174_p5 = scmp.lt.s32.totalorder %s3165_s4, %s3165_s4 }
  0x1a   : > { %p3168_p0 = pnand %p3166_p13, %p3154_p8  ;;  %p3175_p4 = por %p3174_p5, %p3173_p2 }
  0x1c   : > { %p3169_p1 = pneg %p3168_p0 }
  0x1e   : > { %p3176_p3 = pnand %p3175_p4, %p3169_p1 }
  0x20   : > { %3179 = shalt.err (!%p3176_p3)
}
  0x21   : > { %s3242_s5 = smov 64   ;;  %s3243_s6 = smov 4  }
  0x22   : > { %3062 = dma.hbm_to_vmem [thread:$0]  (!%p3300_p6), %s4182_s1, 128, %s166_s20, [#allocation4], %s3242_s5, %s3242_s5, %s3243_s6  }
  0x23   : > { %s3180_s11 = scalar_lea.hbm %s4183_s2, 16 }
  0x24   : > { %p3181_p7 = scmp.ne.s32.totalorder %s4183_s2, %s3180_s11  ;;  %p3187_p9 = scmp.lt.u32.totalorder %s3180_s11, %s4183_s2 }
  0x26   : > { %p3183_p3 = pnand %p3181_p7, %p3154_p8 }
  0x28   : > { %p3184_p4 = pneg %p3183_p3 }
  0x2a   : > { %p3189_p10 = pnand %p3187_p9, %p3184_p4 }
  0x2c   : > { %3192 = shalt.err (!%p3189_p10)
}
  0x2d   : > { %s3193_s20 = scalar_lea.vmem %s3304_s23, 16  ;;  %s3200_s25 = scalar_lea.vmem %s3304_s23, 32 }
  0x2e   : > { %p3194_p11 = scmp.ne.s32.totalorder %s3304_s23, %s3193_s20  ;;  %p3201_p0 = scmp.lt.s32.totalorder %s3304_s23, %s3304_s23 }
  0x2f   : > { %p3202_p1 = scmp.lt.s32.totalorder %s3200_s25, %s3193_s20 }
  0x30   : > { %p3196_p12 = pnand %p3194_p11, %p3154_p8 }
  0x31   : > { %p3203_p2 = por %p3202_p1, %p3201_p0 }
  0x32   : > { %p3197_p13 = pneg %p3196_p12 }
  0x34   : > { %p3204_p5 = pnand %p3203_p2, %p3197_p13 }
  0x36   : > { %3207 = shalt.err (!%p3204_p5)
}
  0x37   : > { %3065 = dma.hbm_to_vmem [thread:$0]  (!%p3300_p6), %s4183_s2, 16, %s3304_s23, [#allocation6]  }
  0x38   : > { %p4191_p7 = scmp.ne.s32.totalorder %s4188_s17, 0 }
  0x39   : > { %p4192_p8 = scmp.ne.s32.totalorder (!%p4191_p7), %s4189_s18, 0 }
  0x3a   : > { %206 = sbr.rel (%p4191_p7) target bundleno = 500 (0x1f4), region = 32 }
  0x41   : > { %3221 = dma.done.wait (%p4192_p8), [#allocation4], 128  }
  0x42   : > { %3223 = vsyncadd (%p4192_p8), [#allocation4], 4294967168 }
  0x43   : > { %3225 = dma.done.wait (%p4192_p8), [#allocation6], 16  }
  0x44   : > { %3227 = vsyncadd (%p4192_p8), [#allocation6], 4294967280  ;;  %vm959_vm0 = vcmask 1043456   ;;  %v3244_v0 = vmov 0.0   ;;  %s240_s21 = smul.u32 98, %s3230_s12  ;;  %vm3245_vm1 = vmmov 0  }
  0x45   : > { %2851 = vmatprep.subr.bf16.mxu0 %v3244_v0  ;;  %3049 = vmatprep.subr.bf16.mxu1 %v3244_v0  ;;  %vm960_vm2 = vcmask 1044480   ;;  %v3246_v1 = vmov 65535   ;;  %v3101_v4 = vld [vmem:[#allocation3] sm:$0x1f]   ;;  %vm811_vm3 = vcmask 72704   ;;  %vm264_vm4 = vcmask 261120  }
  0x46   : > { %2853 = vmatprep.mubr.msk.bf16.mxu0 %vm3245_vm1, %v3244_v0  ;;  %2953 = vmatprep.mubr.msk.bf16.mxu1 %vm3245_vm1, %v3244_v0  ;;  %v961_v2 = vsel %vm959_vm0, 4294967295, %v3246_v1  ;;  %p241_p6 = scmp.lt.s32.totalorder %s240_s21, 195  ;;  %265 = vst.msk [vmem:[#allocation2] sm:$0xff] %vm264_vm4, %v3244_v0  ;;  %266 = vst.msk [vmem:[#allocation2 + $0x8] sm:$0xff] %vm264_vm4, %v3244_v0  ;;  %vm2284_vm5 = vcmask 257024  }
  0x47   : > { %v962_v3 = vsel %vm960_vm2, %v961_v2, 0  ;;  %267 = vst.msk [vmem:[#allocation2 + $0x10] sm:$0xff] %vm264_vm4, %v3244_v0  ;;  %268 = vst.msk [vmem:[#allocation2 + $0x18] sm:$0xff] %vm264_vm4, %v3244_v0 }
  0x48   : > { %s4198_s21 = smov (!%p241_p6, %s240_s21), 195  ;;  %v964_v5 = vand.u32 %v3101_v4, %v962_v3  ;;  %269 = vst.msk [vmem:[#allocation2 + $0x20] sm:$0xff] %vm264_vm4, %v3244_v0  ;;  %270 = vst.msk [vmem:[#allocation2 + $0x28] sm:$0xff] %vm264_vm4, %v3244_v0 }
  0x49   : > { %s2501_s12 = sshll.u32 %s4198_s21, 2  ;;  %271 = vst.msk [vmem:[#allocation2 + $0x30] sm:$0xff] %vm264_vm4, %v3244_v0  ;;  %272 = vst.msk [vmem:[#allocation2 + $0x38] sm:$0xff] %vm264_vm4, %v3244_v0 }
  0x4a   : > { %s3379_s23 = scalar_lea.vmem %s4181_s0, %s2501_s12  ;;  %2852 = vmatpush3.bf16.msra.mxu0 %v964_v5  ;;  %3050 = vmatpush3.bf16.msra.mxu1 %v964_v5  ;;  %273 = vst.msk [vmem:[#allocation2 + $0x40] sm:$0xff] %vm264_vm4, %v3244_v0  ;;  %274 = vst.msk [vmem:[#allocation2 + $0x48] sm:$0xff] %vm264_vm4, %v3244_v0  ;;  %s3788_s30 = scalar_lea.vmem %s4184_s3, %s2501_s12 }
  0x4b   : > { %v3102_v6 = vld [vmem:[%s3379_s23] sm:$0xff]   ;;  %v3103_v7 = vld [vmem:[%s3379_s23 + $0xc8] sm:$0xff]   ;;  %v3105_v9 = vld [vmem:[%s3379_s23 + $0xd0] sm:$0xff]   ;;  %275 = vst.msk [vmem:[#allocation2 + $0x50] sm:$0xff] %vm264_vm4, %v3244_v0 }
  0x4c   : > { %v3104_v8 = vld [vmem:[%s3379_s23 + $0x8] sm:$0xff]   ;;  %v3106_v10 = vld [vmem:[%s3379_s23 + $0x10] sm:$0xff]   ;;  %v3107_v11 = vld [vmem:[%s3379_s23 + $0xd8] sm:$0xff]   ;;  %276 = vst.msk [vmem:[#allocation2 + $0x58] sm:$0xff] %vm264_vm4, %v3244_v0 }
  0x4d   : > { %2854 = vmatmul.mubr.msk.bf16.vlgmr.msra.gmra.mrb[0].mxu0 %vm811_vm3, %v3102_v6  ;;  %2954 = vmatmul.mubr.msk.bf16.vlgmr.msra.gmra.mrb[0].mxu1 %vm811_vm3, %v3103_v7  ;;  %v3108_v12 = vld [vmem:[%s3379_s23 + $0x18] sm:$0xff]   ;;  %v3109_v13 = vld [vmem:[%s3379_s23 + $0xe0] sm:$0xff]   ;;  %v3111_v15 = vld [vmem:[%s3379_s23 + $0xe8] sm:$0xff]   ;;  %277 = vst.msk [vmem:[#allocation2 + $0x60] sm:$0xff] %vm264_vm4, %v3244_v0 }
  0x4e   : > { %2857 = vmatprep.mubr.msk.bf16.mxu0 %vm3245_vm1, %v3244_v0  ;;  %2957 = vmatprep.mubr.msk.bf16.mxu1 %vm3245_vm1, %v3244_v0  ;;  %v3110_v14 = vld [vmem:[%s3379_s23 + $0x20] sm:$0xff]   ;;  %v3112_v16 = vld [vmem:[%s3379_s23 + $0x28] sm:$0xff]   ;;  %v3113_v17 = vld [vmem:[%s3379_s23 + $0xf0] sm:$0xff]   ;;  %278 = vst.msk [vmem:[#allocation2 + $0x68] sm:$0xff] %vm264_vm4, %v3244_v0 }
  0x4f   : > { %v3114_v18 = vld [vmem:[%s3379_s23 + $0x30] sm:$0xff]   ;;  %v3115_v19 = vld [vmem:[%s3379_s23 + $0xf8] sm:$0xff]   ;;  %v3117_v21 = vld [vmem:[%s3379_s23 + $0x100] sm:$0xff]   ;;  %279 = vst.msk [vmem:[#allocation2 + $0x70] sm:$0xff] %vm264_vm4, %v3244_v0 }
  0x50   : > { %v3116_v20 = vld [vmem:[%s3379_s23 + $0x38] sm:$0xff]   ;;  %v3118_v22 = vld [vmem:[%s3379_s23 + $0x40] sm:$0xff]   ;;  %v3119_v23 = vld [vmem:[%s3379_s23 + $0x108] sm:$0xff]   ;;  %280 = vst.msk [vmem:[#allocation2 + $0x78] sm:$0xff] %vm264_vm4, %v3244_v0 }
  0x51   : > { %281 = vst.msk [vmem:[#allocation2 + $0x80] sm:$0xff] %vm264_vm4, %v3244_v0  ;;  %282 = vst.msk [vmem:[#allocation2 + $0x88] sm:$0xff] %vm264_vm4, %v3244_v0  ;;  %v3120_v24 = vld [vmem:[%s3379_s23 + $0x48] sm:$0xff]   ;;  %v3121_v25 = vld [vmem:[%s3379_s23 + $0x110] sm:$0xff]  }
  0x52   : > { %283 = vst.msk [vmem:[#allocation2 + $0x90] sm:$0xff] %vm264_vm4, %v3244_v0  ;;  %284 = vst.msk [vmem:[#allocation2 + $0x98] sm:$0xff] %vm264_vm4, %v3244_v0  ;;  %v3122_v26 = vld [vmem:[%s3379_s23 + $0x50] sm:$0xff]   ;;  %v3123_v27 = vld [vmem:[%s3379_s23 + $0x118] sm:$0xff]  }
  0x53   : > { %285 = vst.msk [vmem:[#allocation2 + $0xa0] sm:$0xff] %vm264_vm4, %v3244_v0  ;;  %286 = vst.msk [vmem:[#allocation2 + $0xa8] sm:$0xff] %vm264_vm4, %v3244_v0  ;;  %v3124_v28 = vld [vmem:[%s3379_s23 + $0x58] sm:$0xff]   ;;  %v3125_v29 = vld [vmem:[%s3379_s23 + $0x120] sm:$0xff]  }
  0x54   : > { %287 = vst.msk [vmem:[#allocation2 + $0xb0] sm:$0xff] %vm264_vm4, %v3244_v0  ;;  %288 = vst.msk [vmem:[#allocation2 + $0xb8] sm:$0xff] %vm264_vm4, %v3244_v0  ;;  %v3126_v30 = vld [vmem:[%s3379_s23 + $0x60] sm:$0xff]   ;;  %v3127_v31 = vld [vmem:[%s3379_s23 + $0x128] sm:$0xff]  }
  0x55   : > { %2858 = vmatmul.mubr.msk.bf16.gmra.mrb[4].mxu0 %vm811_vm3, %v3104_v8  ;;  %2958 = vmatmul.mubr.msk.bf16.gmra.mrb[4].mxu1 %vm811_vm3, %v3105_v9  ;;  %289 = vst.msk [vmem:[#allocation2 + $0xc0] sm:$0xff] %vm264_vm4, %v3244_v0  ;;  %290 = vst.msk [vmem:[#allocation2 + $0xc8] sm:$0xff] %vm264_vm4, %v3244_v0  ;;  %v3128_v32 = vld [vmem:[%s3379_s23 + $0x68] sm:$0xff]   ;;  %v3129_v33 = vld [vmem:[%s3379_s23 + $0x130] sm:$0xff]  }
  0x56   : > { %2861 = vmatprep.mubr.msk.bf16.mxu0 %vm3245_vm1, %v3244_v0  ;;  %2961 = vmatprep.mubr.msk.bf16.mxu1 %vm3245_vm1, %v3244_v0  ;;  %291 = vst.msk [vmem:[#allocation2 + $0xd0] sm:$0xff] %vm264_vm4, %v3244_v0  ;;  %292 = vst.msk [vmem:[#allocation2 + $0xd8] sm:$0xff] %vm264_vm4, %v3244_v0  ;;  %v3130_v34 = vld [vmem:[%s3379_s23 + $0x70] sm:$0xff]   ;;  %v3131_v35 = vld [vmem:[%s3379_s23 + $0x138] sm:$0xff]  }
  0x57   : > { %293 = vst.msk [vmem:[#allocation2 + $0xe0] sm:$0xff] %vm264_vm4, %v3244_v0  ;;  %294 = vst.msk [vmem:[#allocation2 + $0xe8] sm:$0xff] %vm264_vm4, %v3244_v0  ;;  %v3132_v36 = vld [vmem:[%s3379_s23 + $0x78] sm:$0xff]   ;;  %v3133_v37 = vld [vmem:[%s3379_s23 + $0x140] sm:$0xff]  }
  0x58   : > { %295 = vst.msk [vmem:[#allocation2 + $0xf0] sm:$0xff] %vm264_vm4, %v3244_v0  ;;  %296 = vst.msk [vmem:[#allocation2 + $0xf8] sm:$0xff] %vm264_vm4, %v3244_v0  ;;  %v3134_v38 = vld [vmem:[%s3379_s23 + $0x80] sm:$0xff]   ;;  %v3135_v39 = vld [vmem:[%s3379_s23 + $0x148] sm:$0xff]  }
  0x59   : > { %297 = vst.msk [vmem:[#allocation2 + $0x100] sm:$0xff] %vm264_vm4, %v3244_v0  ;;  %298 = vst.msk [vmem:[#allocation2 + $0x108] sm:$0xff] %vm264_vm4, %v3244_v0  ;;  %v3136_v40 = vld [vmem:[%s3379_s23 + $0x88] sm:$0xff]   ;;  %v3137_v41 = vld [vmem:[%s3379_s23 + $0x150] sm:$0xff]  }
  0x5a   : > { %299 = vst.msk [vmem:[#allocation2 + $0x110] sm:$0xff] %vm264_vm4, %v3244_v0  ;;  %300 = vst.msk [vmem:[#allocation2 + $0x118] sm:$0xff] %vm264_vm4, %v3244_v0  ;;  %v3138_v42 = vld [vmem:[%s3379_s23 + $0x90] sm:$0xff]   ;;  %v3139_v43 = vld [vmem:[%s3379_s23 + $0x158] sm:$0xff]  }
  0x5b   : > { %301 = vst.msk [vmem:[#allocation2 + $0x120] sm:$0xff] %vm264_vm4, %v3244_v0  ;;  %302 = vst.msk [vmem:[#allocation2 + $0x128] sm:$0xff] %vm264_vm4, %v3244_v0  ;;  %v3140_v44 = vld [vmem:[%s3379_s23 + $0x98] sm:$0xff]   ;;  %v3141_v45 = vld [vmem:[%s3379_s23 + $0x160] sm:$0xff]  }
  0x5c   : > { %303 = vst.msk [vmem:[#allocation2 + $0x130] sm:$0xff] %vm264_vm4, %v3244_v0  ;;  %304 = vst.msk [vmem:[#allocation2 + $0x138] sm:$0xff] %vm264_vm4, %v3244_v0  ;;  %v3142_v46 = vld [vmem:[%s3379_s23 + $0xa0] sm:$0xff]   ;;  %v3143_v47 = vld [vmem:[%s3379_s23 + $0x168] sm:$0xff]  }
  0x5d   : > { %2862 = vmatmul.mubr.msk.bf16.gmra.mrb[8].mxu0 %vm811_vm3, %v3106_v10  ;;  %2962 = vmatmul.mubr.msk.bf16.gmra.mrb[8].mxu1 %vm811_vm3, %v3107_v11  ;;  %305 = vst.msk [vmem:[#allocation2 + $0x140] sm:$0xff] %vm264_vm4, %v3244_v0  ;;  %306 = vst.msk [vmem:[#allocation2 + $0x148] sm:$0xff] %vm264_vm4, %v3244_v0  ;;  %v3144_v48 = vld [vmem:[%s3379_s23 + $0xa8] sm:$0xff]   ;;  %v3145_v49 = vld [vmem:[%s3379_s23 + $0x170] sm:$0xff]  }
  0x5e   : > { %2865 = vmatprep.mubr.msk.bf16.mxu0 %vm3245_vm1, %v3244_v0  ;;  %2965 = vmatprep.mubr.msk.bf16.mxu1 %vm3245_vm1, %v3244_v0  ;;  %307 = vst.msk [vmem:[#allocation2 + $0x150] sm:$0xff] %vm264_vm4, %v3244_v0  ;;  %308 = vst.msk [vmem:[#allocation2 + $0x158] sm:$0xff] %vm264_vm4, %v3244_v0  ;;  %v3146_v50 = vld [vmem:[%s3379_s23 + $0xb0] sm:$0xff]   ;;  %v3147_v51 = vld [vmem:[%s3379_s23 + $0x178] sm:$0xff]  }
  0x5f   : > { %309 = vst.msk [vmem:[#allocation2 + $0x160] sm:$0xff] %vm264_vm4, %v3244_v0  ;;  %310 = vst.msk [vmem:[#allocation2 + $0x168] sm:$0xff] %vm264_vm4, %v3244_v0  ;;  %v3148_v52 = vld [vmem:[%s3379_s23 + $0xb8] sm:$0xff]   ;;  %v3149_v53 = vld [vmem:[%s3379_s23 + $0x180] sm:$0xff]  }
  0x60   : > { %311 = vst.msk [vmem:[#allocation2 + $0x170] sm:$0xff] %vm264_vm4, %v3244_v0  ;;  %312 = vst.msk [vmem:[#allocation2 + $0x178] sm:$0xff] %vm264_vm4, %v3244_v0  ;;  %v3150_v54 = vld [vmem:[%s3379_s23 + $0xc0] sm:$0xff]   ;;  %v364_v58 = vld [vmem:[#allocation2 + $0x8] sm:$0xff] }
  0x61   : > { %313 = vst.msk [vmem:[#allocation2 + $0x180] sm:$0xff] %vm264_vm4, %v3244_v0  ;;  %314 = vst.msk [vmem:[#allocation2 + $0x188] sm:$0xff] %vm264_vm4, %v3244_v0  ;;  %v363_v55 = vld [vmem:[#allocation2] sm:$0xff]  ;;  %v365_v7 = vld [vmem:[#allocation2 + $0x10] sm:$0xff] }
  0x62   : > { %315 = vst.msk [vmem:[#allocation2 + $0x190] sm:$0xff] %vm264_vm4, %v3244_v0  ;;  %316 = vst.msk [vmem:[#allocation2 + $0x198] sm:$0xff] %vm264_vm4, %v3244_v0  ;;  %v3773_v9 = vld [vmem:[#allocation5] ss:$0 sm:$0xff] }
  0x63   : > { %317 = vst.msk [vmem:[#allocation2 + $0x1a0] sm:$0xff] %vm264_vm4, %v3244_v0  ;;  %318 = vst.msk [vmem:[#allocation2 + $0x1a8] sm:$0xff] %vm264_vm4, %v3244_v0  ;;  %v366_v11 = vld [vmem:[#allocation2 + $0x18] sm:$0xff] }
  0x64   : > { %319 = vst.msk [vmem:[#allocation2 + $0x1b0] sm:$0xff] %vm264_vm4, %v3244_v0  ;;  %320 = vst.msk [vmem:[#allocation2 + $0x1b8] sm:$0xff] %vm264_vm4, %v3244_v0 }
  0x65   : > { %2866 = vmatmul.mubr.msk.bf16.gmra.mrb[12].mxu0 %vm811_vm3, %v3108_v12  ;;  %2966 = vmatmul.mubr.msk.bf16.gmra.mrb[12].mxu1 %vm811_vm3, %v3109_v13  ;;  %321 = vst.msk [vmem:[#allocation2 + $0x1c0] sm:$0xff] %vm264_vm4, %v3244_v0  ;;  %322 = vst.msk [vmem:[#allocation2 + $0x1c8] sm:$0xff] %vm264_vm4, %v3244_v0 }
  0x66   : > { %2869 = vmatprep.mubr.msk.bf16.mxu0 %vm3245_vm1, %v3244_v0  ;;  %2969 = vmatprep.mubr.msk.bf16.mxu1 %vm3245_vm1, %v3244_v0  ;;  %323 = vst.msk [vmem:[#allocation2 + $0x1d0] sm:$0xff] %vm264_vm4, %v3244_v0  ;;  %324 = vst.msk [vmem:[#allocation2 + $0x1d8] sm:$0xff] %vm264_vm4, %v3244_v0 }
  0x67   : > { %325 = vst.msk [vmem:[#allocation2 + $0x1e0] sm:$0xff] %vm264_vm4, %v3244_v0  ;;  %326 = vst.msk [vmem:[#allocation2 + $0x1e8] sm:$0xff] %vm264_vm4, %v3244_v0 }
  0x68   : > { %327 = vst.msk [vmem:[#allocation2 + $0x1f0] sm:$0xff] %vm264_vm4, %v3244_v0  ;;  %328 = vst.msk [vmem:[#allocation2 + $0x1f8] sm:$0xff] %vm264_vm4, %v3244_v0 }
  0x69   : > { %329 = vst.msk [vmem:[#allocation2 + $0x200] sm:$0xff] %vm264_vm4, %v3244_v0  ;;  %330 = vst.msk [vmem:[#allocation2 + $0x208] sm:$0xff] %vm264_vm4, %v3244_v0  ;;  %v413_v56 = vld [vmem:[#allocation2 + $0x190] sm:$0xff]  ;;  %v414_v60 = vld [vmem:[#allocation2 + $0x198] sm:$0xff] }
  0x6a   : > { %331 = vst.msk [vmem:[#allocation2 + $0x210] sm:$0xff] %vm264_vm4, %v3244_v0  ;;  %332 = vst.msk [vmem:[#allocation2 + $0x218] sm:$0xff] %vm264_vm4, %v3244_v0  ;;  %v415_v8 = vld [vmem:[#allocation2 + $0x1a0] sm:$0xff]  ;;  %v416_v13 = vld [vmem:[#allocation2 + $0x1a8] sm:$0xff] }
  0x6b   : > { %333 = vst.msk [vmem:[#allocation2 + $0x220] sm:$0xff] %vm264_vm4, %v3244_v0  ;;  %334 = vst.msk [vmem:[#allocation2 + $0x228] sm:$0xff] %vm264_vm4, %v3244_v0 }
  0x6c   : > { %335 = vst.msk [vmem:[#allocation2 + $0x230] sm:$0xff] %vm264_vm4, %v3244_v0  ;;  %336 = vst.msk [vmem:[#allocation2 + $0x238] sm:$0xff] %vm264_vm4, %v3244_v0 }
  0x6d   : > { %2870 = vmatmul.mubr.msk.bf16.gmra.mrb[16].mxu0 %vm811_vm3, %v3110_v14  ;;  %2970 = vmatmul.mubr.msk.bf16.gmra.mrb[16].mxu1 %vm811_vm3, %v3111_v15  ;;  %337 = vst.msk [vmem:[#allocation2 + $0x240] sm:$0xff] %vm264_vm4, %v3244_v0  ;;  %338 = vst.msk [vmem:[#allocation2 + $0x248] sm:$0xff] %vm264_vm4, %v3244_v0 }
  0x6e   : > { %2873 = vmatprep.mubr.msk.bf16.mxu0 %vm3245_vm1, %v3244_v0  ;;  %2973 = vmatprep.mubr.msk.bf16.mxu1 %vm3245_vm1, %v3244_v0  ;;  %339 = vst.msk [vmem:[#allocation2 + $0x250] sm:$0xff] %vm264_vm4, %v3244_v0  ;;  %340 = vst.msk [vmem:[#allocation2 + $0x258] sm:$0xff] %vm264_vm4, %v3244_v0 }
  0x6f   : > { %341 = vst.msk [vmem:[#allocation2 + $0x260] sm:$0xff] %vm264_vm4, %v3244_v0  ;;  %342 = vst.msk [vmem:[#allocation2 + $0x268] sm:$0xff] %vm264_vm4, %v3244_v0 }
  0x70   : > { %343 = vst.msk [vmem:[#allocation2 + $0x270] sm:$0xff] %vm264_vm4, %v3244_v0  ;;  %344 = vst.msk [vmem:[#allocation2 + $0x278] sm:$0xff] %vm264_vm4, %v3244_v0 }
  0x71   : > { %345 = vst.msk [vmem:[#allocation2 + $0x280] sm:$0xff] %vm264_vm4, %v3244_v0  ;;  %346 = vst.msk [vmem:[#allocation2 + $0x288] sm:$0xff] %vm264_vm4, %v3244_v0 }
  0x72   : > { %347 = vst.msk [vmem:[#allocation2 + $0x290] sm:$0xff] %vm264_vm4, %v3244_v0  ;;  %348 = vst.msk [vmem:[#allocation2 + $0x298] sm:$0xff] %vm264_vm4, %v3244_v0 }
  0x73   : > { %349 = vst.msk [vmem:[#allocation2 + $0x2a0] sm:$0xff] %vm264_vm4, %v3244_v0  ;;  %350 = vst.msk [vmem:[#allocation2 + $0x2a8] sm:$0xff] %vm264_vm4, %v3244_v0 }
  0x74   : > { %351 = vst.msk [vmem:[#allocation2 + $0x2b0] sm:$0xff] %vm264_vm4, %v3244_v0  ;;  %352 = vst.msk [vmem:[#allocation2 + $0x2b8] sm:$0xff] %vm264_vm4, %v3244_v0 }
  0x75   : > { %2874 = vmatmul.mubr.msk.bf16.gmra.mrb[20].mxu0 %vm811_vm3, %v3112_v16  ;;  %2974 = vmatmul.mubr.msk.bf16.gmra.mrb[20].mxu1 %vm811_vm3, %v3113_v17  ;;  %353 = vst.msk [vmem:[#allocation2 + $0x2c0] sm:$0xff] %vm264_vm4, %v3244_v0  ;;  %354 = vst.msk [vmem:[#allocation2 + $0x2c8] sm:$0xff] %vm264_vm4, %v3244_v0 }
  0x76   : > { %2877 = vmatprep.mubr.msk.bf16.mxu0 %vm3245_vm1, %v3244_v0  ;;  %2977 = vmatprep.mubr.msk.bf16.mxu1 %vm3245_vm1, %v3244_v0  ;;  %355 = vst.msk [vmem:[#allocation2 + $0x2d0] sm:$0xff] %vm264_vm4, %v3244_v0  ;;  %356 = vst.msk [vmem:[#allocation2 + $0x2d8] sm:$0xff] %vm264_vm4, %v3244_v0 }
  0x77   : > { %357 = vst.msk [vmem:[#allocation2 + $0x2e0] sm:$0xff] %vm264_vm4, %v3244_v0  ;;  %358 = vst.msk [vmem:[#allocation2 + $0x2e8] sm:$0xff] %vm264_vm4, %v3244_v0 }
  0x78   : > { %359 = vst.msk [vmem:[#allocation2 + $0x2f0] sm:$0xff] %vm264_vm4, %v3244_v0  ;;  %360 = vst.msk [vmem:[#allocation2 + $0x2f8] sm:$0xff] %vm264_vm4, %v3244_v0 }
  0x79   : > { %361 = vst.msk [vmem:[#allocation2 + $0x300] sm:$0xff] %vm264_vm4, %v3244_v0  ;;  %362 = vst.msk [vmem:[#allocation2 + $0x308] sm:$0xff] %vm264_vm4, %v3244_v0 }
  0x7d   : > { %2878 = vmatmul.mubr.msk.bf16.gmra.mrb[24].mxu0 %vm811_vm3, %v3114_v18  ;;  %2978 = vmatmul.mubr.msk.bf16.gmra.mrb[24].mxu1 %vm811_vm3, %v3115_v19 }
  0x7e   : > { %2881 = vmatprep.mubr.msk.bf16.mxu0 %vm3245_vm1, %v3244_v0  ;;  %2981 = vmatprep.mubr.msk.bf16.mxu1 %vm3245_vm1, %v3244_v0 }
  0x85   : > { %2882 = vmatmul.mubr.msk.bf16.gmra.mrb[28].mxu0 %vm811_vm3, %v3116_v20  ;;  %2982 = vmatmul.mubr.msk.bf16.gmra.mrb[28].mxu1 %vm811_vm3, %v3117_v21 }
  0x86   : > { %2885 = vmatprep.mubr.msk.bf16.mxu0 %vm3245_vm1, %v3244_v0  ;;  %2985 = vmatprep.mubr.msk.bf16.mxu1 %vm3245_vm1, %v3244_v0 }
  0x8d   : > { %2886 = vmatmul.mubr.msk.bf16.gmra.mrb[32].mxu0 %vm811_vm3, %v3118_v22  ;;  %2986 = vmatmul.mubr.msk.bf16.gmra.mrb[32].mxu1 %vm811_vm3, %v3119_v23 }
  0x8e   : > { %2889 = vmatprep.mubr.msk.bf16.mxu0 %vm3245_vm1, %v3244_v0  ;;  %2989 = vmatprep.mubr.msk.bf16.mxu1 %vm3245_vm1, %v3244_v0 }
  0x95   : > { %2890 = vmatmul.mubr.msk.bf16.gmra.mrb[36].mxu0 %vm811_vm3, %v3120_v24  ;;  %2990 = vmatmul.mubr.msk.bf16.gmra.mrb[36].mxu1 %vm811_vm3, %v3121_v25 }
  0x96   : > { %2893 = vmatprep.mubr.msk.bf16.mxu0 %vm3245_vm1, %v3244_v0  ;;  %2993 = vmatprep.mubr.msk.bf16.mxu1 %vm3245_vm1, %v3244_v0 }
  0x9d   : > { %2894 = vmatmul.mubr.msk.bf16.gmra.mrb[40].mxu0 %vm811_vm3, %v3122_v26  ;;  %2994 = vmatmul.mubr.msk.bf16.gmra.mrb[40].mxu1 %vm811_vm3, %v3123_v27 }
  0x9e   : > { %2897 = vmatprep.mubr.msk.bf16.mxu0 %vm3245_vm1, %v3244_v0  ;;  %2997 = vmatprep.mubr.msk.bf16.mxu1 %vm3245_vm1, %v3244_v0 }
  0xa5   : > { %2898 = vmatmul.mubr.msk.bf16.gmra.mrb[44].mxu0 %vm811_vm3, %v3124_v28  ;;  %2998 = vmatmul.mubr.msk.bf16.gmra.mrb[44].mxu1 %vm811_vm3, %v3125_v29 }
  0xa6   : > { %2901 = vmatprep.mubr.msk.bf16.mxu0 %vm3245_vm1, %v3244_v0  ;;  %3001 = vmatprep.mubr.msk.bf16.mxu1 %vm3245_vm1, %v3244_v0 }
  0xad   : > { %2902 = vmatmul.mubr.msk.bf16.gmra.mrb[48].mxu0 %vm811_vm3, %v3126_v30  ;;  %3002 = vmatmul.mubr.msk.bf16.gmra.mrb[48].mxu1 %vm811_vm3, %v3127_v31 }
  0xae   : > { %2905 = vmatprep.mubr.msk.bf16.mxu0 %vm3245_vm1, %v3244_v0  ;;  %3005 = vmatprep.mubr.msk.bf16.mxu1 %vm3245_vm1, %v3244_v0 }
  0xb5   : > { %2906 = vmatmul.mubr.msk.bf16.gmra.mrb[52].mxu0 %vm811_vm3, %v3128_v32  ;;  %3006 = vmatmul.mubr.msk.bf16.gmra.mrb[52].mxu1 %vm811_vm3, %v3129_v33 }
  0xb6   : > { %2909 = vmatprep.mubr.msk.bf16.mxu0 %vm3245_vm1, %v3244_v0  ;;  %3009 = vmatprep.mubr.msk.bf16.mxu1 %vm3245_vm1, %v3244_v0 }
  0xbd   : > { %2910 = vmatmul.mubr.msk.bf16.gmra.mrb[56].mxu0 %vm811_vm3, %v3130_v34  ;;  %3010 = vmatmul.mubr.msk.bf16.gmra.mrb[56].mxu1 %vm811_vm3, %v3131_v35  ;;  %v367_v34 = vld [vmem:[#allocation2 + $0x20] sm:$0xff]  ;;  %v417_v35 = vld [vmem:[#allocation2 + $0x1b0] sm:$0xff] }
  0xbe   : > { %2913 = vmatprep.mubr.msk.bf16.mxu0 %vm3245_vm1, %v3244_v0  ;;  %3013 = vmatprep.mubr.msk.bf16.mxu1 %vm3245_vm1, %v3244_v0 }
  0xc5   : > { %2914 = vmatmul.mubr.msk.bf16.gmra.mrb[60].mxu0 %vm811_vm3, %v3132_v36  ;;  %3014 = vmatmul.mubr.msk.bf16.gmra.mrb[60].mxu1 %vm811_vm3, %v3133_v37 }
  0xc6   : > { %2917 = vmatprep.mubr.msk.bf16.mxu0 %vm3245_vm1, %v3244_v0  ;;  %3017 = vmatprep.mubr.msk.bf16.mxu1 %vm3245_vm1, %v3244_v0 }
  0xcd   : > { %2918 = vmatmul.mubr.msk.bf16.gmra.mrb[64].mxu0 %vm811_vm3, %v3134_v38  ;;  %3018 = vmatmul.mubr.msk.bf16.gmra.mrb[64].mxu1 %vm811_vm3, %v3135_v39 }
  0xce   : > { %2921 = vmatprep.mubr.msk.bf16.mxu0 %vm3245_vm1, %v3244_v0  ;;  %3021 = vmatprep.mubr.msk.bf16.mxu1 %vm3245_vm1, %v3244_v0 }
  0xd5   : > { %2922 = vmatmul.mubr.msk.bf16.gmra.mrb[68].mxu0 %vm811_vm3, %v3136_v40  ;;  %3022 = vmatmul.mubr.msk.bf16.gmra.mrb[68].mxu1 %vm811_vm3, %v3137_v41  ;;  %v368_v41 = vld [vmem:[#allocation2 + $0x28] sm:$0xff] }
  0xd6   : > { %2925 = vmatprep.mubr.msk.bf16.mxu0 %vm3245_vm1, %v3244_v0  ;;  %3025 = vmatprep.mubr.msk.bf16.mxu1 %vm3245_vm1, %v3244_v0 }
  0xdd   : > { %2926 = vmatmul.mubr.msk.bf16.gmra.mrb[72].mxu0 %vm811_vm3, %v3138_v42  ;;  %3026 = vmatmul.mubr.msk.bf16.gmra.mrb[72].mxu1 %vm811_vm3, %v3139_v43  ;;  %v418_v43 = vld [vmem:[#allocation2 + $0x1b8] sm:$0xff] }
  0xde   : > { %2929 = vmatprep.mubr.msk.bf16.mxu0 %vm3245_vm1, %v3244_v0  ;;  %3029 = vmatprep.mubr.msk.bf16.mxu1 %vm3245_vm1, %v3244_v0 }
  0xe5   : > { %2930 = vmatmul.mubr.msk.bf16.gmra.mrb[76].mxu0 %vm811_vm3, %v3140_v44  ;;  %3030 = vmatmul.mubr.msk.bf16.gmra.mrb[76].mxu1 %vm811_vm3, %v3141_v45 }
  0xe6   : > { %2933 = vmatprep.mubr.msk.bf16.mxu0 %vm3245_vm1, %v3244_v0  ;;  %3033 = vmatprep.mubr.msk.bf16.mxu1 %vm3245_vm1, %v3244_v0 }
  0xed   : > { %2934 = vmatmul.mubr.msk.bf16.gmra.mrb[80].mxu0 %vm811_vm3, %v3142_v46  ;;  %3034 = vmatmul.mubr.msk.bf16.gmra.mrb[80].mxu1 %vm811_vm3, %v3143_v47 }
  0xee   : > { %2937 = vmatprep.mubr.msk.bf16.mxu0 %vm3245_vm1, %v3244_v0  ;;  %3037 = vmatprep.mubr.msk.bf16.mxu1 %vm3245_vm1, %v3244_v0 }
  0xf5   : > { %2938 = vmatmul.mubr.msk.bf16.gmra.mrb[84].mxu0 %vm811_vm3, %v3144_v48  ;;  %3038 = vmatmul.mubr.msk.bf16.gmra.mrb[84].mxu1 %vm811_vm3, %v3145_v49 }
  0xf6   : > { %2941 = vmatprep.mubr.msk.bf16.mxu0 %vm3245_vm1, %v3244_v0  ;;  %3041 = vmatprep.mubr.msk.bf16.mxu1 %vm3245_vm1, %v3244_v0 }
  0xfd   : > { %2942 = vmatmul.mubr.msk.bf16.gmra.mrb[88].mxu0 %vm811_vm3, %v3146_v50  ;;  %3042 = vmatmul.mubr.msk.bf16.gmra.mrb[88].mxu1 %vm811_vm3, %v3147_v51 }
  0xfe   : > { %2945 = vmatprep.mubr.msk.bf16.mxu0 %vm3245_vm1, %v3244_v0  ;;  %3045 = vmatprep.mubr.msk.bf16.mxu1 %vm3245_vm1, %v3244_v0 }
 0x105   : > { %2946 = vmatmul.mubr.msk.bf16.gmra.mrb[92].mxu0 %vm811_vm3, %v3148_v52  ;;  %3046 = vmatmul.mubr.msk.bf16.gmra.mrb[92].mxu1 %vm811_vm3, %v3149_v53 }
 0x106   : > { %2949 = vmatprep.mubr.msk.bf16.mxu0 %vm3245_vm1, %v3244_v0 }
 0x10d   : > { %2950 = vmatmul.mubr.msk.bf16.gmra.mrb[96].mxu0 %vm811_vm3, %v3150_v54 }
 0x120   : > { %v1000_v57 = vpop.f32.mrb[0].mxu0  ;;  %v1200_v59 = vpop.f32.mrb[0].mxu1 }
 0x121   : > { %v1391_v61 = vadd.f32 %v1000_v57, %v363_v55  ;;  %v2855_v62 = vpop.f32.mrb[1].mxu0  ;;  %v1441_v63 = vadd.f32 %v1200_v59, %v413_v56  ;;  %v2955_v1 = vpop.f32.mrb[1].mxu1 }
 0x122   : > { %v1003_v2 = vpop.f32.mrb[2].mxu0  ;;  %v1203_v3 = vpop.f32.mrb[2].mxu1 }
 0x123   : > { %1490 = vst.msk [vmem:[#allocation2] sm:$0xff] %vm264_vm4, %v1391_v61  ;;  %v1392_v4 = vadd.f32 %v1003_v2, %v364_v58  ;;  %v2856_v5 = vpop.f32.mrb[3].mxu0  ;;  %1540 = vst.msk [vmem:[#allocation2 + $0x190] sm:$0xff] %vm264_vm4, %v1441_v63  ;;  %v1442_v0 = vadd.f32 %v1203_v3, %v414_v60  ;;  %v2956_v6 = vpop.f32.mrb[3].mxu1  ;;  %v369_v3 = vld [vmem:[#allocation2 + $0x30] sm:$0xff] }
 0x125   : > { %1491 = vst.msk [vmem:[#allocation2 + $0x8] sm:$0xff] %vm264_vm4, %v1392_v4  ;;  %1541 = vst.msk [vmem:[#allocation2 + $0x198] sm:$0xff] %vm264_vm4, %v1442_v0  ;;  %v419_v4 = vld [vmem:[#allocation2 + $0x1c0] sm:$0xff] }
 0x128   : > { %v1008_v10 = vpop.f32.mrb[4].mxu0  ;;  %v1208_v12 = vpop.f32.mrb[4].mxu1 }
 0x129   : > { %v1393_v14 = vadd.f32 %v1008_v10, %v365_v7  ;;  %v2859_v15 = vpop.f32.mrb[5].mxu0  ;;  %v1443_v16 = vadd.f32 %v1208_v12, %v415_v8  ;;  %v2959_v17 = vpop.f32.mrb[5].mxu1  ;;  %v370_v10 = vld [vmem:[#allocation2 + $0x38] sm:$0xff]  ;;  %v420_v12 = vld [vmem:[#allocation2 + $0x1c8] sm:$0xff] }
 0x12a   : > { %v1591_v18 = vld [vmem:[#allocation2] sm:$0xff]  ;;  %v1641_v19 = vld [vmem:[#allocation2 + $0x190] sm:$0xff]  ;;  %v1011_v20 = vpop.f32.mrb[6].mxu0  ;;  %v1211_v21 = vpop.f32.mrb[6].mxu1 }
 0x12b   : > { %v1696_v22 = vadd.f32 %v3773_v9, %v1591_v18  ;;  %v1746_v23 = vadd.f32 %v3773_v9, %v1641_v19  ;;  %1492 = vst.msk [vmem:[#allocation2 + $0x10] sm:$0xff] %vm264_vm4, %v1393_v14  ;;  %v1394_v24 = vadd.f32 %v1011_v20, %v366_v11  ;;  %v2860_v25 = vpop.f32.mrb[7].mxu0  ;;  %1542 = vst.msk [vmem:[#allocation2 + $0x1a0] sm:$0xff] %vm264_vm4, %v1443_v16  ;;  %v2960_v27 = vpop.f32.mrb[7].mxu1 }
 0x12c   : > { %v1444_v26 = vadd.f32 %v1211_v21, %v416_v13  ;;  %v1592_v28 = vld [vmem:[#allocation2 + $0x8] sm:$0xff]  ;;  %v1642_v29 = vld [vmem:[#allocation2 + $0x198] sm:$0xff] }
 0x12d   : > { %v1794_v30 = vmax.f32 %v1696_v22, 0.0  ;;  %v1697_v31 = vadd.f32 %v3773_v9, %v1592_v28  ;;  %v1844_v32 = vmax.f32 %v1746_v23, 0.0  ;;  %v1747_v33 = vadd.f32 %v3773_v9, %v1642_v29  ;;  %1493 = vst.msk [vmem:[#allocation2 + $0x18] sm:$0xff] %vm264_vm4, %v1394_v24 }
 0x12e   : > { %1543 = vst.msk [vmem:[#allocation2 + $0x1a8] sm:$0xff] %vm264_vm4, %v1444_v26 }
 0x12f   : > { %v2703_v36 = vpack.c.bf16 %v1794_v30, %v1794_v30  ;;  %v1795_v37 = vmax.f32 %v1697_v31, 0.0  ;;  %v2753_v38 = vpack.c.bf16 %v1844_v32, %v1844_v32  ;;  %v1845_v39 = vmax.f32 %v1747_v33, 0.0 }
 0x130   : > { %v1016_v40 = vpop.f32.mrb[8].mxu0  ;;  %v1216_v42 = vpop.f32.mrb[8].mxu1 }
 0x131   : > { %2285 = vst.msk [vmem:[%s3788_s30] sm:$0xf] %vm2284_vm5, %v2703_v36  ;;  %v2704_v44 = vpack.c.bf16 %v1795_v37, %v1795_v37  ;;  %2335 = vst.msk [vmem:[%s3788_s30 + $0xc8] sm:$0xf] %vm2284_vm5, %v2753_v38  ;;  %v2754_v45 = vpack.c.bf16 %v1845_v39, %v1845_v39  ;;  %v1395_v46 = vadd.f32 %v1016_v40, %v367_v34  ;;  %v2863_v47 = vpop.f32.mrb[9].mxu0  ;;  %v2963_v49 = vpop.f32.mrb[9].mxu1 }
 0x132   : > { %v1445_v48 = vadd.f32 %v1216_v42, %v417_v35  ;;  %v1593_v50 = vld [vmem:[#allocation2 + $0x10] sm:$0xff]  ;;  %v1643_v51 = vld [vmem:[#allocation2 + $0x1a0] sm:$0xff]  ;;  %v1019_v52 = vpop.f32.mrb[10].mxu0  ;;  %v1219_v53 = vpop.f32.mrb[10].mxu1  ;;  %v372_v42 = vld [vmem:[#allocation2 + $0x48] sm:$0xff] }
 0x133   : > { %2286 = vst.msk [vmem:[%s3788_s30 + $0x4] sm:$0xf] %vm2284_vm5, %v2704_v44  ;;  %2336 = vst.msk [vmem:[%s3788_s30 + $0xcc] sm:$0xf] %vm2284_vm5, %v2754_v45  ;;  %v1698_v54 = vadd.f32 %v3773_v9, %v1593_v50  ;;  %v1748_v55 = vadd.f32 %v3773_v9, %v1643_v51  ;;  %v1396_v56 = vadd.f32 %v1019_v52, %v368_v41  ;;  %v2864_v57 = vpop.f32.mrb[11].mxu0  ;;  %v2964_v59 = vpop.f32.mrb[11].mxu1 }
 0x134   : > { %1494 = vst.msk [vmem:[#allocation2 + $0x20] sm:$0xff] %vm264_vm4, %v1395_v46  ;;  %1544 = vst.msk [vmem:[#allocation2 + $0x1b0] sm:$0xff] %vm264_vm4, %v1445_v48  ;;  %v1446_v58 = vadd.f32 %v1219_v53, %v418_v43  ;;  %v1594_v60 = vld [vmem:[#allocation2 + $0x18] sm:$0xff]  ;;  %v371_v35 = vld [vmem:[#allocation2 + $0x40] sm:$0xff] }
 0x135   : > { %v1644_v61 = vld [vmem:[#allocation2 + $0x1a8] sm:$0xff]  ;;  %v1796_v62 = vmax.f32 %v1698_v54, 0.0  ;;  %v1699_v63 = vadd.f32 %v3773_v9, %v1594_v60  ;;  %v1846_v1 = vmax.f32 %v1748_v55, 0.0  ;;  %1495 = vst.msk [vmem:[#allocation2 + $0x28] sm:$0xff] %vm264_vm4, %v1396_v56  ;;  %v421_v36 = vld [vmem:[#allocation2 + $0x1d0] sm:$0xff]  ;;  %v422_v44 = vld [vmem:[#allocation2 + $0x1d8] sm:$0xff] }
 0x136   : > { %v1749_v2 = vadd.f32 %v3773_v9, %v1644_v61  ;;  %1545 = vst.msk [vmem:[#allocation2 + $0x1b8] sm:$0xff] %vm264_vm4, %v1446_v58 }
 0x137   : > { %v2705_v5 = vpack.c.bf16 %v1796_v62, %v1796_v62  ;;  %v1797_v0 = vmax.f32 %v1699_v63, 0.0  ;;  %v2755_v6 = vpack.c.bf16 %v1846_v1, %v1846_v1 }
 0x138   : > { %v1847_v7 = vmax.f32 %v1749_v2, 0.0  ;;  %v1024_v8 = vpop.f32.mrb[12].mxu0  ;;  %v1224_v11 = vpop.f32.mrb[12].mxu1 }
 0x139   : > { %2287 = vst.msk [vmem:[%s3788_s30 + $0x8] sm:$0xf] %vm2284_vm5, %v2705_v5  ;;  %v2706_v13 = vpack.c.bf16 %v1797_v0, %v1797_v0  ;;  %2337 = vst.msk [vmem:[%s3788_s30 + $0xd0] sm:$0xf] %vm2284_vm5, %v2755_v6  ;;  %v1397_v15 = vadd.f32 %v1024_v8, %v369_v3  ;;  %v2867_v16 = vpop.f32.mrb[13].mxu0  ;;  %v1447_v17 = vadd.f32 %v1224_v11, %v419_v4  ;;  %v2967_v18 = vpop.f32.mrb[13].mxu1 }
 0x13a   : > { %v2756_v14 = vpack.c.bf16 %v1847_v7, %v1847_v7  ;;  %v1027_v21 = vpop.f32.mrb[14].mxu0  ;;  %v1227_v22 = vpop.f32.mrb[14].mxu1  ;;  %v373_v4 = vld [vmem:[#allocation2 + $0x50] sm:$0xff]  ;;  %v423_v5 = vld [vmem:[#allocation2 + $0x1e0] sm:$0xff]  ;;  %v374_v11 = vld [vmem:[#allocation2 + $0x58] sm:$0xff] }
 0x13b   : > { %v1595_v19 = vld [vmem:[#allocation2 + $0x20] sm:$0xff]  ;;  %v1645_v20 = vld [vmem:[#allocation2 + $0x1b0] sm:$0xff]  ;;  %2288 = vst.msk [vmem:[%s3788_s30 + $0xc] sm:$0xf] %vm2284_vm5, %v2706_v13  ;;  %v1398_v25 = vadd.f32 %v1027_v21, %v370_v10  ;;  %v2868_v26 = vpop.f32.mrb[15].mxu0  ;;  %v1448_v27 = vadd.f32 %v1227_v22, %v420_v12  ;;  %v2968_v28 = vpop.f32.mrb[15].mxu1 }
 0x13c   : > { %2338 = vst.msk [vmem:[%s3788_s30 + $0xd4] sm:$0xf] %vm2284_vm5, %v2756_v14  ;;  %v1700_v23 = vadd.f32 %v3773_v9, %v1595_v19  ;;  %v1750_v24 = vadd.f32 %v3773_v9, %v1645_v20  ;;  %v1596_v29 = vld [vmem:[#allocation2 + $0x28] sm:$0xff] }
 0x13d   : > { %1496 = vst.msk [vmem:[#allocation2 + $0x30] sm:$0xff] %vm264_vm4, %v1397_v15  ;;  %1546 = vst.msk [vmem:[#allocation2 + $0x1c0] sm:$0xff] %vm264_vm4, %v1447_v17  ;;  %v1646_v30 = vld [vmem:[#allocation2 + $0x1b8] sm:$0xff]  ;;  %v1701_v32 = vadd.f32 %v3773_v9, %v1596_v29  ;;  %v424_v13 = vld [vmem:[#allocation2 + $0x1e8] sm:$0xff] }
 0x13e   : > { %v1798_v31 = vmax.f32 %v1700_v23, 0.0  ;;  %v1848_v33 = vmax.f32 %v1750_v24, 0.0  ;;  %v1751_v34 = vadd.f32 %v3773_v9, %v1646_v30  ;;  %1497 = vst.msk [vmem:[#allocation2 + $0x38] sm:$0xff] %vm264_vm4, %v1398_v25  ;;  %1547 = vst.msk [vmem:[#allocation2 + $0x1c8] sm:$0xff] %vm264_vm4, %v1448_v27 }
 0x13f   : > { %v1799_v38 = vmax.f32 %v1701_v32, 0.0 }
 0x140   : > { %v2707_v37 = vpack.c.bf16 %v1798_v31, %v1798_v31  ;;  %v2757_v39 = vpack.c.bf16 %v1848_v33, %v1848_v33  ;;  %v1849_v40 = vmax.f32 %v1751_v34, 0.0  ;;  %v1032_v41 = vpop.f32.mrb[16].mxu0  ;;  %v1232_v43 = vpop.f32.mrb[16].mxu1 }
 0x141   : > { %v2708_v45 = vpack.c.bf16 %v1799_v38, %v1799_v38  ;;  %v1399_v47 = vadd.f32 %v1032_v41, %v371_v35  ;;  %v2871_v48 = vpop.f32.mrb[17].mxu0  ;;  %v1449_v49 = vadd.f32 %v1232_v43, %v421_v36  ;;  %v2971_v50 = vpop.f32.mrb[17].mxu1  ;;  %v375_v36 = vld [vmem:[#allocation2 + $0x60] sm:$0xff]  ;;  %v376_v43 = vld [vmem:[#allocation2 + $0x68] sm:$0xff] }
 0x142   : > { %2289 = vst.msk [vmem:[%s3788_s30 + $0x10] sm:$0xf] %vm2284_vm5, %v2707_v37  ;;  %2339 = vst.msk [vmem:[%s3788_s30 + $0xd8] sm:$0xf] %vm2284_vm5, %v2757_v39  ;;  %v2758_v46 = vpack.c.bf16 %v1849_v40, %v1849_v40  ;;  %v1035_v53 = vpop.f32.mrb[18].mxu0  ;;  %v1235_v54 = vpop.f32.mrb[18].mxu1 }
 0x143   : > { %2290 = vst.msk [vmem:[%s3788_s30 + $0x14] sm:$0xf] %vm2284_vm5, %v2708_v45  ;;  %v1400_v57 = vadd.f32 %v1035_v53, %v372_v42  ;;  %v2872_v58 = vpop.f32.mrb[19].mxu0  ;;  %v1450_v59 = vadd.f32 %v1235_v54, %v422_v44  ;;  %v2972_v60 = vpop.f32.mrb[19].mxu1  ;;  %v425_v37 = vld [vmem:[#allocation2 + $0x1f0] sm:$0xff]  ;;  %v426_v45 = vld [vmem:[#allocation2 + $0x1f8] sm:$0xff] }
 0x144   : > { %v1597_v51 = vld [vmem:[#allocation2 + $0x30] sm:$0xff]  ;;  %v1647_v52 = vld [vmem:[#allocation2 + $0x1c0] sm:$0xff]  ;;  %2340 = vst.msk [vmem:[%s3788_s30 + $0xdc] sm:$0xf] %vm2284_vm5, %v2758_v46 }
 0x145   : > { %v1702_v55 = vadd.f32 %v3773_v9, %v1597_v51  ;;  %v1752_v56 = vadd.f32 %v3773_v9, %v1647_v52  ;;  %1498 = vst.msk [vmem:[#allocation2 + $0x40] sm:$0xff] %vm264_vm4, %v1399_v47  ;;  %1548 = vst.msk [vmem:[#allocation2 + $0x1d0] sm:$0xff] %vm264_vm4, %v1449_v49  ;;  %v1598_v61 = vld [vmem:[#allocation2 + $0x38] sm:$0xff]  ;;  %v1648_v62 = vld [vmem:[#allocation2 + $0x1c8] sm:$0xff] }
 0x146   : > { %v1703_v1 = vadd.f32 %v3773_v9, %v1598_v61  ;;  %v1753_v3 = vadd.f32 %v3773_v9, %v1648_v62  ;;  %1499 = vst.msk [vmem:[#allocation2 + $0x48] sm:$0xff] %vm264_vm4, %v1400_v57  ;;  %1549 = vst.msk [vmem:[#allocation2 + $0x1d8] sm:$0xff] %vm264_vm4, %v1450_v59 }
 0x147   : > { %v1800_v63 = vmax.f32 %v1702_v55, 0.0  ;;  %v1850_v2 = vmax.f32 %v1752_v56, 0.0 }
 0x148   : > { %v1801_v6 = vmax.f32 %v1703_v1, 0.0  ;;  %v1851_v8 = vmax.f32 %v1753_v3, 0.0  ;;  %v1040_v10 = vpop.f32.mrb[20].mxu0  ;;  %v1240_v12 = vpop.f32.mrb[20].mxu1 }
 0x149   : > { %v2709_v0 = vpack.c.bf16 %v1800_v63, %v1800_v63  ;;  %v2759_v7 = vpack.c.bf16 %v1850_v2, %v1850_v2  ;;  %v1401_v16 = vadd.f32 %v1040_v10, %v373_v4  ;;  %v2875_v17 = vpop.f32.mrb[21].mxu0  ;;  %v1451_v18 = vadd.f32 %v1240_v12, %v423_v5  ;;  %v2975_v19 = vpop.f32.mrb[21].mxu1  ;;  %v377_v5 = vld [vmem:[#allocation2 + $0x70] sm:$0xff]  ;;  %v378_v12 = vld [vmem:[#allocation2 + $0x78] sm:$0xff] }
 0x14a   : > { %v2710_v14 = vpack.c.bf16 %v1801_v6, %v1801_v6  ;;  %v2760_v15 = vpack.c.bf16 %v1851_v8, %v1851_v8  ;;  %v1043_v22 = vpop.f32.mrb[22].mxu0  ;;  %v1243_v23 = vpop.f32.mrb[22].mxu1 }
 0x14b   : > { %2291 = vst.msk [vmem:[%s3788_s30 + $0x18] sm:$0xf] %vm2284_vm5, %v2709_v0  ;;  %2341 = vst.msk [vmem:[%s3788_s30 + $0xe0] sm:$0xf] %vm2284_vm5, %v2759_v7  ;;  %v1402_v26 = vadd.f32 %v1043_v22, %v374_v11  ;;  %v2876_v27 = vpop.f32.mrb[23].mxu0  ;;  %v1452_v28 = vadd.f32 %v1243_v23, %v424_v13  ;;  %v2976_v29 = vpop.f32.mrb[23].mxu1 }
 0x14c   : > { %v1599_v20 = vld [vmem:[#allocation2 + $0x40] sm:$0xff]  ;;  %v1649_v21 = vld [vmem:[#allocation2 + $0x1d0] sm:$0xff]  ;;  %2292 = vst.msk [vmem:[%s3788_s30 + $0x1c] sm:$0xf] %vm2284_vm5, %v2710_v14  ;;  %2342 = vst.msk [vmem:[%s3788_s30 + $0xe4] sm:$0xf] %vm2284_vm5, %v2760_v15 }
 0x14d   : > { %v1704_v24 = vadd.f32 %v3773_v9, %v1599_v20  ;;  %v1754_v25 = vadd.f32 %v3773_v9, %v1649_v21  ;;  %1500 = vst.msk [vmem:[#allocation2 + $0x50] sm:$0xff] %vm264_vm4, %v1401_v16  ;;  %1550 = vst.msk [vmem:[#allocation2 + $0x1e0] sm:$0xff] %vm264_vm4, %v1451_v18  ;;  %v1600_v30 = vld [vmem:[#allocation2 + $0x48] sm:$0xff]  ;;  %v1650_v31 = vld [vmem:[#allocation2 + $0x1d8] sm:$0xff] }
 0x14e   : > { %v1705_v33 = vadd.f32 %v3773_v9, %v1600_v30  ;;  %v1755_v35 = vadd.f32 %v3773_v9, %v1650_v31  ;;  %1501 = vst.msk [vmem:[#allocation2 + $0x58] sm:$0xff] %vm264_vm4, %v1402_v26  ;;  %1551 = vst.msk [vmem:[#allocation2 + $0x1e8] sm:$0xff] %vm264_vm4, %v1452_v28  ;;  %v427_v0 = vld [vmem:[#allocation2 + $0x200] sm:$0xff]  ;;  %v428_v14 = vld [vmem:[#allocation2 + $0x208] sm:$0xff] }
 0x14f   : > { %v1802_v32 = vmax.f32 %v1704_v24, 0.0  ;;  %v1852_v34 = vmax.f32 %v1754_v25, 0.0 }
 0x150   : > { %v1803_v39 = vmax.f32 %v1705_v33, 0.0  ;;  %v1853_v41 = vmax.f32 %v1755_v35, 0.0  ;;  %v1048_v42 = vpop.f32.mrb[24].mxu0  ;;  %v1248_v44 = vpop.f32.mrb[24].mxu1 }
 0x151   : > { %v2711_v38 = vpack.c.bf16 %v1802_v32, %v1802_v32  ;;  %v2761_v40 = vpack.c.bf16 %v1852_v34, %v1852_v34  ;;  %v1403_v48 = vadd.f32 %v1048_v42, %v375_v36  ;;  %v2879_v49 = vpop.f32.mrb[25].mxu0  ;;  %v1453_v50 = vadd.f32 %v1248_v44, %v425_v37  ;;  %v2979_v51 = vpop.f32.mrb[25].mxu1  ;;  %v379_v37 = vld [vmem:[#allocation2 + $0x80] sm:$0xff]  ;;  %v380_v44 = vld [vmem:[#allocation2 + $0x88] sm:$0xff] }
 0x152   : > { %v2712_v46 = vpack.c.bf16 %v1803_v39, %v1803_v39  ;;  %v2762_v47 = vpack.c.bf16 %v1853_v41, %v1853_v41  ;;  %v1051_v54 = vpop.f32.mrb[26].mxu0  ;;  %v1251_v55 = vpop.f32.mrb[26].mxu1 }
 0x153   : > { %2293 = vst.msk [vmem:[%s3788_s30 + $0x20] sm:$0xf] %vm2284_vm5, %v2711_v38  ;;  %2343 = vst.msk [vmem:[%s3788_s30 + $0xe8] sm:$0xf] %vm2284_vm5, %v2761_v40  ;;  %v1404_v58 = vadd.f32 %v1051_v54, %v376_v43  ;;  %v2880_v59 = vpop.f32.mrb[27].mxu0  ;;  %v1454_v60 = vadd.f32 %v1251_v55, %v426_v45  ;;  %v2980_v61 = vpop.f32.mrb[27].mxu1 }
 0x154   : > { %v1601_v52 = vld [vmem:[#allocation2 + $0x50] sm:$0xff]  ;;  %v1651_v53 = vld [vmem:[#allocation2 + $0x1e0] sm:$0xff]  ;;  %2294 = vst.msk [vmem:[%s3788_s30 + $0x24] sm:$0xf] %vm2284_vm5, %v2712_v46  ;;  %2344 = vst.msk [vmem:[%s3788_s30 + $0xec] sm:$0xf] %vm2284_vm5, %v2762_v47 }
 0x155   : > { %v1706_v56 = vadd.f32 %v3773_v9, %v1601_v52  ;;  %v1756_v57 = vadd.f32 %v3773_v9, %v1651_v53  ;;  %1502 = vst.msk [vmem:[#allocation2 + $0x60] sm:$0xff] %vm264_vm4, %v1403_v48  ;;  %1552 = vst.msk [vmem:[#allocation2 + $0x1f0] sm:$0xff] %vm264_vm4, %v1453_v50  ;;  %v1602_v62 = vld [vmem:[#allocation2 + $0x58] sm:$0xff]  ;;  %v1652_v63 = vld [vmem:[#allocation2 + $0x1e8] sm:$0xff] }
 0x156   : > { %v1707_v2 = vadd.f32 %v3773_v9, %v1602_v62  ;;  %v1757_v4 = vadd.f32 %v3773_v9, %v1652_v63  ;;  %1503 = vst.msk [vmem:[#allocation2 + $0x68] sm:$0xff] %vm264_vm4, %v1404_v58  ;;  %1553 = vst.msk [vmem:[#allocation2 + $0x1f8] sm:$0xff] %vm264_vm4, %v1454_v60  ;;  %v429_v38 = vld [vmem:[#allocation2 + $0x210] sm:$0xff]  ;;  %v430_v46 = vld [vmem:[#allocation2 + $0x218] sm:$0xff] }
 0x157   : > { %v1804_v1 = vmax.f32 %v1706_v56, 0.0  ;;  %v1854_v3 = vmax.f32 %v1756_v57, 0.0 }
 0x158   : > { %v1805_v7 = vmax.f32 %v1707_v2, 0.0  ;;  %v1855_v10 = vmax.f32 %v1757_v4, 0.0  ;;  %v1056_v11 = vpop.f32.mrb[28].mxu0  ;;  %v1256_v13 = vpop.f32.mrb[28].mxu1 }
 0x159   : > { %v2713_v6 = vpack.c.bf16 %v1804_v1, %v1804_v1  ;;  %v2763_v8 = vpack.c.bf16 %v1854_v3, %v1854_v3  ;;  %v1405_v17 = vadd.f32 %v1056_v11, %v377_v5  ;;  %v2883_v18 = vpop.f32.mrb[29].mxu0  ;;  %v1455_v19 = vadd.f32 %v1256_v13, %v427_v0  ;;  %v2983_v20 = vpop.f32.mrb[29].mxu1  ;;  %v381_v0 = vld [vmem:[#allocation2 + $0x90] sm:$0xff]  ;;  %v382_v13 = vld [vmem:[#allocation2 + $0x98] sm:$0xff] }
 0x15a   : > { %v2714_v15 = vpack.c.bf16 %v1805_v7, %v1805_v7  ;;  %v2764_v16 = vpack.c.bf16 %v1855_v10, %v1855_v10  ;;  %v1059_v23 = vpop.f32.mrb[30].mxu0  ;;  %v1259_v24 = vpop.f32.mrb[30].mxu1 }
 0x15b   : > { %2295 = vst.msk [vmem:[%s3788_s30 + $0x28] sm:$0xf] %vm2284_vm5, %v2713_v6  ;;  %2345 = vst.msk [vmem:[%s3788_s30 + $0xf0] sm:$0xf] %vm2284_vm5, %v2763_v8  ;;  %v1406_v27 = vadd.f32 %v1059_v23, %v378_v12  ;;  %v2884_v28 = vpop.f32.mrb[31].mxu0  ;;  %v1456_v29 = vadd.f32 %v1259_v24, %v428_v14  ;;  %v2984_v30 = vpop.f32.mrb[31].mxu1 }
 0x15c   : > { %v1603_v21 = vld [vmem:[#allocation2 + $0x60] sm:$0xff]  ;;  %v1653_v22 = vld [vmem:[#allocation2 + $0x1f0] sm:$0xff]  ;;  %2296 = vst.msk [vmem:[%s3788_s30 + $0x2c] sm:$0xf] %vm2284_vm5, %v2714_v15  ;;  %2346 = vst.msk [vmem:[%s3788_s30 + $0xf4] sm:$0xf] %vm2284_vm5, %v2764_v16 }
 0x15d   : > { %v1708_v25 = vadd.f32 %v3773_v9, %v1603_v21  ;;  %v1758_v26 = vadd.f32 %v3773_v9, %v1653_v22  ;;  %1504 = vst.msk [vmem:[#allocation2 + $0x70] sm:$0xff] %vm264_vm4, %v1405_v17  ;;  %1554 = vst.msk [vmem:[#allocation2 + $0x200] sm:$0xff] %vm264_vm4, %v1455_v19  ;;  %v1604_v31 = vld [vmem:[#allocation2 + $0x68] sm:$0xff]  ;;  %v1654_v32 = vld [vmem:[#allocation2 + $0x1f8] sm:$0xff] }
 0x15e   : > { %v1709_v34 = vadd.f32 %v3773_v9, %v1604_v31  ;;  %v1759_v36 = vadd.f32 %v3773_v9, %v1654_v32  ;;  %1505 = vst.msk [vmem:[#allocation2 + $0x78] sm:$0xff] %vm264_vm4, %v1406_v27  ;;  %1555 = vst.msk [vmem:[#allocation2 + $0x208] sm:$0xff] %vm264_vm4, %v1456_v29  ;;  %v431_v6 = vld [vmem:[#allocation2 + $0x220] sm:$0xff]  ;;  %v432_v15 = vld [vmem:[#allocation2 + $0x228] sm:$0xff] }
 0x15f   : > { %v1806_v33 = vmax.f32 %v1708_v25, 0.0  ;;  %v1856_v35 = vmax.f32 %v1758_v26, 0.0 }
 0x160   : > { %v1807_v40 = vmax.f32 %v1709_v34, 0.0  ;;  %v1857_v42 = vmax.f32 %v1759_v36, 0.0  ;;  %v1064_v43 = vpop.f32.mrb[32].mxu0  ;;  %v1264_v45 = vpop.f32.mrb[32].mxu1 }
 0x161   : > { %v2715_v39 = vpack.c.bf16 %v1806_v33, %v1806_v33  ;;  %v2765_v41 = vpack.c.bf16 %v1856_v35, %v1856_v35  ;;  %v1407_v49 = vadd.f32 %v1064_v43, %v379_v37  ;;  %v2887_v50 = vpop.f32.mrb[33].mxu0  ;;  %v1457_v51 = vadd.f32 %v1264_v45, %v429_v38  ;;  %v2987_v52 = vpop.f32.mrb[33].mxu1  ;;  %v383_v38 = vld [vmem:[#allocation2 + $0xa0] sm:$0xff]  ;;  %v384_v45 = vld [vmem:[#allocation2 + $0xa8] sm:$0xff] }
 0x162   : > { %v2716_v47 = vpack.c.bf16 %v1807_v40, %v1807_v40  ;;  %v2766_v48 = vpack.c.bf16 %v1857_v42, %v1857_v42  ;;  %v1067_v55 = vpop.f32.mrb[34].mxu0  ;;  %v1267_v56 = vpop.f32.mrb[34].mxu1 }
 0x163   : > { %2297 = vst.msk [vmem:[%s3788_s30 + $0x30] sm:$0xf] %vm2284_vm5, %v2715_v39  ;;  %2347 = vst.msk [vmem:[%s3788_s30 + $0xf8] sm:$0xf] %vm2284_vm5, %v2765_v41  ;;  %v1408_v59 = vadd.f32 %v1067_v55, %v380_v44  ;;  %v2888_v60 = vpop.f32.mrb[35].mxu0  ;;  %v1458_v61 = vadd.f32 %v1267_v56, %v430_v46  ;;  %v2988_v62 = vpop.f32.mrb[35].mxu1 }
 0x164   : > { %v1605_v53 = vld [vmem:[#allocation2 + $0x70] sm:$0xff]  ;;  %v1655_v54 = vld [vmem:[#allocation2 + $0x200] sm:$0xff]  ;;  %2298 = vst.msk [vmem:[%s3788_s30 + $0x34] sm:$0xf] %vm2284_vm5, %v2716_v47  ;;  %2348 = vst.msk [vmem:[%s3788_s30 + $0xfc] sm:$0xf] %vm2284_vm5, %v2766_v48 }
 0x165   : > { %v1710_v57 = vadd.f32 %v3773_v9, %v1605_v53  ;;  %v1760_v58 = vadd.f32 %v3773_v9, %v1655_v54  ;;  %1506 = vst.msk [vmem:[#allocation2 + $0x80] sm:$0xff] %vm264_vm4, %v1407_v49  ;;  %1556 = vst.msk [vmem:[#allocation2 + $0x210] sm:$0xff] %vm264_vm4, %v1457_v51  ;;  %v1606_v63 = vld [vmem:[#allocation2 + $0x78] sm:$0xff]  ;;  %v1656_v1 = vld [vmem:[#allocation2 + $0x208] sm:$0xff] }
 0x166   : > { %v1711_v3 = vadd.f32 %v3773_v9, %v1606_v63  ;;  %v1761_v5 = vadd.f32 %v3773_v9, %v1656_v1  ;;  %1507 = vst.msk [vmem:[#allocation2 + $0x88] sm:$0xff] %vm264_vm4, %v1408_v59  ;;  %1557 = vst.msk [vmem:[#allocation2 + $0x218] sm:$0xff] %vm264_vm4, %v1458_v61  ;;  %v433_v39 = vld [vmem:[#allocation2 + $0x230] sm:$0xff]  ;;  %v434_v47 = vld [vmem:[#allocation2 + $0x238] sm:$0xff] }
 0x167   : > { %v1808_v2 = vmax.f32 %v1710_v57, 0.0  ;;  %v1858_v4 = vmax.f32 %v1760_v58, 0.0 }
 0x168   : > { %v1809_v8 = vmax.f32 %v1711_v3, 0.0  ;;  %v1859_v11 = vmax.f32 %v1761_v5, 0.0  ;;  %v1072_v12 = vpop.f32.mrb[36].mxu0  ;;  %v1272_v14 = vpop.f32.mrb[36].mxu1 }
 0x169   : > { %v2717_v7 = vpack.c.bf16 %v1808_v2, %v1808_v2  ;;  %v2767_v10 = vpack.c.bf16 %v1858_v4, %v1858_v4  ;;  %v1409_v18 = vadd.f32 %v1072_v12, %v381_v0  ;;  %v2891_v19 = vpop.f32.mrb[37].mxu0  ;;  %v1459_v20 = vadd.f32 %v1272_v14, %v431_v6  ;;  %v2991_v21 = vpop.f32.mrb[37].mxu1  ;;  %v385_v6 = vld [vmem:[#allocation2 + $0xb0] sm:$0xff]  ;;  %v386_v14 = vld [vmem:[#allocation2 + $0xb8] sm:$0xff] }
 0x16a   : > { %v2718_v16 = vpack.c.bf16 %v1809_v8, %v1809_v8  ;;  %v2768_v17 = vpack.c.bf16 %v1859_v11, %v1859_v11  ;;  %v1075_v24 = vpop.f32.mrb[38].mxu0  ;;  %v1275_v25 = vpop.f32.mrb[38].mxu1 }
 0x16b   : > { %2299 = vst.msk [vmem:[%s3788_s30 + $0x38] sm:$0xf] %vm2284_vm5, %v2717_v7  ;;  %2349 = vst.msk [vmem:[%s3788_s30 + $0x100] sm:$0xf] %vm2284_vm5, %v2767_v10  ;;  %v1410_v28 = vadd.f32 %v1075_v24, %v382_v13  ;;  %v2892_v29 = vpop.f32.mrb[39].mxu0  ;;  %v1460_v30 = vadd.f32 %v1275_v25, %v432_v15  ;;  %v2992_v31 = vpop.f32.mrb[39].mxu1 }
 0x16c   : > { %v1607_v22 = vld [vmem:[#allocation2 + $0x80] sm:$0xff]  ;;  %v1657_v23 = vld [vmem:[#allocation2 + $0x210] sm:$0xff]  ;;  %2300 = vst.msk [vmem:[%s3788_s30 + $0x3c] sm:$0xf] %vm2284_vm5, %v2718_v16  ;;  %2350 = vst.msk [vmem:[%s3788_s30 + $0x104] sm:$0xf] %vm2284_vm5, %v2768_v17 }
 0x16d   : > { %v1712_v26 = vadd.f32 %v3773_v9, %v1607_v22  ;;  %v1762_v27 = vadd.f32 %v3773_v9, %v1657_v23  ;;  %1508 = vst.msk [vmem:[#allocation2 + $0x90] sm:$0xff] %vm264_vm4, %v1409_v18  ;;  %1558 = vst.msk [vmem:[#allocation2 + $0x220] sm:$0xff] %vm264_vm4, %v1459_v20  ;;  %v1608_v32 = vld [vmem:[#allocation2 + $0x88] sm:$0xff]  ;;  %v1658_v33 = vld [vmem:[#allocation2 + $0x218] sm:$0xff] }
 0x16e   : > { %v1713_v35 = vadd.f32 %v3773_v9, %v1608_v32  ;;  %v1763_v37 = vadd.f32 %v3773_v9, %v1658_v33  ;;  %1509 = vst.msk [vmem:[#allocation2 + $0x98] sm:$0xff] %vm264_vm4, %v1410_v28  ;;  %1559 = vst.msk [vmem:[#allocation2 + $0x228] sm:$0xff] %vm264_vm4, %v1460_v30  ;;  %v435_v7 = vld [vmem:[#allocation2 + $0x240] sm:$0xff]  ;;  %v436_v16 = vld [vmem:[#allocation2 + $0x248] sm:$0xff] }
 0x16f   : > { %v1810_v34 = vmax.f32 %v1712_v26, 0.0  ;;  %v1860_v36 = vmax.f32 %v1762_v27, 0.0 }
 0x170   : > { %v1811_v41 = vmax.f32 %v1713_v35, 0.0  ;;  %v1861_v43 = vmax.f32 %v1763_v37, 0.0  ;;  %v1080_v44 = vpop.f32.mrb[40].mxu0  ;;  %v1280_v46 = vpop.f32.mrb[40].mxu1 }
 0x171   : > { %v2719_v40 = vpack.c.bf16 %v1810_v34, %v1810_v34  ;;  %v2769_v42 = vpack.c.bf16 %v1860_v36, %v1860_v36  ;;  %v1411_v50 = vadd.f32 %v1080_v44, %v383_v38  ;;  %v2895_v51 = vpop.f32.mrb[41].mxu0  ;;  %v1461_v52 = vadd.f32 %v1280_v46, %v433_v39  ;;  %v2995_v53 = vpop.f32.mrb[41].mxu1  ;;  %v387_v39 = vld [vmem:[#allocation2 + $0xc0] sm:$0xff]  ;;  %v388_v46 = vld [vmem:[#allocation2 + $0xc8] sm:$0xff] }
 0x172   : > { %v2720_v48 = vpack.c.bf16 %v1811_v41, %v1811_v41  ;;  %v2770_v49 = vpack.c.bf16 %v1861_v43, %v1861_v43  ;;  %v1083_v56 = vpop.f32.mrb[42].mxu0  ;;  %v1283_v57 = vpop.f32.mrb[42].mxu1 }
 0x173   : > { %2301 = vst.msk [vmem:[%s3788_s30 + $0x40] sm:$0xf] %vm2284_vm5, %v2719_v40  ;;  %2351 = vst.msk [vmem:[%s3788_s30 + $0x108] sm:$0xf] %vm2284_vm5, %v2769_v42  ;;  %v1412_v60 = vadd.f32 %v1083_v56, %v384_v45  ;;  %v2896_v61 = vpop.f32.mrb[43].mxu0  ;;  %v1462_v62 = vadd.f32 %v1283_v57, %v434_v47  ;;  %v2996_v63 = vpop.f32.mrb[43].mxu1 }
 0x174   : > { %v1609_v54 = vld [vmem:[#allocation2 + $0x90] sm:$0xff]  ;;  %v1659_v55 = vld [vmem:[#allocation2 + $0x220] sm:$0xff]  ;;  %2302 = vst.msk [vmem:[%s3788_s30 + $0x44] sm:$0xf] %vm2284_vm5, %v2720_v48  ;;  %2352 = vst.msk [vmem:[%s3788_s30 + $0x10c] sm:$0xf] %vm2284_vm5, %v2770_v49 }
 0x175   : > { %v1714_v58 = vadd.f32 %v3773_v9, %v1609_v54  ;;  %v1764_v59 = vadd.f32 %v3773_v9, %v1659_v55  ;;  %1510 = vst.msk [vmem:[#allocation2 + $0xa0] sm:$0xff] %vm264_vm4, %v1411_v50  ;;  %1560 = vst.msk [vmem:[#allocation2 + $0x230] sm:$0xff] %vm264_vm4, %v1461_v52  ;;  %v1610_v1 = vld [vmem:[#allocation2 + $0x98] sm:$0xff]  ;;  %v1660_v2 = vld [vmem:[#allocation2 + $0x228] sm:$0xff] }
 0x176   : > { %v1715_v4 = vadd.f32 %v3773_v9, %v1610_v1  ;;  %v1765_v0 = vadd.f32 %v3773_v9, %v1660_v2  ;;  %1511 = vst.msk [vmem:[#allocation2 + $0xa8] sm:$0xff] %vm264_vm4, %v1412_v60  ;;  %1561 = vst.msk [vmem:[#allocation2 + $0x238] sm:$0xff] %vm264_vm4, %v1462_v62  ;;  %v437_v40 = vld [vmem:[#allocation2 + $0x250] sm:$0xff]  ;;  %v438_v48 = vld [vmem:[#allocation2 + $0x258] sm:$0xff] }
 0x177   : > { %v1812_v3 = vmax.f32 %v1714_v58, 0.0  ;;  %v1862_v5 = vmax.f32 %v1764_v59, 0.0 }
 0x178   : > { %v1813_v10 = vmax.f32 %v1715_v4, 0.0  ;;  %v1863_v12 = vmax.f32 %v1765_v0, 0.0  ;;  %v1088_v13 = vpop.f32.mrb[44].mxu0  ;;  %v1288_v15 = vpop.f32.mrb[44].mxu1 }
 0x179   : > { %v2721_v8 = vpack.c.bf16 %v1812_v3, %v1812_v3  ;;  %v2771_v11 = vpack.c.bf16 %v1862_v5, %v1862_v5  ;;  %v1413_v19 = vadd.f32 %v1088_v13, %v385_v6  ;;  %v2899_v20 = vpop.f32.mrb[45].mxu0  ;;  %v1463_v21 = vadd.f32 %v1288_v15, %v435_v7  ;;  %v2999_v22 = vpop.f32.mrb[45].mxu1  ;;  %v389_v7 = vld [vmem:[#allocation2 + $0xd0] sm:$0xff]  ;;  %v390_v15 = vld [vmem:[#allocation2 + $0xd8] sm:$0xff] }
 0x17a   : > { %v2722_v17 = vpack.c.bf16 %v1813_v10, %v1813_v10  ;;  %v2772_v18 = vpack.c.bf16 %v1863_v12, %v1863_v12  ;;  %v1091_v25 = vpop.f32.mrb[46].mxu0  ;;  %v1291_v26 = vpop.f32.mrb[46].mxu1 }
 0x17b   : > { %2303 = vst.msk [vmem:[%s3788_s30 + $0x48] sm:$0xf] %vm2284_vm5, %v2721_v8  ;;  %2353 = vst.msk [vmem:[%s3788_s30 + $0x110] sm:$0xf] %vm2284_vm5, %v2771_v11  ;;  %v1414_v29 = vadd.f32 %v1091_v25, %v386_v14  ;;  %v2900_v30 = vpop.f32.mrb[47].mxu0  ;;  %v1464_v31 = vadd.f32 %v1291_v26, %v436_v16  ;;  %v3000_v32 = vpop.f32.mrb[47].mxu1 }
 0x17c   : > { %v1611_v23 = vld [vmem:[#allocation2 + $0xa0] sm:$0xff]  ;;  %v1661_v24 = vld [vmem:[#allocation2 + $0x230] sm:$0xff]  ;;  %2304 = vst.msk [vmem:[%s3788_s30 + $0x4c] sm:$0xf] %vm2284_vm5, %v2722_v17  ;;  %2354 = vst.msk [vmem:[%s3788_s30 + $0x114] sm:$0xf] %vm2284_vm5, %v2772_v18 }
 0x17d   : > { %v1716_v27 = vadd.f32 %v3773_v9, %v1611_v23  ;;  %v1766_v28 = vadd.f32 %v3773_v9, %v1661_v24  ;;  %1512 = vst.msk [vmem:[#allocation2 + $0xb0] sm:$0xff] %vm264_vm4, %v1413_v19  ;;  %1562 = vst.msk [vmem:[#allocation2 + $0x240] sm:$0xff] %vm264_vm4, %v1463_v21  ;;  %v1612_v33 = vld [vmem:[#allocation2 + $0xa8] sm:$0xff]  ;;  %v1662_v34 = vld [vmem:[#allocation2 + $0x238] sm:$0xff] }
 0x17e   : > { %v1717_v36 = vadd.f32 %v3773_v9, %v1612_v33  ;;  %v1767_v38 = vadd.f32 %v3773_v9, %v1662_v34  ;;  %1513 = vst.msk [vmem:[#allocation2 + $0xb8] sm:$0xff] %vm264_vm4, %v1414_v29  ;;  %1563 = vst.msk [vmem:[#allocation2 + $0x248] sm:$0xff] %vm264_vm4, %v1464_v31  ;;  %v439_v8 = vld [vmem:[#allocation2 + $0x260] sm:$0xff]  ;;  %v440_v17 = vld [vmem:[#allocation2 + $0x268] sm:$0xff] }
 0x17f   : > { %v1814_v35 = vmax.f32 %v1716_v27, 0.0  ;;  %v1864_v37 = vmax.f32 %v1766_v28, 0.0 }
 0x180   : > { %v1815_v42 = vmax.f32 %v1717_v36, 0.0  ;;  %v1865_v44 = vmax.f32 %v1767_v38, 0.0  ;;  %v1096_v45 = vpop.f32.mrb[48].mxu0  ;;  %v1296_v47 = vpop.f32.mrb[48].mxu1 }
 0x181   : > { %v2723_v41 = vpack.c.bf16 %v1814_v35, %v1814_v35  ;;  %v2773_v43 = vpack.c.bf16 %v1864_v37, %v1864_v37  ;;  %v1415_v51 = vadd.f32 %v1096_v45, %v387_v39  ;;  %v2903_v52 = vpop.f32.mrb[49].mxu0  ;;  %v1465_v53 = vadd.f32 %v1296_v47, %v437_v40  ;;  %v3003_v54 = vpop.f32.mrb[49].mxu1  ;;  %v391_v40 = vld [vmem:[#allocation2 + $0xe0] sm:$0xff]  ;;  %v392_v47 = vld [vmem:[#allocation2 + $0xe8] sm:$0xff] }
 0x182   : > { %v2724_v49 = vpack.c.bf16 %v1815_v42, %v1815_v42  ;;  %v2774_v50 = vpack.c.bf16 %v1865_v44, %v1865_v44  ;;  %v1099_v57 = vpop.f32.mrb[50].mxu0  ;;  %v1299_v58 = vpop.f32.mrb[50].mxu1 }
 0x183   : > { %2305 = vst.msk [vmem:[%s3788_s30 + $0x50] sm:$0xf] %vm2284_vm5, %v2723_v41  ;;  %2355 = vst.msk [vmem:[%s3788_s30 + $0x118] sm:$0xf] %vm2284_vm5, %v2773_v43  ;;  %v1416_v61 = vadd.f32 %v1099_v57, %v388_v46  ;;  %v2904_v62 = vpop.f32.mrb[51].mxu0  ;;  %v1466_v63 = vadd.f32 %v1299_v58, %v438_v48  ;;  %v3004_v1 = vpop.f32.mrb[51].mxu1 }
 0x184   : > { %v1613_v55 = vld [vmem:[#allocation2 + $0xb0] sm:$0xff]  ;;  %v1663_v56 = vld [vmem:[#allocation2 + $0x240] sm:$0xff]  ;;  %2306 = vst.msk [vmem:[%s3788_s30 + $0x54] sm:$0xf] %vm2284_vm5, %v2724_v49  ;;  %2356 = vst.msk [vmem:[%s3788_s30 + $0x11c] sm:$0xf] %vm2284_vm5, %v2774_v50 }
 0x185   : > { %v1718_v59 = vadd.f32 %v3773_v9, %v1613_v55  ;;  %v1768_v60 = vadd.f32 %v3773_v9, %v1663_v56  ;;  %1514 = vst.msk [vmem:[#allocation2 + $0xc0] sm:$0xff] %vm264_vm4, %v1415_v51  ;;  %1564 = vst.msk [vmem:[#allocation2 + $0x250] sm:$0xff] %vm264_vm4, %v1465_v53  ;;  %v1614_v2 = vld [vmem:[#allocation2 + $0xb8] sm:$0xff]  ;;  %v1664_v3 = vld [vmem:[#allocation2 + $0x248] sm:$0xff] }
 0x186   : > { %v1719_v5 = vadd.f32 %v3773_v9, %v1614_v2  ;;  %v1769_v6 = vadd.f32 %v3773_v9, %v1664_v3  ;;  %1515 = vst.msk [vmem:[#allocation2 + $0xc8] sm:$0xff] %vm264_vm4, %v1416_v61  ;;  %1565 = vst.msk [vmem:[#allocation2 + $0x258] sm:$0xff] %vm264_vm4, %v1466_v63  ;;  %v441_v41 = vld [vmem:[#allocation2 + $0x270] sm:$0xff]  ;;  %v442_v49 = vld [vmem:[#allocation2 + $0x278] sm:$0xff] }
 0x187   : > { %v1816_v4 = vmax.f32 %v1718_v59, 0.0  ;;  %v1866_v0 = vmax.f32 %v1768_v60, 0.0  ;;  %v3990_v59 = vld [vmem:[#allocation5] ss:$0 sm:$0xff] }
 0x188   : > { %v1817_v11 = vmax.f32 %v1719_v5, 0.0  ;;  %v1867_v13 = vmax.f32 %v1769_v6, 0.0  ;;  %v1104_v14 = vpop.f32.mrb[52].mxu0  ;;  %v1304_v16 = vpop.f32.mrb[52].mxu1 }
 0x189   : > { %v2725_v10 = vpack.c.bf16 %v1816_v4, %v1816_v4  ;;  %v2775_v12 = vpack.c.bf16 %v1866_v0, %v1866_v0  ;;  %v1417_v20 = vadd.f32 %v1104_v14, %v389_v7  ;;  %v2907_v21 = vpop.f32.mrb[53].mxu0  ;;  %v1467_v22 = vadd.f32 %v1304_v16, %v439_v8  ;;  %v3007_v23 = vpop.f32.mrb[53].mxu1  ;;  %v393_v8 = vld [vmem:[#allocation2 + $0xf0] sm:$0xff]  ;;  %v394_v16 = vld [vmem:[#allocation2 + $0xf8] sm:$0xff] }
 0x18a   : > { %v2726_v18 = vpack.c.bf16 %v1817_v11, %v1817_v11  ;;  %v2776_v19 = vpack.c.bf16 %v1867_v13, %v1867_v13  ;;  %v1107_v26 = vpop.f32.mrb[54].mxu0  ;;  %v1307_v27 = vpop.f32.mrb[54].mxu1 }
 0x18b   : > { %2307 = vst.msk [vmem:[%s3788_s30 + $0x58] sm:$0xf] %vm2284_vm5, %v2725_v10  ;;  %2357 = vst.msk [vmem:[%s3788_s30 + $0x120] sm:$0xf] %vm2284_vm5, %v2775_v12  ;;  %v1418_v30 = vadd.f32 %v1107_v26, %v390_v15  ;;  %v2908_v31 = vpop.f32.mrb[55].mxu0  ;;  %v1468_v32 = vadd.f32 %v1307_v27, %v440_v17  ;;  %v3008_v33 = vpop.f32.mrb[55].mxu1 }
 0x18c   : > { %v1615_v24 = vld [vmem:[#allocation2 + $0xc0] sm:$0xff]  ;;  %v1665_v25 = vld [vmem:[#allocation2 + $0x250] sm:$0xff]  ;;  %2308 = vst.msk [vmem:[%s3788_s30 + $0x5c] sm:$0xf] %vm2284_vm5, %v2726_v18  ;;  %2358 = vst.msk [vmem:[%s3788_s30 + $0x124] sm:$0xf] %vm2284_vm5, %v2776_v19 }
 0x18d   : > { %v1720_v28 = vadd.f32 %v3773_v9, %v1615_v24  ;;  %v1770_v29 = vadd.f32 %v3773_v9, %v1665_v25  ;;  %1516 = vst.msk [vmem:[#allocation2 + $0xd0] sm:$0xff] %vm264_vm4, %v1417_v20  ;;  %1566 = vst.msk [vmem:[#allocation2 + $0x260] sm:$0xff] %vm264_vm4, %v1467_v22  ;;  %v1616_v34 = vld [vmem:[#allocation2 + $0xc8] sm:$0xff]  ;;  %v1666_v35 = vld [vmem:[#allocation2 + $0x258] sm:$0xff] }
 0x18e   : > { %v1721_v37 = vadd.f32 %v3773_v9, %v1616_v34  ;;  %v1771_v39 = vadd.f32 %v3773_v9, %v1666_v35  ;;  %1517 = vst.msk [vmem:[#allocation2 + $0xd8] sm:$0xff] %vm264_vm4, %v1418_v30  ;;  %1567 = vst.msk [vmem:[#allocation2 + $0x268] sm:$0xff] %vm264_vm4, %v1468_v32  ;;  %v443_v10 = vld [vmem:[#allocation2 + $0x280] sm:$0xff]  ;;  %v444_v18 = vld [vmem:[#allocation2 + $0x288] sm:$0xff] }
 0x18f   : > { %v1818_v36 = vmax.f32 %v1720_v28, 0.0  ;;  %v1868_v38 = vmax.f32 %v1770_v29, 0.0 }
 0x190   : > { %v1819_v43 = vmax.f32 %v1721_v37, 0.0  ;;  %v1869_v45 = vmax.f32 %v1771_v39, 0.0  ;;  %v1112_v46 = vpop.f32.mrb[56].mxu0  ;;  %v1312_v48 = vpop.f32.mrb[56].mxu1 }
 0x191   : > { %v2727_v42 = vpack.c.bf16 %v1818_v36, %v1818_v36  ;;  %v2777_v44 = vpack.c.bf16 %v1868_v38, %v1868_v38  ;;  %v1419_v51 = vadd.f32 %v1112_v46, %v391_v40  ;;  %v2911_v52 = vpop.f32.mrb[57].mxu0  ;;  %v1469_v53 = vadd.f32 %v1312_v48, %v441_v41  ;;  %v3011_v54 = vpop.f32.mrb[57].mxu1  ;;  %v395_v41 = vld [vmem:[#allocation2 + $0x100] sm:$0xff]  ;;  %v396_v48 = vld [vmem:[#allocation2 + $0x108] sm:$0xff] }
 0x192   : > { %v2728_v50 = vpack.c.bf16 %v1819_v43, %v1819_v43  ;;  %v2778_v9 = vpack.c.bf16 %v1869_v45, %v1869_v45  ;;  %v1115_v57 = vpop.f32.mrb[58].mxu0  ;;  %v1315_v58 = vpop.f32.mrb[58].mxu1 }
 0x193   : > { %2309 = vst.msk [vmem:[%s3788_s30 + $0x60] sm:$0xf] %vm2284_vm5, %v2727_v42  ;;  %2359 = vst.msk [vmem:[%s3788_s30 + $0x128] sm:$0xf] %vm2284_vm5, %v2777_v44  ;;  %v1420_v62 = vadd.f32 %v1115_v57, %v392_v47  ;;  %v2912_v63 = vpop.f32.mrb[59].mxu0  ;;  %v1470_v1 = vadd.f32 %v1315_v58, %v442_v49  ;;  %v3012_v2 = vpop.f32.mrb[59].mxu1 }
 0x194   : > { %v1617_v55 = vld [vmem:[#allocation2 + $0xd0] sm:$0xff]  ;;  %v1667_v56 = vld [vmem:[#allocation2 + $0x260] sm:$0xff]  ;;  %2310 = vst.msk [vmem:[%s3788_s30 + $0x64] sm:$0xf] %vm2284_vm5, %v2728_v50  ;;  %2360 = vst.msk [vmem:[%s3788_s30 + $0x12c] sm:$0xf] %vm2284_vm5, %v2778_v9 }
 0x195   : > { %v1722_v60 = vadd.f32 %v3990_v59, %v1617_v55  ;;  %v1772_v61 = vadd.f32 %v3990_v59, %v1667_v56  ;;  %1518 = vst.msk [vmem:[#allocation2 + $0xe0] sm:$0xff] %vm264_vm4, %v1419_v51  ;;  %1568 = vst.msk [vmem:[#allocation2 + $0x270] sm:$0xff] %vm264_vm4, %v1469_v53  ;;  %v1618_v3 = vld [vmem:[#allocation2 + $0xd8] sm:$0xff]  ;;  %v1668_v4 = vld [vmem:[#allocation2 + $0x268] sm:$0xff] }
 0x196   : > { %v1723_v0 = vadd.f32 %v3990_v59, %v1618_v3  ;;  %v1773_v7 = vadd.f32 %v3990_v59, %v1668_v4  ;;  %1519 = vst.msk [vmem:[#allocation2 + $0xe8] sm:$0xff] %vm264_vm4, %v1420_v62  ;;  %1569 = vst.msk [vmem:[#allocation2 + $0x278] sm:$0xff] %vm264_vm4, %v1470_v1  ;;  %v445_v42 = vld [vmem:[#allocation2 + $0x290] sm:$0xff]  ;;  %v446_v50 = vld [vmem:[#allocation2 + $0x298] sm:$0xff] }
 0x197   : > { %v1820_v5 = vmax.f32 %v1722_v60, 0.0  ;;  %v1870_v6 = vmax.f32 %v1772_v61, 0.0 }
 0x198   : > { %v1821_v12 = vmax.f32 %v1723_v0, 0.0  ;;  %v1871_v14 = vmax.f32 %v1773_v7, 0.0  ;;  %v1120_v15 = vpop.f32.mrb[60].mxu0  ;;  %v1320_v17 = vpop.f32.mrb[60].mxu1 }
 0x199   : > { %v2729_v11 = vpack.c.bf16 %v1820_v5, %v1820_v5  ;;  %v2779_v13 = vpack.c.bf16 %v1870_v6, %v1870_v6  ;;  %v1421_v21 = vadd.f32 %v1120_v15, %v393_v8  ;;  %v2915_v22 = vpop.f32.mrb[61].mxu0  ;;  %v1471_v23 = vadd.f32 %v1320_v17, %v443_v10  ;;  %v3015_v24 = vpop.f32.mrb[61].mxu1  ;;  %v397_v10 = vld [vmem:[#allocation2 + $0x110] sm:$0xff]  ;;  %v398_v17 = vld [vmem:[#allocation2 + $0x118] sm:$0xff] }
 0x19a   : > { %v2730_v19 = vpack.c.bf16 %v1821_v12, %v1821_v12  ;;  %v2780_v20 = vpack.c.bf16 %v1871_v14, %v1871_v14  ;;  %v1123_v27 = vpop.f32.mrb[62].mxu0  ;;  %v1323_v28 = vpop.f32.mrb[62].mxu1 }
 0x19b   : > { %2311 = vst.msk [vmem:[%s3788_s30 + $0x68] sm:$0xf] %vm2284_vm5, %v2729_v11  ;;  %2361 = vst.msk [vmem:[%s3788_s30 + $0x130] sm:$0xf] %vm2284_vm5, %v2779_v13  ;;  %v1422_v31 = vadd.f32 %v1123_v27, %v394_v16  ;;  %v2916_v32 = vpop.f32.mrb[63].mxu0  ;;  %v1472_v33 = vadd.f32 %v1323_v28, %v444_v18  ;;  %v3016_v34 = vpop.f32.mrb[63].mxu1 }
 0x19c   : > { %v1619_v25 = vld [vmem:[#allocation2 + $0xe0] sm:$0xff]  ;;  %v1669_v26 = vld [vmem:[#allocation2 + $0x270] sm:$0xff]  ;;  %2312 = vst.msk [vmem:[%s3788_s30 + $0x6c] sm:$0xf] %vm2284_vm5, %v2730_v19  ;;  %2362 = vst.msk [vmem:[%s3788_s30 + $0x134] sm:$0xf] %vm2284_vm5, %v2780_v20 }
 0x19d   : > { %v1724_v29 = vadd.f32 %v3990_v59, %v1619_v25  ;;  %v1774_v30 = vadd.f32 %v3990_v59, %v1669_v26  ;;  %1520 = vst.msk [vmem:[#allocation2 + $0xf0] sm:$0xff] %vm264_vm4, %v1421_v21  ;;  %1570 = vst.msk [vmem:[#allocation2 + $0x280] sm:$0xff] %vm264_vm4, %v1471_v23  ;;  %v1620_v35 = vld [vmem:[#allocation2 + $0xe8] sm:$0xff]  ;;  %v1670_v36 = vld [vmem:[#allocation2 + $0x278] sm:$0xff] }
 0x19e   : > { %v1725_v38 = vadd.f32 %v3990_v59, %v1620_v35  ;;  %v1775_v40 = vadd.f32 %v3990_v59, %v1670_v36  ;;  %1521 = vst.msk [vmem:[#allocation2 + $0xf8] sm:$0xff] %vm264_vm4, %v1422_v31  ;;  %1571 = vst.msk [vmem:[#allocation2 + $0x288] sm:$0xff] %vm264_vm4, %v1472_v33  ;;  %v447_v11 = vld [vmem:[#allocation2 + $0x2a0] sm:$0xff]  ;;  %v448_v19 = vld [vmem:[#allocation2 + $0x2a8] sm:$0xff] }
 0x19f   : > { %v1822_v37 = vmax.f32 %v1724_v29, 0.0  ;;  %v1872_v39 = vmax.f32 %v1774_v30, 0.0 }
 0x1a0   : > { %v1823_v44 = vmax.f32 %v1725_v38, 0.0  ;;  %v1873_v46 = vmax.f32 %v1775_v40, 0.0  ;;  %v1128_v47 = vpop.f32.mrb[64].mxu0  ;;  %v1328_v49 = vpop.f32.mrb[64].mxu1 }
 0x1a1   : > { %v2731_v43 = vpack.c.bf16 %v1822_v37, %v1822_v37  ;;  %v2781_v45 = vpack.c.bf16 %v1872_v39, %v1872_v39  ;;  %v1423_v52 = vadd.f32 %v1128_v47, %v395_v41  ;;  %v2919_v53 = vpop.f32.mrb[65].mxu0  ;;  %v1473_v54 = vadd.f32 %v1328_v49, %v445_v42  ;;  %v3019_v55 = vpop.f32.mrb[65].mxu1  ;;  %v399_v42 = vld [vmem:[#allocation2 + $0x120] sm:$0xff]  ;;  %v400_v49 = vld [vmem:[#allocation2 + $0x128] sm:$0xff] }
 0x1a2   : > { %v2732_v9 = vpack.c.bf16 %v1823_v44, %v1823_v44  ;;  %v2782_v51 = vpack.c.bf16 %v1873_v46, %v1873_v46  ;;  %v1131_v58 = vpop.f32.mrb[66].mxu0  ;;  %v1331_v60 = vpop.f32.mrb[66].mxu1 }
 0x1a3   : > { %2313 = vst.msk [vmem:[%s3788_s30 + $0x70] sm:$0xf] %vm2284_vm5, %v2731_v43  ;;  %2363 = vst.msk [vmem:[%s3788_s30 + $0x138] sm:$0xf] %vm2284_vm5, %v2781_v45  ;;  %v1424_v63 = vadd.f32 %v1131_v58, %v396_v48  ;;  %v2920_v1 = vpop.f32.mrb[67].mxu0  ;;  %v1474_v2 = vadd.f32 %v1331_v60, %v446_v50  ;;  %v3020_v3 = vpop.f32.mrb[67].mxu1 }
 0x1a4   : > { %v1621_v56 = vld [vmem:[#allocation2 + $0xf0] sm:$0xff]  ;;  %v1671_v57 = vld [vmem:[#allocation2 + $0x280] sm:$0xff]  ;;  %2314 = vst.msk [vmem:[%s3788_s30 + $0x74] sm:$0xf] %vm2284_vm5, %v2732_v9  ;;  %2364 = vst.msk [vmem:[%s3788_s30 + $0x13c] sm:$0xf] %vm2284_vm5, %v2782_v51 }
 0x1a5   : > { %v1726_v61 = vadd.f32 %v3990_v59, %v1621_v56  ;;  %v1776_v62 = vadd.f32 %v3990_v59, %v1671_v57  ;;  %1522 = vst.msk [vmem:[#allocation2 + $0x100] sm:$0xff] %vm264_vm4, %v1423_v52  ;;  %1572 = vst.msk [vmem:[#allocation2 + $0x290] sm:$0xff] %vm264_vm4, %v1473_v54  ;;  %v1622_v4 = vld [vmem:[#allocation2 + $0xf8] sm:$0xff]  ;;  %v1672_v5 = vld [vmem:[#allocation2 + $0x288] sm:$0xff] }
 0x1a6   : > { %v1727_v6 = vadd.f32 %v3990_v59, %v1622_v4  ;;  %v1777_v8 = vadd.f32 %v3990_v59, %v1672_v5  ;;  %1523 = vst.msk [vmem:[#allocation2 + $0x108] sm:$0xff] %vm264_vm4, %v1424_v63  ;;  %1573 = vst.msk [vmem:[#allocation2 + $0x298] sm:$0xff] %vm264_vm4, %v1474_v2  ;;  %v449_v43 = vld [vmem:[#allocation2 + $0x2b0] sm:$0xff]  ;;  %v450_v9 = vld [vmem:[#allocation2 + $0x2b8] sm:$0xff] }
 0x1a7   : > { %v1824_v0 = vmax.f32 %v1726_v61, 0.0  ;;  %v1874_v7 = vmax.f32 %v1776_v62, 0.0 }
 0x1a8   : > { %v1825_v13 = vmax.f32 %v1727_v6, 0.0  ;;  %v1875_v15 = vmax.f32 %v1777_v8, 0.0  ;;  %v1136_v16 = vpop.f32.mrb[68].mxu0  ;;  %v1336_v18 = vpop.f32.mrb[68].mxu1 }
 0x1a9   : > { %v2733_v12 = vpack.c.bf16 %v1824_v0, %v1824_v0  ;;  %v2783_v14 = vpack.c.bf16 %v1874_v7, %v1874_v7  ;;  %v1425_v22 = vadd.f32 %v1136_v16, %v397_v10  ;;  %v2923_v23 = vpop.f32.mrb[69].mxu0  ;;  %v1475_v24 = vadd.f32 %v1336_v18, %v447_v11  ;;  %v3023_v25 = vpop.f32.mrb[69].mxu1  ;;  %v401_v11 = vld [vmem:[#allocation2 + $0x130] sm:$0xff]  ;;  %v402_v18 = vld [vmem:[#allocation2 + $0x138] sm:$0xff] }
 0x1aa   : > { %v2734_v20 = vpack.c.bf16 %v1825_v13, %v1825_v13  ;;  %v2784_v21 = vpack.c.bf16 %v1875_v15, %v1875_v15  ;;  %v1139_v28 = vpop.f32.mrb[70].mxu0  ;;  %v1339_v29 = vpop.f32.mrb[70].mxu1 }
 0x1ab   : > { %2315 = vst.msk [vmem:[%s3788_s30 + $0x78] sm:$0xf] %vm2284_vm5, %v2733_v12  ;;  %2365 = vst.msk [vmem:[%s3788_s30 + $0x140] sm:$0xf] %vm2284_vm5, %v2783_v14  ;;  %v1426_v32 = vadd.f32 %v1139_v28, %v398_v17  ;;  %v2924_v33 = vpop.f32.mrb[71].mxu0  ;;  %v1476_v34 = vadd.f32 %v1339_v29, %v448_v19  ;;  %v3024_v35 = vpop.f32.mrb[71].mxu1 }
 0x1ac   : > { %v1623_v26 = vld [vmem:[#allocation2 + $0x100] sm:$0xff]  ;;  %v1673_v27 = vld [vmem:[#allocation2 + $0x290] sm:$0xff]  ;;  %2316 = vst.msk [vmem:[%s3788_s30 + $0x7c] sm:$0xf] %vm2284_vm5, %v2734_v20  ;;  %2366 = vst.msk [vmem:[%s3788_s30 + $0x144] sm:$0xf] %vm2284_vm5, %v2784_v21 }
 0x1ad   : > { %v1728_v30 = vadd.f32 %v3990_v59, %v1623_v26  ;;  %v1778_v31 = vadd.f32 %v3990_v59, %v1673_v27  ;;  %1524 = vst.msk [vmem:[#allocation2 + $0x110] sm:$0xff] %vm264_vm4, %v1425_v22  ;;  %1574 = vst.msk [vmem:[#allocation2 + $0x2a0] sm:$0xff] %vm264_vm4, %v1475_v24  ;;  %v1624_v36 = vld [vmem:[#allocation2 + $0x108] sm:$0xff]  ;;  %v1674_v37 = vld [vmem:[#allocation2 + $0x298] sm:$0xff] }
 0x1ae   : > { %v1729_v39 = vadd.f32 %v3990_v59, %v1624_v36  ;;  %v1779_v41 = vadd.f32 %v3990_v59, %v1674_v37  ;;  %1525 = vst.msk [vmem:[#allocation2 + $0x118] sm:$0xff] %vm264_vm4, %v1426_v32  ;;  %1575 = vst.msk [vmem:[#allocation2 + $0x2a8] sm:$0xff] %vm264_vm4, %v1476_v34  ;;  %v451_v12 = vld [vmem:[#allocation2 + $0x2c0] sm:$0xff]  ;;  %v452_v20 = vld [vmem:[#allocation2 + $0x2c8] sm:$0xff] }
 0x1af   : > { %v1826_v38 = vmax.f32 %v1728_v30, 0.0  ;;  %v1876_v40 = vmax.f32 %v1778_v31, 0.0 }
 0x1b0   : > { %v1827_v45 = vmax.f32 %v1729_v39, 0.0  ;;  %v1877_v47 = vmax.f32 %v1779_v41, 0.0  ;;  %v1144_v48 = vpop.f32.mrb[72].mxu0  ;;  %v1344_v50 = vpop.f32.mrb[72].mxu1 }
 0x1b1   : > { %v2735_v44 = vpack.c.bf16 %v1826_v38, %v1826_v38  ;;  %v2785_v46 = vpack.c.bf16 %v1876_v40, %v1876_v40  ;;  %v1427_v53 = vadd.f32 %v1144_v48, %v399_v42  ;;  %v2927_v54 = vpop.f32.mrb[73].mxu0  ;;  %v1477_v55 = vadd.f32 %v1344_v50, %v449_v43  ;;  %v3027_v56 = vpop.f32.mrb[73].mxu1  ;;  %v403_v43 = vld [vmem:[#allocation2 + $0x140] sm:$0xff]  ;;  %v404_v50 = vld [vmem:[#allocation2 + $0x148] sm:$0xff] }
 0x1b2   : > { %v2736_v51 = vpack.c.bf16 %v1827_v45, %v1827_v45  ;;  %v2786_v52 = vpack.c.bf16 %v1877_v47, %v1877_v47  ;;  %v1147_v60 = vpop.f32.mrb[74].mxu0  ;;  %v1347_v61 = vpop.f32.mrb[74].mxu1 }
 0x1b3   : > { %2317 = vst.msk [vmem:[%s3788_s30 + $0x80] sm:$0xf] %vm2284_vm5, %v2735_v44  ;;  %2367 = vst.msk [vmem:[%s3788_s30 + $0x148] sm:$0xf] %vm2284_vm5, %v2785_v46  ;;  %v1428_v1 = vadd.f32 %v1147_v60, %v400_v49  ;;  %v2928_v2 = vpop.f32.mrb[75].mxu0  ;;  %v1478_v3 = vadd.f32 %v1347_v61, %v450_v9  ;;  %v3028_v4 = vpop.f32.mrb[75].mxu1 }
 0x1b4   : > { %v1625_v57 = vld [vmem:[#allocation2 + $0x110] sm:$0xff]  ;;  %v1675_v58 = vld [vmem:[#allocation2 + $0x2a0] sm:$0xff]  ;;  %2318 = vst.msk [vmem:[%s3788_s30 + $0x84] sm:$0xf] %vm2284_vm5, %v2736_v51  ;;  %2368 = vst.msk [vmem:[%s3788_s30 + $0x14c] sm:$0xf] %vm2284_vm5, %v2786_v52 }
 0x1b5   : > { %v1730_v62 = vadd.f32 %v3990_v59, %v1625_v57  ;;  %v1780_v63 = vadd.f32 %v3990_v59, %v1675_v58  ;;  %1526 = vst.msk [vmem:[#allocation2 + $0x120] sm:$0xff] %vm264_vm4, %v1427_v53  ;;  %1576 = vst.msk [vmem:[#allocation2 + $0x2b0] sm:$0xff] %vm264_vm4, %v1477_v55  ;;  %v1626_v5 = vld [vmem:[#allocation2 + $0x118] sm:$0xff]  ;;  %v1676_v0 = vld [vmem:[#allocation2 + $0x2a8] sm:$0xff] }
 0x1b6   : > { %v1731_v7 = vadd.f32 %v3990_v59, %v1626_v5  ;;  %v1781_v10 = vadd.f32 %v3990_v59, %v1676_v0  ;;  %1527 = vst.msk [vmem:[#allocation2 + $0x128] sm:$0xff] %vm264_vm4, %v1428_v1  ;;  %1577 = vst.msk [vmem:[#allocation2 + $0x2b8] sm:$0xff] %vm264_vm4, %v1478_v3  ;;  %v453_v44 = vld [vmem:[#allocation2 + $0x2d0] sm:$0xff]  ;;  %v454_v51 = vld [vmem:[#allocation2 + $0x2d8] sm:$0xff] }
 0x1b7   : > { %v1828_v6 = vmax.f32 %v1730_v62, 0.0  ;;  %v1878_v8 = vmax.f32 %v1780_v63, 0.0 }
 0x1b8   : > { %v1829_v14 = vmax.f32 %v1731_v7, 0.0  ;;  %v1879_v16 = vmax.f32 %v1781_v10, 0.0  ;;  %v1152_v17 = vpop.f32.mrb[76].mxu0  ;;  %v1352_v19 = vpop.f32.mrb[76].mxu1 }
 0x1b9   : > { %v2737_v13 = vpack.c.bf16 %v1828_v6, %v1828_v6  ;;  %v2787_v15 = vpack.c.bf16 %v1878_v8, %v1878_v8  ;;  %v1429_v23 = vadd.f32 %v1152_v17, %v401_v11  ;;  %v2931_v24 = vpop.f32.mrb[77].mxu0  ;;  %v1479_v25 = vadd.f32 %v1352_v19, %v451_v12  ;;  %v3031_v26 = vpop.f32.mrb[77].mxu1  ;;  %v405_v12 = vld [vmem:[#allocation2 + $0x150] sm:$0xff]  ;;  %v406_v19 = vld [vmem:[#allocation2 + $0x158] sm:$0xff] }
 0x1ba   : > { %v2738_v21 = vpack.c.bf16 %v1829_v14, %v1829_v14  ;;  %v2788_v22 = vpack.c.bf16 %v1879_v16, %v1879_v16  ;;  %v1155_v29 = vpop.f32.mrb[78].mxu0  ;;  %v1355_v30 = vpop.f32.mrb[78].mxu1 }
 0x1bb   : > { %2319 = vst.msk [vmem:[%s3788_s30 + $0x88] sm:$0xf] %vm2284_vm5, %v2737_v13  ;;  %2369 = vst.msk [vmem:[%s3788_s30 + $0x150] sm:$0xf] %vm2284_vm5, %v2787_v15  ;;  %v1430_v33 = vadd.f32 %v1155_v29, %v402_v18  ;;  %v2932_v34 = vpop.f32.mrb[79].mxu0  ;;  %v1480_v35 = vadd.f32 %v1355_v30, %v452_v20  ;;  %v3032_v36 = vpop.f32.mrb[79].mxu1 }
 0x1bc   : > { %v1627_v27 = vld [vmem:[#allocation2 + $0x120] sm:$0xff]  ;;  %v1677_v28 = vld [vmem:[#allocation2 + $0x2b0] sm:$0xff]  ;;  %2320 = vst.msk [vmem:[%s3788_s30 + $0x8c] sm:$0xf] %vm2284_vm5, %v2738_v21  ;;  %2370 = vst.msk [vmem:[%s3788_s30 + $0x154] sm:$0xf] %vm2284_vm5, %v2788_v22 }
 0x1bd   : > { %v1732_v31 = vadd.f32 %v3990_v59, %v1627_v27  ;;  %v1782_v32 = vadd.f32 %v3990_v59, %v1677_v28  ;;  %1528 = vst.msk [vmem:[#allocation2 + $0x130] sm:$0xff] %vm264_vm4, %v1429_v23  ;;  %1578 = vst.msk [vmem:[#allocation2 + $0x2c0] sm:$0xff] %vm264_vm4, %v1479_v25  ;;  %v1628_v37 = vld [vmem:[#allocation2 + $0x128] sm:$0xff]  ;;  %v1678_v38 = vld [vmem:[#allocation2 + $0x2b8] sm:$0xff] }
 0x1be   : > { %v1733_v40 = vadd.f32 %v3990_v59, %v1628_v37  ;;  %v1783_v42 = vadd.f32 %v3990_v59, %v1678_v38  ;;  %1529 = vst.msk [vmem:[#allocation2 + $0x138] sm:$0xff] %vm264_vm4, %v1430_v33  ;;  %1579 = vst.msk [vmem:[#allocation2 + $0x2c8] sm:$0xff] %vm264_vm4, %v1480_v35  ;;  %v455_v13 = vld [vmem:[#allocation2 + $0x2e0] sm:$0xff]  ;;  %v456_v21 = vld [vmem:[#allocation2 + $0x2e8] sm:$0xff] }
 0x1bf   : > { %v1830_v39 = vmax.f32 %v1732_v31, 0.0  ;;  %v1880_v41 = vmax.f32 %v1782_v32, 0.0 }
 0x1c0   : > { %v1831_v46 = vmax.f32 %v1733_v40, 0.0  ;;  %v1881_v48 = vmax.f32 %v1783_v42, 0.0  ;;  %v1160_v49 = vpop.f32.mrb[80].mxu0  ;;  %v1360_v9 = vpop.f32.mrb[80].mxu1 }
 0x1c1   : > { %v2739_v45 = vpack.c.bf16 %v1830_v39, %v1830_v39  ;;  %v2789_v47 = vpack.c.bf16 %v1880_v41, %v1880_v41  ;;  %v1431_v54 = vadd.f32 %v1160_v49, %v403_v43  ;;  %v2935_v55 = vpop.f32.mrb[81].mxu0  ;;  %v1481_v56 = vadd.f32 %v1360_v9, %v453_v44  ;;  %v3035_v57 = vpop.f32.mrb[81].mxu1  ;;  %v407_v44 = vld [vmem:[#allocation2 + $0x160] sm:$0xff]  ;;  %v408_v9 = vld [vmem:[#allocation2 + $0x168] sm:$0xff] }
 0x1c2   : > { %v2740_v52 = vpack.c.bf16 %v1831_v46, %v1831_v46  ;;  %v2790_v53 = vpack.c.bf16 %v1881_v48, %v1881_v48  ;;  %v1163_v61 = vpop.f32.mrb[82].mxu0  ;;  %v1363_v62 = vpop.f32.mrb[82].mxu1 }
 0x1c3   : > { %2321 = vst.msk [vmem:[%s3788_s30 + $0x90] sm:$0xf] %vm2284_vm5, %v2739_v45  ;;  %2371 = vst.msk [vmem:[%s3788_s30 + $0x158] sm:$0xf] %vm2284_vm5, %v2789_v47  ;;  %v1432_v2 = vadd.f32 %v1163_v61, %v404_v50  ;;  %v2936_v3 = vpop.f32.mrb[83].mxu0  ;;  %v1482_v4 = vadd.f32 %v1363_v62, %v454_v51  ;;  %v3036_v5 = vpop.f32.mrb[83].mxu1 }
 0x1c4   : > { %v1629_v58 = vld [vmem:[#allocation2 + $0x130] sm:$0xff]  ;;  %v1679_v60 = vld [vmem:[#allocation2 + $0x2c0] sm:$0xff]  ;;  %2322 = vst.msk [vmem:[%s3788_s30 + $0x94] sm:$0xf] %vm2284_vm5, %v2740_v52  ;;  %2372 = vst.msk [vmem:[%s3788_s30 + $0x15c] sm:$0xf] %vm2284_vm5, %v2790_v53 }
 0x1c5   : > { %v1734_v63 = vadd.f32 %v3990_v59, %v1629_v58  ;;  %v1784_v1 = vadd.f32 %v3990_v59, %v1679_v60  ;;  %1530 = vst.msk [vmem:[#allocation2 + $0x140] sm:$0xff] %vm264_vm4, %v1431_v54  ;;  %1580 = vst.msk [vmem:[#allocation2 + $0x2d0] sm:$0xff] %vm264_vm4, %v1481_v56  ;;  %v1630_v0 = vld [vmem:[#allocation2 + $0x138] sm:$0xff]  ;;  %v1680_v6 = vld [vmem:[#allocation2 + $0x2c8] sm:$0xff] }
 0x1c6   : > { %v1735_v8 = vadd.f32 %v3990_v59, %v1630_v0  ;;  %v1785_v11 = vadd.f32 %v3990_v59, %v1680_v6  ;;  %1531 = vst.msk [vmem:[#allocation2 + $0x148] sm:$0xff] %vm264_vm4, %v1432_v2  ;;  %1581 = vst.msk [vmem:[#allocation2 + $0x2d8] sm:$0xff] %vm264_vm4, %v1482_v4  ;;  %v457_v45 = vld [vmem:[#allocation2 + $0x2f0] sm:$0xff]  ;;  %v458_v52 = vld [vmem:[#allocation2 + $0x2f8] sm:$0xff] }
 0x1c7   : > { %v1832_v7 = vmax.f32 %v1734_v63, 0.0  ;;  %v1882_v10 = vmax.f32 %v1784_v1, 0.0 }
 0x1c8   : > { %v1833_v15 = vmax.f32 %v1735_v8, 0.0  ;;  %v1883_v17 = vmax.f32 %v1785_v11, 0.0  ;;  %v1168_v18 = vpop.f32.mrb[84].mxu0  ;;  %v1368_v20 = vpop.f32.mrb[84].mxu1 }
 0x1c9   : > { %v2741_v14 = vpack.c.bf16 %v1832_v7, %v1832_v7  ;;  %v2791_v16 = vpack.c.bf16 %v1882_v10, %v1882_v10  ;;  %v1433_v24 = vadd.f32 %v1168_v18, %v405_v12  ;;  %v2939_v25 = vpop.f32.mrb[85].mxu0  ;;  %v1483_v26 = vadd.f32 %v1368_v20, %v455_v13  ;;  %v3039_v27 = vpop.f32.mrb[85].mxu1  ;;  %v409_v13 = vld [vmem:[#allocation2 + $0x170] sm:$0xff]  ;;  %v410_v20 = vld [vmem:[#allocation2 + $0x178] sm:$0xff] }
 0x1ca   : > { %v2742_v22 = vpack.c.bf16 %v1833_v15, %v1833_v15  ;;  %v2792_v23 = vpack.c.bf16 %v1883_v17, %v1883_v17  ;;  %v1171_v30 = vpop.f32.mrb[86].mxu0  ;;  %v1371_v31 = vpop.f32.mrb[86].mxu1 }
 0x1cb   : > { %2323 = vst.msk [vmem:[%s3788_s30 + $0x98] sm:$0xf] %vm2284_vm5, %v2741_v14  ;;  %2373 = vst.msk [vmem:[%s3788_s30 + $0x160] sm:$0xf] %vm2284_vm5, %v2791_v16  ;;  %v1434_v34 = vadd.f32 %v1171_v30, %v406_v19  ;;  %v2940_v35 = vpop.f32.mrb[87].mxu0  ;;  %v1484_v36 = vadd.f32 %v1371_v31, %v456_v21  ;;  %v3040_v37 = vpop.f32.mrb[87].mxu1 }
 0x1cc   : > { %v1631_v28 = vld [vmem:[#allocation2 + $0x140] sm:$0xff]  ;;  %v1681_v29 = vld [vmem:[#allocation2 + $0x2d0] sm:$0xff]  ;;  %2324 = vst.msk [vmem:[%s3788_s30 + $0x9c] sm:$0xf] %vm2284_vm5, %v2742_v22  ;;  %2374 = vst.msk [vmem:[%s3788_s30 + $0x164] sm:$0xf] %vm2284_vm5, %v2792_v23 }
 0x1cd   : > { %v1736_v32 = vadd.f32 %v3990_v59, %v1631_v28  ;;  %v1786_v33 = vadd.f32 %v3990_v59, %v1681_v29  ;;  %1532 = vst.msk [vmem:[#allocation2 + $0x150] sm:$0xff] %vm264_vm4, %v1433_v24  ;;  %1582 = vst.msk [vmem:[#allocation2 + $0x2e0] sm:$0xff] %vm264_vm4, %v1483_v26  ;;  %v1632_v38 = vld [vmem:[#allocation2 + $0x148] sm:$0xff]  ;;  %v1682_v39 = vld [vmem:[#allocation2 + $0x2d8] sm:$0xff] }
 0x1ce   : > { %v1737_v41 = vadd.f32 %v3990_v59, %v1632_v38  ;;  %v1787_v43 = vadd.f32 %v3990_v59, %v1682_v39  ;;  %1533 = vst.msk [vmem:[#allocation2 + $0x158] sm:$0xff] %vm264_vm4, %v1434_v34  ;;  %1583 = vst.msk [vmem:[#allocation2 + $0x2e8] sm:$0xff] %vm264_vm4, %v1484_v36  ;;  %v459_v14 = vld [vmem:[#allocation2 + $0x300] sm:$0xff]  ;;  %v460_v22 = vld [vmem:[#allocation2 + $0x308] sm:$0xff] }
 0x1cf   : > { %v1834_v40 = vmax.f32 %v1736_v32, 0.0  ;;  %v1884_v42 = vmax.f32 %v1786_v33, 0.0 }
 0x1d0   : > { %v1835_v47 = vmax.f32 %v1737_v41, 0.0  ;;  %v1885_v49 = vmax.f32 %v1787_v43, 0.0  ;;  %v1176_v50 = vpop.f32.mrb[88].mxu0  ;;  %v1376_v51 = vpop.f32.mrb[88].mxu1 }
 0x1d1   : > { %v2743_v46 = vpack.c.bf16 %v1834_v40, %v1834_v40  ;;  %v2793_v48 = vpack.c.bf16 %v1884_v42, %v1884_v42  ;;  %v1435_v55 = vadd.f32 %v1176_v50, %v407_v44  ;;  %v2943_v56 = vpop.f32.mrb[89].mxu0  ;;  %v1485_v57 = vadd.f32 %v1376_v51, %v457_v45  ;;  %v3043_v58 = vpop.f32.mrb[89].mxu1  ;;  %v411_v45 = vld [vmem:[#allocation2 + $0x180] sm:$0xff] }
 0x1d2   : > { %v2744_v53 = vpack.c.bf16 %v1835_v47, %v1835_v47  ;;  %v2794_v54 = vpack.c.bf16 %v1885_v49, %v1885_v49  ;;  %v1179_v62 = vpop.f32.mrb[90].mxu0  ;;  %v1379_v63 = vpop.f32.mrb[90].mxu1 }
 0x1d3   : > { %2325 = vst.msk [vmem:[%s3788_s30 + $0xa0] sm:$0xf] %vm2284_vm5, %v2743_v46  ;;  %2375 = vst.msk [vmem:[%s3788_s30 + $0x168] sm:$0xf] %vm2284_vm5, %v2793_v48  ;;  %v1436_v3 = vadd.f32 %v1179_v62, %v408_v9  ;;  %v2944_v4 = vpop.f32.mrb[91].mxu0  ;;  %v1486_v5 = vadd.f32 %v1379_v63, %v458_v52  ;;  %v3044_v0 = vpop.f32.mrb[91].mxu1 }
 0x1d4   : > { %v1633_v60 = vld [vmem:[#allocation2 + $0x150] sm:$0xff]  ;;  %v1683_v61 = vld [vmem:[#allocation2 + $0x2e0] sm:$0xff]  ;;  %2326 = vst.msk [vmem:[%s3788_s30 + $0xa4] sm:$0xf] %vm2284_vm5, %v2744_v53  ;;  %2376 = vst.msk [vmem:[%s3788_s30 + $0x16c] sm:$0xf] %vm2284_vm5, %v2794_v54 }
 0x1d5   : > { %v1738_v1 = vadd.f32 %v3990_v59, %v1633_v60  ;;  %v1788_v2 = vadd.f32 %v3990_v59, %v1683_v61  ;;  %1534 = vst.msk [vmem:[#allocation2 + $0x160] sm:$0xff] %vm264_vm4, %v1435_v55  ;;  %1584 = vst.msk [vmem:[#allocation2 + $0x2f0] sm:$0xff] %vm264_vm4, %v1485_v57  ;;  %v1634_v6 = vld [vmem:[#allocation2 + $0x158] sm:$0xff]  ;;  %v1684_v7 = vld [vmem:[#allocation2 + $0x2e8] sm:$0xff] }
 0x1d6   : > { %v1739_v10 = vadd.f32 %v3990_v59, %v1634_v6  ;;  %v1789_v12 = vadd.f32 %v3990_v59, %v1684_v7  ;;  %1535 = vst.msk [vmem:[#allocation2 + $0x168] sm:$0xff] %vm264_vm4, %v1436_v3  ;;  %1585 = vst.msk [vmem:[#allocation2 + $0x2f8] sm:$0xff] %vm264_vm4, %v1486_v5  ;;  %v412_v9 = vld [vmem:[#allocation2 + $0x188] sm:$0xff] }
 0x1d7   : > { %v1836_v8 = vmax.f32 %v1738_v1, 0.0  ;;  %v1886_v11 = vmax.f32 %v1788_v2, 0.0 }
 0x1d8   : > { %v1837_v16 = vmax.f32 %v1739_v10, 0.0  ;;  %v1887_v18 = vmax.f32 %v1789_v12, 0.0  ;;  %v1184_v19 = vpop.f32.mrb[92].mxu0  ;;  %v1384_v21 = vpop.f32.mrb[92].mxu1 }
 0x1d9   : > { %v2745_v15 = vpack.c.bf16 %v1836_v8, %v1836_v8  ;;  %v2795_v17 = vpack.c.bf16 %v1886_v11, %v1886_v11  ;;  %v1437_v25 = vadd.f32 %v1184_v19, %v409_v13  ;;  %v2947_v26 = vpop.f32.mrb[93].mxu0  ;;  %v1487_v27 = vadd.f32 %v1384_v21, %v459_v14  ;;  %v3047_v28 = vpop.f32.mrb[93].mxu1 }
 0x1da   : > { %v2746_v23 = vpack.c.bf16 %v1837_v16, %v1837_v16  ;;  %v2796_v24 = vpack.c.bf16 %v1887_v18, %v1887_v18  ;;  %v1187_v31 = vpop.f32.mrb[94].mxu0  ;;  %v1387_v32 = vpop.f32.mrb[94].mxu1 }
 0x1db   : > { %2327 = vst.msk [vmem:[%s3788_s30 + $0xa8] sm:$0xf] %vm2284_vm5, %v2745_v15  ;;  %2377 = vst.msk [vmem:[%s3788_s30 + $0x170] sm:$0xf] %vm2284_vm5, %v2795_v17  ;;  %v1438_v35 = vadd.f32 %v1187_v31, %v410_v20  ;;  %v2948_v36 = vpop.f32.mrb[95].mxu0  ;;  %v1488_v37 = vadd.f32 %v1387_v32, %v460_v22  ;;  %v3048_v38 = vpop.f32.mrb[95].mxu1 }
 0x1dc   : > { %v1635_v29 = vld [vmem:[#allocation2 + $0x160] sm:$0xff]  ;;  %v1685_v30 = vld [vmem:[#allocation2 + $0x2f0] sm:$0xff]  ;;  %2328 = vst.msk [vmem:[%s3788_s30 + $0xac] sm:$0xf] %vm2284_vm5, %v2746_v23  ;;  %2378 = vst.msk [vmem:[%s3788_s30 + $0x174] sm:$0xf] %vm2284_vm5, %v2796_v24 }
 0x1dd   : > { %v1740_v33 = vadd.f32 %v3990_v59, %v1635_v29  ;;  %v1790_v34 = vadd.f32 %v3990_v59, %v1685_v30  ;;  %1536 = vst.msk [vmem:[#allocation2 + $0x170] sm:$0xff] %vm264_vm4, %v1437_v25  ;;  %1586 = vst.msk [vmem:[#allocation2 + $0x300] sm:$0xff] %vm264_vm4, %v1487_v27  ;;  %v1636_v39 = vld [vmem:[#allocation2 + $0x168] sm:$0xff]  ;;  %v1686_v40 = vld [vmem:[#allocation2 + $0x2f8] sm:$0xff] }
 0x1de   : > { %v1741_v42 = vadd.f32 %v3990_v59, %v1636_v39  ;;  %v1791_v44 = vadd.f32 %v3990_v59, %v1686_v40  ;;  %1537 = vst.msk [vmem:[#allocation2 + $0x178] sm:$0xff] %vm264_vm4, %v1438_v35  ;;  %1587 = vst.msk [vmem:[#allocation2 + $0x308] sm:$0xff] %vm264_vm4, %v1488_v37 }
 0x1df   : > { %v1838_v41 = vmax.f32 %v1740_v33, 0.0  ;;  %v1888_v43 = vmax.f32 %v1790_v34, 0.0 }
 0x1e0   : > { %v1839_v47 = vmax.f32 %v1741_v42, 0.0  ;;  %v1889_v49 = vmax.f32 %v1791_v44, 0.0  ;;  %v1192_v50 = vpop.f32.mrb[96].mxu0 }
 0x1e1   : > { %v2747_v46 = vpack.c.bf16 %v1838_v41, %v1838_v41  ;;  %v2797_v48 = vpack.c.bf16 %v1888_v43, %v1888_v43  ;;  %v1439_v53 = vadd.f32 %v1192_v50, %v411_v45  ;;  %v2951_v54 = vpop.f32.mrb[97].mxu0 }
 0x1e2   : > { %v2748_v51 = vpack.c.bf16 %v1839_v47, %v1839_v47  ;;  %v2798_v52 = vpack.c.bf16 %v1889_v49, %v1889_v49  ;;  %v1195_v57 = vpop.f32.mrb[98].mxu0 }
 0x1e3   : > { %2329 = vst.msk [vmem:[%s3788_s30 + $0xb0] sm:$0xf] %vm2284_vm5, %v2747_v46  ;;  %2379 = vst.msk [vmem:[%s3788_s30 + $0x178] sm:$0xf] %vm2284_vm5, %v2797_v48  ;;  %v1440_v61 = vadd.f32 %v1195_v57, %v412_v9  ;;  %v2952_v62 = vpop.f32.mrb[99].mxu0 }
 0x1e4   : > { %v1637_v55 = vld [vmem:[#allocation2 + $0x170] sm:$0xff]  ;;  %v1687_v56 = vld [vmem:[#allocation2 + $0x300] sm:$0xff]  ;;  %2330 = vst.msk [vmem:[%s3788_s30 + $0xb4] sm:$0xf] %vm2284_vm5, %v2748_v51  ;;  %2380 = vst.msk [vmem:[%s3788_s30 + $0x17c] sm:$0xf] %vm2284_vm5, %v2798_v52 }
 0x1e5   : > { %v1742_v58 = vadd.f32 %v3990_v59, %v1637_v55  ;;  %v1792_v60 = vadd.f32 %v3990_v59, %v1687_v56  ;;  %1538 = vst.msk [vmem:[#allocation2 + $0x180] sm:$0xff] %vm264_vm4, %v1439_v53  ;;  %v1638_v63 = vld [vmem:[#allocation2 + $0x178] sm:$0xff]  ;;  %v1688_v1 = vld [vmem:[#allocation2 + $0x308] sm:$0xff]  ;;  %1539 = vst.msk [vmem:[#allocation2 + $0x188] sm:$0xff] %vm264_vm4, %v1440_v61 }
 0x1e6   : > { %v1743_v3 = vadd.f32 %v3990_v59, %v1638_v63  ;;  %v1793_v5 = vadd.f32 %v3990_v59, %v1688_v1 }
 0x1e7   : > { %v1840_v2 = vmax.f32 %v1742_v58, 0.0  ;;  %v1890_v4 = vmax.f32 %v1792_v60, 0.0 }
 0x1e8   : > { %v1841_v6 = vmax.f32 %v1743_v3, 0.0  ;;  %v1891_v8 = vmax.f32 %v1793_v5, 0.0 }
 0x1e9   : > { %v2749_v0 = vpack.c.bf16 %v1840_v2, %v1840_v2  ;;  %v2799_v7 = vpack.c.bf16 %v1890_v4, %v1890_v4 }
 0x1ea   : > { %v2750_v10 = vpack.c.bf16 %v1841_v6, %v1841_v6  ;;  %v2800_v11 = vpack.c.bf16 %v1891_v8, %v1891_v8 }
 0x1eb   : > { %2331 = vst.msk [vmem:[%s3788_s30 + $0xb8] sm:$0xf] %vm2284_vm5, %v2749_v0  ;;  %2381 = vst.msk [vmem:[%s3788_s30 + $0x180] sm:$0xf] %vm2284_vm5, %v2799_v7 }
 0x1ec   : > { %v1639_v12 = vld [vmem:[#allocation2 + $0x180] sm:$0xff]  ;;  %2332 = vst.msk [vmem:[%s3788_s30 + $0xbc] sm:$0xf] %vm2284_vm5, %v2750_v10  ;;  %2382 = vst.msk [vmem:[%s3788_s30 + $0x184] sm:$0xf] %vm2284_vm5, %v2800_v11  ;;  %v1640_v14 = vld [vmem:[#allocation2 + $0x188] sm:$0xff] }
 0x1ed   : > { %v1744_v13 = vadd.f32 %v3990_v59, %v1639_v12  ;;  %v1745_v16 = vadd.f32 %v3990_v59, %v1640_v14 }
 0x1ef   : > { %v1842_v15 = vmax.f32 %v1744_v13, 0.0  ;;  %v1843_v18 = vmax.f32 %v1745_v16, 0.0 }
 0x1f1   : > { %v2751_v17 = vpack.c.bf16 %v1842_v15, %v1842_v15  ;;  %v2752_v19 = vpack.c.bf16 %v1843_v18, %v1843_v18 }
 0x1f3   : > { %2333 = vst.msk [vmem:[%s3788_s30 + $0xc0] sm:$0xf] %vm2284_vm5, %v2751_v17  ;;  %2334 = vst.msk [vmem:[%s3788_s30 + $0xc4] sm:$0xf] %vm2284_vm5, %v2752_v19 }
 0x1f4 PF: > { %s15_s14 = sadd.s32 1, %s3238_s14   ;;  %s4193_s12 = smov %s3234_s13 }
 0x1f5   : > { %p12_p3 = scmp.ge.s32.totalorder %s15_s14, 4   ;;  %s4194_s13 = smov %s4196_s16 }
 0x1f7   :  { %14 = sbr.rel (!%p12_p3) target bundleno = 3 (0x3), region = 81 }
 0x1fe   :  { %2411 = vsyncpa [#allocation4], 1 }
 0x1ff   :  { %2413 = vsyncpa [#allocation4 + $0x1], 1 }
 0x200   :  { %2414 = vsyncpa [#allocation6], 1 }

// kernel: cnn_forward.7
= control target key start
LH: loop header
LB: loop body
LE: loop exit
PB: predicated region body
PF: predicated region fallthrough
CT: control target
= control target key end

     0   :  { %s4612_s12 = smov 0   ;;  %s4614_s13 = smov 0   ;;  %s5919_s0 = inlined_call_operand.vmem [shape: bf16[1568,288], index: 0, kind: input, shape index: {}]   ;;  %s5920_s1 = inlined_call_operand.vmem [shape: bf16[288,64], index: 1, kind: input, shape index: {}]   ;;  %s5921_s2 = inlined_call_operand.vmem [shape: f32[1,64], index: 2, kind: input, shape index: {}]   ;;  %s5922_s3 = inlined_call_operand.vmem [shape: bf16[1568,64], index: 3, kind: output, shape index: {}]  }
   0x1   :  { %s4616_s14 = smov 0  }
   0x2 LB: > { %s32_s15 = sadd.s32 1, %s4583_s13  ;;  %p3654_p0 = scmp.ge.s32.totalorder %s4587_s14, 1  ;;  %s4587_s14 = sphi %s4616_s14, %s13_s14   ;;  %s4583_s13 = sphi %s4614_s13, %s5924_s13   ;;  %s4579_s12 = sphi %s4612_s12, %s5923_s12  }
   0x3   : > { %p34_p1 = scmp.ge.s32.totalorder %s32_s15, 2  ;;  %p191_p2 = scmp.lt.s32.totalorder %s4587_s14, 3 }
   0x5   : > { %s5926_s15 = smov (%p34_p1, %s32_s15), 0  ;;  %p192_p3 = pnand %p3654_p0, %p191_p2 }
   0x6   : > { %v4349_v0 = vld [vmem:[%s5920_s1] sm:$0xff] (!%p192_p3)   ;;  %v4589_v1 = vmov (!%p192_p3), 0   ;;  %v4350_v2 = vld [vmem:[%s5920_s1 + $0x8] sm:$0xff] (!%p192_p3)   ;;  %v4590_v3 = vmov (!%p192_p3), 0.0   ;;  %vm4591_vm0 = vmmov (!%p192_p3), 0   ;;  %s234_s20 = smul.u32 (!%p192_p3), 98, %s4579_s12 }
   0x7   : > { %195 = sbr.rel (%p192_p3) target bundleno = 688 (0x2b0), region = 32  ;;  %1692 = vmatprep.subr.bf16.mxu0 (!%p192_p3), %v4589_v1  ;;  %4121 = vmatprep.subr.bf16.mxu1 (!%p192_p3), %v4590_v3  ;;  %v4351_v4 = vld [vmem:[%s5920_s1 + $0x10] sm:$0xff] (!%p192_p3)   ;;  %v4352_v5 = vld [vmem:[%s5920_s1 + $0x18] sm:$0xff] (!%p192_p3)   ;;  %v4353_v6 = vld [vmem:[%s5920_s1 + $0x20] sm:$0xff] (!%p192_p3)   ;;  %vm1544_vm1 = vcmask (!%p192_p3), 261120   ;;  %vm272_vm2 = vcmask (!%p192_p3), 523264  }
   0x8   : > { %1693 = vmatpush1.bf16.msra.mxu0 (!%p192_p3), %v4349_v0  ;;  %4125 = vmatprep.mubr.msk.bf16.mxu1 (!%p192_p3), %vm4591_vm0, %v4590_v3  ;;  %p236_p4 = scmp.lt.s32.totalorder (!%p192_p3), %s234_s20, 195  ;;  %v4363_v7 = vld [vmem:[%s5920_s1 + $0x80] sm:$0xff] (!%p192_p3)   ;;  %v4365_v8 = vld [vmem:[%s5920_s1 + $0x88] sm:$0xff] (!%p192_p3)   ;;  %v4355_v12 = vld [vmem:[%s5920_s1 + $0x30] sm:$0xff] (!%p192_p3)   ;;  %273 = vst.msk [vmem:[#allocation2] sm:$0xff] (!%p192_p3), %vm272_vm2, %v4590_v3  ;;  %vm3435_vm3 = vcmask (!%p192_p3), 519168  }
   0x9   : > { %1694 = vmatprep.subr.bf16.mxu0 (!%p192_p3), %v4589_v1  ;;  %4122 = vmatpush3.bf16.msra.mxu1 (!%p192_p3), %v4363_v7  ;;  %v4354_v9 = vld [vmem:[%s5920_s1 + $0x28] sm:$0xff] (!%p192_p3)   ;;  %v4356_v13 = vld [vmem:[%s5920_s1 + $0x38] sm:$0xff] (!%p192_p3)   ;;  %v4357_v15 = vld [vmem:[%s5920_s1 + $0x40] sm:$0xff] (!%p192_p3)   ;;  %274 = vst.msk [vmem:[#allocation2 + $0x8] sm:$0xff] (!%p192_p3), %vm272_vm2, %v4590_v3 }
   0xa   : > { %4123 = vmatprep.subr.bf16.mxu1 (!%p192_p3), %v4590_v3  ;;  %v4358_v16 = vld [vmem:[%s5920_s1 + $0x48] sm:$0xff] (!%p192_p3)   ;;  %v4359_v18 = vld [vmem:[%s5920_s1 + $0x50] sm:$0xff] (!%p192_p3)   ;;  %v4360_v19 = vld [vmem:[%s5920_s1 + $0x58] sm:$0xff] (!%p192_p3)   ;;  %275 = vst.msk [vmem:[#allocation2 + $0x10] sm:$0xff] (!%p192_p3), %vm272_vm2, %v4590_v3 }
   0xb   : > { %v4361_v21 = vld [vmem:[%s5920_s1 + $0x60] sm:$0xff] (!%p192_p3)   ;;  %v4362_v22 = vld [vmem:[%s5920_s1 + $0x68] sm:$0xff] (!%p192_p3)   ;;  %v4364_v24 = vld [vmem:[%s5920_s1 + $0x70] sm:$0xff] (!%p192_p3)   ;;  %276 = vst.msk [vmem:[#allocation2 + $0x18] sm:$0xff] (!%p192_p3), %vm272_vm2, %v4590_v3 }
   0xc   : > { %1695 = vmatpush1.bf16.msra.mxu0 (!%p192_p3), %v4350_v2  ;;  %v4366_v25 = vld [vmem:[%s5920_s1 + $0x78] sm:$0xff] (!%p192_p3)   ;;  %277 = vst.msk [vmem:[#allocation2 + $0x20] sm:$0xff] (!%p192_p3), %vm272_vm2, %v4590_v3  ;;  %278 = vst.msk [vmem:[#allocation2 + $0x28] sm:$0xff] (!%p192_p3), %vm272_vm2, %v4590_v3 }
   0xd   : > { %1696 = vmatprep.subr.bf16.mxu0 (!%p192_p3), %v4589_v1  ;;  %4124 = vmatpush3.bf16.msra.mxu1 (!%p192_p3), %v4365_v8  ;;  %279 = vst.msk [vmem:[#allocation2 + $0x30] sm:$0xff] (!%p192_p3), %vm272_vm2, %v4590_v3  ;;  %280 = vst.msk [vmem:[#allocation2 + $0x38] sm:$0xff] (!%p192_p3), %vm272_vm2, %v4590_v3 }
   0xe   : > { %s5928_s20 = smov (!%p236_p4, %s234_s20), 195  ;;  %281 = vst.msk [vmem:[#allocation2 + $0x40] sm:$0xff] %vm272_vm2, %v4590_v3  ;;  %282 = vst.msk [vmem:[#allocation2 + $0x48] sm:$0xff] %vm272_vm2, %v4590_v3 }
   0xf   : > { %s4321_s25 = smul.u32 12, %s5928_s20  ;;  %283 = vst.msk [vmem:[#allocation2 + $0x50] sm:$0xff] %vm272_vm2, %v4590_v3  ;;  %284 = vst.msk [vmem:[#allocation2 + $0x58] sm:$0xff] %vm272_vm2, %v4590_v3  ;;  %s3656_s10 = sshll.u32 %s5928_s20, 2 }
  0x10   : > { %1697 = vmatpush1.bf16.msra.mxu0 %v4351_v4  ;;  %285 = vst.msk [vmem:[#allocation2 + $0x60] sm:$0xff] %vm272_vm2, %v4590_v3  ;;  %286 = vst.msk [vmem:[#allocation2 + $0x68] sm:$0xff] %vm272_vm2, %v4590_v3  ;;  %s5156_s12 = scalar_lea.vmem %s5922_s3, %s3656_s10 }
  0x11   : > { %1698 = vmatprep.subr.bf16.mxu0 %v4589_v1  ;;  %s4665_s7 = scalar_lea.vmem %s5919_s0, %s4321_s25  ;;  %287 = vst.msk [vmem:[#allocation2 + $0x70] sm:$0xff] %vm272_vm2, %v4590_v3  ;;  %288 = vst.msk [vmem:[#allocation2 + $0x78] sm:$0xff] %vm272_vm2, %v4590_v3 }
  0x12   : > { %v4367_v10 = vld [vmem:[%s4665_s7 + $0x8] ss:$12 sps:$4 sm:$0xff]   ;;  %v4370_v11 = vld [vmem:[%s4665_s7 + $0x4] ss:$12 sps:$4 sm:$0xff]   ;;  %v4371_v14 = vld [vmem:[%s4665_s7 + $0x20] ss:$12 sps:$4 sm:$0xff]  }
  0x13   : > { %1724 = vmatprep.mubr.bf16.mxu0 %v4370_v11  ;;  %4126 = vmatmul.mubr.msk.bf16.vlgmr.msra.gmra.mrb[0].mxu1 %vm1544_vm1, %v4367_v10  ;;  %v4375_v17 = vld [vmem:[%s4665_s7 + $0x38] ss:$12 sps:$4 sm:$0xff]   ;;  %v4379_v20 = vld [vmem:[%s4665_s7 + $0x50] ss:$12 sps:$4 sm:$0xff]   ;;  %v4383_v23 = vld [vmem:[%s4665_s7 + $0x68] ss:$12 sps:$4 sm:$0xff]  }
  0x14   : > { %1699 = vmatpush1.bf16.msra.mxu0 %v4352_v5  ;;  %4129 = vmatprep.mubr.msk.bf16.mxu1 %vm4591_vm0, %v4590_v3  ;;  %v4387_v26 = vld [vmem:[%s4665_s7 + $0x80] ss:$12 sps:$4 sm:$0xff]   ;;  %v4372_v28 = vld [vmem:[%s4665_s7 + $0x1c] ss:$12 sps:$4 sm:$0xff]   ;;  %v4391_v29 = vld [vmem:[%s4665_s7 + $0x98] ss:$12 sps:$4 sm:$0xff]  }
  0x15   : > { %1700 = vmatprep.subr.bf16.mxu0 %v4589_v1  ;;  %v4368_v27 = vld [vmem:[%s4665_s7] ss:$12 sps:$4 sm:$0xff]   ;;  %v4374_v30 = vld [vmem:[%s4665_s7 + $0x18] ss:$12 sps:$4 sm:$0xff]   ;;  %v4395_v32 = vld [vmem:[%s4665_s7 + $0xb0] ss:$12 sps:$4 sm:$0xff]  }
  0x16   : > { %v4376_v31 = vld [vmem:[%s4665_s7 + $0x34] ss:$12 sps:$4 sm:$0xff]   ;;  %v4378_v33 = vld [vmem:[%s4665_s7 + $0x30] ss:$12 sps:$4 sm:$0xff]   ;;  %v4380_v34 = vld [vmem:[%s4665_s7 + $0x4c] ss:$12 sps:$4 sm:$0xff]  }
  0x17   : > { %v4399_v35 = vld [vmem:[%s4665_s7 + $0xc8] ss:$12 sps:$4 sm:$0xff]   ;;  %v4384_v37 = vld [vmem:[%s4665_s7 + $0x64] ss:$12 sps:$4 sm:$0xff]   ;;  %v4403_v38 = vld [vmem:[%s4665_s7 + $0xe0] ss:$12 sps:$4 sm:$0xff]  }
  0x18   : > { %1701 = vmatpush1.bf16.msra.mxu0 %v4353_v6  ;;  %v4382_v36 = vld [vmem:[%s4665_s7 + $0x48] ss:$12 sps:$4 sm:$0xff]   ;;  %v4386_v39 = vld [vmem:[%s4665_s7 + $0x60] ss:$12 sps:$4 sm:$0xff]   ;;  %v4407_v41 = vld [vmem:[%s4665_s7 + $0xf8] ss:$12 sps:$4 sm:$0xff]  }
  0x19   : > { %1702 = vmatprep.subr.bf16.mxu0 %v4589_v1  ;;  %v4388_v40 = vld [vmem:[%s4665_s7 + $0x7c] ss:$12 sps:$4 sm:$0xff]   ;;  %v4390_v42 = vld [vmem:[%s4665_s7 + $0x78] ss:$12 sps:$4 sm:$0xff]   ;;  %v4392_v43 = vld [vmem:[%s4665_s7 + $0x94] ss:$12 sps:$4 sm:$0xff]  }
  0x1a   : > { %v4411_v44 = vld [vmem:[%s4665_s7 + $0x110] ss:$12 sps:$4 sm:$0xff]   ;;  %v4396_v46 = vld [vmem:[%s4665_s7 + $0xac] ss:$12 sps:$4 sm:$0xff]   ;;  %v4415_v47 = vld [vmem:[%s4665_s7 + $0x128] ss:$12 sps:$4 sm:$0xff]  }
  0x1b   : > { %4130 = vmatmul.mubr.msk.bf16.gmra.mrb[4].mxu1 %vm1544_vm1, %v4371_v14  ;;  %v4394_v45 = vld [vmem:[%s4665_s7 + $0x90] ss:$12 sps:$4 sm:$0xff]   ;;  %v4398_v48 = vld [vmem:[%s4665_s7 + $0xa8] ss:$12 sps:$4 sm:$0xff]   ;;  %v4419_v50 = vld [vmem:[%s4665_s7 + $0x140] ss:$12 sps:$4 sm:$0xff]  }
  0x1c   : > { %1703 = vmatpush1.bf16.msra.mxu0 %v4354_v9  ;;  %4133 = vmatprep.mubr.msk.bf16.mxu1 %vm4591_vm0, %v4590_v3  ;;  %v4400_v49 = vld [vmem:[%s4665_s7 + $0xc4] ss:$12 sps:$4 sm:$0xff]   ;;  %v4402_v51 = vld [vmem:[%s4665_s7 + $0xc0] ss:$12 sps:$4 sm:$0xff]   ;;  %v4404_v52 = vld [vmem:[%s4665_s7 + $0xdc] ss:$12 sps:$4 sm:$0xff]  }
  0x1d   : > { %1704 = vmatprep.subr.bf16.mxu0 %v4589_v1  ;;  %v4423_v53 = vld [vmem:[%s4665_s7 + $0x158] ss:$12 sps:$4 sm:$0xff]   ;;  %v4408_v55 = vld [vmem:[%s4665_s7 + $0xf4] ss:$12 sps:$4 sm:$0xff]   ;;  %v4427_v56 = vld [vmem:[%s4665_s7 + $0x170] ss:$12 sps:$4 sm:$0xff]  }
  0x1e   : > { %v4406_v54 = vld [vmem:[%s4665_s7 + $0xd8] ss:$12 sps:$4 sm:$0xff]   ;;  %v4795_v57 = vld [vmem:[%s4665_s7 + $0xf0] ss:$12 sps:$4 sm:$0xff]   ;;  %289 = vst.msk [vmem:[#allocation2 + $0x80] sm:$0xff] %vm272_vm2, %v4590_v3  ;;  %290 = vst.msk [vmem:[#allocation2 + $0x88] sm:$0xff] %vm272_vm2, %v4590_v3 }
  0x1f   : > { %v4798_v58 = vld [vmem:[%s4665_s7 + $0x10c] ss:$12 sps:$4 sm:$0xff]   ;;  %291 = vst.msk [vmem:[#allocation2 + $0x90] sm:$0xff] %vm272_vm2, %v4590_v3  ;;  %292 = vst.msk [vmem:[#allocation2 + $0x98] sm:$0xff] %vm272_vm2, %v4590_v3  ;;  %v4431_v59 = vld [vmem:[%s4665_s7 + $0x188] ss:$12 sps:$4 sm:$0xff]  }
  0x20   : > { %1705 = vmatpush1.bf16.msra.mxu0 %v4355_v12  ;;  %293 = vst.msk [vmem:[#allocation2 + $0xa0] sm:$0xff] %vm272_vm2, %v4590_v3  ;;  %294 = vst.msk [vmem:[#allocation2 + $0xa8] sm:$0xff] %vm272_vm2, %v4590_v3  ;;  %v4414_v60 = vld [vmem:[%s4665_s7 + $0x108] ss:$12 sps:$4 sm:$0xff]   ;;  %v4416_v61 = vld [vmem:[%s4665_s7 + $0x124] ss:$12 sps:$4 sm:$0xff]  }
  0x21   : > { %1706 = vmatprep.subr.bf16.mxu0 %v4589_v1  ;;  %295 = vst.msk [vmem:[#allocation2 + $0xb0] sm:$0xff] %vm272_vm2, %v4590_v3  ;;  %296 = vst.msk [vmem:[#allocation2 + $0xb8] sm:$0xff] %vm272_vm2, %v4590_v3  ;;  %v4435_v62 = vld [vmem:[%s4665_s7 + $0x1a0] ss:$12 sps:$4 sm:$0xff]   ;;  %v4420_v0 = vld [vmem:[%s4665_s7 + $0x13c] ss:$12 sps:$4 sm:$0xff]  }
  0x22   : > { %297 = vst.msk [vmem:[#allocation2 + $0xc0] sm:$0xff] %vm272_vm2, %v4590_v3  ;;  %298 = vst.msk [vmem:[#allocation2 + $0xc8] sm:$0xff] %vm272_vm2, %v4590_v3  ;;  %v4418_v63 = vld [vmem:[%s4665_s7 + $0x120] ss:$12 sps:$4 sm:$0xff]   ;;  %v4422_v2 = vld [vmem:[%s4665_s7 + $0x138] ss:$12 sps:$4 sm:$0xff]  }
  0x23   : > { %4134 = vmatmul.mubr.msk.bf16.gmra.mrb[8].mxu1 %vm1544_vm1, %v4375_v17  ;;  %299 = vst.msk [vmem:[#allocation2 + $0xd0] sm:$0xff] %vm272_vm2, %v4590_v3  ;;  %300 = vst.msk [vmem:[#allocation2 + $0xd8] sm:$0xff] %vm272_vm2, %v4590_v3  ;;  %v4424_v4 = vld [vmem:[%s4665_s7 + $0x154] ss:$12 sps:$4 sm:$0xff]   ;;  %v4443_v5 = vld [vmem:[%s4665_s7 + $0x1d0] ss:$12 sps:$4 sm:$0xff]  }
  0x24   : > { %1707 = vmatpush1.bf16.msra.mxu0 %v4356_v13  ;;  %4137 = vmatprep.mubr.msk.bf16.mxu1 %vm4591_vm0, %v4590_v3  ;;  %301 = vst.msk [vmem:[#allocation2 + $0xe0] sm:$0xff] %vm272_vm2, %v4590_v3  ;;  %302 = vst.msk [vmem:[#allocation2 + $0xe8] sm:$0xff] %vm272_vm2, %v4590_v3  ;;  %v4426_v6 = vld [vmem:[%s4665_s7 + $0x150] ss:$12 sps:$4 sm:$0xff]   ;;  %v4428_v7 = vld [vmem:[%s4665_s7 + $0x16c] ss:$12 sps:$4 sm:$0xff]  }
  0x25   : > { %1708 = vmatprep.subr.bf16.mxu0 %v4589_v1  ;;  %303 = vst.msk [vmem:[#allocation2 + $0xf0] sm:$0xff] %vm272_vm2, %v4590_v3  ;;  %304 = vst.msk [vmem:[#allocation2 + $0xf8] sm:$0xff] %vm272_vm2, %v4590_v3  ;;  %v4447_v8 = vld [vmem:[%s4665_s7 + $0x1e8] ss:$12 sps:$4 sm:$0xff]   ;;  %v4432_v10 = vld [vmem:[%s4665_s7 + $0x184] ss:$12 sps:$4 sm:$0xff]  }
  0x26   : > { %305 = vst.msk [vmem:[#allocation2 + $0x100] sm:$0xff] %vm272_vm2, %v4590_v3  ;;  %306 = vst.msk [vmem:[#allocation2 + $0x108] sm:$0xff] %vm272_vm2, %v4590_v3  ;;  %v4430_v9 = vld [vmem:[%s4665_s7 + $0x168] ss:$12 sps:$4 sm:$0xff]   ;;  %v4451_v11 = vld [vmem:[%s4665_s7 + $0x200] ss:$12 sps:$4 sm:$0xff]  }
  0x27   : > { %307 = vst.msk [vmem:[#allocation2 + $0x110] sm:$0xff] %vm272_vm2, %v4590_v3  ;;  %308 = vst.msk [vmem:[#allocation2 + $0x118] sm:$0xff] %vm272_vm2, %v4590_v3  ;;  %v4434_v12 = vld [vmem:[%s4665_s7 + $0x180] ss:$12 sps:$4 sm:$0xff]   ;;  %v4436_v13 = vld [vmem:[%s4665_s7 + $0x19c] ss:$12 sps:$4 sm:$0xff]  }
  0x28   : > { %1709 = vmatpush1.bf16.msra.mxu0 %v4357_v15  ;;  %309 = vst.msk [vmem:[#allocation2 + $0x120] sm:$0xff] %vm272_vm2, %v4590_v3  ;;  %310 = vst.msk [vmem:[#allocation2 + $0x128] sm:$0xff] %vm272_vm2, %v4590_v3  ;;  %v4455_v14 = vld [vmem:[%s4665_s7 + $0x218] ss:$12 sps:$4 sm:$0xff]   ;;  %v4459_v17 = vld [vmem:[%s4665_s7 + $0x230] ss:$12 sps:$4 sm:$0xff]  }
  0x29   : > { %1710 = vmatprep.subr.bf16.mxu0 %v4589_v1  ;;  %311 = vst.msk [vmem:[#allocation2 + $0x130] sm:$0xff] %vm272_vm2, %v4590_v3  ;;  %312 = vst.msk [vmem:[#allocation2 + $0x138] sm:$0xff] %vm272_vm2, %v4590_v3  ;;  %v4438_v15 = vld [vmem:[%s4665_s7 + $0x198] ss:$12 sps:$4 sm:$0xff]  }
  0x2a   : > { %313 = vst.msk [vmem:[#allocation2 + $0x140] sm:$0xff] %vm272_vm2, %v4590_v3  ;;  %314 = vst.msk [vmem:[#allocation2 + $0x148] sm:$0xff] %vm272_vm2, %v4590_v3 }
  0x2b   : > { %4138 = vmatmul.mubr.msk.bf16.gmra.mrb[12].mxu1 %vm1544_vm1, %v4379_v20  ;;  %315 = vst.msk [vmem:[#allocation2 + $0x150] sm:$0xff] %vm272_vm2, %v4590_v3  ;;  %316 = vst.msk [vmem:[#allocation2 + $0x158] sm:$0xff] %vm272_vm2, %v4590_v3  ;;  %v4463_v20 = vld [vmem:[%s4665_s7 + $0x248] ss:$12 sps:$4 sm:$0xff]  }
  0x2c   : > { %1711 = vmatpush1.bf16.msra.mxu0 %v4358_v16  ;;  %4141 = vmatprep.mubr.msk.bf16.mxu1 %vm4591_vm0, %v4590_v3  ;;  %317 = vst.msk [vmem:[#allocation2 + $0x160] sm:$0xff] %vm272_vm2, %v4590_v3  ;;  %318 = vst.msk [vmem:[#allocation2 + $0x168] sm:$0xff] %vm272_vm2, %v4590_v3  ;;  %v4440_v16 = vld [vmem:[%s4665_s7 + $0x1b4] ss:$12 sps:$4 sm:$0xff]  }
  0x2d   : > { %1712 = vmatprep.subr.bf16.mxu0 %v4589_v1  ;;  %319 = vst.msk [vmem:[#allocation2 + $0x170] sm:$0xff] %vm272_vm2, %v4590_v3  ;;  %320 = vst.msk [vmem:[#allocation2 + $0x178] sm:$0xff] %vm272_vm2, %v4590_v3 }
  0x2e   : > { %321 = vst.msk [vmem:[#allocation2 + $0x180] sm:$0xff] %vm272_vm2, %v4590_v3  ;;  %322 = vst.msk [vmem:[#allocation2 + $0x188] sm:$0xff] %vm272_vm2, %v4590_v3 }
  0x2f   : > { %323 = vst.msk [vmem:[#allocation2 + $0x190] sm:$0xff] %vm272_vm2, %v4590_v3  ;;  %324 = vst.msk [vmem:[#allocation2 + $0x198] sm:$0xff] %vm272_vm2, %v4590_v3 }
  0x30   : > { %1713 = vmatpush1.bf16.msra.mxu0 %v4359_v18  ;;  %325 = vst.msk [vmem:[#allocation2 + $0x1a0] sm:$0xff] %vm272_vm2, %v4590_v3  ;;  %326 = vst.msk [vmem:[#allocation2 + $0x1a8] sm:$0xff] %vm272_vm2, %v4590_v3  ;;  %v4442_v18 = vld [vmem:[%s4665_s7 + $0x1b0] ss:$12 sps:$4 sm:$0xff]  }
  0x31   : > { %1714 = vmatprep.subr.bf16.mxu0 %v4589_v1  ;;  %327 = vst.msk [vmem:[#allocation2 + $0x1b0] sm:$0xff] %vm272_vm2, %v4590_v3  ;;  %328 = vst.msk [vmem:[#allocation2 + $0x1b8] sm:$0xff] %vm272_vm2, %v4590_v3 }
  0x32   : > { %329 = vst.msk [vmem:[#allocation2 + $0x1c0] sm:$0xff] %vm272_vm2, %v4590_v3  ;;  %330 = vst.msk [vmem:[#allocation2 + $0x1c8] sm:$0xff] %vm272_vm2, %v4590_v3 }
  0x33   : > { %4142 = vmatmul.mubr.msk.bf16.gmra.mrb[16].mxu1 %vm1544_vm1, %v4383_v23  ;;  %331 = vst.msk [vmem:[#allocation2 + $0x1d0] sm:$0xff] %vm272_vm2, %v4590_v3  ;;  %332 = vst.msk [vmem:[#allocation2 + $0x1d8] sm:$0xff] %vm272_vm2, %v4590_v3  ;;  %v4467_v23 = vld [vmem:[%s4665_s7 + $0x260] ss:$12 sps:$4 sm:$0xff]  }
  0x34   : > { %1715 = vmatpush1.bf16.msra.mxu0 %v4360_v19  ;;  %4145 = vmatprep.mubr.msk.bf16.mxu1 %vm4591_vm0, %v4590_v3  ;;  %333 = vst.msk [vmem:[#allocation2 + $0x1e0] sm:$0xff] %vm272_vm2, %v4590_v3  ;;  %334 = vst.msk [vmem:[#allocation2 + $0x1e8] sm:$0xff] %vm272_vm2, %v4590_v3  ;;  %v4444_v19 = vld [vmem:[%s4665_s7 + $0x1cc] ss:$12 sps:$4 sm:$0xff]  }
  0x35   : > { %1716 = vmatprep.subr.bf16.mxu0 %v4589_v1  ;;  %335 = vst.msk [vmem:[#allocation2 + $0x1f0] sm:$0xff] %vm272_vm2, %v4590_v3  ;;  %336 = vst.msk [vmem:[#allocation2 + $0x1f8] sm:$0xff] %vm272_vm2, %v4590_v3 }
  0x36   : > { %337 = vst.msk [vmem:[#allocation2 + $0x200] sm:$0xff] %vm272_vm2, %v4590_v3  ;;  %338 = vst.msk [vmem:[#allocation2 + $0x208] sm:$0xff] %vm272_vm2, %v4590_v3 }
  0x37   : > { %339 = vst.msk [vmem:[#allocation2 + $0x210] sm:$0xff] %vm272_vm2, %v4590_v3  ;;  %340 = vst.msk [vmem:[#allocation2 + $0x218] sm:$0xff] %vm272_vm2, %v4590_v3 }
  0x38   : > { %1717 = vmatpush1.bf16.msra.mxu0 %v4361_v21  ;;  %341 = vst.msk [vmem:[#allocation2 + $0x220] sm:$0xff] %vm272_vm2, %v4590_v3  ;;  %342 = vst.msk [vmem:[#allocation2 + $0x228] sm:$0xff] %vm272_vm2, %v4590_v3  ;;  %v4446_v21 = vld [vmem:[%s4665_s7 + $0x1c8] ss:$12 sps:$4 sm:$0xff]  }
  0x39   : > { %1718 = vmatprep.subr.bf16.mxu0 %v4589_v1  ;;  %343 = vst.msk [vmem:[#allocation2 + $0x230] sm:$0xff] %vm272_vm2, %v4590_v3  ;;  %344 = vst.msk [vmem:[#allocation2 + $0x238] sm:$0xff] %vm272_vm2, %v4590_v3 }
  0x3a   : > { %345 = vst.msk [vmem:[#allocation2 + $0x240] sm:$0xff] %vm272_vm2, %v4590_v3  ;;  %346 = vst.msk [vmem:[#allocation2 + $0x248] sm:$0xff] %vm272_vm2, %v4590_v3 }
  0x3b   : > { %4146 = vmatmul.mubr.msk.bf16.gmra.mrb[20].mxu1 %vm1544_vm1, %v4387_v26  ;;  %347 = vst.msk [vmem:[#allocation2 + $0x250] sm:$0xff] %vm272_vm2, %v4590_v3  ;;  %348 = vst.msk [vmem:[#allocation2 + $0x258] sm:$0xff] %vm272_vm2, %v4590_v3  ;;  %v4471_v26 = vld [vmem:[%s4665_s7 + $0x278] ss:$12 sps:$4 sm:$0xff]  }
  0x3c   : > { %1719 = vmatpush1.bf16.msra.mxu0 %v4362_v22  ;;  %4149 = vmatprep.mubr.msk.bf16.mxu1 %vm4591_vm0, %v4590_v3  ;;  %349 = vst.msk [vmem:[#allocation2 + $0x260] sm:$0xff] %vm272_vm2, %v4590_v3  ;;  %350 = vst.msk [vmem:[#allocation2 + $0x268] sm:$0xff] %vm272_vm2, %v4590_v3  ;;  %v4448_v22 = vld [vmem:[%s4665_s7 + $0x1e4] ss:$12 sps:$4 sm:$0xff]  }
  0x3d   : > { %1720 = vmatprep.subr.bf16.mxu0 %v4589_v1  ;;  %351 = vst.msk [vmem:[#allocation2 + $0x270] sm:$0xff] %vm272_vm2, %v4590_v3  ;;  %352 = vst.msk [vmem:[#allocation2 + $0x278] sm:$0xff] %vm272_vm2, %v4590_v3 }
  0x3e   : > { %353 = vst.msk [vmem:[#allocation2 + $0x280] sm:$0xff] %vm272_vm2, %v4590_v3  ;;  %354 = vst.msk [vmem:[#allocation2 + $0x288] sm:$0xff] %vm272_vm2, %v4590_v3 }
  0x3f   : > { %355 = vst.msk [vmem:[#allocation2 + $0x290] sm:$0xff] %vm272_vm2, %v4590_v3  ;;  %356 = vst.msk [vmem:[#allocation2 + $0x298] sm:$0xff] %vm272_vm2, %v4590_v3 }
  0x40   : > { %1721 = vmatpush1.bf16.msra.mxu0 %v4364_v24  ;;  %357 = vst.msk [vmem:[#allocation2 + $0x2a0] sm:$0xff] %vm272_vm2, %v4590_v3  ;;  %358 = vst.msk [vmem:[#allocation2 + $0x2a8] sm:$0xff] %vm272_vm2, %v4590_v3  ;;  %v4450_v24 = vld [vmem:[%s4665_s7 + $0x1e0] ss:$12 sps:$4 sm:$0xff]  }
  0x41   : > { %1722 = vmatprep.subr.bf16.mxu0 %v4589_v1  ;;  %359 = vst.msk [vmem:[#allocation2 + $0x2b0] sm:$0xff] %vm272_vm2, %v4590_v3  ;;  %360 = vst.msk [vmem:[#allocation2 + $0x2b8] sm:$0xff] %vm272_vm2, %v4590_v3  ;;  %v4439_v1 = vld [vmem:[%s4665_s7 + $0x1b8] ss:$12 sps:$4 sm:$0xff]  }
  0x42   : > { %361 = vst.msk [vmem:[#allocation2 + $0x2c0] sm:$0xff] %vm272_vm2, %v4590_v3  ;;  %362 = vst.msk [vmem:[#allocation2 + $0x2c8] sm:$0xff] %vm272_vm2, %v4590_v3 }
  0x43   : > { %4150 = vmatmul.mubr.msk.bf16.gmra.mrb[24].mxu1 %vm1544_vm1, %v4391_v29  ;;  %363 = vst.msk [vmem:[#allocation2 + $0x2d0] sm:$0xff] %vm272_vm2, %v4590_v3  ;;  %364 = vst.msk [vmem:[#allocation2 + $0x2d8] sm:$0xff] %vm272_vm2, %v4590_v3 }
  0x44   : > { %1723 = vmatpush1.bf16.msra.mxu0 %v4366_v25  ;;  %4153 = vmatprep.mubr.msk.bf16.mxu1 %vm4591_vm0, %v4590_v3  ;;  %365 = vst.msk [vmem:[#allocation2 + $0x2e0] sm:$0xff] %vm272_vm2, %v4590_v3  ;;  %366 = vst.msk [vmem:[#allocation2 + $0x2e8] sm:$0xff] %vm272_vm2, %v4590_v3  ;;  %v4452_v25 = vld [vmem:[%s4665_s7 + $0x1fc] ss:$12 sps:$4 sm:$0xff]  }
  0x45   : > { %367 = vst.msk [vmem:[#allocation2 + $0x2f0] sm:$0xff] %vm272_vm2, %v4590_v3  ;;  %368 = vst.msk [vmem:[#allocation2 + $0x2f8] sm:$0xff] %vm272_vm2, %v4590_v3 }
  0x46   : > { %369 = vst.msk [vmem:[#allocation2 + $0x300] sm:$0xff] %vm272_vm2, %v4590_v3  ;;  %370 = vst.msk [vmem:[#allocation2 + $0x308] sm:$0xff] %vm272_vm2, %v4590_v3 }
  0x47   : > { %1725 = vmatmul.mubr.bf16.vlgmr.msra.gmra.mrb[0].mxu0 %v4368_v27  ;;  %v4454_v27 = vld [vmem:[%s4665_s7 + $0x1f8] ss:$12 sps:$4 sm:$0xff]  }
  0x48   : > { %1732 = vmatprep.mubr.bf16.mxu0 %v4372_v28  ;;  %v4456_v28 = vld [vmem:[%s4665_s7 + $0x214] ss:$12 sps:$4 sm:$0xff]  }
  0x4b   : > { %4154 = vmatmul.mubr.msk.bf16.gmra.mrb[28].mxu1 %vm1544_vm1, %v4395_v32 }
  0x4c   : > { %4157 = vmatprep.mubr.msk.bf16.mxu1 %vm4591_vm0, %v4590_v3 }
  0x4f   : > { %1733 = vmatmul.mubr.bf16.gmra.mrb[4].mxu0 %v4374_v30 }
  0x50   : > { %1740 = vmatprep.mubr.bf16.mxu0 %v4376_v31  ;;  %v4475_v31 = vld [vmem:[%s4665_s7 + $0x290] ss:$12 sps:$4 sm:$0xff]  }
  0x53   : > { %4158 = vmatmul.mubr.msk.bf16.gmra.mrb[32].mxu1 %vm1544_vm1, %v4399_v35  ;;  %v4460_v35 = vld [vmem:[%s4665_s7 + $0x22c] ss:$12 sps:$4 sm:$0xff]  }
  0x54   : > { %4161 = vmatprep.mubr.msk.bf16.mxu1 %vm4591_vm0, %v4590_v3 }
  0x57   : > { %1741 = vmatmul.mubr.bf16.gmra.mrb[8].mxu0 %v4378_v33  ;;  %v4458_v33 = vld [vmem:[%s4665_s7 + $0x210] ss:$12 sps:$4 sm:$0xff]  }
  0x58   : > { %1748 = vmatprep.mubr.bf16.mxu0 %v4380_v34 }
  0x5b   : > { %4162 = vmatmul.mubr.msk.bf16.gmra.mrb[36].mxu1 %vm1544_vm1, %v4403_v38  ;;  %v4479_v38 = vld [vmem:[%s4665_s7 + $0x2a8] ss:$12 sps:$4 sm:$0xff]  }
  0x5c   : > { %4165 = vmatprep.mubr.msk.bf16.mxu1 %vm4591_vm0, %v4590_v3 }
  0x5f   : > { %1749 = vmatmul.mubr.bf16.gmra.mrb[12].mxu0 %v4382_v36 }
  0x60   : > { %1756 = vmatprep.mubr.bf16.mxu0 %v4384_v37 }
  0x63   : > { %4166 = vmatmul.mubr.msk.bf16.gmra.mrb[40].mxu1 %vm1544_vm1, %v4407_v41 }
  0x64   : > { %4169 = vmatprep.mubr.msk.bf16.mxu1 %vm4591_vm0, %v4590_v3 }
  0x67   : > { %1757 = vmatmul.mubr.bf16.gmra.mrb[16].mxu0 %v4386_v39 }
  0x68   : > { %1764 = vmatprep.mubr.bf16.mxu0 %v4388_v40  ;;  %v4462_v40 = vld [vmem:[%s4665_s7 + $0x228] ss:$12 sps:$4 sm:$0xff]  }
  0x6b   : > { %4170 = vmatmul.mubr.msk.bf16.gmra.mrb[44].mxu1 %vm1544_vm1, %v4411_v44 }
  0x6c   : > { %4173 = vmatprep.mubr.msk.bf16.mxu1 %vm4591_vm0, %v4590_v3 }
  0x6f   : > { %1765 = vmatmul.mubr.bf16.gmra.mrb[20].mxu0 %v4390_v42  ;;  %v4464_v42 = vld [vmem:[%s4665_s7 + $0x244] ss:$12 sps:$4 sm:$0xff]  }
  0x70   : > { %1772 = vmatprep.mubr.bf16.mxu0 %v4392_v43 }
  0x73   : > { %4174 = vmatmul.mubr.msk.bf16.gmra.mrb[48].mxu1 %vm1544_vm1, %v4415_v47  ;;  %v4466_v47 = vld [vmem:[%s4665_s7 + $0x240] ss:$12 sps:$4 sm:$0xff]  }
  0x74   : > { %4177 = vmatprep.mubr.msk.bf16.mxu1 %vm4591_vm0, %v4590_v3 }
  0x77   : > { %1773 = vmatmul.mubr.bf16.gmra.mrb[24].mxu0 %v4394_v45  ;;  %v4483_v45 = vld [vmem:[%s4665_s7 + $0x2c0] ss:$12 sps:$4 sm:$0xff]  }
  0x78   : > { %1780 = vmatprep.mubr.bf16.mxu0 %v4396_v46 }
  0x7b   : > { %4178 = vmatmul.mubr.msk.bf16.gmra.mrb[52].mxu1 %vm1544_vm1, %v4419_v50 }
  0x7c   : > { %4181 = vmatprep.mubr.msk.bf16.mxu1 %vm4591_vm0, %v4590_v3 }
  0x7f   : > { %1781 = vmatmul.mubr.bf16.gmra.mrb[28].mxu0 %v4398_v48 }
  0x80   : > { %1788 = vmatprep.mubr.bf16.mxu0 %v4400_v49  ;;  %v4468_v49 = vld [vmem:[%s4665_s7 + $0x25c] ss:$12 sps:$4 sm:$0xff]  }
  0x83   : > { %4182 = vmatmul.mubr.msk.bf16.gmra.mrb[56].mxu1 %vm1544_vm1, %v4423_v53 }
  0x84   : > { %4185 = vmatprep.mubr.msk.bf16.mxu1 %vm4591_vm0, %v4590_v3 }
  0x87   : > { %1789 = vmatmul.mubr.bf16.gmra.mrb[32].mxu0 %v4402_v51 }
  0x88   : > { %1796 = vmatprep.mubr.bf16.mxu0 %v4404_v52  ;;  %v4487_v52 = vld [vmem:[%s4665_s7 + $0x2d8] ss:$12 sps:$4 sm:$0xff]  }
  0x8b   : > { %4186 = vmatmul.mubr.msk.bf16.gmra.mrb[60].mxu1 %vm1544_vm1, %v4427_v56  ;;  %v4472_v56 = vld [vmem:[%s4665_s7 + $0x274] ss:$12 sps:$4 sm:$0xff]  }
  0x8c   : > { %4189 = vmatprep.mubr.msk.bf16.mxu1 %vm4591_vm0, %v4590_v3 }
  0x8f   : > { %1797 = vmatmul.mubr.bf16.gmra.mrb[36].mxu0 %v4406_v54  ;;  %v4470_v54 = vld [vmem:[%s4665_s7 + $0x258] ss:$12 sps:$4 sm:$0xff]  }
  0x90   : > { %1804 = vmatprep.mubr.bf16.mxu0 %v4408_v55 }
  0x93   : > { %4190 = vmatmul.mubr.msk.bf16.gmra.mrb[64].mxu1 %vm1544_vm1, %v4431_v59  ;;  %v4491_v59 = vld [vmem:[%s4665_s7 + $0x2f0] ss:$12 sps:$4 sm:$0xff]  }
  0x94   : > { %4193 = vmatprep.mubr.msk.bf16.mxu1 %vm4591_vm0, %v4590_v3 }
  0x97   : > { %1805 = vmatmul.mubr.bf16.gmra.mrb[40].mxu0 %v4795_v57 }
  0x98   : > { %1812 = vmatprep.mubr.bf16.mxu0 %v4798_v58 }
  0x9b   : > { %4194 = vmatmul.mubr.msk.bf16.gmra.mrb[68].mxu1 %vm1544_vm1, %v4435_v62 }
  0x9c   : > { %4197 = vmatprep.mubr.msk.bf16.mxu1 %vm4591_vm0, %v4590_v3 }
  0x9f   : > { %1813 = vmatmul.mubr.bf16.gmra.mrb[44].mxu0 %v4414_v60 }
  0xa0   : > { %1820 = vmatprep.mubr.bf16.mxu0 %v4416_v61  ;;  %v4474_v61 = vld [vmem:[%s4665_s7 + $0x270] ss:$12 sps:$4 sm:$0xff]  }
  0xa3   : > { %4198 = vmatmul.mubr.msk.bf16.gmra.mrb[72].mxu1 %vm1544_vm1, %v4439_v1 }
  0xa4   : > { %4201 = vmatprep.mubr.msk.bf16.mxu1 %vm4591_vm0, %v4590_v3 }
  0xa7   : > { %1821 = vmatmul.mubr.bf16.gmra.mrb[48].mxu0 %v4418_v63  ;;  %v4476_v63 = vld [vmem:[%s4665_s7 + $0x28c] ss:$12 sps:$4 sm:$0xff]  }
  0xa8   : > { %1828 = vmatprep.mubr.bf16.mxu0 %v4420_v0 }
  0xab   : > { %4202 = vmatmul.mubr.msk.bf16.gmra.mrb[76].mxu1 %vm1544_vm1, %v4443_v5 }
  0xac   : > { %4205 = vmatprep.mubr.msk.bf16.mxu1 %vm4591_vm0, %v4590_v3 }
  0xaf   : > { %1829 = vmatmul.mubr.bf16.gmra.mrb[52].mxu0 %v4422_v2  ;;  %v4495_v2 = vld [vmem:[%s4665_s7 + $0x308] ss:$12 sps:$4 sm:$0xff]  }
  0xb0   : > { %1836 = vmatprep.mubr.bf16.mxu0 %v4424_v4  ;;  %v371_v4 = vld [vmem:[#allocation2] sm:$0xff] }
  0xb3   : > { %4206 = vmatmul.mubr.msk.bf16.gmra.mrb[80].mxu1 %vm1544_vm1, %v4447_v8 }
  0xb4   : > { %4209 = vmatprep.mubr.msk.bf16.mxu1 %vm4591_vm0, %v4590_v3 }
  0xb7   : > { %1837 = vmatmul.mubr.bf16.gmra.mrb[56].mxu0 %v4426_v6 }
  0xb8   : > { %1844 = vmatprep.mubr.bf16.mxu0 %v4428_v7 }
  0xbb   : > { %4210 = vmatmul.mubr.msk.bf16.gmra.mrb[84].mxu1 %vm1544_vm1, %v4451_v11  ;;  %v372_v11 = vld [vmem:[#allocation2 + $0x8] sm:$0xff] }
  0xbc   : > { %4213 = vmatprep.mubr.msk.bf16.mxu1 %vm4591_vm0, %v4590_v3 }
  0xbf   : > { %1845 = vmatmul.mubr.bf16.gmra.mrb[60].mxu0 %v4430_v9  ;;  %v4478_v9 = vld [vmem:[%s4665_s7 + $0x288] ss:$12 sps:$4 sm:$0xff]  }
  0xc0   : > { %1852 = vmatprep.mubr.bf16.mxu0 %v4432_v10 }
  0xc3   : > { %4214 = vmatmul.mubr.msk.bf16.gmra.mrb[88].mxu1 %vm1544_vm1, %v4455_v14 }
  0xc4   : > { %4217 = vmatprep.mubr.msk.bf16.mxu1 %vm4591_vm0, %v4590_v3 }
  0xc7   : > { %1853 = vmatmul.mubr.bf16.gmra.mrb[64].mxu0 %v4434_v12 }
  0xc8   : > { %1860 = vmatprep.mubr.bf16.mxu0 %v4436_v13  ;;  %v4480_v13 = vld [vmem:[%s4665_s7 + $0x2a4] ss:$12 sps:$4 sm:$0xff]  }
  0xcb   : > { %4218 = vmatmul.mubr.msk.bf16.gmra.mrb[92].mxu1 %vm1544_vm1, %v4459_v17 }
  0xcc   : > { %4221 = vmatprep.mubr.msk.bf16.mxu1 %vm4591_vm0, %v4590_v3 }
  0xcf   : > { %1861 = vmatmul.mubr.bf16.gmra.mrb[68].mxu0 %v4438_v15 }
  0xd0   : > { %1868 = vmatprep.mubr.bf16.mxu0 %v4440_v16 }
  0xd3   : > { %4222 = vmatmul.mubr.msk.bf16.gmra.mrb[96].mxu1 %vm1544_vm1, %v4463_v20  ;;  %v4499_v20 = vld [vmem:[%s4665_s7 + $0x320] ss:$12 sps:$4 sm:$0xff]  }
  0xd4   : > { %4225 = vmatprep.mubr.msk.bf16.mxu1 %vm4591_vm0, %v4590_v3 }
  0xd7   : > { %1869 = vmatmul.mubr.bf16.gmra.mrb[72].mxu0 %v4442_v18 }
  0xd8   : > { %1876 = vmatprep.mubr.bf16.mxu0 %v4444_v19 }
  0xdb   : > { %4226 = vmatmul.mubr.msk.bf16.gmra.mrb[100].mxu1 %vm1544_vm1, %v4467_v23 }
  0xdc   : > { %4229 = vmatprep.mubr.msk.bf16.mxu1 %vm4591_vm0, %v4590_v3 }
  0xdf   : > { %1877 = vmatmul.mubr.bf16.gmra.mrb[76].mxu0 %v4446_v21  ;;  %v373_v21 = vld [vmem:[#allocation2 + $0x10] sm:$0xff] }
  0xe0   : > { %1884 = vmatprep.mubr.bf16.mxu0 %v4448_v22 }
  0xe3   : > { %4230 = vmatmul.mubr.msk.bf16.gmra.mrb[104].mxu1 %vm1544_vm1, %v4471_v26  ;;  %v4482_v26 = vld [vmem:[%s4665_s7 + $0x2a0] ss:$12 sps:$4 sm:$0xff]  }
  0xe4   : > { %4233 = vmatprep.mubr.msk.bf16.mxu1 %vm4591_vm0, %v4590_v3 }
  0xe6   : > { %v2151_v29 = vpop.f32.mrb[0].mxu1 }
  0xe7   : > { %1885 = vmatmul.mubr.bf16.gmra.mrb[80].mxu0 %v4450_v24  ;;  %v4127_v30 = vpop.f32.mrb[1].mxu1 }
  0xe8   : > { %1892 = vmatprep.mubr.bf16.mxu0 %v4452_v25  ;;  %v5068_v32 = vpop.f32.mrb[2].mxu1 }
  0xe9   : > { %v4128_v34 = vpop.f32.mrb[3].mxu1 }
  0xeb   : > { %4234 = vmatmul.mubr.msk.bf16.gmra.mrb[108].mxu1 %vm1544_vm1, %v4475_v31  ;;  %v4484_v31 = vld [vmem:[%s4665_s7 + $0x2bc] ss:$12 sps:$4 sm:$0xff]  }
  0xec   : > { %4237 = vmatprep.mubr.msk.bf16.mxu1 %vm4591_vm0, %v4590_v3 }
  0xee   : > { %v5075_v36 = vpop.f32.mrb[4].mxu1 }
  0xef   : > { %1893 = vmatmul.mubr.bf16.gmra.mrb[84].mxu0 %v4454_v27  ;;  %v4131_v37 = vpop.f32.mrb[5].mxu1 }
  0xf0   : > { %1900 = vmatprep.mubr.bf16.mxu0 %v4456_v28  ;;  %v5078_v39 = vpop.f32.mrb[6].mxu1  ;;  %v5138_v28 = vld [vmem:[%s5921_s2] ss:$0 sm:$0xff] }
  0xf1   : > { %v4132_v41 = vpop.f32.mrb[7].mxu1 }
  0xf3   : > { %4238 = vmatmul.mubr.msk.bf16.gmra.mrb[112].mxu1 %vm1544_vm1, %v4479_v38 }
  0xf4   : > { %4241 = vmatprep.mubr.msk.bf16.mxu1 %vm4591_vm0, %v4590_v3 }
  0xf6   : > { %v5085_v43 = vpop.f32.mrb[8].mxu1 }
  0xf7   : > { %1901 = vmatmul.mubr.bf16.gmra.mrb[88].mxu0 %v4458_v33  ;;  %v4135_v44 = vpop.f32.mrb[9].mxu1 }
  0xf8   : > { %1908 = vmatprep.mubr.bf16.mxu0 %v4460_v35  ;;  %v5088_v46 = vpop.f32.mrb[10].mxu1  ;;  %v4503_v44 = vld [vmem:[%s4665_s7 + $0x338] ss:$12 sps:$4 sm:$0xff]  }
  0xf9   : > { %v4136_v48 = vpop.f32.mrb[11].mxu1 }
  0xfb   : > { %4242 = vmatmul.mubr.msk.bf16.gmra.mrb[116].mxu1 %vm1544_vm1, %v4483_v45  ;;  %v375_v45 = vld [vmem:[#allocation2 + $0x20] sm:$0xff] }
  0xfc   : > { %4245 = vmatprep.mubr.msk.bf16.mxu1 %vm4591_vm0, %v4590_v3 }
  0xfe   : > { %v5095_v50 = vpop.f32.mrb[12].mxu1 }
  0xff   : > { %1909 = vmatmul.mubr.bf16.gmra.mrb[92].mxu0 %v4462_v40  ;;  %v4139_v51 = vpop.f32.mrb[13].mxu1 }
 0x100   : > { %1916 = vmatprep.mubr.bf16.mxu0 %v4464_v42  ;;  %v5098_v53 = vpop.f32.mrb[14].mxu1 }
 0x101   : > { %v4140_v55 = vpop.f32.mrb[15].mxu1 }
 0x102   : > { %v4486_v55 = vld [vmem:[%s4665_s7 + $0x2b8] ss:$12 sps:$4 sm:$0xff]  }
 0x103   : > { %4246 = vmatmul.mubr.msk.bf16.gmra.mrb[120].mxu1 %vm1544_vm1, %v4487_v52 }
 0x104   : > { %4249 = vmatprep.mubr.msk.bf16.mxu1 %vm4591_vm0, %v4590_v3 }
 0x106   : > { %v5105_v57 = vpop.f32.mrb[16].mxu1 }
 0x107   : > { %1917 = vmatmul.mubr.bf16.gmra.mrb[96].mxu0 %v4466_v47  ;;  %v4143_v58 = vpop.f32.mrb[17].mxu1 }
 0x108   : > { %1924 = vmatprep.mubr.bf16.mxu0 %v4468_v49  ;;  %v5108_v60 = vpop.f32.mrb[18].mxu1  ;;  %v376_v58 = vld [vmem:[#allocation2 + $0x28] sm:$0xff] }
 0x109   : > { %v4144_v62 = vpop.f32.mrb[19].mxu1 }
 0x10b   : > { %4250 = vmatmul.mubr.msk.bf16.gmra.mrb[124].mxu1 %vm1544_vm1, %v4491_v59 }
 0x10c   : > { %4253 = vmatprep.mubr.msk.bf16.mxu1 %vm4591_vm0, %v4590_v3 }
 0x10e   : > { %v5115_v0 = vpop.f32.mrb[20].mxu1 }
 0x10f   : > { %1925 = vmatmul.mubr.bf16.gmra.mrb[100].mxu0 %v4470_v54  ;;  %v4147_v1 = vpop.f32.mrb[21].mxu1 }
 0x110   : > { %1932 = vmatprep.mubr.bf16.mxu0 %v4472_v56  ;;  %v5118_v6 = vpop.f32.mrb[22].mxu1 }
 0x111   : > { %v4148_v10 = vpop.f32.mrb[23].mxu1 }
 0x113   : > { %4254 = vmatmul.mubr.msk.bf16.gmra.mrb[128].mxu1 %vm1544_vm1, %v4495_v2 }
 0x114   : > { %4257 = vmatprep.mubr.msk.bf16.mxu1 %vm4591_vm0, %v4590_v3 }
 0x116   : > { %v5127_v18 = vpop.f32.mrb[24].mxu1 }
 0x117   : > { %1933 = vmatmul.mubr.bf16.gmra.mrb[104].mxu0 %v4474_v61  ;;  %v4151_v19 = vpop.f32.mrb[25].mxu1  ;;  %v4488_v61 = vld [vmem:[%s4665_s7 + $0x2d4] ss:$12 sps:$4 sm:$0xff]  }
 0x118   : > { %1940 = vmatprep.mubr.bf16.mxu0 %v4476_v63  ;;  %v5131_v23 = vpop.f32.mrb[26].mxu1 }
 0x119   : > { %v4152_v27 = vpop.f32.mrb[27].mxu1 }
 0x11a   : > { %v1726_v5 = vpop.f32.mrb[0].mxu0 }
 0x11b   : > { %v2152_v7 = vadd.f32 %v2151_v29, %v1726_v5  ;;  %v1728_v8 = vpop.f32.mrb[1].mxu0  ;;  %v374_v29 = vld [vmem:[#allocation2 + $0x18] sm:$0xff]  ;;  %4258 = vmatmul.mubr.msk.bf16.gmra.mrb[132].mxu1 %vm1544_vm1, %v4499_v20 }
 0x11c   : > { %v1729_v12 = vpop.f32.mrb[2].mxu0  ;;  %4261 = vmatprep.mubr.msk.bf16.mxu1 %vm4591_vm0, %v4590_v3  ;;  %v4490_v20 = vld [vmem:[%s4665_s7 + $0x2d0] ss:$12 sps:$4 sm:$0xff]  }
 0x11d   : > { %v2542_v14 = vadd.f32 %v2152_v7, %v371_v4  ;;  %v2155_v15 = vadd.f32 %v5068_v32, %v1729_v12  ;;  %v1731_v16 = vpop.f32.mrb[3].mxu0  ;;  %v377_v12 = vld [vmem:[#allocation2 + $0x30] sm:$0xff] }
 0x11e   : > { %v5148_v40 = vpop.f32.mrb[28].mxu1 }
 0x11f   : > { %2641 = vst.msk [vmem:[#allocation2] sm:$0xff] %vm272_vm2, %v2542_v14  ;;  %v2543_v17 = vadd.f32 %v2155_v15, %v372_v11  ;;  %1941 = vmatmul.mubr.bf16.gmra.mrb[108].mxu0 %v4478_v9  ;;  %v4155_v42 = vpop.f32.mrb[29].mxu1  ;;  %v4507_v11 = vld [vmem:[%s4665_s7 + $0x350] ss:$12 sps:$4 sm:$0xff]  }
 0x120   : > { %1948 = vmatprep.mubr.bf16.mxu0 %v4480_v13  ;;  %v5158_v48 = vpop.f32.mrb[30].mxu1 }
 0x121   : > { %2642 = vst.msk [vmem:[#allocation2 + $0x8] sm:$0xff] %vm272_vm2, %v2543_v17  ;;  %v4156_v56 = vpop.f32.mrb[31].mxu1 }
 0x122   : > { %v1734_v22 = vpop.f32.mrb[4].mxu0 }
 0x123   : > { %v2160_v24 = vadd.f32 %v5075_v36, %v1734_v22  ;;  %v1736_v25 = vpop.f32.mrb[5].mxu0  ;;  %4262 = vmatmul.mubr.msk.bf16.gmra.mrb[136].mxu1 %vm1544_vm1, %v4503_v44  ;;  %v378_v22 = vld [vmem:[#allocation2 + $0x38] sm:$0xff] }
 0x124   : > { %v1737_v30 = vpop.f32.mrb[6].mxu0  ;;  %4265 = vmatprep.mubr.msk.bf16.mxu1 %vm4591_vm0, %v4590_v3  ;;  %v4492_v25 = vld [vmem:[%s4665_s7 + $0x2ec] ss:$12 sps:$4 sm:$0xff]  }
 0x125   : > { %v2544_v32 = vadd.f32 %v2160_v24, %v373_v21  ;;  %v2163_v33 = vadd.f32 %v5078_v39, %v1737_v30  ;;  %v1739_v34 = vpop.f32.mrb[7].mxu0 }
 0x126   : > { %v2742_v35 = vld [vmem:[#allocation2] sm:$0xff] }
 0x127   : > { %v2847_v36 = vadd.f32 %v5138_v28, %v2742_v35  ;;  %2643 = vst.msk [vmem:[#allocation2 + $0x10] sm:$0xff] %vm272_vm2, %v2544_v32  ;;  %v2545_v37 = vadd.f32 %v2163_v33, %v374_v29  ;;  %1949 = vmatmul.mubr.bf16.gmra.mrb[112].mxu0 %v4482_v26 }
 0x128   : > { %v2743_v38 = vld [vmem:[#allocation2 + $0x8] sm:$0xff]  ;;  %1956 = vmatprep.mubr.bf16.mxu0 %v4484_v31 }
 0x129   : > { %v2945_v39 = vmax.f32 %v2847_v36, 0.0  ;;  %v2848_v41 = vadd.f32 %v5138_v28, %v2743_v38  ;;  %2644 = vst.msk [vmem:[#allocation2 + $0x18] sm:$0xff] %vm272_vm2, %v2545_v37  ;;  %v4511_v37 = vld [vmem:[%s4665_s7 + $0x368] ss:$12 sps:$4 sm:$0xff]   ;;  %v379_v38 = vld [vmem:[#allocation2 + $0x40] sm:$0xff] }
 0x12a   : > { %v1742_v47 = vpop.f32.mrb[8].mxu0 }
 0x12b   : > { %v3972_v49 = vpack.c.bf16 %v2945_v39, %v2945_v39  ;;  %v2946_v51 = vmax.f32 %v2848_v41, 0.0  ;;  %v2168_v52 = vadd.f32 %v5085_v43, %v1742_v47  ;;  %v1744_v54 = vpop.f32.mrb[9].mxu0  ;;  %4266 = vmatmul.mubr.msk.bf16.gmra.mrb[140].mxu1 %vm1544_vm1, %v4507_v11 }
 0x12c   : > { %v1745_v59 = vpop.f32.mrb[10].mxu0  ;;  %4269 = vmatprep.mubr.msk.bf16.mxu1 %vm4591_vm0, %v4590_v3 }
 0x12d   : > { %3436 = vst.msk [vmem:[%s5156_s12] sm:$0xf] %vm3435_vm3, %v3972_v49  ;;  %v3973_v62 = vpack.c.bf16 %v2946_v51, %v2946_v51  ;;  %v2546_v63 = vadd.f32 %v2168_v52, %v375_v45  ;;  %v2171_v1 = vadd.f32 %v5088_v46, %v1745_v59  ;;  %v1747_v2 = vpop.f32.mrb[11].mxu0  ;;  %v5173_v46 = vpop.f32.mrb[32].mxu1  ;;  %v4494_v49 = vld [vmem:[%s4665_s7 + $0x2e8] ss:$12 sps:$4 sm:$0xff]  }
 0x12e   : > { %v2744_v4 = vld [vmem:[#allocation2 + $0x10] sm:$0xff]  ;;  %v4159_v10 = vpop.f32.mrb[33].mxu1  ;;  %v380_v52 = vld [vmem:[#allocation2 + $0x48] sm:$0xff] }
 0x12f   : > { %3437 = vst.msk [vmem:[%s5156_s12 + $0x4] sm:$0xf] %vm3435_vm3, %v3973_v62  ;;  %v2849_v43 = vadd.f32 %v5138_v28, %v2744_v4  ;;  %v2547_v5 = vadd.f32 %v2171_v1, %v376_v58  ;;  %1957 = vmatmul.mubr.bf16.gmra.mrb[116].mxu0 %v4486_v55  ;;  %v5178_v14 = vpop.f32.mrb[34].mxu1  ;;  %v4496_v55 = vld [vmem:[%s4665_s7 + $0x304] ss:$12 sps:$4 sm:$0xff]  }
 0x130   : > { %2645 = vst.msk [vmem:[#allocation2 + $0x20] sm:$0xff] %vm272_vm2, %v2546_v63  ;;  %v2745_v7 = vld [vmem:[#allocation2 + $0x18] sm:$0xff]  ;;  %1964 = vmatprep.mubr.bf16.mxu0 %v4488_v61  ;;  %v4160_v21 = vpop.f32.mrb[35].mxu1 }
 0x131   : > { %v2947_v8 = vmax.f32 %v2849_v43, 0.0  ;;  %v2850_v9 = vadd.f32 %v5138_v28, %v2745_v7  ;;  %2646 = vst.msk [vmem:[#allocation2 + $0x28] sm:$0xff] %vm272_vm2, %v2547_v5  ;;  %v4515_v5 = vld [vmem:[%s4665_s7 + $0x380] ss:$12 sps:$4 sm:$0xff]   ;;  %v381_v7 = vld [vmem:[#allocation2 + $0x50] sm:$0xff] }
 0x132   : > { %v1750_v13 = vpop.f32.mrb[12].mxu0 }
 0x133   : > { %v3974_v15 = vpack.c.bf16 %v2947_v8, %v2947_v8  ;;  %v2948_v16 = vmax.f32 %v2850_v9, 0.0  ;;  %v2176_v17 = vadd.f32 %v5095_v50, %v1750_v13  ;;  %v1752_v19 = vpop.f32.mrb[13].mxu0  ;;  %4270 = vmatmul.mubr.msk.bf16.gmra.mrb[144].mxu1 %vm1544_vm1, %v4511_v37 }
 0x134   : > { %v1753_v24 = vpop.f32.mrb[14].mxu0  ;;  %4273 = vmatprep.mubr.msk.bf16.mxu1 %vm4591_vm0, %v4590_v3 }
 0x135   : > { %3438 = vst.msk [vmem:[%s5156_s12 + $0x8] sm:$0xf] %vm3435_vm3, %v3974_v15  ;;  %v3975_v26 = vpack.c.bf16 %v2948_v16, %v2948_v16  ;;  %v2548_v27 = vadd.f32 %v2176_v17, %v377_v12  ;;  %v2179_v29 = vadd.f32 %v5098_v53, %v1753_v24  ;;  %v1755_v30 = vpop.f32.mrb[15].mxu0  ;;  %v5193_v53 = vpop.f32.mrb[36].mxu1  ;;  %v4498_v15 = vld [vmem:[%s4665_s7 + $0x300] ss:$12 sps:$4 sm:$0xff]  }
 0x136   : > { %v4163_v36 = vpop.f32.mrb[37].mxu1  ;;  %v382_v17 = vld [vmem:[#allocation2 + $0x58] sm:$0xff] }
 0x137   : > { %v2746_v31 = vld [vmem:[#allocation2 + $0x20] sm:$0xff]  ;;  %3439 = vst.msk [vmem:[%s5156_s12 + $0xc] sm:$0xf] %vm3435_vm3, %v3975_v26  ;;  %v2549_v32 = vadd.f32 %v2179_v29, %v378_v22  ;;  %1965 = vmatmul.mubr.bf16.gmra.mrb[120].mxu0 %v4490_v20  ;;  %v5198_v41 = vpop.f32.mrb[38].mxu1  ;;  %v4500_v20 = vld [vmem:[%s4665_s7 + $0x31c] ss:$12 sps:$4 sm:$0xff]  }
 0x138   : > { %v2851_v50 = vadd.f32 %v5138_v28, %v2746_v31  ;;  %2647 = vst.msk [vmem:[#allocation2 + $0x30] sm:$0xff] %vm272_vm2, %v2548_v27  ;;  %v2747_v33 = vld [vmem:[#allocation2 + $0x28] sm:$0xff]  ;;  %1972 = vmatprep.mubr.bf16.mxu0 %v4492_v25  ;;  %v4164_v51 = vpop.f32.mrb[39].mxu1 }
 0x139   : > { %v2852_v35 = vadd.f32 %v5138_v28, %v2747_v33  ;;  %2648 = vst.msk [vmem:[#allocation2 + $0x38] sm:$0xff] %vm272_vm2, %v2549_v32  ;;  %v4519_v32 = vld [vmem:[%s4665_s7 + $0x398] ss:$12 sps:$4 sm:$0xff]  }
 0x13a   : > { %v2949_v34 = vmax.f32 %v2851_v50, 0.0  ;;  %v1758_v39 = vpop.f32.mrb[16].mxu0  ;;  %v383_v33 = vld [vmem:[#allocation2 + $0x60] sm:$0xff] }
 0x13b   : > { %v2950_v44 = vmax.f32 %v2852_v35, 0.0  ;;  %v2184_v45 = vadd.f32 %v5105_v57, %v1758_v39  ;;  %v1760_v47 = vpop.f32.mrb[17].mxu0  ;;  %4274 = vmatmul.mubr.msk.bf16.gmra.mrb[148].mxu1 %vm1544_vm1, %v4515_v5 }
 0x13c   : > { %v3976_v42 = vpack.c.bf16 %v2949_v34, %v2949_v34  ;;  %v1761_v54 = vpop.f32.mrb[18].mxu0  ;;  %4277 = vmatprep.mubr.msk.bf16.mxu1 %vm4591_vm0, %v4590_v3 }
 0x13d   : > { %v3977_v56 = vpack.c.bf16 %v2950_v44, %v2950_v44  ;;  %v2550_v58 = vadd.f32 %v2184_v45, %v379_v38  ;;  %v2187_v59 = vadd.f32 %v5108_v60, %v1761_v54  ;;  %v1763_v61 = vpop.f32.mrb[19].mxu0  ;;  %v5213_v60 = vpop.f32.mrb[40].mxu1  ;;  %v384_v45 = vld [vmem:[#allocation2 + $0x68] sm:$0xff] }
 0x13e   : > { %3440 = vst.msk [vmem:[%s5156_s12 + $0x10] sm:$0xf] %vm3435_vm3, %v3976_v42  ;;  %v4167_v43 = vpop.f32.mrb[41].mxu1  ;;  %v4502_v42 = vld [vmem:[%s4665_s7 + $0x318] ss:$12 sps:$4 sm:$0xff]  }
 0x13f   : > { %v2748_v62 = vld [vmem:[#allocation2 + $0x30] sm:$0xff]  ;;  %3441 = vst.msk [vmem:[%s5156_s12 + $0x14] sm:$0xf] %vm3435_vm3, %v3977_v56  ;;  %v2551_v63 = vadd.f32 %v2187_v59, %v380_v52  ;;  %1973 = vmatmul.mubr.bf16.gmra.mrb[124].mxu0 %v4494_v49  ;;  %v5218_v9 = vpop.f32.mrb[42].mxu1 }
 0x140   : > { %v2853_v57 = vadd.f32 %v5138_v28, %v2748_v62  ;;  %2649 = vst.msk [vmem:[#allocation2 + $0x40] sm:$0xff] %vm272_vm2, %v2550_v58  ;;  %v2749_v1 = vld [vmem:[#allocation2 + $0x38] sm:$0xff]  ;;  %1980 = vmatprep.mubr.bf16.mxu0 %v4496_v55  ;;  %v4168_v16 = vpop.f32.mrb[43].mxu1  ;;  %v4504_v49 = vld [vmem:[%s4665_s7 + $0x334] ss:$12 sps:$4 sm:$0xff]  }
 0x141   : > { %v2854_v4 = vadd.f32 %v5138_v28, %v2749_v1  ;;  %2650 = vst.msk [vmem:[#allocation2 + $0x48] sm:$0xff] %vm272_vm2, %v2551_v63  ;;  %v4523_v63 = vld [vmem:[%s4665_s7 + $0x3b0] ss:$12 sps:$4 sm:$0xff]  }
 0x142   : > { %v2951_v2 = vmax.f32 %v2853_v57, 0.0  ;;  %v1766_v8 = vpop.f32.mrb[20].mxu0  ;;  %v385_v1 = vld [vmem:[#allocation2 + $0x70] sm:$0xff] }
 0x143   : > { %v2952_v11 = vmax.f32 %v2854_v4, 0.0  ;;  %v2192_v12 = vadd.f32 %v5115_v0, %v1766_v8  ;;  %v1768_v13 = vpop.f32.mrb[21].mxu0  ;;  %4278 = vmatmul.mubr.msk.bf16.gmra.mrb[152].mxu1 %vm1544_vm1, %v4519_v32 }
 0x144   : > { %v3978_v10 = vpack.c.bf16 %v2951_v2, %v2951_v2  ;;  %v1769_v19 = vpop.f32.mrb[22].mxu0  ;;  %4281 = vmatprep.mubr.msk.bf16.mxu1 %vm4591_vm0, %v4590_v3 }
 0x145   : > { %v3979_v21 = vpack.c.bf16 %v2952_v11, %v2952_v11  ;;  %v2552_v22 = vadd.f32 %v2192_v12, %v381_v7  ;;  %v2195_v24 = vadd.f32 %v5118_v6, %v1769_v19  ;;  %v1771_v25 = vpop.f32.mrb[23].mxu0  ;;  %v5233_v6 = vpop.f32.mrb[44].mxu1  ;;  %v386_v12 = vld [vmem:[#allocation2 + $0x78] sm:$0xff] }
 0x146   : > { %3442 = vst.msk [vmem:[%s5156_s12 + $0x18] sm:$0xf] %vm3435_vm3, %v3978_v10  ;;  %v4171_v50 = vpop.f32.mrb[45].mxu1  ;;  %v4506_v10 = vld [vmem:[%s4665_s7 + $0x330] ss:$12 sps:$4 sm:$0xff]  }
 0x147   : > { %v2750_v26 = vld [vmem:[#allocation2 + $0x40] sm:$0xff]  ;;  %3443 = vst.msk [vmem:[%s5156_s12 + $0x1c] sm:$0xf] %vm3435_vm3, %v3979_v21  ;;  %v2553_v27 = vadd.f32 %v2195_v24, %v382_v17  ;;  %1981 = vmatmul.mubr.bf16.gmra.mrb[128].mxu0 %v4498_v15  ;;  %v5238_v35 = vpop.f32.mrb[46].mxu1  ;;  %v4508_v15 = vld [vmem:[%s4665_s7 + $0x34c] ss:$12 sps:$4 sm:$0xff]  }
 0x148   : > { %v2855_v0 = vadd.f32 %v5138_v28, %v2750_v26  ;;  %2651 = vst.msk [vmem:[#allocation2 + $0x50] sm:$0xff] %vm272_vm2, %v2552_v22  ;;  %v2751_v29 = vld [vmem:[#allocation2 + $0x48] sm:$0xff]  ;;  %1988 = vmatprep.mubr.bf16.mxu0 %v4500_v20  ;;  %v4172_v44 = vpop.f32.mrb[47].mxu1 }
 0x149   : > { %v2856_v31 = vadd.f32 %v5138_v28, %v2751_v29  ;;  %2652 = vst.msk [vmem:[#allocation2 + $0x58] sm:$0xff] %vm272_vm2, %v2553_v27  ;;  %v4527_v27 = vld [vmem:[%s4665_s7 + $0x3c8] ss:$12 sps:$4 sm:$0xff]   ;;  %v387_v29 = vld [vmem:[#allocation2 + $0x80] sm:$0xff] }
 0x14a   : > { %v2953_v30 = vmax.f32 %v2855_v0, 0.0  ;;  %v1774_v34 = vpop.f32.mrb[24].mxu0 }
 0x14b   : > { %v2954_v37 = vmax.f32 %v2856_v31, 0.0  ;;  %v2200_v38 = vadd.f32 %v5127_v18, %v1774_v34  ;;  %v1776_v39 = vpop.f32.mrb[25].mxu0  ;;  %4282 = vmatmul.mubr.msk.bf16.gmra.mrb[156].mxu1 %vm1544_vm1, %v4523_v63 }
 0x14c   : > { %v3980_v36 = vpack.c.bf16 %v2953_v30, %v2953_v30  ;;  %v1777_v47 = vpop.f32.mrb[26].mxu0  ;;  %4285 = vmatprep.mubr.msk.bf16.mxu1 %vm4591_vm0, %v4590_v3 }
 0x14d   : > { %v3981_v51 = vpack.c.bf16 %v2954_v37, %v2954_v37  ;;  %v2554_v52 = vadd.f32 %v2200_v38, %v383_v33  ;;  %v2203_v54 = vadd.f32 %v5131_v23, %v1777_v47  ;;  %v1779_v55 = vpop.f32.mrb[27].mxu0  ;;  %v5253_v23 = vpop.f32.mrb[48].mxu1  ;;  %v388_v38 = vld [vmem:[#allocation2 + $0x88] sm:$0xff] }
 0x14e   : > { %3444 = vst.msk [vmem:[%s5156_s12 + $0x20] sm:$0xf] %vm3435_vm3, %v3980_v36  ;;  %v4175_v57 = vpop.f32.mrb[49].mxu1  ;;  %v4510_v36 = vld [vmem:[%s4665_s7 + $0x348] ss:$12 sps:$4 sm:$0xff]  }
 0x14f   : > { %v2752_v56 = vld [vmem:[#allocation2 + $0x50] sm:$0xff]  ;;  %3445 = vst.msk [vmem:[%s5156_s12 + $0x24] sm:$0xf] %vm3435_vm3, %v3981_v51  ;;  %v2555_v58 = vadd.f32 %v2203_v54, %v384_v45  ;;  %1989 = vmatmul.mubr.bf16.gmra.mrb[132].mxu0 %v4502_v42  ;;  %v5258_v4 = vpop.f32.mrb[50].mxu1 }
 0x150   : > { %v2857_v18 = vadd.f32 %v5138_v28, %v2752_v56  ;;  %2653 = vst.msk [vmem:[#allocation2 + $0x60] sm:$0xff] %vm272_vm2, %v2554_v52  ;;  %v2753_v59 = vld [vmem:[#allocation2 + $0x58] sm:$0xff]  ;;  %1996 = vmatprep.mubr.bf16.mxu0 %v4504_v49  ;;  %v4176_v11 = vpop.f32.mrb[51].mxu1  ;;  %v4512_v42 = vld [vmem:[%s4665_s7 + $0x364] ss:$12 sps:$4 sm:$0xff]  }
 0x151   : > { %v2858_v62 = vadd.f32 %v5138_v28, %v2753_v59  ;;  %2654 = vst.msk [vmem:[#allocation2 + $0x68] sm:$0xff] %vm272_vm2, %v2555_v58  ;;  %v4531_v58 = vld [vmem:[%s4665_s7 + $0x3e0] ss:$12 sps:$4 sm:$0xff]   ;;  %v389_v59 = vld [vmem:[#allocation2 + $0x90] sm:$0xff] }
 0x152   : > { %v2955_v61 = vmax.f32 %v2857_v18, 0.0  ;;  %v1782_v2 = vpop.f32.mrb[28].mxu0 }
 0x153   : > { %v2956_v5 = vmax.f32 %v2858_v62, 0.0  ;;  %v2208_v7 = vadd.f32 %v5148_v40, %v1782_v2  ;;  %v1784_v8 = vpop.f32.mrb[29].mxu0  ;;  %4286 = vmatmul.mubr.msk.bf16.gmra.mrb[160].mxu1 %vm1544_vm1, %v4527_v27 }
 0x154   : > { %v3982_v43 = vpack.c.bf16 %v2955_v61, %v2955_v61  ;;  %v1785_v13 = vpop.f32.mrb[30].mxu0  ;;  %4289 = vmatprep.mubr.msk.bf16.mxu1 %vm4591_vm0, %v4590_v3 }
 0x155   : > { %v3983_v16 = vpack.c.bf16 %v2956_v5, %v2956_v5  ;;  %v2556_v17 = vadd.f32 %v2208_v7, %v385_v1  ;;  %v2211_v19 = vadd.f32 %v5158_v48, %v1785_v13  ;;  %v1787_v20 = vpop.f32.mrb[31].mxu0  ;;  %v5273_v48 = vpop.f32.mrb[52].mxu1  ;;  %v390_v7 = vld [vmem:[#allocation2 + $0x98] sm:$0xff] }
 0x156   : > { %3446 = vst.msk [vmem:[%s5156_s12 + $0x28] sm:$0xf] %vm3435_vm3, %v3982_v43  ;;  %v4179_v0 = vpop.f32.mrb[53].mxu1  ;;  %v4514_v43 = vld [vmem:[%s4665_s7 + $0x360] ss:$12 sps:$4 sm:$0xff]  }
 0x157   : > { %v2754_v21 = vld [vmem:[#allocation2 + $0x60] sm:$0xff]  ;;  %3447 = vst.msk [vmem:[%s5156_s12 + $0x2c] sm:$0xf] %vm3435_vm3, %v3983_v16  ;;  %v2557_v22 = vadd.f32 %v2211_v19, %v386_v12  ;;  %1997 = vmatmul.mubr.bf16.gmra.mrb[136].mxu0 %v4506_v10  ;;  %v5278_v31 = vpop.f32.mrb[54].mxu1  ;;  %v4516_v10 = vld [vmem:[%s4665_s7 + $0x37c] ss:$12 sps:$4 sm:$0xff]  }
 0x158   : > { %v2859_v40 = vadd.f32 %v5138_v28, %v2754_v21  ;;  %2655 = vst.msk [vmem:[#allocation2 + $0x70] sm:$0xff] %vm272_vm2, %v2556_v17  ;;  %v2755_v24 = vld [vmem:[#allocation2 + $0x68] sm:$0xff]  ;;  %2004 = vmatprep.mubr.bf16.mxu0 %v4508_v15  ;;  %v4180_v37 = vpop.f32.mrb[55].mxu1 }
 0x159   : > { %v2860_v26 = vadd.f32 %v5138_v28, %v2755_v24  ;;  %2656 = vst.msk [vmem:[#allocation2 + $0x78] sm:$0xff] %vm272_vm2, %v2557_v22  ;;  %v4535_v22 = vld [vmem:[%s4665_s7 + $0x3f8] ss:$12 sps:$4 sm:$0xff]  }
 0x15a   : > { %v2957_v25 = vmax.f32 %v2859_v40, 0.0  ;;  %v1790_v30 = vpop.f32.mrb[32].mxu0  ;;  %v391_v24 = vld [vmem:[#allocation2 + $0xa0] sm:$0xff] }
 0x15b   : > { %v2958_v32 = vmax.f32 %v2860_v26, 0.0  ;;  %v2216_v33 = vadd.f32 %v5173_v46, %v1790_v30  ;;  %v1792_v34 = vpop.f32.mrb[33].mxu0  ;;  %4290 = vmatmul.mubr.msk.bf16.gmra.mrb[164].mxu1 %vm1544_vm1, %v4531_v58 }
 0x15c   : > { %v3984_v50 = vpack.c.bf16 %v2957_v25, %v2957_v25  ;;  %v1793_v39 = vpop.f32.mrb[34].mxu0  ;;  %4293 = vmatprep.mubr.msk.bf16.mxu1 %vm4591_vm0, %v4590_v3 }
 0x15d   : > { %v3985_v44 = vpack.c.bf16 %v2958_v32, %v2958_v32  ;;  %v2558_v45 = vadd.f32 %v2216_v33, %v387_v29  ;;  %v2219_v47 = vadd.f32 %v5178_v14, %v1793_v39  ;;  %v1795_v49 = vpop.f32.mrb[35].mxu0  ;;  %v5293_v14 = vpop.f32.mrb[56].mxu1  ;;  %v392_v33 = vld [vmem:[#allocation2 + $0xa8] sm:$0xff] }
 0x15e   : > { %3448 = vst.msk [vmem:[%s5156_s12 + $0x30] sm:$0xf] %vm3435_vm3, %v3984_v50  ;;  %v4183_v18 = vpop.f32.mrb[57].mxu1  ;;  %v4518_v50 = vld [vmem:[%s4665_s7 + $0x378] ss:$12 sps:$4 sm:$0xff]  }
 0x15f   : > { %v2756_v51 = vld [vmem:[#allocation2 + $0x70] sm:$0xff]  ;;  %3449 = vst.msk [vmem:[%s5156_s12 + $0x34] sm:$0xf] %vm3435_vm3, %v3985_v44  ;;  %v2559_v52 = vadd.f32 %v2219_v47, %v388_v38  ;;  %2005 = vmatmul.mubr.bf16.gmra.mrb[140].mxu0 %v4510_v36  ;;  %v5298_v62 = vpop.f32.mrb[58].mxu1 }
 0x160   : > { %v2861_v46 = vadd.f32 %v5138_v28, %v2756_v51  ;;  %2657 = vst.msk [vmem:[#allocation2 + $0x80] sm:$0xff] %vm272_vm2, %v2558_v45  ;;  %v2757_v54 = vld [vmem:[#allocation2 + $0x78] sm:$0xff]  ;;  %2012 = vmatprep.mubr.bf16.mxu0 %v4512_v42  ;;  %v4184_v5 = vpop.f32.mrb[59].mxu1  ;;  %v4520_v36 = vld [vmem:[%s4665_s7 + $0x394] ss:$12 sps:$4 sm:$0xff]  }
 0x161   : > { %v2862_v56 = vadd.f32 %v5138_v28, %v2757_v54  ;;  %2658 = vst.msk [vmem:[#allocation2 + $0x88] sm:$0xff] %vm272_vm2, %v2559_v52  ;;  %v4539_v52 = vld [vmem:[%s4665_s7 + $0x410] ss:$12 sps:$4 sm:$0xff]  }
 0x162   : > { %v2959_v55 = vmax.f32 %v2861_v46, 0.0  ;;  %v1798_v61 = vpop.f32.mrb[36].mxu0  ;;  %v393_v54 = vld [vmem:[#allocation2 + $0xb0] sm:$0xff] }
 0x163   : > { %v2960_v63 = vmax.f32 %v2862_v56, 0.0  ;;  %v2224_v1 = vadd.f32 %v5193_v53, %v1798_v61  ;;  %v1800_v2 = vpop.f32.mrb[37].mxu0  ;;  %4294 = vmatmul.mubr.msk.bf16.gmra.mrb[168].mxu1 %vm1544_vm1, %v4535_v22 }
 0x164   : > { %v3986_v57 = vpack.c.bf16 %v2959_v55, %v2959_v55  ;;  %v1801_v8 = vpop.f32.mrb[38].mxu0  ;;  %4297 = vmatprep.mubr.msk.bf16.mxu1 %vm4591_vm0, %v4590_v3 }
 0x165   : > { %v3987_v11 = vpack.c.bf16 %v2960_v63, %v2960_v63  ;;  %v2560_v12 = vadd.f32 %v2224_v1, %v389_v59  ;;  %v2227_v13 = vadd.f32 %v5198_v41, %v1801_v8  ;;  %v1803_v15 = vpop.f32.mrb[39].mxu0  ;;  %v5313_v41 = vpop.f32.mrb[60].mxu1  ;;  %v394_v1 = vld [vmem:[#allocation2 + $0xb8] sm:$0xff] }
 0x166   : > { %3450 = vst.msk [vmem:[%s5156_s12 + $0x38] sm:$0xf] %vm3435_vm3, %v3986_v57  ;;  %v4187_v40 = vpop.f32.mrb[61].mxu1  ;;  %v4522_v57 = vld [vmem:[%s4665_s7 + $0x390] ss:$12 sps:$4 sm:$0xff]  }
 0x167   : > { %v2758_v16 = vld [vmem:[#allocation2 + $0x80] sm:$0xff]  ;;  %3451 = vst.msk [vmem:[%s5156_s12 + $0x3c] sm:$0xf] %vm3435_vm3, %v3987_v11  ;;  %v2561_v17 = vadd.f32 %v2227_v13, %v390_v7  ;;  %2013 = vmatmul.mubr.bf16.gmra.mrb[144].mxu0 %v4514_v43  ;;  %v5318_v26 = vpop.f32.mrb[62].mxu1  ;;  %v4524_v43 = vld [vmem:[%s4665_s7 + $0x3ac] ss:$12 sps:$4 sm:$0xff]  }
 0x168   : > { %v2863_v53 = vadd.f32 %v5138_v28, %v2758_v16  ;;  %2659 = vst.msk [vmem:[#allocation2 + $0x90] sm:$0xff] %vm272_vm2, %v2560_v12  ;;  %v2759_v19 = vld [vmem:[#allocation2 + $0x88] sm:$0xff]  ;;  %2020 = vmatprep.mubr.bf16.mxu0 %v4516_v10  ;;  %v4188_v32 = vpop.f32.mrb[63].mxu1 }
 0x169   : > { %v2864_v21 = vadd.f32 %v5138_v28, %v2759_v19  ;;  %2660 = vst.msk [vmem:[#allocation2 + $0x98] sm:$0xff] %vm272_vm2, %v2561_v17  ;;  %v4543_v17 = vld [vmem:[%s4665_s7 + $0x428] ss:$12 sps:$4 sm:$0xff]   ;;  %v395_v19 = vld [vmem:[#allocation2 + $0xc0] sm:$0xff] }
 0x16a   : > { %v2961_v20 = vmax.f32 %v2863_v53, 0.0  ;;  %v1806_v25 = vpop.f32.mrb[40].mxu0 }
 0x16b   : > { %v2962_v27 = vmax.f32 %v2864_v21, 0.0  ;;  %v2232_v29 = vadd.f32 %v5213_v60, %v1806_v25  ;;  %v1808_v30 = vpop.f32.mrb[41].mxu0  ;;  %4298 = vmatmul.mubr.msk.bf16.gmra.mrb[172].mxu1 %vm1544_vm1, %v4539_v52 }
 0x16c   : > { %v3988_v0 = vpack.c.bf16 %v2961_v20, %v2961_v20  ;;  %v1809_v34 = vpop.f32.mrb[42].mxu0  ;;  %4301 = vmatprep.mubr.msk.bf16.mxu1 %vm4591_vm0, %v4590_v3 }
 0x16d   : > { %v3989_v37 = vpack.c.bf16 %v2962_v27, %v2962_v27  ;;  %v2562_v38 = vadd.f32 %v2232_v29, %v391_v24  ;;  %v2235_v39 = vadd.f32 %v5218_v9, %v1809_v34  ;;  %v1811_v42 = vpop.f32.mrb[43].mxu0  ;;  %v5333_v9 = vpop.f32.mrb[64].mxu1  ;;  %v396_v29 = vld [vmem:[#allocation2 + $0xc8] sm:$0xff] }
 0x16e   : > { %3452 = vst.msk [vmem:[%s5156_s12 + $0x40] sm:$0xf] %vm3435_vm3, %v3988_v0  ;;  %v4191_v46 = vpop.f32.mrb[65].mxu1  ;;  %v4526_v0 = vld [vmem:[%s4665_s7 + $0x3a8] ss:$12 sps:$4 sm:$0xff]  }
 0x16f   : > { %v2760_v44 = vld [vmem:[#allocation2 + $0x90] sm:$0xff]  ;;  %3453 = vst.msk [vmem:[%s5156_s12 + $0x44] sm:$0xf] %vm3435_vm3, %v3989_v37  ;;  %v2563_v45 = vadd.f32 %v2235_v39, %v392_v33  ;;  %2021 = vmatmul.mubr.bf16.gmra.mrb[148].mxu0 %v4518_v50  ;;  %v5338_v56 = vpop.f32.mrb[66].mxu1 }
 0x170   : > { %v2865_v60 = vadd.f32 %v5138_v28, %v2760_v44  ;;  %2661 = vst.msk [vmem:[#allocation2 + $0xa0] sm:$0xff] %vm272_vm2, %v2562_v38  ;;  %v2761_v47 = vld [vmem:[#allocation2 + $0x98] sm:$0xff]  ;;  %2028 = vmatprep.mubr.bf16.mxu0 %v4520_v36  ;;  %v4192_v63 = vpop.f32.mrb[67].mxu1  ;;  %v4528_v50 = vld [vmem:[%s4665_s7 + $0x3c4] ss:$12 sps:$4 sm:$0xff]  }
 0x171   : > { %v2866_v51 = vadd.f32 %v5138_v28, %v2761_v47  ;;  %2662 = vst.msk [vmem:[#allocation2 + $0xa8] sm:$0xff] %vm272_vm2, %v2563_v45  ;;  %v4547_v45 = vld [vmem:[%s4665_s7 + $0x440] ss:$12 sps:$4 sm:$0xff]   ;;  %v397_v47 = vld [vmem:[#allocation2 + $0xd0] sm:$0xff] }
 0x172   : > { %v2963_v49 = vmax.f32 %v2865_v60, 0.0  ;;  %v1814_v55 = vpop.f32.mrb[44].mxu0 }
 0x173   : > { %v2964_v58 = vmax.f32 %v2866_v51, 0.0  ;;  %v2240_v59 = vadd.f32 %v5233_v6, %v1814_v55  ;;  %v1816_v61 = vpop.f32.mrb[45].mxu0  ;;  %4302 = vmatmul.mubr.msk.bf16.gmra.mrb[176].mxu1 %vm1544_vm1, %v4543_v17 }
 0x174   : > { %v3990_v18 = vpack.c.bf16 %v2963_v49, %v2963_v49  ;;  %v1817_v2 = vpop.f32.mrb[46].mxu0  ;;  %4305 = vmatprep.mubr.msk.bf16.mxu1 %vm4591_vm0, %v4590_v3 }
 0x175   : > { %v3991_v5 = vpack.c.bf16 %v2964_v58, %v2964_v58  ;;  %v2564_v7 = vadd.f32 %v2240_v59, %v393_v54  ;;  %v2243_v8 = vadd.f32 %v5238_v35, %v1817_v2  ;;  %v1819_v10 = vpop.f32.mrb[47].mxu0  ;;  %v5353_v35 = vpop.f32.mrb[68].mxu1  ;;  %v398_v59 = vld [vmem:[#allocation2 + $0xd8] sm:$0xff] }
 0x176   : > { %3454 = vst.msk [vmem:[%s5156_s12 + $0x48] sm:$0xf] %vm3435_vm3, %v3990_v18  ;;  %v4195_v53 = vpop.f32.mrb[69].mxu1  ;;  %v4530_v18 = vld [vmem:[%s4665_s7 + $0x3c0] ss:$12 sps:$4 sm:$0xff]  }
 0x177   : > { %v2762_v11 = vld [vmem:[#allocation2 + $0xa0] sm:$0xff]  ;;  %3455 = vst.msk [vmem:[%s5156_s12 + $0x4c] sm:$0xf] %vm3435_vm3, %v3991_v5  ;;  %v2565_v12 = vadd.f32 %v2243_v8, %v394_v1  ;;  %2029 = vmatmul.mubr.bf16.gmra.mrb[152].mxu0 %v4522_v57  ;;  %v5358_v21 = vpop.f32.mrb[70].mxu1  ;;  %v4532_v57 = vld [vmem:[%s4665_s7 + $0x3dc] ss:$12 sps:$4 sm:$0xff]  }
 0x178   : > { %v2867_v6 = vadd.f32 %v5138_v28, %v2762_v11  ;;  %2663 = vst.msk [vmem:[#allocation2 + $0xb0] sm:$0xff] %vm272_vm2, %v2564_v7  ;;  %v2763_v13 = vld [vmem:[#allocation2 + $0xa8] sm:$0xff]  ;;  %2036 = vmatprep.mubr.bf16.mxu0 %v4524_v43  ;;  %v4196_v27 = vpop.f32.mrb[71].mxu1 }
 0x179   : > { %v2868_v16 = vadd.f32 %v5138_v28, %v2763_v13  ;;  %2664 = vst.msk [vmem:[#allocation2 + $0xb8] sm:$0xff] %vm272_vm2, %v2565_v12  ;;  %v4551_v12 = vld [vmem:[%s4665_s7 + $0x458] ss:$12 sps:$4 sm:$0xff]  }
 0x17a   : > { %v2965_v15 = vmax.f32 %v2867_v6, 0.0  ;;  %v1822_v20 = vpop.f32.mrb[48].mxu0  ;;  %v399_v13 = vld [vmem:[#allocation2 + $0xe0] sm:$0xff] }
 0x17b   : > { %v2966_v22 = vmax.f32 %v2868_v16, 0.0  ;;  %v2248_v24 = vadd.f32 %v5253_v23, %v1822_v20  ;;  %v1824_v25 = vpop.f32.mrb[49].mxu0  ;;  %4306 = vmatmul.mubr.msk.bf16.gmra.mrb[180].mxu1 %vm1544_vm1, %v4547_v45 }
 0x17c   : > { %v3992_v40 = vpack.c.bf16 %v2965_v15, %v2965_v15  ;;  %v1825_v30 = vpop.f32.mrb[50].mxu0  ;;  %4309 = vmatprep.mubr.msk.bf16.mxu1 %vm4591_vm0, %v4590_v3 }
 0x17d   : > { %v3993_v32 = vpack.c.bf16 %v2966_v22, %v2966_v22  ;;  %v2566_v33 = vadd.f32 %v2248_v24, %v395_v19  ;;  %v2251_v34 = vadd.f32 %v5258_v4, %v1825_v30  ;;  %v1827_v36 = vpop.f32.mrb[51].mxu0  ;;  %v5373_v4 = vpop.f32.mrb[72].mxu1  ;;  %v400_v24 = vld [vmem:[#allocation2 + $0xe8] sm:$0xff] }
 0x17e   : > { %3456 = vst.msk [vmem:[%s5156_s12 + $0x50] sm:$0xf] %vm3435_vm3, %v3992_v40  ;;  %v4199_v60 = vpop.f32.mrb[73].mxu1  ;;  %v4534_v40 = vld [vmem:[%s4665_s7 + $0x3d8] ss:$12 sps:$4 sm:$0xff]  }
 0x17f   : > { %v2764_v37 = vld [vmem:[#allocation2 + $0xb0] sm:$0xff]  ;;  %3457 = vst.msk [vmem:[%s5156_s12 + $0x54] sm:$0xf] %vm3435_vm3, %v3993_v32  ;;  %v2567_v38 = vadd.f32 %v2251_v34, %v396_v29  ;;  %2037 = vmatmul.mubr.bf16.gmra.mrb[156].mxu0 %v4526_v0  ;;  %v5378_v51 = vpop.f32.mrb[74].mxu1 }
 0x180   : > { %v2869_v23 = vadd.f32 %v5138_v28, %v2764_v37  ;;  %2665 = vst.msk [vmem:[#allocation2 + $0xc0] sm:$0xff] %vm272_vm2, %v2566_v33  ;;  %v2765_v39 = vld [vmem:[#allocation2 + $0xb8] sm:$0xff]  ;;  %2044 = vmatprep.mubr.bf16.mxu0 %v4528_v50  ;;  %v4200_v58 = vpop.f32.mrb[75].mxu1  ;;  %v4536_v0 = vld [vmem:[%s4665_s7 + $0x3f4] ss:$12 sps:$4 sm:$0xff]  }
 0x181   : > { %v2870_v44 = vadd.f32 %v5138_v28, %v2765_v39  ;;  %2666 = vst.msk [vmem:[#allocation2 + $0xc8] sm:$0xff] %vm272_vm2, %v2567_v38  ;;  %v4555_v38 = vld [vmem:[%s4665_s7 + $0x470] ss:$12 sps:$4 sm:$0xff]  }
 0x182   : > { %v2967_v42 = vmax.f32 %v2869_v23, 0.0  ;;  %v1830_v49 = vpop.f32.mrb[52].mxu0  ;;  %v401_v39 = vld [vmem:[#allocation2 + $0xf0] sm:$0xff] }
 0x183   : > { %v2968_v52 = vmax.f32 %v2870_v44, 0.0  ;;  %v2256_v54 = vadd.f32 %v5273_v48, %v1830_v49  ;;  %v1832_v55 = vpop.f32.mrb[53].mxu0  ;;  %4310 = vmatmul.mubr.msk.bf16.gmra.mrb[184].mxu1 %vm1544_vm1, %v4551_v12 }
 0x184   : > { %v3994_v46 = vpack.c.bf16 %v2967_v42, %v2967_v42  ;;  %v1833_v61 = vpop.f32.mrb[54].mxu0  ;;  %4313 = vmatprep.mubr.msk.bf16.mxu1 %vm4591_vm0, %v4590_v3 }
 0x185   : > { %v3995_v63 = vpack.c.bf16 %v2968_v52, %v2968_v52  ;;  %v2568_v1 = vadd.f32 %v2256_v54, %v397_v47  ;;  %v2259_v2 = vadd.f32 %v5278_v31, %v1833_v61  ;;  %v1835_v43 = vpop.f32.mrb[55].mxu0  ;;  %v5393_v31 = vpop.f32.mrb[76].mxu1  ;;  %v402_v54 = vld [vmem:[#allocation2 + $0xf8] sm:$0xff] }
 0x186   : > { %3458 = vst.msk [vmem:[%s5156_s12 + $0x58] sm:$0xf] %vm3435_vm3, %v3994_v46  ;;  %v4203_v6 = vpop.f32.mrb[77].mxu1  ;;  %v4538_v46 = vld [vmem:[%s4665_s7 + $0x3f0] ss:$12 sps:$4 sm:$0xff]  }
 0x187   : > { %v2766_v5 = vld [vmem:[#allocation2 + $0xc0] sm:$0xff]  ;;  %3459 = vst.msk [vmem:[%s5156_s12 + $0x5c] sm:$0xf] %vm3435_vm3, %v3995_v63  ;;  %v2569_v7 = vadd.f32 %v2259_v2, %v398_v59  ;;  %2045 = vmatmul.mubr.bf16.gmra.mrb[160].mxu0 %v4530_v18  ;;  %v5398_v16 = vpop.f32.mrb[78].mxu1  ;;  %v4540_v18 = vld [vmem:[%s4665_s7 + $0x40c] ss:$12 sps:$4 sm:$0xff]  }
 0x188   : > { %v2871_v48 = vadd.f32 %v5138_v28, %v2766_v5  ;;  %2667 = vst.msk [vmem:[#allocation2 + $0xd0] sm:$0xff] %vm272_vm2, %v2568_v1  ;;  %v2767_v8 = vld [vmem:[#allocation2 + $0xc8] sm:$0xff]  ;;  %2052 = vmatprep.mubr.bf16.mxu0 %v4532_v57  ;;  %v4204_v22 = vpop.f32.mrb[79].mxu1 }
 0x189   : > { %v2872_v11 = vadd.f32 %v5138_v28, %v2767_v8  ;;  %2668 = vst.msk [vmem:[#allocation2 + $0xd8] sm:$0xff] %vm272_vm2, %v2569_v7  ;;  %v403_v7 = vld [vmem:[#allocation2 + $0x100] sm:$0xff] }
 0x18a   : > { %v2969_v10 = vmax.f32 %v2871_v48, 0.0  ;;  %v1838_v15 = vpop.f32.mrb[56].mxu0  ;;  %v4559_v48 = vld [vmem:[%s4665_s7 + $0x488] ss:$12 sps:$4 sm:$0xff]  }
 0x18b   : > { %v2970_v17 = vmax.f32 %v2872_v11, 0.0  ;;  %v2264_v19 = vadd.f32 %v5293_v14, %v1838_v15  ;;  %v1840_v20 = vpop.f32.mrb[57].mxu0  ;;  %4314 = vmatmul.mubr.msk.bf16.gmra.mrb[188].mxu1 %vm1544_vm1, %v4555_v38  ;;  %v4542_v15 = vld [vmem:[%s4665_s7 + $0x408] ss:$12 sps:$4 sm:$0xff]  }
 0x18c   : > { %v3996_v53 = vpack.c.bf16 %v2969_v10, %v2969_v10  ;;  %v1841_v25 = vpop.f32.mrb[58].mxu0  ;;  %4317 = vmatprep.mubr.msk.bf16.mxu1 %vm4591_vm0, %v4590_v3  ;;  %v4544_v20 = vld [vmem:[%s4665_s7 + $0x424] ss:$12 sps:$4 sm:$0xff]  }
 0x18d   : > { %v3997_v27 = vpack.c.bf16 %v2970_v17, %v2970_v17  ;;  %v2570_v29 = vadd.f32 %v2264_v19, %v399_v13  ;;  %v2267_v30 = vadd.f32 %v5298_v62, %v1841_v25  ;;  %v1843_v50 = vpop.f32.mrb[59].mxu0  ;;  %v5413_v62 = vpop.f32.mrb[80].mxu1  ;;  %v404_v17 = vld [vmem:[#allocation2 + $0x108] sm:$0xff] }
 0x18e   : > { %3460 = vst.msk [vmem:[%s5156_s12 + $0x60] sm:$0xf] %vm3435_vm3, %v3996_v53  ;;  %v4207_v23 = vpop.f32.mrb[81].mxu1 }
 0x18f   : > { %v2768_v32 = vld [vmem:[#allocation2 + $0xd0] sm:$0xff]  ;;  %3461 = vst.msk [vmem:[%s5156_s12 + $0x64] sm:$0xf] %vm3435_vm3, %v3997_v27  ;;  %v2571_v33 = vadd.f32 %v2267_v30, %v400_v24  ;;  %2053 = vmatmul.mubr.bf16.gmra.mrb[164].mxu0 %v4534_v40  ;;  %v5418_v44 = vpop.f32.mrb[82].mxu1 }
 0x190   : > { %v2873_v14 = vadd.f32 %v5138_v28, %v2768_v32  ;;  %2669 = vst.msk [vmem:[#allocation2 + $0xe0] sm:$0xff] %vm272_vm2, %v2570_v29  ;;  %v2769_v34 = vld [vmem:[#allocation2 + $0xd8] sm:$0xff]  ;;  %2060 = vmatprep.mubr.bf16.mxu0 %v4536_v0  ;;  %v4208_v52 = vpop.f32.mrb[83].mxu1 }
 0x191   : > { %v2874_v37 = vadd.f32 %v5138_v28, %v2769_v34  ;;  %2670 = vst.msk [vmem:[#allocation2 + $0xe8] sm:$0xff] %vm272_vm2, %v2571_v33 }
 0x192   : > { %v2971_v36 = vmax.f32 %v2873_v14, 0.0  ;;  %v1846_v42 = vpop.f32.mrb[60].mxu0  ;;  %v405_v14 = vld [vmem:[#allocation2 + $0x110] sm:$0xff] }
 0x193   : > { %v2972_v45 = vmax.f32 %v2874_v37, 0.0  ;;  %v2272_v47 = vadd.f32 %v5313_v41, %v1846_v42  ;;  %v1848_v49 = vpop.f32.mrb[61].mxu0  ;;  %4318 = vmatmul.mubr.msk.bf16.gmra.mrb[192].mxu1 %vm1544_vm1, %v4559_v48  ;;  %v4550_v48 = vld [vmem:[%s4665_s7 + $0x438] ss:$12 sps:$4 sm:$0xff]  }
 0x194   : > { %v3998_v60 = vpack.c.bf16 %v2971_v36, %v2971_v36  ;;  %v1849_v55 = vpop.f32.mrb[62].mxu0 }
 0x195   : > { %v3999_v58 = vpack.c.bf16 %v2972_v45, %v2972_v45  ;;  %v2572_v59 = vadd.f32 %v2272_v47, %v401_v39  ;;  %v2275_v61 = vadd.f32 %v5318_v26, %v1849_v55  ;;  %v1851_v57 = vpop.f32.mrb[63].mxu0  ;;  %v5433_v26 = vpop.f32.mrb[84].mxu1  ;;  %v4546_v39 = vld [vmem:[%s4665_s7 + $0x420] ss:$12 sps:$4 sm:$0xff]   ;;  %v4548_v47 = vld [vmem:[%s4665_s7 + $0x43c] ss:$12 sps:$4 sm:$0xff]  }
 0x196   : > { %3462 = vst.msk [vmem:[%s5156_s12 + $0x68] sm:$0xf] %vm3435_vm3, %v3998_v60  ;;  %v4211_v3 = vpop.f32.mrb[85].mxu1  ;;  %v406_v60 = vld [vmem:[#allocation2 + $0x118] sm:$0xff] }
 0x197   : > { %v2770_v63 = vld [vmem:[#allocation2 + $0xe0] sm:$0xff]  ;;  %3463 = vst.msk [vmem:[%s5156_s12 + $0x6c] sm:$0xf] %vm3435_vm3, %v3999_v58  ;;  %v2573_v1 = vadd.f32 %v2275_v61, %v402_v54  ;;  %2061 = vmatmul.mubr.bf16.gmra.mrb[168].mxu0 %v4538_v46  ;;  %v5438_v10 = vpop.f32.mrb[86].mxu1 }
 0x198   : > { %v2875_v41 = vadd.f32 %v5138_v28, %v2770_v63  ;;  %2671 = vst.msk [vmem:[#allocation2 + $0xf0] sm:$0xff] %vm272_vm2, %v2572_v59  ;;  %v2771_v2 = vld [vmem:[#allocation2 + $0xe8] sm:$0xff]  ;;  %2068 = vmatprep.mubr.bf16.mxu0 %v4540_v18  ;;  %v4212_v53 = vpop.f32.mrb[87].mxu1  ;;  %v407_v63 = vld [vmem:[#allocation2 + $0x120] sm:$0xff] }
 0x199   : > { %v2876_v5 = vadd.f32 %v5138_v28, %v2771_v2  ;;  %2672 = vst.msk [vmem:[#allocation2 + $0xf8] sm:$0xff] %vm272_vm2, %v2573_v1  ;;  %v5451_v30 = vpop.f32.mrb[88].mxu1 }
 0x19a   : > { %v2973_v43 = vmax.f32 %v2875_v41, 0.0  ;;  %v1854_v8 = vpop.f32.mrb[64].mxu0 }
 0x19b   : > { %v2974_v6 = vmax.f32 %v2876_v5, 0.0  ;;  %v2280_v12 = vadd.f32 %v5333_v9, %v1854_v8  ;;  %v1856_v13 = vpop.f32.mrb[65].mxu0  ;;  %v408_v8 = vld [vmem:[#allocation2 + $0x128] sm:$0xff] }
 0x19c   : > { %v4000_v11 = vpack.c.bf16 %v2973_v43, %v2973_v43  ;;  %v1857_v19 = vpop.f32.mrb[66].mxu0 }
 0x19d   : > { %v4001_v40 = vpack.c.bf16 %v2974_v6, %v2974_v6  ;;  %v2574_v22 = vadd.f32 %v2280_v12, %v403_v7  ;;  %v2283_v24 = vadd.f32 %v5338_v56, %v1857_v19  ;;  %v1859_v25 = vpop.f32.mrb[67].mxu0  ;;  %v5456_v56 = vld [vmem:[%s5921_s2] ss:$0 sm:$0xff] }
 0x19e   : > { %3464 = vst.msk [vmem:[%s5156_s12 + $0x70] sm:$0xf] %vm3435_vm3, %v4000_v11  ;;  %v4552_v6 = vld [vmem:[%s4665_s7 + $0x454] ss:$12 sps:$4 sm:$0xff]  }
 0x19f   : > { %v2772_v0 = vld [vmem:[#allocation2 + $0xf0] sm:$0xff]  ;;  %3465 = vst.msk [vmem:[%s5156_s12 + $0x74] sm:$0xf] %vm3435_vm3, %v4001_v40  ;;  %v2575_v27 = vadd.f32 %v2283_v24, %v404_v17  ;;  %2069 = vmatmul.mubr.bf16.gmra.mrb[172].mxu0 %v4542_v15 }
 0x1a0   : > { %v2877_v9 = vadd.f32 %v5138_v28, %v2772_v0  ;;  %2673 = vst.msk [vmem:[#allocation2 + $0x100] sm:$0xff] %vm272_vm2, %v2574_v22  ;;  %v2773_v29 = vld [vmem:[#allocation2 + $0xf8] sm:$0xff]  ;;  %2076 = vmatprep.mubr.bf16.mxu0 %v4544_v20  ;;  %v4215_v28 = vpop.f32.mrb[89].mxu1  ;;  %v409_v25 = vld [vmem:[#allocation2 + $0x130] sm:$0xff] }
 0x1a1   : > { %v2878_v32 = vadd.f32 %v5456_v56, %v2773_v29  ;;  %2674 = vst.msk [vmem:[#allocation2 + $0x108] sm:$0xff] %vm272_vm2, %v2575_v27  ;;  %v5460_v34 = vpop.f32.mrb[90].mxu1  ;;  %v4554_v28 = vld [vmem:[%s4665_s7 + $0x450] ss:$12 sps:$4 sm:$0xff]  }
 0x1a2   : > { %v2975_v50 = vmax.f32 %v2877_v9, 0.0  ;;  %v1862_v33 = vpop.f32.mrb[68].mxu0  ;;  %v4216_v42 = vpop.f32.mrb[91].mxu1 }
 0x1a3   : > { %v2976_v37 = vmax.f32 %v2878_v32, 0.0  ;;  %v2288_v23 = vadd.f32 %v5353_v35, %v1862_v33  ;;  %v1864_v38 = vpop.f32.mrb[69].mxu0  ;;  %v5472_v59 = vpop.f32.mrb[92].mxu1  ;;  %v410_v33 = vld [vmem:[#allocation2 + $0x138] sm:$0xff] }
 0x1a4   : > { %v4002_v36 = vpack.c.bf16 %v2975_v50, %v2975_v50  ;;  %v1865_v45 = vpop.f32.mrb[70].mxu0  ;;  %v4219_v57 = vpop.f32.mrb[93].mxu1 }
 0x1a5   : > { %v4003_v49 = vpack.c.bf16 %v2976_v37, %v2976_v37  ;;  %v2576_v46 = vadd.f32 %v2288_v23, %v405_v14  ;;  %v2291_v52 = vadd.f32 %v5358_v21, %v1865_v45  ;;  %v1867_v54 = vpop.f32.mrb[71].mxu0  ;;  %v5476_v1 = vpop.f32.mrb[94].mxu1  ;;  %v4556_v37 = vld [vmem:[%s4665_s7 + $0x46c] ss:$12 sps:$4 sm:$0xff]   ;;  %v4558_v57 = vld [vmem:[%s4665_s7 + $0x468] ss:$12 sps:$4 sm:$0xff]  }
 0x1a6   : > { %3466 = vst.msk [vmem:[%s5156_s12 + $0x78] sm:$0xf] %vm3435_vm3, %v4002_v36  ;;  %v4220_v7 = vpop.f32.mrb[95].mxu1  ;;  %v411_v54 = vld [vmem:[#allocation2 + $0x140] sm:$0xff] }
 0x1a7   : > { %v2774_v55 = vld [vmem:[#allocation2 + $0x100] sm:$0xff]  ;;  %3467 = vst.msk [vmem:[%s5156_s12 + $0x7c] sm:$0xf] %vm3435_vm3, %v4003_v49  ;;  %v2577_v35 = vadd.f32 %v2291_v52, %v406_v60  ;;  %2077 = vmatmul.mubr.bf16.gmra.mrb[176].mxu0 %v4546_v39  ;;  %v5488_v40 = vpop.f32.mrb[96].mxu1 }
 0x1a8   : > { %v2879_v18 = vadd.f32 %v5456_v56, %v2774_v55  ;;  %2675 = vst.msk [vmem:[#allocation2 + $0x110] sm:$0xff] %vm272_vm2, %v2576_v46  ;;  %v2775_v58 = vld [vmem:[#allocation2 + $0x108] sm:$0xff]  ;;  %2084 = vmatprep.mubr.bf16.mxu0 %v4548_v47  ;;  %v4223_v24 = vpop.f32.mrb[97].mxu1 }
 0x1a9   : > { %v2880_v21 = vadd.f32 %v5456_v56, %v2775_v58  ;;  %2676 = vst.msk [vmem:[#allocation2 + $0x118] sm:$0xff] %vm272_vm2, %v2577_v35  ;;  %v5492_v9 = vpop.f32.mrb[98].mxu1  ;;  %v4562_v24 = vld [vmem:[%s4665_s7 + $0x480] ss:$12 sps:$4 sm:$0xff]  }
 0x1aa   : > { %v2977_v61 = vmax.f32 %v2879_v18, 0.0  ;;  %v1870_v41 = vpop.f32.mrb[72].mxu0  ;;  %v4224_v14 = vpop.f32.mrb[99].mxu1 }
 0x1ab   : > { %v2978_v43 = vmax.f32 %v2880_v21, 0.0  ;;  %v2296_v5 = vadd.f32 %v5373_v4, %v1870_v41  ;;  %v1872_v3 = vpop.f32.mrb[73].mxu0  ;;  %v412_v41 = vld [vmem:[#allocation2 + $0x148] sm:$0xff] }
 0x1ac   : > { %v4004_v2 = vpack.c.bf16 %v2977_v61, %v2977_v61  ;;  %v1873_v11 = vpop.f32.mrb[74].mxu0 }
 0x1ad   : > { %v4005_v12 = vpack.c.bf16 %v2978_v43, %v2978_v43  ;;  %v2578_v13 = vadd.f32 %v2296_v5, %v407_v63  ;;  %v2299_v15 = vadd.f32 %v5378_v51, %v1873_v11  ;;  %v1875_v53 = vpop.f32.mrb[75].mxu0  ;;  %v4560_v43 = vld [vmem:[%s4665_s7 + $0x484] ss:$12 sps:$4 sm:$0xff]  }
 0x1ae   : > { %3468 = vst.msk [vmem:[%s5156_s12 + $0x80] sm:$0xf] %vm3435_vm3, %v4004_v2  ;;  %v5504_v49 = vpop.f32.mrb[100].mxu1  ;;  %v413_v53 = vld [vmem:[#allocation2 + $0x150] sm:$0xff] }
 0x1af   : > { %v2776_v17 = vld [vmem:[#allocation2 + $0x110] sm:$0xff]  ;;  %3469 = vst.msk [vmem:[%s5156_s12 + $0x84] sm:$0xf] %vm3435_vm3, %v4005_v12  ;;  %v2579_v4 = vadd.f32 %v2299_v15, %v408_v8  ;;  %2085 = vmatmul.mubr.bf16.gmra.mrb[180].mxu0 %v4550_v48  ;;  %v4227_v52 = vpop.f32.mrb[101].mxu1 }
 0x1b0   : > { %v2881_v19 = vadd.f32 %v5456_v56, %v2776_v17  ;;  %2677 = vst.msk [vmem:[#allocation2 + $0x120] sm:$0xff] %vm272_vm2, %v2578_v13  ;;  %v2777_v20 = vld [vmem:[#allocation2 + $0x118] sm:$0xff]  ;;  %2092 = vmatprep.mubr.bf16.mxu0 %v4552_v6  ;;  %v5508_v18 = vpop.f32.mrb[102].mxu1  ;;  %v416_v52 = vld [vmem:[#allocation2 + $0x168] sm:$0xff] }
 0x1b1   : > { %v2882_v51 = vadd.f32 %v5456_v56, %v2777_v20  ;;  %2678 = vst.msk [vmem:[#allocation2 + $0x128] sm:$0xff] %vm272_vm2, %v2579_v4  ;;  %v4228_v63 = vpop.f32.mrb[103].mxu1 }
 0x1b2   : > { %v2979_v22 = vmax.f32 %v2881_v19, 0.0  ;;  %v1878_v0 = vpop.f32.mrb[76].mxu0 }
 0x1b3   : > { %v2980_v29 = vmax.f32 %v2882_v51, 0.0  ;;  %v2304_v50 = vadd.f32 %v5393_v31, %v1878_v0  ;;  %v1880_v32 = vpop.f32.mrb[77].mxu0  ;;  %v414_v0 = vld [vmem:[#allocation2 + $0x158] sm:$0xff] }
 0x1b4   : > { %v4006_v27 = vpack.c.bf16 %v2979_v22, %v2979_v22  ;;  %v1881_v36 = vpop.f32.mrb[78].mxu0 }
 0x1b5   : > { %v4007_v23 = vpack.c.bf16 %v2980_v29, %v2980_v29  ;;  %v2580_v38 = vadd.f32 %v2304_v50, %v409_v25  ;;  %v2307_v39 = vadd.f32 %v5398_v16, %v1881_v36  ;;  %v1883_v42 = vpop.f32.mrb[79].mxu0 }
 0x1b6   : > { %3470 = vst.msk [vmem:[%s5156_s12 + $0x88] sm:$0xf] %vm3435_vm3, %v4006_v27  ;;  %v5520_v12 = vpop.f32.mrb[104].mxu1 }
 0x1b7   : > { %v2778_v60 = vld [vmem:[#allocation2 + $0x120] sm:$0xff]  ;;  %3471 = vst.msk [vmem:[%s5156_s12 + $0x8c] sm:$0xf] %vm3435_vm3, %v4007_v23  ;;  %v2581_v31 = vadd.f32 %v2307_v39, %v410_v33  ;;  %2093 = vmatmul.mubr.bf16.gmra.mrb[184].mxu0 %v4554_v28 }
 0x1b8   : > { %v2883_v45 = vadd.f32 %v5456_v56, %v2778_v60  ;;  %2679 = vst.msk [vmem:[#allocation2 + $0x130] sm:$0xff] %vm272_vm2, %v2580_v38  ;;  %v2779_v47 = vld [vmem:[#allocation2 + $0x128] sm:$0xff]  ;;  %2100 = vmatprep.mubr.bf16.mxu0 %v4556_v37  ;;  %v415_v39 = vld [vmem:[#allocation2 + $0x160] sm:$0xff] }
 0x1b9   : > { %v2884_v16 = vadd.f32 %v5456_v56, %v2779_v47  ;;  %2680 = vst.msk [vmem:[#allocation2 + $0x138] sm:$0xff] %vm272_vm2, %v2581_v31 }
 0x1ba   : > { %v2981_v46 = vmax.f32 %v2883_v45, 0.0  ;;  %v1886_v55 = vpop.f32.mrb[80].mxu0 }
 0x1bb   : > { %v2982_v58 = vmax.f32 %v2884_v16, 0.0  ;;  %v2312_v61 = vadd.f32 %v5413_v62, %v1886_v55  ;;  %v1888_v21 = vpop.f32.mrb[81].mxu0 }
 0x1bc   : > { %v4008_v35 = vpack.c.bf16 %v2981_v46, %v2981_v46  ;;  %v1889_v2 = vpop.f32.mrb[82].mxu0 }
 0x1bd   : > { %v4009_v5 = vpack.c.bf16 %v2982_v58, %v2982_v58  ;;  %v2582_v3 = vadd.f32 %v2312_v61, %v411_v54  ;;  %v2315_v48 = vadd.f32 %v5418_v44, %v1889_v2  ;;  %v1891_v7 = vpop.f32.mrb[83].mxu0  ;;  %v4231_v44 = vpop.f32.mrb[105].mxu1 }
 0x1be   : > { %3472 = vst.msk [vmem:[%s5156_s12 + $0x90] sm:$0xf] %vm3435_vm3, %v4008_v35  ;;  %v5524_v19 = vpop.f32.mrb[106].mxu1 }
 0x1bf   : > { %v2780_v8 = vld [vmem:[#allocation2 + $0x130] sm:$0xff]  ;;  %3473 = vst.msk [vmem:[%s5156_s12 + $0x94] sm:$0xf] %vm3435_vm3, %v4009_v5  ;;  %v2583_v62 = vadd.f32 %v2315_v48, %v412_v41  ;;  %2101 = vmatmul.mubr.bf16.gmra.mrb[188].mxu0 %v4558_v57  ;;  %v4232_v25 = vpop.f32.mrb[107].mxu1 }
 0x1c0   : > { %v2885_v11 = vadd.f32 %v5456_v56, %v2780_v8  ;;  %2681 = vst.msk [vmem:[#allocation2 + $0x140] sm:$0xff] %vm272_vm2, %v2582_v3  ;;  %v2781_v6 = vld [vmem:[#allocation2 + $0x138] sm:$0xff]  ;;  %2108 = vmatprep.mubr.bf16.mxu0 %v4560_v43  ;;  %v5535_v37 = vpop.f32.mrb[108].mxu1 }
 0x1c1   : > { %v2886_v15 = vadd.f32 %v5456_v56, %v2781_v6  ;;  %2682 = vst.msk [vmem:[#allocation2 + $0x148] sm:$0xff] %vm272_vm2, %v2583_v62 }
 0x1c2   : > { %v2983_v13 = vmax.f32 %v2885_v11, 0.0  ;;  %v1894_v17 = vpop.f32.mrb[84].mxu0 }
 0x1c3   : > { %v2984_v20 = vmax.f32 %v2886_v15, 0.0  ;;  %v2320_v22 = vadd.f32 %v5433_v26, %v1894_v17  ;;  %v1896_v51 = vpop.f32.mrb[85].mxu0 }
 0x1c4   : > { %v4010_v4 = vpack.c.bf16 %v2983_v13, %v2983_v13  ;;  %v1897_v27 = vpop.f32.mrb[86].mxu0  ;;  %v418_v13 = vld [vmem:[#allocation2 + $0x178] sm:$0xff] }
 0x1c5   : > { %v4011_v29 = vpack.c.bf16 %v2984_v20, %v2984_v20  ;;  %v2584_v50 = vadd.f32 %v2320_v22, %v413_v53  ;;  %v2323_v32 = vadd.f32 %v5438_v10, %v1897_v27  ;;  %v1899_v28 = vpop.f32.mrb[87].mxu0  ;;  %v4235_v10 = vpop.f32.mrb[109].mxu1 }
 0x1c6   : > { %3474 = vst.msk [vmem:[%s5156_s12 + $0x98] sm:$0xf] %vm3435_vm3, %v4010_v4  ;;  %v5539_v60 = vpop.f32.mrb[110].mxu1 }
 0x1c7   : > { %v2782_v14 = vld [vmem:[#allocation2 + $0x140] sm:$0xff]  ;;  %3475 = vst.msk [vmem:[%s5156_s12 + $0x9c] sm:$0xf] %vm3435_vm3, %v4011_v29  ;;  %v2585_v26 = vadd.f32 %v2323_v32, %v414_v0  ;;  %2109 = vmatmul.mubr.bf16.gmra.mrb[192].mxu0 %v4562_v24  ;;  %v4236_v16 = vpop.f32.mrb[111].mxu1 }
 0x1c8   : > { %v2887_v33 = vadd.f32 %v5456_v56, %v2782_v14  ;;  %2683 = vst.msk [vmem:[#allocation2 + $0x150] sm:$0xff] %vm272_vm2, %v2584_v50  ;;  %v2783_v36 = vld [vmem:[#allocation2 + $0x148] sm:$0xff]  ;;  %v5549_v41 = vpop.f32.mrb[112].mxu1 }
 0x1c9   : > { %v2888_v38 = vadd.f32 %v5456_v56, %v2783_v36  ;;  %2684 = vst.msk [vmem:[#allocation2 + $0x158] sm:$0xff] %vm272_vm2, %v2585_v26  ;;  %v4239_v5 = vpop.f32.mrb[113].mxu1  ;;  %v420_v36 = vld [vmem:[#allocation2 + $0x188] sm:$0xff] }
 0x1ca   : > { %v2985_v23 = vmax.f32 %v2887_v33, 0.0  ;;  %v1902_v42 = vpop.f32.mrb[88].mxu0  ;;  %v5553_v48 = vpop.f32.mrb[114].mxu1 }
 0x1cb   : > { %v2986_v31 = vmax.f32 %v2888_v38, 0.0  ;;  %v2328_v47 = vadd.f32 %v5451_v30, %v1902_v42  ;;  %v1904_v46 = vpop.f32.mrb[89].mxu0  ;;  %v4240_v6 = vpop.f32.mrb[115].mxu1 }
 0x1cc   : > { %v4012_v45 = vpack.c.bf16 %v2985_v23, %v2985_v23  ;;  %v1905_v54 = vpop.f32.mrb[90].mxu0 }
 0x1cd   : > { %v4013_v55 = vpack.c.bf16 %v2986_v31, %v2986_v31  ;;  %v2586_v35 = vadd.f32 %v2328_v47, %v415_v39  ;;  %v2331_v58 = vadd.f32 %v5460_v34, %v1905_v54  ;;  %v1907_v61 = vpop.f32.mrb[91].mxu0  ;;  %v417_v34 = vld [vmem:[#allocation2 + $0x170] sm:$0xff] }
 0x1ce   : > { %3476 = vst.msk [vmem:[%s5156_s12 + $0xa0] sm:$0xf] %vm3435_vm3, %v4012_v45  ;;  %v5563_v24 = vpop.f32.mrb[116].mxu1 }
 0x1cf   : > { %v2784_v21 = vld [vmem:[#allocation2 + $0x150] sm:$0xff]  ;;  %3477 = vst.msk [vmem:[%s5156_s12 + $0xa4] sm:$0xf] %vm3435_vm3, %v4013_v55  ;;  %v2587_v63 = vadd.f32 %v2331_v58, %v416_v52  ;;  %v4243_v27 = vpop.f32.mrb[117].mxu1 }
 0x1d0   : > { %v2889_v57 = vadd.f32 %v5456_v56, %v2784_v21  ;;  %2685 = vst.msk [vmem:[#allocation2 + $0x160] sm:$0xff] %vm272_vm2, %v2586_v35  ;;  %v2785_v30 = vld [vmem:[#allocation2 + $0x158] sm:$0xff]  ;;  %v5567_v50 = vpop.f32.mrb[118].mxu1 }
 0x1d1   : > { %v2890_v43 = vadd.f32 %v5456_v56, %v2785_v30  ;;  %2686 = vst.msk [vmem:[#allocation2 + $0x168] sm:$0xff] %vm272_vm2, %v2587_v63  ;;  %v4244_v26 = vpop.f32.mrb[119].mxu1  ;;  %v422_v30 = vld [vmem:[#allocation2 + $0x198] sm:$0xff] }
 0x1d2   : > { %v2987_v2 = vmax.f32 %v2889_v57, 0.0  ;;  %v1910_v3 = vpop.f32.mrb[92].mxu0 }
 0x1d3   : > { %v2988_v8 = vmax.f32 %v2890_v43, 0.0  ;;  %v2336_v11 = vadd.f32 %v5472_v59, %v1910_v3  ;;  %v1912_v62 = vpop.f32.mrb[93].mxu0 }
 0x1d4   : > { %v4014_v7 = vpack.c.bf16 %v2987_v2, %v2987_v2  ;;  %v1913_v15 = vpop.f32.mrb[94].mxu0 }
 0x1d5   : > { %v4015_v44 = vpack.c.bf16 %v2988_v8, %v2988_v8  ;;  %v2588_v53 = vadd.f32 %v2336_v11, %v417_v34  ;;  %v2339_v17 = vadd.f32 %v5476_v1, %v1913_v15  ;;  %v1915_v4 = vpop.f32.mrb[95].mxu0  ;;  %v419_v1 = vld [vmem:[#allocation2 + $0x180] sm:$0xff] }
 0x1d6   : > { %3478 = vst.msk [vmem:[%s5156_s12 + $0xa8] sm:$0xf] %vm3435_vm3, %v4014_v7  ;;  %v5577_v46 = vpop.f32.mrb[120].mxu1 }
 0x1d7   : > { %v2786_v20 = vld [vmem:[#allocation2 + $0x160] sm:$0xff]  ;;  %3479 = vst.msk [vmem:[%s5156_s12 + $0xac] sm:$0xf] %vm3435_vm3, %v4015_v44  ;;  %v2589_v51 = vadd.f32 %v2339_v17, %v418_v13  ;;  %v4247_v54 = vpop.f32.mrb[121].mxu1 }
 0x1d8   : > { %v2891_v22 = vadd.f32 %v5456_v56, %v2786_v20  ;;  %2687 = vst.msk [vmem:[#allocation2 + $0x170] sm:$0xff] %vm272_vm2, %v2588_v53  ;;  %v2787_v59 = vld [vmem:[#allocation2 + $0x168] sm:$0xff]  ;;  %v5581_v35 = vpop.f32.mrb[122].mxu1 }
 0x1d9   : > { %v2892_v0 = vadd.f32 %v5456_v56, %v2787_v59  ;;  %2688 = vst.msk [vmem:[#allocation2 + $0x178] sm:$0xff] %vm272_vm2, %v2589_v51  ;;  %v4248_v63 = vpop.f32.mrb[123].mxu1  ;;  %v424_v59 = vld [vmem:[#allocation2 + $0x1a8] sm:$0xff] }
 0x1da   : > { %v2989_v25 = vmax.f32 %v2891_v22, 0.0  ;;  %v1918_v29 = vpop.f32.mrb[96].mxu0 }
 0x1db   : > { %v2990_v28 = vmax.f32 %v2892_v0, 0.0  ;;  %v2344_v14 = vadd.f32 %v5488_v40, %v1918_v29  ;;  %v1920_v33 = vpop.f32.mrb[97].mxu0 }
 0x1dc   : > { %v4016_v32 = vpack.c.bf16 %v2989_v25, %v2989_v25  ;;  %v1921_v23 = vpop.f32.mrb[98].mxu0 }
 0x1dd   : > { %v4017_v38 = vpack.c.bf16 %v2990_v28, %v2990_v28  ;;  %v2590_v10 = vadd.f32 %v2344_v14, %v419_v1  ;;  %v2347_v39 = vadd.f32 %v5492_v9, %v1921_v23  ;;  %v1923_v42 = vpop.f32.mrb[99].mxu0  ;;  %v421_v9 = vld [vmem:[#allocation2 + $0x190] sm:$0xff] }
 0x1de   : > { %3480 = vst.msk [vmem:[%s5156_s12 + $0xb0] sm:$0xf] %vm3435_vm3, %v4016_v32  ;;  %v5591_v62 = vpop.f32.mrb[124].mxu1 }
 0x1df   : > { %v2788_v45 = vld [vmem:[#allocation2 + $0x170] sm:$0xff]  ;;  %3481 = vst.msk [vmem:[%s5156_s12 + $0xb4] sm:$0xf] %vm3435_vm3, %v4017_v38  ;;  %v2591_v47 = vadd.f32 %v2347_v39, %v420_v36  ;;  %v4251_v15 = vpop.f32.mrb[125].mxu1 }
 0x1e0   : > { %v2893_v31 = vadd.f32 %v5456_v56, %v2788_v45  ;;  %2689 = vst.msk [vmem:[#allocation2 + $0x180] sm:$0xff] %vm272_vm2, %v2590_v10  ;;  %v2789_v40 = vld [vmem:[#allocation2 + $0x178] sm:$0xff]  ;;  %v5595_v53 = vpop.f32.mrb[126].mxu1 }
 0x1e1   : > { %v2894_v52 = vadd.f32 %v5456_v56, %v2789_v40  ;;  %2690 = vst.msk [vmem:[#allocation2 + $0x188] sm:$0xff] %vm272_vm2, %v2591_v47  ;;  %v4252_v51 = vpop.f32.mrb[127].mxu1  ;;  %v426_v40 = vld [vmem:[#allocation2 + $0x1b8] sm:$0xff] }
 0x1e2   : > { %v2991_v16 = vmax.f32 %v2893_v31, 0.0  ;;  %v1926_v55 = vpop.f32.mrb[100].mxu0 }
 0x1e3   : > { %v2992_v61 = vmax.f32 %v2894_v52, 0.0  ;;  %v2352_v21 = vadd.f32 %v5504_v49, %v1926_v55  ;;  %v1928_v57 = vpop.f32.mrb[101].mxu0 }
 0x1e4   : > { %v4018_v58 = vpack.c.bf16 %v2991_v16, %v2991_v16  ;;  %v1929_v2 = vpop.f32.mrb[102].mxu0 }
 0x1e5   : > { %v4019_v43 = vpack.c.bf16 %v2992_v61, %v2992_v61  ;;  %v2592_v5 = vadd.f32 %v2352_v21, %v421_v9  ;;  %v2355_v34 = vadd.f32 %v5508_v18, %v1929_v2  ;;  %v1931_v3 = vpop.f32.mrb[103].mxu0  ;;  %v423_v18 = vld [vmem:[#allocation2 + $0x1a0] sm:$0xff] }
 0x1e6   : > { %3482 = vst.msk [vmem:[%s5156_s12 + $0xb8] sm:$0xf] %vm3435_vm3, %v4018_v58  ;;  %v5605_v33 = vpop.f32.mrb[128].mxu1 }
 0x1e7   : > { %v2790_v7 = vld [vmem:[#allocation2 + $0x180] sm:$0xff]  ;;  %3483 = vst.msk [vmem:[%s5156_s12 + $0xbc] sm:$0xf] %vm3435_vm3, %v4019_v43  ;;  %v2593_v11 = vadd.f32 %v2355_v34, %v422_v30  ;;  %v4255_v23 = vpop.f32.mrb[129].mxu1 }
 0x1e8   : > { %v2895_v8 = vadd.f32 %v5456_v56, %v2790_v7  ;;  %2691 = vst.msk [vmem:[#allocation2 + $0x190] sm:$0xff] %vm272_vm2, %v2592_v5  ;;  %v2791_v49 = vld [vmem:[#allocation2 + $0x188] sm:$0xff]  ;;  %v5609_v10 = vpop.f32.mrb[130].mxu1 }
 0x1e9   : > { %v2896_v13 = vadd.f32 %v5456_v56, %v2791_v49  ;;  %2692 = vst.msk [vmem:[#allocation2 + $0x198] sm:$0xff] %vm272_vm2, %v2593_v11  ;;  %v4256_v47 = vpop.f32.mrb[131].mxu1  ;;  %v428_v49 = vld [vmem:[#allocation2 + $0x1c8] sm:$0xff] }
 0x1ea   : > { %v2993_v6 = vmax.f32 %v2895_v8, 0.0  ;;  %v1934_v44 = vpop.f32.mrb[104].mxu0 }
 0x1eb   : > { %v2994_v4 = vmax.f32 %v2896_v13, 0.0  ;;  %v2360_v20 = vadd.f32 %v5520_v12, %v1934_v44  ;;  %v1936_v22 = vpop.f32.mrb[105].mxu0 }
 0x1ec   : > { %v4020_v17 = vpack.c.bf16 %v2993_v6, %v2993_v6  ;;  %v1937_v25 = vpop.f32.mrb[106].mxu0 }
 0x1ed   : > { %v4021_v0 = vpack.c.bf16 %v2994_v4, %v2994_v4  ;;  %v2594_v27 = vadd.f32 %v2360_v20, %v423_v18  ;;  %v2363_v1 = vadd.f32 %v5524_v19, %v1937_v25  ;;  %v1939_v29 = vpop.f32.mrb[107].mxu0  ;;  %v425_v19 = vld [vmem:[#allocation2 + $0x1b0] sm:$0xff] }
 0x1ee   : > { %3484 = vst.msk [vmem:[%s5156_s12 + $0xc0] sm:$0xf] %vm3435_vm3, %v4020_v17  ;;  %v5619_v57 = vpop.f32.mrb[132].mxu1 }
 0x1ef   : > { %v2792_v32 = vld [vmem:[#allocation2 + $0x190] sm:$0xff]  ;;  %3485 = vst.msk [vmem:[%s5156_s12 + $0xc4] sm:$0xf] %vm3435_vm3, %v4021_v0  ;;  %v2595_v14 = vadd.f32 %v2363_v1, %v424_v59  ;;  %v4259_v2 = vpop.f32.mrb[133].mxu1 }
 0x1f0   : > { %v2897_v28 = vadd.f32 %v5456_v56, %v2792_v32  ;;  %2693 = vst.msk [vmem:[#allocation2 + $0x1a0] sm:$0xff] %vm272_vm2, %v2594_v27  ;;  %v2793_v12 = vld [vmem:[#allocation2 + $0x198] sm:$0xff]  ;;  %v5623_v5 = vpop.f32.mrb[134].mxu1 }
 0x1f1   : > { %v2898_v36 = vadd.f32 %v5456_v56, %v2793_v12  ;;  %2694 = vst.msk [vmem:[#allocation2 + $0x1a8] sm:$0xff] %vm272_vm2, %v2595_v14  ;;  %v4260_v11 = vpop.f32.mrb[135].mxu1  ;;  %v430_v12 = vld [vmem:[#allocation2 + $0x1d8] sm:$0xff] }
 0x1f2   : > { %v2995_v26 = vmax.f32 %v2897_v28, 0.0  ;;  %v1942_v38 = vpop.f32.mrb[108].mxu0 }
 0x1f3   : > { %v2996_v42 = vmax.f32 %v2898_v36, 0.0  ;;  %v2368_v45 = vadd.f32 %v5535_v37, %v1942_v38  ;;  %v1944_v31 = vpop.f32.mrb[109].mxu0 }
 0x1f4   : > { %v4022_v39 = vpack.c.bf16 %v2995_v26, %v2995_v26  ;;  %v1945_v16 = vpop.f32.mrb[110].mxu0 }
 0x1f5   : > { %v4023_v52 = vpack.c.bf16 %v2996_v42, %v2996_v42  ;;  %v2596_v54 = vadd.f32 %v2368_v45, %v425_v19  ;;  %v2371_v9 = vadd.f32 %v5539_v60, %v1945_v16  ;;  %v1947_v55 = vpop.f32.mrb[111].mxu0  ;;  %v427_v60 = vld [vmem:[#allocation2 + $0x1c0] sm:$0xff] }
 0x1f6   : > { %3486 = vst.msk [vmem:[%s5156_s12 + $0xc8] sm:$0xf] %vm3435_vm3, %v4022_v39  ;;  %v5633_v22 = vpop.f32.mrb[136].mxu1 }
 0x1f7   : > { %v2794_v58 = vld [vmem:[#allocation2 + $0x1a0] sm:$0xff]  ;;  %3487 = vst.msk [vmem:[%s5156_s12 + $0xcc] sm:$0xf] %vm3435_vm3, %v4023_v52  ;;  %v2597_v21 = vadd.f32 %v2371_v9, %v426_v40  ;;  %v4263_v25 = vpop.f32.mrb[137].mxu1 }
 0x1f8   : > { %v2899_v61 = vadd.f32 %v5456_v56, %v2794_v58  ;;  %2695 = vst.msk [vmem:[#allocation2 + $0x1b0] sm:$0xff] %vm272_vm2, %v2596_v54  ;;  %v2795_v37 = vld [vmem:[#allocation2 + $0x1a8] sm:$0xff]  ;;  %v5637_v27 = vpop.f32.mrb[138].mxu1 }
 0x1f9   : > { %v2900_v30 = vadd.f32 %v5456_v56, %v2795_v37  ;;  %2696 = vst.msk [vmem:[#allocation2 + $0x1b8] sm:$0xff] %vm272_vm2, %v2597_v21  ;;  %v4264_v14 = vpop.f32.mrb[139].mxu1  ;;  %v432_v37 = vld [vmem:[#allocation2 + $0x1e8] sm:$0xff] }
 0x1fa   : > { %v2997_v63 = vmax.f32 %v2899_v61, 0.0  ;;  %v1950_v43 = vpop.f32.mrb[112].mxu0 }
 0x1fb   : > { %v2998_v3 = vmax.f32 %v2900_v30, 0.0  ;;  %v2376_v7 = vadd.f32 %v5549_v41, %v1950_v43  ;;  %v1952_v8 = vpop.f32.mrb[113].mxu0 }
 0x1fc   : > { %v4024_v34 = vpack.c.bf16 %v2997_v63, %v2997_v63  ;;  %v1953_v6 = vpop.f32.mrb[114].mxu0 }
 0x1fd   : > { %v4025_v13 = vpack.c.bf16 %v2998_v3, %v2998_v3  ;;  %v2598_v15 = vadd.f32 %v2376_v7, %v427_v60  ;;  %v2379_v18 = vadd.f32 %v5553_v48, %v1953_v6  ;;  %v1955_v44 = vpop.f32.mrb[115].mxu0  ;;  %v429_v48 = vld [vmem:[#allocation2 + $0x1d0] sm:$0xff] }
 0x1fe   : > { %3488 = vst.msk [vmem:[%s5156_s12 + $0xd0] sm:$0xf] %vm3435_vm3, %v4024_v34  ;;  %v5647_v31 = vpop.f32.mrb[140].mxu1 }
 0x1ff   : > { %v2796_v17 = vld [vmem:[#allocation2 + $0x1b0] sm:$0xff]  ;;  %3489 = vst.msk [vmem:[%s5156_s12 + $0xd4] sm:$0xf] %vm3435_vm3, %v4025_v13  ;;  %v2599_v20 = vadd.f32 %v2379_v18, %v428_v49  ;;  %v4267_v16 = vpop.f32.mrb[141].mxu1 }
 0x200   : > { %v2901_v4 = vadd.f32 %v5456_v56, %v2796_v17  ;;  %2697 = vst.msk [vmem:[#allocation2 + $0x1c0] sm:$0xff] %vm272_vm2, %v2598_v15  ;;  %v2797_v41 = vld [vmem:[#allocation2 + $0x1b8] sm:$0xff]  ;;  %v5651_v54 = vpop.f32.mrb[142].mxu1 }
 0x201   : > { %v2902_v59 = vadd.f32 %v5456_v56, %v2797_v41  ;;  %2698 = vst.msk [vmem:[#allocation2 + $0x1c8] sm:$0xff] %vm272_vm2, %v2599_v20  ;;  %v4268_v21 = vpop.f32.mrb[143].mxu1  ;;  %v434_v41 = vld [vmem:[#allocation2 + $0x1f8] sm:$0xff] }
 0x202   : > { %v2999_v51 = vmax.f32 %v2901_v4, 0.0  ;;  %v1958_v0 = vpop.f32.mrb[116].mxu0 }
 0x203   : > { %v3000_v29 = vmax.f32 %v2902_v59, 0.0  ;;  %v2384_v32 = vadd.f32 %v5563_v24, %v1958_v0  ;;  %v1960_v28 = vpop.f32.mrb[117].mxu0 }
 0x204   : > { %v4026_v1 = vpack.c.bf16 %v2999_v51, %v2999_v51  ;;  %v1961_v26 = vpop.f32.mrb[118].mxu0 }
 0x205   : > { %v4027_v36 = vpack.c.bf16 %v3000_v29, %v3000_v29  ;;  %v2600_v23 = vadd.f32 %v2384_v32, %v429_v48  ;;  %v2387_v19 = vadd.f32 %v5567_v50, %v1961_v26  ;;  %v1963_v38 = vpop.f32.mrb[119].mxu0  ;;  %v431_v50 = vld [vmem:[#allocation2 + $0x1e0] sm:$0xff] }
 0x206   : > { %3490 = vst.msk [vmem:[%s5156_s12 + $0xd8] sm:$0xf] %vm3435_vm3, %v4026_v1  ;;  %v5661_v8 = vpop.f32.mrb[144].mxu1 }
 0x207   : > { %v2798_v39 = vld [vmem:[#allocation2 + $0x1c0] sm:$0xff]  ;;  %3491 = vst.msk [vmem:[%s5156_s12 + $0xdc] sm:$0xf] %vm3435_vm3, %v4027_v36  ;;  %v2601_v45 = vadd.f32 %v2387_v19, %v430_v12  ;;  %v4271_v6 = vpop.f32.mrb[145].mxu1 }
 0x208   : > { %v2903_v42 = vadd.f32 %v5456_v56, %v2798_v39  ;;  %2699 = vst.msk [vmem:[#allocation2 + $0x1d0] sm:$0xff] %vm272_vm2, %v2600_v23  ;;  %v2799_v24 = vld [vmem:[#allocation2 + $0x1c8] sm:$0xff]  ;;  %v5665_v15 = vpop.f32.mrb[146].mxu1 }
 0x209   : > { %v2904_v40 = vadd.f32 %v5456_v56, %v2799_v24  ;;  %2700 = vst.msk [vmem:[#allocation2 + $0x1d8] sm:$0xff] %vm272_vm2, %v2601_v45  ;;  %v4272_v20 = vpop.f32.mrb[147].mxu1  ;;  %v436_v24 = vld [vmem:[#allocation2 + $0x208] sm:$0xff] }
 0x20a   : > { %v3001_v47 = vmax.f32 %v2903_v42, 0.0  ;;  %v1966_v52 = vpop.f32.mrb[120].mxu0 }
 0x20b   : > { %v3002_v55 = vmax.f32 %v2904_v40, 0.0  ;;  %v2392_v58 = vadd.f32 %v5577_v46, %v1966_v52  ;;  %v1968_v61 = vpop.f32.mrb[121].mxu0 }
 0x20c   : > { %v4028_v9 = vpack.c.bf16 %v3001_v47, %v3001_v47  ;;  %v1969_v63 = vpop.f32.mrb[122].mxu0 }
 0x20d   : > { %v4029_v30 = vpack.c.bf16 %v3002_v55, %v3002_v55  ;;  %v2602_v2 = vadd.f32 %v2392_v58, %v431_v50  ;;  %v2395_v60 = vadd.f32 %v5581_v35, %v1969_v63  ;;  %v1971_v43 = vpop.f32.mrb[123].mxu0  ;;  %v433_v35 = vld [vmem:[#allocation2 + $0x1f0] sm:$0xff] }
 0x20e   : > { %3492 = vst.msk [vmem:[%s5156_s12 + $0xe0] sm:$0xf] %vm3435_vm3, %v4028_v9  ;;  %v5675_v28 = vpop.f32.mrb[148].mxu1 }
 0x20f   : > { %v2800_v34 = vld [vmem:[#allocation2 + $0x1d0] sm:$0xff]  ;;  %3493 = vst.msk [vmem:[%s5156_s12 + $0xe4] sm:$0xf] %vm3435_vm3, %v4029_v30  ;;  %v2603_v7 = vadd.f32 %v2395_v60, %v432_v37  ;;  %v4275_v26 = vpop.f32.mrb[149].mxu1 }
 0x210   : > { %v2905_v3 = vadd.f32 %v5456_v56, %v2800_v34  ;;  %2701 = vst.msk [vmem:[#allocation2 + $0x1e0] sm:$0xff] %vm272_vm2, %v2602_v2  ;;  %v2801_v46 = vld [vmem:[#allocation2 + $0x1d8] sm:$0xff]  ;;  %v5679_v23 = vpop.f32.mrb[150].mxu1 }
 0x211   : > { %v2906_v49 = vadd.f32 %v5456_v56, %v2801_v46  ;;  %2702 = vst.msk [vmem:[#allocation2 + $0x1e8] sm:$0xff] %vm272_vm2, %v2603_v7  ;;  %v4276_v45 = vpop.f32.mrb[151].mxu1  ;;  %v438_v46 = vld [vmem:[#allocation2 + $0x218] sm:$0xff] }
 0x212   : > { %v3003_v11 = vmax.f32 %v2905_v3, 0.0  ;;  %v1974_v13 = vpop.f32.mrb[124].mxu0 }
 0x213   : > { %v3004_v44 = vmax.f32 %v2906_v49, 0.0  ;;  %v2400_v17 = vadd.f32 %v5591_v62, %v1974_v13  ;;  %v1976_v4 = vpop.f32.mrb[125].mxu0 }
 0x214   : > { %v4030_v18 = vpack.c.bf16 %v3003_v11, %v3003_v11  ;;  %v1977_v51 = vpop.f32.mrb[126].mxu0 }
 0x215   : > { %v4031_v59 = vpack.c.bf16 %v3004_v44, %v3004_v44  ;;  %v2604_v25 = vadd.f32 %v2400_v17, %v433_v35  ;;  %v2403_v48 = vadd.f32 %v5595_v53, %v1977_v51  ;;  %v1979_v0 = vpop.f32.mrb[127].mxu0  ;;  %v435_v53 = vld [vmem:[#allocation2 + $0x200] sm:$0xff] }
 0x216   : > { %3494 = vst.msk [vmem:[%s5156_s12 + $0xe8] sm:$0xf] %vm3435_vm3, %v4030_v18  ;;  %v5689_v61 = vpop.f32.mrb[152].mxu1 }
 0x217   : > { %v2802_v1 = vld [vmem:[#allocation2 + $0x1e0] sm:$0xff]  ;;  %3495 = vst.msk [vmem:[%s5156_s12 + $0xec] sm:$0xf] %vm3435_vm3, %v4031_v59  ;;  %v2605_v32 = vadd.f32 %v2403_v48, %v434_v41  ;;  %v4279_v63 = vpop.f32.mrb[153].mxu1 }
 0x218   : > { %v2907_v29 = vadd.f32 %v5456_v56, %v2802_v1  ;;  %2703 = vst.msk [vmem:[#allocation2 + $0x1f0] sm:$0xff] %vm272_vm2, %v2604_v25  ;;  %v2803_v62 = vld [vmem:[#allocation2 + $0x1e8] sm:$0xff]  ;;  %v5693_v2 = vpop.f32.mrb[154].mxu1 }
 0x219   : > { %v2908_v12 = vadd.f32 %v5456_v56, %v2803_v62  ;;  %2704 = vst.msk [vmem:[#allocation2 + $0x1f8] sm:$0xff] %vm272_vm2, %v2605_v32  ;;  %v4280_v7 = vpop.f32.mrb[155].mxu1  ;;  %v440_v62 = vld [vmem:[#allocation2 + $0x228] sm:$0xff] }
 0x21a   : > { %v3005_v14 = vmax.f32 %v2907_v29, 0.0  ;;  %v1982_v36 = vpop.f32.mrb[128].mxu0 }
 0x21b   : > { %v3006_v38 = vmax.f32 %v2908_v12, 0.0  ;;  %v2408_v39 = vadd.f32 %v5605_v33, %v1982_v36  ;;  %v1984_v42 = vpop.f32.mrb[129].mxu0 }
 0x21c   : > { %v4032_v19 = vpack.c.bf16 %v3005_v14, %v3005_v14  ;;  %v1985_v47 = vpop.f32.mrb[130].mxu0 }
 0x21d   : > { %v4033_v40 = vpack.c.bf16 %v3006_v38, %v3006_v38  ;;  %v2606_v16 = vadd.f32 %v2408_v39, %v435_v53  ;;  %v2411_v50 = vadd.f32 %v5609_v10, %v1985_v47  ;;  %v1987_v52 = vpop.f32.mrb[131].mxu0  ;;  %v437_v10 = vld [vmem:[#allocation2 + $0x210] sm:$0xff] }
 0x21e   : > { %3496 = vst.msk [vmem:[%s5156_s12 + $0xf0] sm:$0xf] %vm3435_vm3, %v4032_v19  ;;  %v5703_v4 = vpop.f32.mrb[156].mxu1 }
 0x21f   : > { %v2804_v9 = vld [vmem:[#allocation2 + $0x1f0] sm:$0xff]  ;;  %3497 = vst.msk [vmem:[%s5156_s12 + $0xf4] sm:$0xf] %vm3435_vm3, %v4033_v40  ;;  %v2607_v58 = vadd.f32 %v2411_v50, %v436_v24  ;;  %v4283_v51 = vpop.f32.mrb[157].mxu1 }
 0x220   : > { %v2909_v55 = vadd.f32 %v5456_v56, %v2804_v9  ;;  %2705 = vst.msk [vmem:[#allocation2 + $0x200] sm:$0xff] %vm272_vm2, %v2606_v16  ;;  %v2805_v33 = vld [vmem:[#allocation2 + $0x1f8] sm:$0xff]  ;;  %v5707_v25 = vpop.f32.mrb[158].mxu1 }
 0x221   : > { %v2910_v37 = vadd.f32 %v5456_v56, %v2805_v33  ;;  %2706 = vst.msk [vmem:[#allocation2 + $0x208] sm:$0xff] %vm272_vm2, %v2607_v58  ;;  %v4284_v32 = vpop.f32.mrb[159].mxu1  ;;  %v442_v33 = vld [vmem:[#allocation2 + $0x238] sm:$0xff] }
 0x222   : > { %v3007_v21 = vmax.f32 %v2909_v55, 0.0  ;;  %v1990_v30 = vpop.f32.mrb[132].mxu0 }
 0x223   : > { %v3008_v43 = vmax.f32 %v2910_v37, 0.0  ;;  %v2416_v34 = vadd.f32 %v5619_v57, %v1990_v30  ;;  %v1992_v3 = vpop.f32.mrb[133].mxu0 }
 0x224   : > { %v4034_v60 = vpack.c.bf16 %v3007_v21, %v3007_v21  ;;  %v1993_v11 = vpop.f32.mrb[134].mxu0 }
 0x225   : > { %v4035_v49 = vpack.c.bf16 %v3008_v43, %v3008_v43  ;;  %v2608_v6 = vadd.f32 %v2416_v34, %v437_v10  ;;  %v2419_v35 = vadd.f32 %v5623_v5, %v1993_v11  ;;  %v1995_v13 = vpop.f32.mrb[135].mxu0  ;;  %v439_v5 = vld [vmem:[#allocation2 + $0x220] sm:$0xff] }
 0x226   : > { %3498 = vst.msk [vmem:[%s5156_s12 + $0xf8] sm:$0xf] %vm3435_vm3, %v4034_v60  ;;  %v5717_v42 = vpop.f32.mrb[160].mxu1 }
 0x227   : > { %v2806_v18 = vld [vmem:[#allocation2 + $0x200] sm:$0xff]  ;;  %3499 = vst.msk [vmem:[%s5156_s12 + $0xfc] sm:$0xf] %vm3435_vm3, %v4035_v49  ;;  %v2609_v17 = vadd.f32 %v2419_v35, %v438_v46  ;;  %v4287_v47 = vpop.f32.mrb[161].mxu1 }
 0x228   : > { %v2911_v44 = vadd.f32 %v5456_v56, %v2806_v18  ;;  %2707 = vst.msk [vmem:[#allocation2 + $0x210] sm:$0xff] %vm272_vm2, %v2608_v6  ;;  %v2807_v57 = vld [vmem:[#allocation2 + $0x208] sm:$0xff]  ;;  %v5721_v16 = vpop.f32.mrb[162].mxu1  ;;  %v5736_v46 = vld [vmem:[%s5921_s2] ss:$0 sm:$0xff] }
 0x229   : > { %v2912_v41 = vadd.f32 %v5456_v56, %v2807_v57  ;;  %2708 = vst.msk [vmem:[#allocation2 + $0x218] sm:$0xff] %vm272_vm2, %v2609_v17  ;;  %v4288_v58 = vpop.f32.mrb[163].mxu1  ;;  %v443_v49 = vld [vmem:[#allocation2 + $0x240] sm:$0xff]  ;;  %v444_v57 = vld [vmem:[#allocation2 + $0x248] sm:$0xff] }
 0x22a   : > { %v3009_v20 = vmax.f32 %v2911_v44, 0.0  ;;  %v1998_v59 = vpop.f32.mrb[136].mxu0 }
 0x22b   : > { %v3010_v0 = vmax.f32 %v2912_v41, 0.0  ;;  %v2424_v1 = vadd.f32 %v5633_v22, %v1998_v59  ;;  %v2000_v29 = vpop.f32.mrb[137].mxu0 }
 0x22c   : > { %v4036_v48 = vpack.c.bf16 %v3009_v20, %v3009_v20  ;;  %v2001_v14 = vpop.f32.mrb[138].mxu0 }
 0x22d   : > { %v4037_v12 = vpack.c.bf16 %v3010_v0, %v3010_v0  ;;  %v2610_v26 = vadd.f32 %v2424_v1, %v439_v5  ;;  %v2427_v53 = vadd.f32 %v5637_v27, %v2001_v14  ;;  %v2003_v36 = vpop.f32.mrb[139].mxu0  ;;  %v441_v27 = vld [vmem:[#allocation2 + $0x230] sm:$0xff] }
 0x22e   : > { %3500 = vst.msk [vmem:[%s5156_s12 + $0x100] sm:$0xf] %vm3435_vm3, %v4036_v48  ;;  %v5731_v3 = vpop.f32.mrb[164].mxu1 }
 0x22f   : > { %v2808_v19 = vld [vmem:[#allocation2 + $0x210] sm:$0xff]  ;;  %3501 = vst.msk [vmem:[%s5156_s12 + $0x104] sm:$0xf] %vm3435_vm3, %v4037_v12  ;;  %v2611_v39 = vadd.f32 %v2427_v53, %v440_v62  ;;  %v4291_v11 = vpop.f32.mrb[165].mxu1 }
 0x230   : > { %v2913_v38 = vadd.f32 %v5456_v56, %v2808_v19  ;;  %2709 = vst.msk [vmem:[#allocation2 + $0x220] sm:$0xff] %vm272_vm2, %v2610_v26  ;;  %v2809_v22 = vld [vmem:[#allocation2 + $0x218] sm:$0xff]  ;;  %v5740_v6 = vpop.f32.mrb[166].mxu1 }
 0x231   : > { %v2914_v24 = vadd.f32 %v5456_v56, %v2809_v22  ;;  %2710 = vst.msk [vmem:[#allocation2 + $0x228] sm:$0xff] %vm272_vm2, %v2611_v39  ;;  %v4292_v17 = vpop.f32.mrb[167].mxu1  ;;  %v446_v22 = vld [vmem:[#allocation2 + $0x258] sm:$0xff] }
 0x232   : > { %v3011_v45 = vmax.f32 %v2913_v38, 0.0  ;;  %v2006_v40 = vpop.f32.mrb[140].mxu0 }
 0x233   : > { %v3012_v52 = vmax.f32 %v2914_v24, 0.0  ;;  %v2432_v9 = vadd.f32 %v5647_v31, %v2006_v40  ;;  %v2008_v55 = vpop.f32.mrb[141].mxu0 }
 0x234   : > { %v4038_v50 = vpack.c.bf16 %v3011_v45, %v3011_v45  ;;  %v2009_v21 = vpop.f32.mrb[142].mxu0 }
 0x235   : > { %v4039_v37 = vpack.c.bf16 %v3012_v52, %v3012_v52  ;;  %v2612_v63 = vadd.f32 %v2432_v9, %v441_v27  ;;  %v2435_v10 = vadd.f32 %v5651_v54, %v2009_v21  ;;  %v2011_v30 = vpop.f32.mrb[143].mxu0 }
 0x236   : > { %3502 = vst.msk [vmem:[%s5156_s12 + $0x108] sm:$0xf] %vm3435_vm3, %v4038_v50  ;;  %v5750_v29 = vpop.f32.mrb[168].mxu1 }
 0x237   : > { %v2810_v60 = vld [vmem:[#allocation2 + $0x220] sm:$0xff]  ;;  %3503 = vst.msk [vmem:[%s5156_s12 + $0x10c] sm:$0xf] %vm3435_vm3, %v4039_v37  ;;  %v2613_v34 = vadd.f32 %v2435_v10, %v442_v33  ;;  %v4295_v14 = vpop.f32.mrb[169].mxu1 }
 0x238   : > { %v2915_v43 = vadd.f32 %v5456_v56, %v2810_v60  ;;  %2711 = vst.msk [vmem:[#allocation2 + $0x230] sm:$0xff] %vm272_vm2, %v2612_v63  ;;  %v2811_v31 = vld [vmem:[#allocation2 + $0x228] sm:$0xff]  ;;  %v5754_v26 = vpop.f32.mrb[170].mxu1 }
 0x239   : > { %v2916_v54 = vadd.f32 %v5736_v46, %v2811_v31  ;;  %2712 = vst.msk [vmem:[#allocation2 + $0x238] sm:$0xff] %vm272_vm2, %v2613_v34  ;;  %v4296_v39 = vpop.f32.mrb[171].mxu1  ;;  %v448_v31 = vld [vmem:[#allocation2 + $0x268] sm:$0xff] }
 0x23a   : > { %v3013_v7 = vmax.f32 %v2915_v43, 0.0  ;;  %v2014_v56 = vpop.f32.mrb[144].mxu0 }
 0x23b   : > { %v3014_v13 = vmax.f32 %v2916_v54, 0.0  ;;  %v2440_v18 = vadd.f32 %v5661_v8, %v2014_v56  ;;  %v2016_v44 = vpop.f32.mrb[145].mxu0 }
 0x23c   : > { %v4040_v35 = vpack.c.bf16 %v3013_v7, %v3013_v7  ;;  %v2017_v20 = vpop.f32.mrb[146].mxu0 }
 0x23d   : > { %v4041_v41 = vpack.c.bf16 %v3014_v13, %v3014_v13  ;;  %v2614_v51 = vadd.f32 %v2440_v18, %v443_v49  ;;  %v2443_v5 = vadd.f32 %v5665_v15, %v2017_v20  ;;  %v2019_v59 = vpop.f32.mrb[147].mxu0  ;;  %v445_v15 = vld [vmem:[#allocation2 + $0x250] sm:$0xff] }
 0x23e   : > { %3504 = vst.msk [vmem:[%s5156_s12 + $0x110] sm:$0xf] %vm3435_vm3, %v4040_v35  ;;  %v5764_v55 = vpop.f32.mrb[172].mxu1 }
 0x23f   : > { %v2812_v48 = vld [vmem:[#allocation2 + $0x230] sm:$0xff]  ;;  %3505 = vst.msk [vmem:[%s5156_s12 + $0x114] sm:$0xf] %vm3435_vm3, %v4041_v41  ;;  %v2615_v1 = vadd.f32 %v2443_v5, %v444_v57  ;;  %v4299_v21 = vpop.f32.mrb[173].mxu1 }
 0x240   : > { %v2917_v0 = vadd.f32 %v5736_v46, %v2812_v48  ;;  %2713 = vst.msk [vmem:[#allocation2 + $0x240] sm:$0xff] %vm272_vm2, %v2614_v51  ;;  %v2813_v8 = vld [vmem:[#allocation2 + $0x238] sm:$0xff]  ;;  %v5768_v63 = vpop.f32.mrb[174].mxu1 }
 0x241   : > { %v2918_v62 = vadd.f32 %v5736_v46, %v2813_v8  ;;  %2714 = vst.msk [vmem:[#allocation2 + $0x248] sm:$0xff] %vm272_vm2, %v2615_v1  ;;  %v4300_v34 = vpop.f32.mrb[175].mxu1  ;;  %v450_v8 = vld [vmem:[#allocation2 + $0x278] sm:$0xff] }
 0x242   : > { %v3015_v32 = vmax.f32 %v2917_v0, 0.0  ;;  %v2022_v12 = vpop.f32.mrb[148].mxu0 }
 0x243   : > { %v3016_v36 = vmax.f32 %v2918_v62, 0.0  ;;  %v2448_v19 = vadd.f32 %v5675_v28, %v2022_v12  ;;  %v2024_v38 = vpop.f32.mrb[149].mxu0 }
 0x244   : > { %v4042_v53 = vpack.c.bf16 %v3015_v32, %v3015_v32  ;;  %v2025_v45 = vpop.f32.mrb[150].mxu0 }
 0x245   : > { %v4043_v24 = vpack.c.bf16 %v3016_v36, %v3016_v36  ;;  %v2616_v47 = vadd.f32 %v2448_v19, %v445_v15  ;;  %v2451_v27 = vadd.f32 %v5679_v23, %v2025_v45  ;;  %v2027_v40 = vpop.f32.mrb[151].mxu0  ;;  %v447_v23 = vld [vmem:[#allocation2 + $0x260] sm:$0xff] }
 0x246   : > { %3506 = vst.msk [vmem:[%s5156_s12 + $0x118] sm:$0xf] %vm3435_vm3, %v4042_v53  ;;  %v5778_v44 = vpop.f32.mrb[176].mxu1 }
 0x247   : > { %v2814_v50 = vld [vmem:[#allocation2 + $0x240] sm:$0xff]  ;;  %3507 = vst.msk [vmem:[%s5156_s12 + $0x11c] sm:$0xf] %vm3435_vm3, %v4043_v24  ;;  %v2617_v9 = vadd.f32 %v2451_v27, %v446_v22  ;;  %v4303_v20 = vpop.f32.mrb[177].mxu1 }
 0x248   : > { %v2919_v52 = vadd.f32 %v5736_v46, %v2814_v50  ;;  %2715 = vst.msk [vmem:[#allocation2 + $0x250] sm:$0xff] %vm272_vm2, %v2616_v47  ;;  %v2815_v28 = vld [vmem:[#allocation2 + $0x248] sm:$0xff]  ;;  %v5782_v51 = vpop.f32.mrb[178].mxu1 }
 0x249   : > { %v2920_v33 = vadd.f32 %v5736_v46, %v2815_v28  ;;  %2716 = vst.msk [vmem:[#allocation2 + $0x258] sm:$0xff] %vm272_vm2, %v2617_v9  ;;  %v4304_v1 = vpop.f32.mrb[179].mxu1  ;;  %v452_v28 = vld [vmem:[#allocation2 + $0x288] sm:$0xff] }
 0x24a   : > { %v3017_v58 = vmax.f32 %v2919_v52, 0.0  ;;  %v2030_v37 = vpop.f32.mrb[152].mxu0 }
 0x24b   : > { %v3018_v30 = vmax.f32 %v2920_v33, 0.0  ;;  %v2456_v60 = vadd.f32 %v5689_v61, %v2030_v37  ;;  %v2032_v43 = vpop.f32.mrb[153].mxu0 }
 0x24c   : > { %v4044_v10 = vpack.c.bf16 %v3017_v58, %v3017_v58  ;;  %v2033_v7 = vpop.f32.mrb[154].mxu0 }
 0x24d   : > { %v4045_v54 = vpack.c.bf16 %v3018_v30, %v3018_v30  ;;  %v2618_v11 = vadd.f32 %v2456_v60, %v447_v23  ;;  %v2459_v49 = vadd.f32 %v5693_v2, %v2033_v7  ;;  %v2035_v56 = vpop.f32.mrb[155].mxu0  ;;  %v449_v2 = vld [vmem:[#allocation2 + $0x270] sm:$0xff] }
 0x24e   : > { %3508 = vst.msk [vmem:[%s5156_s12 + $0x120] sm:$0xf] %vm3435_vm3, %v4044_v10  ;;  %v5792_v38 = vpop.f32.mrb[180].mxu1 }
 0x24f   : > { %v2816_v35 = vld [vmem:[#allocation2 + $0x250] sm:$0xff]  ;;  %3509 = vst.msk [vmem:[%s5156_s12 + $0x124] sm:$0xf] %vm3435_vm3, %v4045_v54  ;;  %v2619_v18 = vadd.f32 %v2459_v49, %v448_v31  ;;  %v4307_v45 = vpop.f32.mrb[181].mxu1 }
 0x250   : > { %v2921_v13 = vadd.f32 %v5736_v46, %v2816_v35  ;;  %2717 = vst.msk [vmem:[#allocation2 + $0x260] sm:$0xff] %vm272_vm2, %v2618_v11  ;;  %v2817_v61 = vld [vmem:[#allocation2 + $0x258] sm:$0xff]  ;;  %v5796_v47 = vpop.f32.mrb[182].mxu1 }
 0x251   : > { %v2922_v57 = vadd.f32 %v5736_v46, %v2817_v61  ;;  %2718 = vst.msk [vmem:[#allocation2 + $0x268] sm:$0xff] %vm272_vm2, %v2619_v18  ;;  %v4308_v9 = vpop.f32.mrb[183].mxu1  ;;  %v454_v61 = vld [vmem:[#allocation2 + $0x298] sm:$0xff] }
 0x252   : > { %v3019_v17 = vmax.f32 %v2921_v13, 0.0  ;;  %v2038_v41 = vpop.f32.mrb[156].mxu0 }
 0x253   : > { %v3020_v59 = vmax.f32 %v2922_v57, 0.0  ;;  %v2464_v48 = vadd.f32 %v5703_v4, %v2038_v41  ;;  %v2040_v0 = vpop.f32.mrb[157].mxu0 }
 0x254   : > { %v4046_v5 = vpack.c.bf16 %v3019_v17, %v3019_v17  ;;  %v2041_v32 = vpop.f32.mrb[158].mxu0 }
 0x255   : > { %v4047_v62 = vpack.c.bf16 %v3020_v59, %v3020_v59  ;;  %v2620_v14 = vadd.f32 %v2464_v48, %v449_v2  ;;  %v2467_v15 = vadd.f32 %v5707_v25, %v2041_v32  ;;  %v2043_v12 = vpop.f32.mrb[159].mxu0  ;;  %v451_v25 = vld [vmem:[#allocation2 + $0x280] sm:$0xff] }
 0x256   : > { %3510 = vst.msk [vmem:[%s5156_s12 + $0x128] sm:$0xf] %vm3435_vm3, %v4046_v5  ;;  %v5806_v43 = vpop.f32.mrb[184].mxu1 }
 0x257   : > { %v2818_v53 = vld [vmem:[#allocation2 + $0x260] sm:$0xff]  ;;  %3511 = vst.msk [vmem:[%s5156_s12 + $0x12c] sm:$0xf] %vm3435_vm3, %v4047_v62  ;;  %v2621_v19 = vadd.f32 %v2467_v15, %v450_v8  ;;  %v4311_v7 = vpop.f32.mrb[185].mxu1 }
 0x258   : > { %v2923_v36 = vadd.f32 %v5736_v46, %v2818_v53  ;;  %2719 = vst.msk [vmem:[#allocation2 + $0x270] sm:$0xff] %vm272_vm2, %v2620_v14  ;;  %v2819_v4 = vld [vmem:[#allocation2 + $0x268] sm:$0xff]  ;;  %v5810_v11 = vpop.f32.mrb[186].mxu1 }
 0x259   : > { %v2924_v22 = vadd.f32 %v5736_v46, %v2819_v4  ;;  %2720 = vst.msk [vmem:[#allocation2 + $0x278] sm:$0xff] %vm272_vm2, %v2621_v19  ;;  %v4312_v18 = vpop.f32.mrb[187].mxu1  ;;  %v456_v4 = vld [vmem:[#allocation2 + $0x2a8] sm:$0xff] }
 0x25a   : > { %v3021_v39 = vmax.f32 %v2923_v36, 0.0  ;;  %v2046_v24 = vpop.f32.mrb[160].mxu0 }
 0x25b   : > { %v3022_v40 = vmax.f32 %v2924_v22, 0.0  ;;  %v2472_v50 = vadd.f32 %v5717_v42, %v2046_v24  ;;  %v2048_v52 = vpop.f32.mrb[161].mxu0 }
 0x25c   : > { %v4048_v27 = vpack.c.bf16 %v3021_v39, %v3021_v39  ;;  %v2049_v58 = vpop.f32.mrb[162].mxu0 }
 0x25d   : > { %v4049_v33 = vpack.c.bf16 %v3022_v40, %v3022_v40  ;;  %v2622_v21 = vadd.f32 %v2472_v50, %v451_v25  ;;  %v2475_v23 = vadd.f32 %v5721_v16, %v2049_v58  ;;  %v2051_v37 = vpop.f32.mrb[163].mxu0  ;;  %v453_v16 = vld [vmem:[#allocation2 + $0x290] sm:$0xff] }
 0x25e   : > { %3512 = vst.msk [vmem:[%s5156_s12 + $0x130] sm:$0xf] %vm3435_vm3, %v4048_v27  ;;  %v5820_v0 = vpop.f32.mrb[188].mxu1 }
 0x25f   : > { %v2820_v10 = vld [vmem:[#allocation2 + $0x270] sm:$0xff]  ;;  %3513 = vst.msk [vmem:[%s5156_s12 + $0x134] sm:$0xf] %vm3435_vm3, %v4049_v33  ;;  %v2623_v60 = vadd.f32 %v2475_v23, %v452_v28  ;;  %v4315_v32 = vpop.f32.mrb[189].mxu1 }
 0x260   : > { %v2925_v30 = vadd.f32 %v5736_v46, %v2820_v10  ;;  %2721 = vst.msk [vmem:[#allocation2 + $0x280] sm:$0xff] %vm272_vm2, %v2622_v21  ;;  %v2821_v42 = vld [vmem:[#allocation2 + $0x278] sm:$0xff]  ;;  %v5824_v14 = vpop.f32.mrb[190].mxu1 }
 0x261   : > { %v2926_v31 = vadd.f32 %v5736_v46, %v2821_v42  ;;  %2722 = vst.msk [vmem:[#allocation2 + $0x288] sm:$0xff] %vm272_vm2, %v2623_v60  ;;  %v4316_v19 = vpop.f32.mrb[191].mxu1  ;;  %v458_v42 = vld [vmem:[#allocation2 + $0x2b8] sm:$0xff] }
 0x262   : > { %v3023_v34 = vmax.f32 %v2925_v30, 0.0  ;;  %v2054_v54 = vpop.f32.mrb[164].mxu0 }
 0x263   : > { %v3024_v56 = vmax.f32 %v2926_v31, 0.0  ;;  %v2480_v35 = vadd.f32 %v5731_v3, %v2054_v54  ;;  %v2056_v13 = vpop.f32.mrb[165].mxu0 }
 0x264   : > { %v4050_v49 = vpack.c.bf16 %v3023_v34, %v3023_v34  ;;  %v2057_v17 = vpop.f32.mrb[166].mxu0 }
 0x265   : > { %v4051_v57 = vpack.c.bf16 %v3024_v56, %v3024_v56  ;;  %v2624_v20 = vadd.f32 %v2480_v35, %v453_v16  ;;  %v2483_v2 = vadd.f32 %v5740_v6, %v2057_v17  ;;  %v2059_v41 = vpop.f32.mrb[167].mxu0  ;;  %v455_v6 = vld [vmem:[#allocation2 + $0x2a0] sm:$0xff] }
 0x266   : > { %3514 = vst.msk [vmem:[%s5156_s12 + $0x138] sm:$0xf] %vm3435_vm3, %v4050_v49  ;;  %v5834_v52 = vpop.f32.mrb[192].mxu1  ;;  %v460_v41 = vld [vmem:[#allocation2 + $0x2c8] sm:$0xff] }
 0x267   : > { %v2822_v5 = vld [vmem:[#allocation2 + $0x280] sm:$0xff]  ;;  %3515 = vst.msk [vmem:[%s5156_s12 + $0x13c] sm:$0xf] %vm3435_vm3, %v4051_v57  ;;  %v2625_v48 = vadd.f32 %v2483_v2, %v454_v61  ;;  %v4319_v58 = vpop.f32.mrb[193].mxu1 }
 0x268   : > { %v2927_v59 = vadd.f32 %v5736_v46, %v2822_v5  ;;  %2723 = vst.msk [vmem:[#allocation2 + $0x290] sm:$0xff] %vm272_vm2, %v2624_v20  ;;  %v2823_v3 = vld [vmem:[#allocation2 + $0x288] sm:$0xff]  ;;  %v5838_v21 = vpop.f32.mrb[194].mxu1  ;;  %v459_v61 = vld [vmem:[#allocation2 + $0x2c0] sm:$0xff] }
 0x269   : > { %v2928_v8 = vadd.f32 %v5736_v46, %v2823_v3  ;;  %2724 = vst.msk [vmem:[#allocation2 + $0x298] sm:$0xff] %vm272_vm2, %v2625_v48  ;;  %v4320_v60 = vpop.f32.mrb[195].mxu1  ;;  %v463_v58 = vld [vmem:[#allocation2 + $0x2e0] sm:$0xff] }
 0x26a   : > { %v3025_v1 = vmax.f32 %v2927_v59, 0.0  ;;  %v2062_v62 = vpop.f32.mrb[168].mxu0 }
 0x26b   : > { %v3026_v12 = vmax.f32 %v2928_v8, 0.0  ;;  %v2488_v53 = vadd.f32 %v5750_v29, %v2062_v62  ;;  %v2064_v36 = vpop.f32.mrb[169].mxu0 }
 0x26c   : > { %v4052_v15 = vpack.c.bf16 %v3025_v1, %v3025_v1  ;;  %v2065_v39 = vpop.f32.mrb[170].mxu0 }
 0x26d   : > { %v4053_v22 = vpack.c.bf16 %v3026_v12, %v3026_v12  ;;  %v2626_v45 = vadd.f32 %v2488_v53, %v455_v6  ;;  %v2491_v25 = vadd.f32 %v5754_v26, %v2065_v39  ;;  %v2067_v24 = vpop.f32.mrb[171].mxu0  ;;  %v457_v26 = vld [vmem:[#allocation2 + $0x2b0] sm:$0xff]  ;;  %v462_v39 = vld [vmem:[#allocation2 + $0x2d8] sm:$0xff] }
 0x26e   : > { %3516 = vst.msk [vmem:[%s5156_s12 + $0x140] sm:$0xf] %vm3435_vm3, %v4052_v15  ;;  %v461_v12 = vld [vmem:[#allocation2 + $0x2d0] sm:$0xff] }
 0x26f   : > { %v2824_v27 = vld [vmem:[#allocation2 + $0x290] sm:$0xff]  ;;  %3517 = vst.msk [vmem:[%s5156_s12 + $0x144] sm:$0xf] %vm3435_vm3, %v4053_v22  ;;  %v2627_v50 = vadd.f32 %v2491_v25, %v456_v4 }
 0x270   : > { %v2929_v40 = vadd.f32 %v5736_v46, %v2824_v27  ;;  %2725 = vst.msk [vmem:[#allocation2 + $0x2a0] sm:$0xff] %vm272_vm2, %v2626_v45  ;;  %v2825_v29 = vld [vmem:[#allocation2 + $0x298] sm:$0xff] }
 0x271   : > { %v2930_v28 = vadd.f32 %v5736_v46, %v2825_v29  ;;  %2726 = vst.msk [vmem:[#allocation2 + $0x2a8] sm:$0xff] %vm272_vm2, %v2627_v50 }
 0x272   : > { %v3027_v9 = vmax.f32 %v2929_v40, 0.0  ;;  %v2070_v33 = vpop.f32.mrb[172].mxu0 }
 0x273   : > { %v3028_v37 = vmax.f32 %v2930_v28, 0.0  ;;  %v2496_v10 = vadd.f32 %v5764_v55, %v2070_v33  ;;  %v2072_v30 = vpop.f32.mrb[173].mxu0 }
 0x274   : > { %v4054_v23 = vpack.c.bf16 %v3027_v9, %v3027_v9  ;;  %v2073_v34 = vpop.f32.mrb[174].mxu0 }
 0x275   : > { %v4055_v31 = vpack.c.bf16 %v3028_v37, %v3028_v37  ;;  %v2628_v7 = vadd.f32 %v2496_v10, %v457_v26  ;;  %v2499_v16 = vadd.f32 %v5768_v63, %v2073_v34  ;;  %v2075_v54 = vpop.f32.mrb[175].mxu0  ;;  %v464_v10 = vld [vmem:[#allocation2 + $0x2e8] sm:$0xff] }
 0x276   : > { %3518 = vst.msk [vmem:[%s5156_s12 + $0x148] sm:$0xf] %vm3435_vm3, %v4054_v23 }
 0x277   : > { %v2826_v49 = vld [vmem:[#allocation2 + $0x2a0] sm:$0xff]  ;;  %3519 = vst.msk [vmem:[%s5156_s12 + $0x14c] sm:$0xf] %vm3435_vm3, %v4055_v31  ;;  %v2629_v55 = vadd.f32 %v2499_v16, %v458_v42 }
 0x278   : > { %v2931_v56 = vadd.f32 %v5736_v46, %v2826_v49  ;;  %2727 = vst.msk [vmem:[#allocation2 + $0x2b0] sm:$0xff] %vm272_vm2, %v2628_v7  ;;  %v2827_v35 = vld [vmem:[#allocation2 + $0x2a8] sm:$0xff] }
 0x279   : > { %v2932_v18 = vadd.f32 %v5736_v46, %v2827_v35  ;;  %2728 = vst.msk [vmem:[#allocation2 + $0x2b8] sm:$0xff] %vm272_vm2, %v2629_v55  ;;  %v465_v55 = vld [vmem:[#allocation2 + $0x2f0] sm:$0xff] }
 0x27a   : > { %v3029_v13 = vmax.f32 %v2931_v56, 0.0  ;;  %v2078_v17 = vpop.f32.mrb[176].mxu0 }
 0x27b   : > { %v3030_v57 = vmax.f32 %v2932_v18, 0.0  ;;  %v2504_v20 = vadd.f32 %v5778_v44, %v2078_v17  ;;  %v2080_v2 = vpop.f32.mrb[177].mxu0  ;;  %v466_v17 = vld [vmem:[#allocation2 + $0x2f8] sm:$0xff] }
 0x27c   : > { %v4056_v63 = vpack.c.bf16 %v3029_v13, %v3029_v13  ;;  %v2081_v5 = vpop.f32.mrb[178].mxu0 }
 0x27d   : > { %v4057_v59 = vpack.c.bf16 %v3030_v57, %v3030_v57  ;;  %v2630_v48 = vadd.f32 %v2504_v20, %v459_v61  ;;  %v2507_v3 = vadd.f32 %v5782_v51, %v2081_v5  ;;  %v2083_v1 = vpop.f32.mrb[179].mxu0 }
 0x27e   : > { %3520 = vst.msk [vmem:[%s5156_s12 + $0x150] sm:$0xf] %vm3435_vm3, %v4056_v63 }
 0x27f   : > { %v2828_v8 = vld [vmem:[#allocation2 + $0x2b0] sm:$0xff]  ;;  %3521 = vst.msk [vmem:[%s5156_s12 + $0x154] sm:$0xf] %vm3435_vm3, %v4057_v59  ;;  %v2631_v6 = vadd.f32 %v2507_v3, %v460_v41 }
 0x280   : > { %v2933_v32 = vadd.f32 %v5736_v46, %v2828_v8  ;;  %2729 = vst.msk [vmem:[#allocation2 + $0x2c0] sm:$0xff] %vm272_vm2, %v2630_v48  ;;  %v2829_v44 = vld [vmem:[#allocation2 + $0x2b8] sm:$0xff]  ;;  %v467_v8 = vld [vmem:[#allocation2 + $0x300] sm:$0xff] }
 0x281   : > { %v2934_v15 = vadd.f32 %v5736_v46, %v2829_v44  ;;  %2730 = vst.msk [vmem:[#allocation2 + $0x2c8] sm:$0xff] %vm272_vm2, %v2631_v6 }
 0x282   : > { %v3031_v62 = vmax.f32 %v2933_v32, 0.0  ;;  %v2086_v53 = vpop.f32.mrb[180].mxu0 }
 0x283   : > { %v3032_v36 = vmax.f32 %v2934_v15, 0.0  ;;  %v2512_v19 = vadd.f32 %v5792_v38, %v2086_v53  ;;  %v2088_v4 = vpop.f32.mrb[181].mxu0  ;;  %v468_v15 = vld [vmem:[#allocation2 + $0x308] sm:$0xff] }
 0x284   : > { %v4058_v51 = vpack.c.bf16 %v3031_v62, %v3031_v62  ;;  %v2089_v22 = vpop.f32.mrb[182].mxu0 }
 0x285   : > { %v4059_v45 = vpack.c.bf16 %v3032_v36, %v3032_v36  ;;  %v2632_v25 = vadd.f32 %v2512_v19, %v461_v12  ;;  %v2515_v24 = vadd.f32 %v5796_v47, %v2089_v22  ;;  %v2091_v27 = vpop.f32.mrb[183].mxu0 }
 0x286   : > { %3522 = vst.msk [vmem:[%s5156_s12 + $0x158] sm:$0xf] %vm3435_vm3, %v4058_v51 }
 0x287   : > { %v2830_v40 = vld [vmem:[#allocation2 + $0x2c0] sm:$0xff]  ;;  %3523 = vst.msk [vmem:[%s5156_s12 + $0x15c] sm:$0xf] %vm3435_vm3, %v4059_v45  ;;  %v2633_v29 = vadd.f32 %v2515_v24, %v462_v39 }
 0x288   : > { %v2935_v50 = vadd.f32 %v5736_v46, %v2830_v40  ;;  %2731 = vst.msk [vmem:[#allocation2 + $0x2d0] sm:$0xff] %vm272_vm2, %v2632_v25  ;;  %v2831_v38 = vld [vmem:[#allocation2 + $0x2c8] sm:$0xff] }
 0x289   : > { %v2936_v28 = vadd.f32 %v5736_v46, %v2831_v38  ;;  %2732 = vst.msk [vmem:[#allocation2 + $0x2d8] sm:$0xff] %vm272_vm2, %v2633_v29 }
 0x28a   : > { %v3033_v9 = vmax.f32 %v2935_v50, 0.0  ;;  %v2094_v26 = vpop.f32.mrb[184].mxu0 }
 0x28b   : > { %v3034_v33 = vmax.f32 %v2936_v28, 0.0  ;;  %v2520_v23 = vadd.f32 %v5806_v43, %v2094_v26  ;;  %v2096_v37 = vpop.f32.mrb[185].mxu0 }
 0x28c   : > { %v4060_v47 = vpack.c.bf16 %v3033_v9, %v3033_v9  ;;  %v2097_v30 = vpop.f32.mrb[186].mxu0 }
 0x28d   : > { %v4061_v60 = vpack.c.bf16 %v3034_v33, %v3034_v33  ;;  %v2634_v42 = vadd.f32 %v2520_v23, %v463_v58  ;;  %v2523_v34 = vadd.f32 %v5810_v11, %v2097_v30  ;;  %v2099_v31 = vpop.f32.mrb[187].mxu0 }
 0x28e   : > { %3524 = vst.msk [vmem:[%s5156_s12 + $0x160] sm:$0xf] %vm3435_vm3, %v4060_v47 }
 0x28f   : > { %v2832_v7 = vld [vmem:[#allocation2 + $0x2d0] sm:$0xff]  ;;  %3525 = vst.msk [vmem:[%s5156_s12 + $0x164] sm:$0xf] %vm3435_vm3, %v4061_v60  ;;  %v2635_v54 = vadd.f32 %v2523_v34, %v464_v10 }
 0x290   : > { %v2937_v16 = vadd.f32 %v5736_v46, %v2832_v7  ;;  %2733 = vst.msk [vmem:[#allocation2 + $0x2e0] sm:$0xff] %vm272_vm2, %v2634_v42  ;;  %v2833_v43 = vld [vmem:[#allocation2 + $0x2d8] sm:$0xff] }
 0x291   : > { %v2938_v56 = vadd.f32 %v5736_v46, %v2833_v43  ;;  %2734 = vst.msk [vmem:[#allocation2 + $0x2e8] sm:$0xff] %vm272_vm2, %v2635_v54 }
 0x292   : > { %v3035_v49 = vmax.f32 %v2937_v16, 0.0  ;;  %v2102_v35 = vpop.f32.mrb[188].mxu0 }
 0x293   : > { %v3036_v13 = vmax.f32 %v2938_v56, 0.0  ;;  %v2528_v18 = vadd.f32 %v5820_v0, %v2102_v35  ;;  %v2104_v61 = vpop.f32.mrb[189].mxu0 }
 0x294   : > { %v4062_v11 = vpack.c.bf16 %v3035_v49, %v3035_v49  ;;  %v2105_v63 = vpop.f32.mrb[190].mxu0 }
 0x295   : > { %v4063_v57 = vpack.c.bf16 %v3036_v13, %v3036_v13  ;;  %v2636_v20 = vadd.f32 %v2528_v18, %v465_v55  ;;  %v2531_v2 = vadd.f32 %v5824_v14, %v2105_v63  ;;  %v2107_v41 = vpop.f32.mrb[191].mxu0 }
 0x296   : > { %3526 = vst.msk [vmem:[%s5156_s12 + $0x168] sm:$0xf] %vm3435_vm3, %v4062_v11 }
 0x297   : > { %v2834_v5 = vld [vmem:[#allocation2 + $0x2e0] sm:$0xff]  ;;  %3527 = vst.msk [vmem:[%s5156_s12 + $0x16c] sm:$0xf] %vm3435_vm3, %v4063_v57  ;;  %v2637_v48 = vadd.f32 %v2531_v2, %v466_v17 }
 0x298   : > { %v2939_v59 = vadd.f32 %v5736_v46, %v2834_v5  ;;  %2735 = vst.msk [vmem:[#allocation2 + $0x2f0] sm:$0xff] %vm272_vm2, %v2636_v20  ;;  %v2835_v0 = vld [vmem:[#allocation2 + $0x2e8] sm:$0xff] }
 0x299   : > { %v2940_v1 = vadd.f32 %v5736_v46, %v2835_v0  ;;  %2736 = vst.msk [vmem:[#allocation2 + $0x2f8] sm:$0xff] %vm272_vm2, %v2637_v48 }
 0x29a   : > { %v3037_v3 = vmax.f32 %v2939_v59, 0.0  ;;  %v2110_v32 = vpop.f32.mrb[192].mxu0 }
 0x29b   : > { %v3038_v6 = vmax.f32 %v2940_v1, 0.0  ;;  %v2536_v44 = vadd.f32 %v5834_v52, %v2110_v32  ;;  %v2112_v62 = vpop.f32.mrb[193].mxu0 }
 0x29c   : > { %v4064_v14 = vpack.c.bf16 %v3037_v3, %v3037_v3  ;;  %v2113_v12 = vpop.f32.mrb[194].mxu0 }
 0x29d   : > { %v4065_v53 = vpack.c.bf16 %v3038_v6, %v3038_v6  ;;  %v2638_v51 = vadd.f32 %v2536_v44, %v467_v8  ;;  %v2539_v36 = vadd.f32 %v5838_v21, %v2113_v12  ;;  %v2115_v19 = vpop.f32.mrb[195].mxu0 }
 0x29e   : > { %3528 = vst.msk [vmem:[%s5156_s12 + $0x170] sm:$0xf] %vm3435_vm3, %v4064_v14 }
 0x29f   : > { %v2836_v4 = vld [vmem:[#allocation2 + $0x2f0] sm:$0xff]  ;;  %3529 = vst.msk [vmem:[%s5156_s12 + $0x174] sm:$0xf] %vm3435_vm3, %v4065_v53  ;;  %v2639_v52 = vadd.f32 %v2539_v36, %v468_v15 }
 0x2a0   : > { %v2941_v39 = vadd.f32 %v5736_v46, %v2836_v4  ;;  %2737 = vst.msk [vmem:[#allocation2 + $0x300] sm:$0xff] %vm272_vm2, %v2638_v51  ;;  %v2837_v22 = vld [vmem:[#allocation2 + $0x2f8] sm:$0xff] }
 0x2a1   : > { %v2942_v25 = vadd.f32 %v5736_v46, %v2837_v22  ;;  %2738 = vst.msk [vmem:[#allocation2 + $0x308] sm:$0xff] %vm272_vm2, %v2639_v52 }
 0x2a2   : > { %v3039_v45 = vmax.f32 %v2941_v39, 0.0 }
 0x2a3   : > { %v3040_v21 = vmax.f32 %v2942_v25, 0.0 }
 0x2a4   : > { %v4066_v24 = vpack.c.bf16 %v3039_v45, %v3039_v45 }
 0x2a5   : > { %v4067_v27 = vpack.c.bf16 %v3040_v21, %v3040_v21 }
 0x2a6   : > { %3530 = vst.msk [vmem:[%s5156_s12 + $0x178] sm:$0xf] %vm3435_vm3, %v4066_v24 }
 0x2a7   : > { %v2838_v40 = vld [vmem:[#allocation2 + $0x300] sm:$0xff]  ;;  %3531 = vst.msk [vmem:[%s5156_s12 + $0x17c] sm:$0xf] %vm3435_vm3, %v4067_v27 }
 0x2a8   : > { %v2943_v50 = vadd.f32 %v5736_v46, %v2838_v40  ;;  %v2839_v29 = vld [vmem:[#allocation2 + $0x308] sm:$0xff] }
 0x2a9   : > { %v2944_v9 = vadd.f32 %v5736_v46, %v2839_v29 }
 0x2aa   : > { %v3041_v38 = vmax.f32 %v2943_v50, 0.0 }
 0x2ab   : > { %v3042_v58 = vmax.f32 %v2944_v9, 0.0 }
 0x2ac   : > { %v4068_v28 = vpack.c.bf16 %v3041_v38, %v3041_v38 }
 0x2ad   : > { %v4069_v26 = vpack.c.bf16 %v3042_v58, %v3042_v58 }
 0x2ae   : > { %3532 = vst.msk [vmem:[%s5156_s12 + $0x180] sm:$0xf] %vm3435_vm3, %v4068_v28 }
 0x2af   : > { %3533 = vst.msk [vmem:[%s5156_s12 + $0x184] sm:$0xf] %vm3435_vm3, %v4069_v26 }
 0x2b0 PF: > { %s13_s14 = sadd.s32 1, %s4587_s14   ;;  %s5923_s12 = smov %s4583_s13 }
 0x2b1   : > { %p10_p5 = scmp.ge.s32.totalorder %s13_s14, 4   ;;  %s5924_s13 = smov %s5926_s15 }
 0x2b3   :  { %12 = sbr.rel (!%p10_p5) target bundleno = 2 (0x2), region = 76 }

// kernel: cnn_forward.8
= control target key start
LH: loop header
LB: loop body
LE: loop exit
PB: predicated region body
PF: predicated region fallthrough
CT: control target
= control target key end

     0   :  { %s519_s22 = smov 64   ;;  %vm456_vm0 = vcmask 519168   ;;  %vm458_vm1 = vcmask 518144   ;;  %s1370_s0 = inlined_call_operand.vmem [shape: bf16[28,2,14,128], index: 0, kind: input, shape index: {}]   ;;  %s1371_s1 = inlined_call_operand.vmem [shape: bf16[28,14,64], index: 1, kind: output, shape index: {}]  }
   0x1   :  { %v12_v0 = vld [vmem:[%s1370_s0 + $0x10] sm:$0xf]  ;;  %v14_v1 = vld [vmem:[%s1370_s0 + $0x18] sm:$0xf]  ;;  %v8_v2 = vld [vmem:[%s1370_s0] sm:$0xf] }
   0x2   :  { %v539_v3 = vmax.bf16 %v14_v1, %v12_v0  ;;  %v10_v4 = vld [vmem:[%s1370_s0 + $0x8] sm:$0xf]  ;;  %v13_v5 = vld [vmem:[%s1370_s0 + $0x14] sm:$0x7]  ;;  %v15_v6 = vld [vmem:[%s1370_s0 + $0x1c] sm:$0x7] }
   0x3   :  { %v550_v7 = vmax.bf16 %v10_v4, %v8_v2  ;;  %v9_v8 = vld [vmem:[%s1370_s0 + $0x4] sm:$0x7]  ;;  %v11_v9 = vld [vmem:[%s1370_s0 + $0xc] sm:$0x7]  ;;  %v560_v10 = vmax.bf16 %v15_v6, %v13_v5  ;;  %v16_v14 = vld [vmem:[%s1370_s0 + $0x20] sm:$0xf] }
   0x4   :  { %236 = vrot.lane.b32.xlu1 %v539_v3, %s519_s22  ;;  %v564_v11 = vmax.bf16 %v11_v9, %v9_v8  ;;  %v17_v12 = vld [vmem:[%s1370_s0 + $0x24] sm:$0x7]  ;;  %v19_v13 = vld [vmem:[%s1370_s0 + $0x2c] sm:$0x7]  ;;  %v18_v15 = vld [vmem:[%s1370_s0 + $0x28] sm:$0xf] }
   0x5   :  { %232 = vrot.lane.b32.xlu0 %v550_v7, %s519_s22  ;;  %v580_v16 = vmax.bf16 %v19_v13, %v17_v12  ;;  %v584_v17 = vmax.bf16 %v18_v15, %v16_v14  ;;  %v21_v18 = vld [vmem:[%s1370_s0 + $0x34] sm:$0x7]  ;;  %v23_v19 = vld [vmem:[%s1370_s0 + $0x3c] sm:$0x7]  ;;  %v20_v20 = vld [vmem:[%s1370_s0 + $0x30] sm:$0xf] }
   0x6   :  { %v22_v21 = vld [vmem:[%s1370_s0 + $0x38] sm:$0xf]  ;;  %v600_v22 = vmax.bf16 %v23_v19, %v21_v18  ;;  %v25_v24 = vld [vmem:[%s1370_s0 + $0x44] sm:$0x7]  ;;  %v27_v25 = vld [vmem:[%s1370_s0 + $0x4c] sm:$0x7] }
   0x7   :  { %v604_v23 = vmax.bf16 %v22_v21, %v20_v20  ;;  %v24_v26 = vld [vmem:[%s1370_s0 + $0x40] sm:$0xf]  ;;  %v26_v27 = vld [vmem:[%s1370_s0 + $0x48] sm:$0xf]  ;;  %v620_v28 = vmax.bf16 %v27_v25, %v25_v24  ;;  %v29_v30 = vld [vmem:[%s1370_s0 + $0x54] sm:$0x7] }
   0x8   :  { %238 = vrot.lane.b32.xlu1 %v560_v10, %s519_s22  ;;  %v624_v29 = vmax.bf16 %v26_v27, %v24_v26  ;;  %v31_v31 = vld [vmem:[%s1370_s0 + $0x5c] sm:$0x7]  ;;  %v28_v32 = vld [vmem:[%s1370_s0 + $0x50] sm:$0xf]  ;;  %v30_v33 = vld [vmem:[%s1370_s0 + $0x58] sm:$0xf] }
   0x9   :  { %234 = vrot.lane.b32.xlu0 %v564_v11, %s519_s22  ;;  %v640_v34 = vmax.bf16 %v31_v31, %v29_v30  ;;  %v644_v35 = vmax.bf16 %v30_v33, %v28_v32  ;;  %v33_v36 = vld [vmem:[%s1370_s0 + $0x64] sm:$0x7]  ;;  %v35_v37 = vld [vmem:[%s1370_s0 + $0x6c] sm:$0x7]  ;;  %v32_v38 = vld [vmem:[%s1370_s0 + $0x60] sm:$0xf] }
   0xa   :  { %v34_v39 = vld [vmem:[%s1370_s0 + $0x68] sm:$0xf]  ;;  %v660_v40 = vmax.bf16 %v35_v37, %v33_v36  ;;  %v37_v42 = vld [vmem:[%s1370_s0 + $0x74] sm:$0x7]  ;;  %v39_v43 = vld [vmem:[%s1370_s0 + $0x7c] sm:$0x7] }
   0xb   :  { %v664_v41 = vmax.bf16 %v34_v39, %v32_v38  ;;  %v36_v44 = vld [vmem:[%s1370_s0 + $0x70] sm:$0xf]  ;;  %v38_v45 = vld [vmem:[%s1370_s0 + $0x78] sm:$0xf]  ;;  %v680_v46 = vmax.bf16 %v39_v43, %v37_v42  ;;  %v41_v48 = vld [vmem:[%s1370_s0 + $0x84] sm:$0x7] }
   0xc   :  { %242 = vrot.lane.b32.xlu1 %v580_v16, %s519_s22  ;;  %v684_v47 = vmax.bf16 %v38_v45, %v36_v44  ;;  %v43_v49 = vld [vmem:[%s1370_s0 + $0x8c] sm:$0x7]  ;;  %v40_v50 = vld [vmem:[%s1370_s0 + $0x80] sm:$0xf]  ;;  %v42_v51 = vld [vmem:[%s1370_s0 + $0x88] sm:$0xf] }
   0xd   :  { %240 = vrot.lane.b32.xlu0 %v584_v17, %s519_s22  ;;  %v700_v52 = vmax.bf16 %v43_v49, %v41_v48  ;;  %v704_v53 = vmax.bf16 %v42_v51, %v40_v50  ;;  %v45_v54 = vld [vmem:[%s1370_s0 + $0x94] sm:$0x7]  ;;  %v47_v55 = vld [vmem:[%s1370_s0 + $0x9c] sm:$0x7]  ;;  %v44_v56 = vld [vmem:[%s1370_s0 + $0x90] sm:$0xf] }
   0xe   :  { %v46_v57 = vld [vmem:[%s1370_s0 + $0x98] sm:$0xf]  ;;  %v720_v58 = vmax.bf16 %v47_v55, %v45_v54  ;;  %v49_v60 = vld [vmem:[%s1370_s0 + $0xa4] sm:$0x7]  ;;  %v51_v61 = vld [vmem:[%s1370_s0 + $0xac] sm:$0x7] }
   0xf   :  { %v724_v59 = vmax.bf16 %v46_v57, %v44_v56  ;;  %v48_v62 = vld [vmem:[%s1370_s0 + $0xa0] sm:$0xf]  ;;  %v50_v63 = vld [vmem:[%s1370_s0 + $0xa8] sm:$0xf]  ;;  %v740_v0 = vmax.bf16 %v51_v61, %v49_v60  ;;  %v53_v2 = vld [vmem:[%s1370_s0 + $0xb4] sm:$0x7] }
  0x10   :  { %246 = vrot.lane.b32.xlu1 %v600_v22, %s519_s22  ;;  %v744_v1 = vmax.bf16 %v50_v63, %v48_v62  ;;  %v55_v4 = vld [vmem:[%s1370_s0 + $0xbc] sm:$0x7]  ;;  %v52_v5 = vld [vmem:[%s1370_s0 + $0xb0] sm:$0xf]  ;;  %v54_v6 = vld [vmem:[%s1370_s0 + $0xb8] sm:$0xf] }
  0x11   :  { %244 = vrot.lane.b32.xlu0 %v604_v23, %s519_s22  ;;  %v760_v8 = vmax.bf16 %v55_v4, %v53_v2  ;;  %v764_v9 = vmax.bf16 %v54_v6, %v52_v5  ;;  %v57_v12 = vld [vmem:[%s1370_s0 + $0xc4] sm:$0x7]  ;;  %v59_v13 = vld [vmem:[%s1370_s0 + $0xcc] sm:$0x7]  ;;  %v56_v14 = vld [vmem:[%s1370_s0 + $0xc0] sm:$0xf] }
  0x12   :  { %v58_v15 = vld [vmem:[%s1370_s0 + $0xc8] sm:$0xf]  ;;  %v780_v18 = vmax.bf16 %v59_v13, %v57_v12  ;;  %v61_v20 = vld [vmem:[%s1370_s0 + $0xd4] sm:$0x7]  ;;  %v63_v21 = vld [vmem:[%s1370_s0 + $0xdc] sm:$0x7] }
  0x13   :  { %v784_v19 = vmax.bf16 %v58_v15, %v56_v14  ;;  %v60_v24 = vld [vmem:[%s1370_s0 + $0xd0] sm:$0xf]  ;;  %v62_v25 = vld [vmem:[%s1370_s0 + $0xd8] sm:$0xf]  ;;  %v800_v26 = vmax.bf16 %v63_v21, %v61_v20  ;;  %v65_v30 = vld [vmem:[%s1370_s0 + $0xe4] sm:$0x7] }
  0x14   :  { %250 = vrot.lane.b32.xlu1 %v620_v28, %s519_s22  ;;  %v804_v27 = vmax.bf16 %v62_v25, %v60_v24  ;;  %v67_v31 = vld [vmem:[%s1370_s0 + $0xec] sm:$0x7]  ;;  %v64_v32 = vld [vmem:[%s1370_s0 + $0xe0] sm:$0xf]  ;;  %v66_v33 = vld [vmem:[%s1370_s0 + $0xe8] sm:$0xf] }
  0x15   :  { %248 = vrot.lane.b32.xlu0 %v624_v29, %s519_s22  ;;  %v820_v36 = vmax.bf16 %v67_v31, %v65_v30  ;;  %v824_v37 = vmax.bf16 %v66_v33, %v64_v32  ;;  %v69_v38 = vld [vmem:[%s1370_s0 + $0xf4] sm:$0x7]  ;;  %v71_v39 = vld [vmem:[%s1370_s0 + $0xfc] sm:$0x7]  ;;  %v68_v42 = vld [vmem:[%s1370_s0 + $0xf0] sm:$0xf] }
  0x16   :  { %v70_v43 = vld [vmem:[%s1370_s0 + $0xf8] sm:$0xf]  ;;  %v840_v44 = vmax.bf16 %v71_v39, %v69_v38  ;;  %v73_v48 = vld [vmem:[%s1370_s0 + $0x104] sm:$0x7]  ;;  %v75_v49 = vld [vmem:[%s1370_s0 + $0x10c] sm:$0x7] }
  0x17   :  { %v844_v45 = vmax.bf16 %v70_v43, %v68_v42  ;;  %v72_v50 = vld [vmem:[%s1370_s0 + $0x100] sm:$0xf]  ;;  %v74_v51 = vld [vmem:[%s1370_s0 + $0x108] sm:$0xf]  ;;  %v860_v54 = vmax.bf16 %v75_v49, %v73_v48  ;;  %v77_v56 = vld [vmem:[%s1370_s0 + $0x114] sm:$0x7] }
  0x18   :  { %254 = vrot.lane.b32.xlu1 %v640_v34, %s519_s22  ;;  %v864_v55 = vmax.bf16 %v74_v51, %v72_v50  ;;  %v79_v57 = vld [vmem:[%s1370_s0 + $0x11c] sm:$0x7]  ;;  %v76_v60 = vld [vmem:[%s1370_s0 + $0x110] sm:$0xf]  ;;  %v78_v61 = vld [vmem:[%s1370_s0 + $0x118] sm:$0xf] }
  0x19   :  { %252 = vrot.lane.b32.xlu0 %v644_v35, %s519_s22  ;;  %v880_v62 = vmax.bf16 %v79_v57, %v77_v56  ;;  %v884_v63 = vmax.bf16 %v78_v61, %v76_v60  ;;  %v81_v2 = vld [vmem:[%s1370_s0 + $0x124] sm:$0x7]  ;;  %v83_v4 = vld [vmem:[%s1370_s0 + $0x12c] sm:$0x7]  ;;  %v80_v5 = vld [vmem:[%s1370_s0 + $0x120] sm:$0xf] }
  0x1a   :  { %v82_v6 = vld [vmem:[%s1370_s0 + $0x128] sm:$0xf]  ;;  %v900_v12 = vmax.bf16 %v83_v4, %v81_v2  ;;  %v85_v14 = vld [vmem:[%s1370_s0 + $0x134] sm:$0x7]  ;;  %v87_v15 = vld [vmem:[%s1370_s0 + $0x13c] sm:$0x7] }
  0x1b   :  { %v904_v13 = vmax.bf16 %v82_v6, %v80_v5  ;;  %v84_v20 = vld [vmem:[%s1370_s0 + $0x130] sm:$0xf]  ;;  %v86_v21 = vld [vmem:[%s1370_s0 + $0x138] sm:$0xf]  ;;  %v920_v24 = vmax.bf16 %v87_v15, %v85_v14  ;;  %v89_v30 = vld [vmem:[%s1370_s0 + $0x144] sm:$0x7] }
  0x1c   :  { %258 = vrot.lane.b32.xlu1 %v660_v40, %s519_s22  ;;  %v924_v25 = vmax.bf16 %v86_v21, %v84_v20  ;;  %v91_v31 = vld [vmem:[%s1370_s0 + $0x14c] sm:$0x7]  ;;  %v88_v32 = vld [vmem:[%s1370_s0 + $0x140] sm:$0xf]  ;;  %v90_v33 = vld [vmem:[%s1370_s0 + $0x148] sm:$0xf] }
  0x1d   :  { %256 = vrot.lane.b32.xlu0 %v664_v41, %s519_s22  ;;  %v940_v38 = vmax.bf16 %v91_v31, %v89_v30  ;;  %v944_v39 = vmax.bf16 %v90_v33, %v88_v32  ;;  %v93_v42 = vld [vmem:[%s1370_s0 + $0x154] sm:$0x7]  ;;  %v95_v43 = vld [vmem:[%s1370_s0 + $0x15c] sm:$0x7]  ;;  %v92_v48 = vld [vmem:[%s1370_s0 + $0x150] sm:$0xf] }
  0x1e   :  { %v94_v49 = vld [vmem:[%s1370_s0 + $0x158] sm:$0xf]  ;;  %v960_v50 = vmax.bf16 %v95_v43, %v93_v42  ;;  %v97_v56 = vld [vmem:[%s1370_s0 + $0x164] sm:$0x7]  ;;  %v99_v57 = vld [vmem:[%s1370_s0 + $0x16c] sm:$0x7] }
  0x1f   :  { %v964_v51 = vmax.bf16 %v94_v49, %v92_v48  ;;  %v96_v60 = vld [vmem:[%s1370_s0 + $0x160] sm:$0xf]  ;;  %v98_v61 = vld [vmem:[%s1370_s0 + $0x168] sm:$0xf]  ;;  %v980_v2 = vmax.bf16 %v99_v57, %v97_v56  ;;  %v101_v5 = vld [vmem:[%s1370_s0 + $0x174] sm:$0x7] }
  0x20   :  { %262 = vrot.lane.b32.xlu1 %v680_v46, %s519_s22  ;;  %v984_v4 = vmax.bf16 %v98_v61, %v96_v60  ;;  %v103_v6 = vld [vmem:[%s1370_s0 + $0x17c] sm:$0x7]  ;;  %v100_v14 = vld [vmem:[%s1370_s0 + $0x170] sm:$0xf]  ;;  %v102_v15 = vld [vmem:[%s1370_s0 + $0x178] sm:$0xf] }
  0x21   :  { %260 = vrot.lane.b32.xlu0 %v684_v47, %s519_s22  ;;  %v1000_v20 = vmax.bf16 %v103_v6, %v101_v5  ;;  %v1004_v21 = vmax.bf16 %v102_v15, %v100_v14  ;;  %v105_v30 = vld [vmem:[%s1370_s0 + $0x184] sm:$0x7]  ;;  %v107_v31 = vld [vmem:[%s1370_s0 + $0x18c] sm:$0x7]  ;;  %v104_v32 = vld [vmem:[%s1370_s0 + $0x180] sm:$0xf] }
  0x22   :  { %v106_v33 = vld [vmem:[%s1370_s0 + $0x188] sm:$0xf]  ;;  %v1020_v42 = vmax.bf16 %v107_v31, %v105_v30  ;;  %v109_v48 = vld [vmem:[%s1370_s0 + $0x194] sm:$0x7]  ;;  %v111_v49 = vld [vmem:[%s1370_s0 + $0x19c] sm:$0x7] }
  0x23   :  { %v1024_v43 = vmax.bf16 %v106_v33, %v104_v32  ;;  %v108_v56 = vld [vmem:[%s1370_s0 + $0x190] sm:$0xf]  ;;  %v110_v57 = vld [vmem:[%s1370_s0 + $0x198] sm:$0xf]  ;;  %v1040_v60 = vmax.bf16 %v111_v49, %v109_v48  ;;  %v113_v5 = vld [vmem:[%s1370_s0 + $0x1a4] sm:$0x7] }
  0x24   :  { %266 = vrot.lane.b32.xlu1 %v700_v52, %s519_s22  ;;  %v1044_v61 = vmax.bf16 %v110_v57, %v108_v56  ;;  %v115_v6 = vld [vmem:[%s1370_s0 + $0x1ac] sm:$0x7]  ;;  %v112_v14 = vld [vmem:[%s1370_s0 + $0x1a0] sm:$0xf]  ;;  %v114_v15 = vld [vmem:[%s1370_s0 + $0x1a8] sm:$0xf] }
  0x25   :  { %264 = vrot.lane.b32.xlu0 %v704_v53, %s519_s22  ;;  %v1060_v30 = vmax.bf16 %v115_v6, %v113_v5  ;;  %v1064_v31 = vmax.bf16 %v114_v15, %v112_v14  ;;  %v117_v32 = vld [vmem:[%s1370_s0 + $0x1b4] sm:$0x7]  ;;  %v119_v33 = vld [vmem:[%s1370_s0 + $0x1bc] sm:$0x7]  ;;  %v116_v48 = vld [vmem:[%s1370_s0 + $0x1b0] sm:$0xf] }
  0x26   :  { %v118_v49 = vld [vmem:[%s1370_s0 + $0x1b8] sm:$0xf]  ;;  %v1080_v56 = vmax.bf16 %v119_v33, %v117_v32 }
  0x27   :  { %v1084_v57 = vmax.bf16 %v118_v49, %v116_v48 }
  0x28   :  { %270 = vrot.lane.b32.xlu1 %v720_v58, %s519_s22 }
  0x29   :  { %268 = vrot.lane.b32.xlu0 %v724_v59, %s519_s22 }
  0x2c   :  { %274 = vrot.lane.b32.xlu1 %v740_v0, %s519_s22 }
  0x2d   :  { %272 = vrot.lane.b32.xlu0 %v744_v1, %s519_s22 }
  0x30   :  { %278 = vrot.lane.b32.xlu1 %v760_v8, %s519_s22 }
  0x31   :  { %276 = vrot.lane.b32.xlu0 %v764_v9, %s519_s22 }
  0x34   :  { %282 = vrot.lane.b32.xlu1 %v780_v18, %s519_s22 }
  0x35   :  { %280 = vrot.lane.b32.xlu0 %v784_v19, %s519_s22 }
  0x38   :  { %286 = vrot.lane.b32.xlu1 %v800_v26, %s519_s22 }
  0x39   :  { %284 = vrot.lane.b32.xlu0 %v804_v27, %s519_s22 }
  0x3c   :  { %290 = vrot.lane.b32.xlu1 %v820_v36, %s519_s22 }
  0x3d   :  { %288 = vrot.lane.b32.xlu0 %v824_v37, %s519_s22 }
  0x40   :  { %294 = vrot.lane.b32.xlu1 %v840_v44, %s519_s22 }
  0x41   :  { %292 = vrot.lane.b32.xlu0 %v844_v45, %s519_s22 }
  0x44   :  { %298 = vrot.lane.b32.xlu1 %v860_v54, %s519_s22 }
  0x45   :  { %296 = vrot.lane.b32.xlu0 %v864_v55, %s519_s22 }
  0x48   :  { %302 = vrot.lane.b32.xlu1 %v880_v62, %s519_s22 }
  0x49   :  { %300 = vrot.lane.b32.xlu0 %v884_v63, %s519_s22 }
  0x4c   :  { %306 = vrot.lane.b32.xlu1 %v900_v12, %s519_s22 }
  0x4d   :  { %304 = vrot.lane.b32.xlu0 %v904_v13, %s519_s22 }
  0x50   :  { %310 = vrot.lane.b32.xlu1 %v920_v24, %s519_s22 }
  0x51   :  { %308 = vrot.lane.b32.xlu0 %v924_v25, %s519_s22 }
  0x54   :  { %314 = vrot.lane.b32.xlu1 %v940_v38, %s519_s22 }
  0x55   :  { %312 = vrot.lane.b32.xlu0 %v944_v39, %s519_s22 }
  0x58   :  { %318 = vrot.lane.b32.xlu1 %v960_v50, %s519_s22 }
  0x59   :  { %316 = vrot.lane.b32.xlu0 %v964_v51, %s519_s22 }
  0x5c   :  { %322 = vrot.lane.b32.xlu1 %v980_v2, %s519_s22 }
  0x5d   :  { %320 = vrot.lane.b32.xlu0 %v984_v4, %s519_s22 }
  0x60   :  { %326 = vrot.lane.b32.xlu1 %v1000_v20, %s519_s22 }
  0x61   :  { %324 = vrot.lane.b32.xlu0 %v1004_v21, %s519_s22 }
  0x64   :  { %330 = vrot.lane.b32.xlu1 %v1020_v42, %s519_s22 }
  0x65   :  { %328 = vrot.lane.b32.xlu0 %v1024_v43, %s519_s22 }
  0x68   :  { %334 = vrot.lane.b32.xlu1 %v1040_v60, %s519_s22 }
  0x69   :  { %332 = vrot.lane.b32.xlu0 %v1044_v61, %s519_s22 }
  0x6c   :  { %338 = vrot.lane.b32.xlu1 %v1060_v30, %s519_s22 }
  0x6d   :  { %336 = vrot.lane.b32.xlu0 %v1064_v31, %s519_s22 }
  0x70   :  { %342 = vrot.lane.b32.xlu1 %v1080_v56, %s519_s22 }
  0x71   :  { %340 = vrot.lane.b32.xlu0 %v1084_v57, %s519_s22 }
  0x76   :  { %v237_v5 = vpop.permute.xlu1 %236 }
  0x77   :  { %v402_v6 = vmax.bf16 %v237_v5, %v539_v3  ;;  %v233_v14 = vpop.permute.xlu0 %232 }
  0x78   :  { %v400_v15 = vmax.bf16 %v233_v14, %v550_v7 }
  0x79   :  { %460 = vst.msk [vmem:[%s1371_s1 + $0x8] sm:$0xf] %vm456_vm0, %v402_v6 }
  0x7a   :  { %457 = vst.msk [vmem:[%s1371_s1] sm:$0xf] %vm456_vm0, %v400_v15  ;;  %v239_v32 = vpop.permute.xlu1 %238 }
  0x7b   :  { %v403_v33 = vmax.bf16 %v239_v32, %v560_v10  ;;  %v235_v48 = vpop.permute.xlu0 %234 }
  0x7c   :  { %v401_v3 = vmax.bf16 %v235_v48, %v564_v11 }
  0x7d   :  { %461 = vst.msk [vmem:[%s1371_s1 + $0xc] sm:$0x7] %vm458_vm1, %v403_v33 }
  0x7e   :  { %459 = vst.msk [vmem:[%s1371_s1 + $0x4] sm:$0x7] %vm458_vm1, %v401_v3  ;;  %v243_v7 = vpop.permute.xlu1 %242 }
  0x7f   :  { %v405_v49 = vmax.bf16 %v243_v7, %v580_v16  ;;  %v241_v5 = vpop.permute.xlu0 %240 }
  0x80   :  { %v404_v6 = vmax.bf16 %v241_v5, %v584_v17 }
  0x81   :  { %463 = vst.msk [vmem:[%s1371_s1 + $0x14] sm:$0x7] %vm458_vm1, %v405_v49 }
  0x82   :  { %462 = vst.msk [vmem:[%s1371_s1 + $0x10] sm:$0xf] %vm456_vm0, %v404_v6  ;;  %v247_v10 = vpop.permute.xlu1 %246 }
  0x83   :  { %v407_v11 = vmax.bf16 %v247_v10, %v600_v22  ;;  %v245_v14 = vpop.permute.xlu0 %244 }
  0x84   :  { %v406_v15 = vmax.bf16 %v245_v14, %v604_v23 }
  0x85   :  { %465 = vst.msk [vmem:[%s1371_s1 + $0x1c] sm:$0x7] %vm458_vm1, %v407_v11 }
  0x86   :  { %464 = vst.msk [vmem:[%s1371_s1 + $0x18] sm:$0xf] %vm456_vm0, %v406_v15  ;;  %v251_v16 = vpop.permute.xlu1 %250 }
  0x87   :  { %v409_v17 = vmax.bf16 %v251_v16, %v620_v28  ;;  %v249_v32 = vpop.permute.xlu0 %248 }
  0x88   :  { %v408_v33 = vmax.bf16 %v249_v32, %v624_v29 }
  0x89   :  { %467 = vst.msk [vmem:[%s1371_s1 + $0x24] sm:$0x7] %vm458_vm1, %v409_v17 }
  0x8a   :  { %466 = vst.msk [vmem:[%s1371_s1 + $0x20] sm:$0xf] %vm456_vm0, %v408_v33  ;;  %v255_v22 = vpop.permute.xlu1 %254 }
  0x8b   :  { %v411_v23 = vmax.bf16 %v255_v22, %v640_v34  ;;  %v253_v48 = vpop.permute.xlu0 %252 }
  0x8c   :  { %v410_v3 = vmax.bf16 %v253_v48, %v644_v35 }
  0x8d   :  { %469 = vst.msk [vmem:[%s1371_s1 + $0x2c] sm:$0x7] %vm458_vm1, %v411_v23 }
  0x8e   :  { %468 = vst.msk [vmem:[%s1371_s1 + $0x28] sm:$0xf] %vm456_vm0, %v410_v3  ;;  %v259_v28 = vpop.permute.xlu1 %258 }
  0x8f   :  { %v413_v29 = vmax.bf16 %v259_v28, %v660_v40  ;;  %v257_v7 = vpop.permute.xlu0 %256 }
  0x90   :  { %v412_v49 = vmax.bf16 %v257_v7, %v664_v41 }
  0x91   :  { %471 = vst.msk [vmem:[%s1371_s1 + $0x34] sm:$0x7] %vm458_vm1, %v413_v29 }
  0x92   :  { %470 = vst.msk [vmem:[%s1371_s1 + $0x30] sm:$0xf] %vm456_vm0, %v412_v49  ;;  %v263_v34 = vpop.permute.xlu1 %262 }
  0x93   :  { %v415_v35 = vmax.bf16 %v263_v34, %v680_v46  ;;  %v261_v5 = vpop.permute.xlu0 %260 }
  0x94   :  { %v414_v6 = vmax.bf16 %v261_v5, %v684_v47 }
  0x95   :  { %473 = vst.msk [vmem:[%s1371_s1 + $0x3c] sm:$0x7] %vm458_vm1, %v415_v35 }
  0x96   :  { %472 = vst.msk [vmem:[%s1371_s1 + $0x38] sm:$0xf] %vm456_vm0, %v414_v6  ;;  %v267_v40 = vpop.permute.xlu1 %266 }
  0x97   :  { %v417_v41 = vmax.bf16 %v267_v40, %v700_v52  ;;  %v265_v10 = vpop.permute.xlu0 %264 }
  0x98   :  { %v416_v11 = vmax.bf16 %v265_v10, %v704_v53 }
  0x99   :  { %475 = vst.msk [vmem:[%s1371_s1 + $0x44] sm:$0x7] %vm458_vm1, %v417_v41 }
  0x9a   :  { %474 = vst.msk [vmem:[%s1371_s1 + $0x40] sm:$0xf] %vm456_vm0, %v416_v11  ;;  %v271_v46 = vpop.permute.xlu1 %270 }
  0x9b   :  { %v419_v47 = vmax.bf16 %v271_v46, %v720_v58  ;;  %v269_v14 = vpop.permute.xlu0 %268 }
  0x9c   :  { %v418_v15 = vmax.bf16 %v269_v14, %v724_v59 }
  0x9d   :  { %477 = vst.msk [vmem:[%s1371_s1 + $0x4c] sm:$0x7] %vm458_vm1, %v419_v47 }
  0x9e   :  { %476 = vst.msk [vmem:[%s1371_s1 + $0x48] sm:$0xf] %vm456_vm0, %v418_v15  ;;  %v275_v52 = vpop.permute.xlu1 %274 }
  0x9f   :  { %v421_v53 = vmax.bf16 %v275_v52, %v740_v0  ;;  %v273_v16 = vpop.permute.xlu0 %272 }
  0xa0   :  { %v420_v17 = vmax.bf16 %v273_v16, %v744_v1 }
  0xa1   :  { %479 = vst.msk [vmem:[%s1371_s1 + $0x54] sm:$0x7] %vm458_vm1, %v421_v53 }
  0xa2   :  { %478 = vst.msk [vmem:[%s1371_s1 + $0x50] sm:$0xf] %vm456_vm0, %v420_v17  ;;  %v279_v58 = vpop.permute.xlu1 %278 }
  0xa3   :  { %v423_v59 = vmax.bf16 %v279_v58, %v760_v8  ;;  %v277_v32 = vpop.permute.xlu0 %276 }
  0xa4   :  { %v422_v33 = vmax.bf16 %v277_v32, %v764_v9 }
  0xa5   :  { %481 = vst.msk [vmem:[%s1371_s1 + $0x5c] sm:$0x7] %vm458_vm1, %v423_v59 }
  0xa6   :  { %480 = vst.msk [vmem:[%s1371_s1 + $0x58] sm:$0xf] %vm456_vm0, %v422_v33  ;;  %v283_v0 = vpop.permute.xlu1 %282 }
  0xa7   :  { %v425_v1 = vmax.bf16 %v283_v0, %v780_v18  ;;  %v281_v22 = vpop.permute.xlu0 %280 }
  0xa8   :  { %v424_v23 = vmax.bf16 %v281_v22, %v784_v19 }
  0xa9   :  { %483 = vst.msk [vmem:[%s1371_s1 + $0x64] sm:$0x7] %vm458_vm1, %v425_v1 }
  0xaa   :  { %482 = vst.msk [vmem:[%s1371_s1 + $0x60] sm:$0xf] %vm456_vm0, %v424_v23  ;;  %v287_v8 = vpop.permute.xlu1 %286 }
  0xab   :  { %v427_v9 = vmax.bf16 %v287_v8, %v800_v26  ;;  %v285_v48 = vpop.permute.xlu0 %284 }
  0xac   :  { %v426_v3 = vmax.bf16 %v285_v48, %v804_v27 }
  0xad   :  { %485 = vst.msk [vmem:[%s1371_s1 + $0x6c] sm:$0x7] %vm458_vm1, %v427_v9 }
  0xae   :  { %484 = vst.msk [vmem:[%s1371_s1 + $0x68] sm:$0xf] %vm456_vm0, %v426_v3  ;;  %v291_v18 = vpop.permute.xlu1 %290 }
  0xaf   :  { %v429_v19 = vmax.bf16 %v291_v18, %v820_v36  ;;  %v289_v28 = vpop.permute.xlu0 %288 }
  0xb0   :  { %v428_v29 = vmax.bf16 %v289_v28, %v824_v37 }
  0xb1   :  { %487 = vst.msk [vmem:[%s1371_s1 + $0x74] sm:$0x7] %vm458_vm1, %v429_v19 }
  0xb2   :  { %486 = vst.msk [vmem:[%s1371_s1 + $0x70] sm:$0xf] %vm456_vm0, %v428_v29  ;;  %v295_v26 = vpop.permute.xlu1 %294 }
  0xb3   :  { %v431_v27 = vmax.bf16 %v295_v26, %v840_v44  ;;  %v293_v7 = vpop.permute.xlu0 %292 }
  0xb4   :  { %v430_v49 = vmax.bf16 %v293_v7, %v844_v45 }
  0xb5   :  { %489 = vst.msk [vmem:[%s1371_s1 + $0x7c] sm:$0x7] %vm458_vm1, %v431_v27 }
  0xb6   :  { %488 = vst.msk [vmem:[%s1371_s1 + $0x78] sm:$0xf] %vm456_vm0, %v430_v49  ;;  %v299_v36 = vpop.permute.xlu1 %298 }
  0xb7   :  { %v433_v37 = vmax.bf16 %v299_v36, %v860_v54  ;;  %v297_v34 = vpop.permute.xlu0 %296 }
  0xb8   :  { %v432_v35 = vmax.bf16 %v297_v34, %v864_v55 }
  0xb9   :  { %491 = vst.msk [vmem:[%s1371_s1 + $0x84] sm:$0x7] %vm458_vm1, %v433_v37 }
  0xba   :  { %490 = vst.msk [vmem:[%s1371_s1 + $0x80] sm:$0xf] %vm456_vm0, %v432_v35  ;;  %v303_v44 = vpop.permute.xlu1 %302 }
  0xbb   :  { %v435_v45 = vmax.bf16 %v303_v44, %v880_v62  ;;  %v301_v5 = vpop.permute.xlu0 %300 }
  0xbc   :  { %v434_v6 = vmax.bf16 %v301_v5, %v884_v63 }
  0xbd   :  { %493 = vst.msk [vmem:[%s1371_s1 + $0x8c] sm:$0x7] %vm458_vm1, %v435_v45 }
  0xbe   :  { %492 = vst.msk [vmem:[%s1371_s1 + $0x88] sm:$0xf] %vm456_vm0, %v434_v6  ;;  %v307_v54 = vpop.permute.xlu1 %306 }
  0xbf   :  { %v437_v55 = vmax.bf16 %v307_v54, %v900_v12  ;;  %v305_v40 = vpop.permute.xlu0 %304 }
  0xc0   :  { %v436_v41 = vmax.bf16 %v305_v40, %v904_v13 }
  0xc1   :  { %495 = vst.msk [vmem:[%s1371_s1 + $0x94] sm:$0x7] %vm458_vm1, %v437_v55 }
  0xc2   :  { %494 = vst.msk [vmem:[%s1371_s1 + $0x90] sm:$0xf] %vm456_vm0, %v436_v41  ;;  %v311_v62 = vpop.permute.xlu1 %310 }
  0xc3   :  { %v439_v63 = vmax.bf16 %v311_v62, %v920_v24  ;;  %v309_v10 = vpop.permute.xlu0 %308 }
  0xc4   :  { %v438_v11 = vmax.bf16 %v309_v10, %v924_v25 }
  0xc5   :  { %497 = vst.msk [vmem:[%s1371_s1 + $0x9c] sm:$0x7] %vm458_vm1, %v439_v63 }
  0xc6   :  { %496 = vst.msk [vmem:[%s1371_s1 + $0x98] sm:$0xf] %vm456_vm0, %v438_v11  ;;  %v315_v12 = vpop.permute.xlu1 %314 }
  0xc7   :  { %v441_v13 = vmax.bf16 %v315_v12, %v940_v38  ;;  %v313_v46 = vpop.permute.xlu0 %312 }
  0xc8   :  { %v440_v47 = vmax.bf16 %v313_v46, %v944_v39 }
  0xc9   :  { %499 = vst.msk [vmem:[%s1371_s1 + $0xa4] sm:$0x7] %vm458_vm1, %v441_v13 }
  0xca   :  { %498 = vst.msk [vmem:[%s1371_s1 + $0xa0] sm:$0xf] %vm456_vm0, %v440_v47  ;;  %v319_v24 = vpop.permute.xlu1 %318 }
  0xcb   :  { %v443_v25 = vmax.bf16 %v319_v24, %v960_v50  ;;  %v317_v14 = vpop.permute.xlu0 %316 }
  0xcc   :  { %v442_v15 = vmax.bf16 %v317_v14, %v964_v51 }
  0xcd   :  { %501 = vst.msk [vmem:[%s1371_s1 + $0xac] sm:$0x7] %vm458_vm1, %v443_v25 }
  0xce   :  { %500 = vst.msk [vmem:[%s1371_s1 + $0xa8] sm:$0xf] %vm456_vm0, %v442_v15  ;;  %v323_v38 = vpop.permute.xlu1 %322 }
  0xcf   :  { %v445_v39 = vmax.bf16 %v323_v38, %v980_v2  ;;  %v321_v52 = vpop.permute.xlu0 %320 }
  0xd0   :  { %v444_v53 = vmax.bf16 %v321_v52, %v984_v4 }
  0xd1   :  { %503 = vst.msk [vmem:[%s1371_s1 + $0xb4] sm:$0x7] %vm458_vm1, %v445_v39 }
  0xd2   :  { %502 = vst.msk [vmem:[%s1371_s1 + $0xb0] sm:$0xf] %vm456_vm0, %v444_v53  ;;  %v327_v50 = vpop.permute.xlu1 %326 }
  0xd3   :  { %v447_v51 = vmax.bf16 %v327_v50, %v1000_v20  ;;  %v325_v16 = vpop.permute.xlu0 %324 }
  0xd4   :  { %v446_v17 = vmax.bf16 %v325_v16, %v1004_v21 }
  0xd5   :  { %505 = vst.msk [vmem:[%s1371_s1 + $0xbc] sm:$0x7] %vm458_vm1, %v447_v51 }
  0xd6   :  { %504 = vst.msk [vmem:[%s1371_s1 + $0xb8] sm:$0xf] %vm456_vm0, %v446_v17  ;;  %v331_v2 = vpop.permute.xlu1 %330 }
  0xd7   :  { %v449_v4 = vmax.bf16 %v331_v2, %v1020_v42  ;;  %v329_v58 = vpop.permute.xlu0 %328 }
  0xd8   :  { %v448_v59 = vmax.bf16 %v329_v58, %v1024_v43 }
  0xd9   :  { %507 = vst.msk [vmem:[%s1371_s1 + $0xc4] sm:$0x7] %vm458_vm1, %v449_v4 }
  0xda   :  { %506 = vst.msk [vmem:[%s1371_s1 + $0xc0] sm:$0xf] %vm456_vm0, %v448_v59  ;;  %v335_v20 = vpop.permute.xlu1 %334 }
  0xdb   :  { %v451_v21 = vmax.bf16 %v335_v20, %v1040_v60  ;;  %v333_v32 = vpop.permute.xlu0 %332 }
  0xdc   :  { %v450_v33 = vmax.bf16 %v333_v32, %v1044_v61 }
  0xdd   :  { %509 = vst.msk [vmem:[%s1371_s1 + $0xcc] sm:$0x7] %vm458_vm1, %v451_v21 }
  0xde   :  { %508 = vst.msk [vmem:[%s1371_s1 + $0xc8] sm:$0xf] %vm456_vm0, %v450_v33  ;;  %v339_v42 = vpop.permute.xlu1 %338 }
  0xdf   :  { %v453_v43 = vmax.bf16 %v339_v42, %v1060_v30  ;;  %v337_v0 = vpop.permute.xlu0 %336 }
  0xe0   :  { %v452_v1 = vmax.bf16 %v337_v0, %v1064_v31 }
  0xe1   :  { %511 = vst.msk [vmem:[%s1371_s1 + $0xd4] sm:$0x7] %vm458_vm1, %v453_v43 }
  0xe2   :  { %510 = vst.msk [vmem:[%s1371_s1 + $0xd0] sm:$0xf] %vm456_vm0, %v452_v1  ;;  %v343_v60 = vpop.permute.xlu1 %342 }
  0xe3   :  { %v455_v61 = vmax.bf16 %v343_v60, %v1080_v56  ;;  %v341_v22 = vpop.permute.xlu0 %340 }
  0xe4   :  { %v454_v23 = vmax.bf16 %v341_v22, %v1084_v57 }
  0xe5   :  { %513 = vst.msk [vmem:[%s1371_s1 + $0xdc] sm:$0x7] %vm458_vm1, %v455_v61 }
  0xe6   :  { %512 = vst.msk [vmem:[%s1371_s1 + $0xd8] sm:$0xf] %vm456_vm0, %v454_v23 }

// kernel: cnn_forward.9
= control target key start
LH: loop header
LB: loop body
LE: loop exit
PB: predicated region body
PF: predicated region fallthrough
CT: control target
= control target key end

     0   :  { %s2586_s12 = smov 0   ;;  %s2588_s13 = smov 0   ;;  %s2965_s0 = inlined_call_operand.vmem [shape: bf16[416,576], index: 0, kind: input, shape index: {}]   ;;  %s2966_s1 = inlined_call_operand.vmem [shape: bf16[576,128], index: 1, kind: input, shape index: {}]   ;;  %s2967_s2 = inlined_call_operand.vmem [shape: f32[1,128], index: 2, kind: input, shape index: {}]   ;;  %s2968_s3 = inlined_call_operand.vmem [shape: bf16[416,128], index: 3, kind: output, shape index: {}]  }
   0x1   :  { %s2590_s14 = smov 0  }
   0x2 LB: > { %s32_s15 = sadd.s32 1, %s2558_s13  ;;  %p1856_p0 = scmp.ge.s32.totalorder %s2562_s14, 1  ;;  %s2562_s14 = sphi %s2590_s14, %s13_s14   ;;  %s2558_s13 = sphi %s2588_s13, %s2970_s13   ;;  %s2554_s12 = sphi %s2586_s12, %s2969_s12  }
   0x3   : > { %p34_p1 = scmp.ge.s32.totalorder %s32_s15, 2  ;;  %p191_p2 = scmp.lt.s32.totalorder %s2562_s14, 3 }
   0x5   : > { %s2972_s15 = smov (%p34_p1, %s32_s15), 0  ;;  %p192_p3 = pnand %p1856_p0, %p191_p2 }
   0x6   : > { %v2413_v0 = vld [vmem:[%s2966_s1 + $0x40] sm:$0xff] (!%p192_p3)   ;;  %s234_s18 = smul.u32 (!%p192_p3), 26, %s2554_s12  ;;  %v2415_v2 = vld [vmem:[%s2966_s1 + $0x48] sm:$0xff] (!%p192_p3)   ;;  %v2417_v4 = vld [vmem:[%s2966_s1 + $0x50] sm:$0xff] (!%p192_p3)   ;;  %v2564_v24 = vmov (!%p192_p3), 0.0   ;;  %vm2565_vm0 = vmmov (!%p192_p3), 0  }
   0x7   : > { %195 = sbr.rel (%p192_p3) target bundleno = 414 (0x19e), region = 32  ;;  %v2414_v1 = vld [vmem:[%s2966_s1] sm:$0xff] (!%p192_p3)   ;;  %2105 = vmatprep.subr.bf16.mxu0 (!%p192_p3), %v2413_v0  ;;  %2370 = vmatprep.subr.bf16.mxu1 (!%p192_p3), %v2413_v0  ;;  %v2416_v3 = vld [vmem:[%s2966_s1 + $0x8] sm:$0xff] (!%p192_p3)   ;;  %v2418_v5 = vld [vmem:[%s2966_s1 + $0x10] sm:$0xff] (!%p192_p3)   ;;  %vm1015_vm1 = vcmask (!%p192_p3), 523264  }
   0x8   : > { %p236_p4 = scmp.lt.s32.totalorder (!%p192_p3), %s234_s18, 51  ;;  %2106 = vmatpush3.bf16.msra.mxu0 (!%p192_p3), %v2414_v1  ;;  %2378 = vmatpush3.bf16.msra.mxu1 (!%p192_p3), %v2414_v1  ;;  %v2419_v6 = vld [vmem:[%s2966_s1 + $0x58] sm:$0xff] (!%p192_p3)   ;;  %v2421_v8 = vld [vmem:[%s2966_s1 + $0x60] sm:$0xff] (!%p192_p3)   ;;  %v2423_v10 = vld [vmem:[%s2966_s1 + $0x68] sm:$0xff] (!%p192_p3)  }
   0x9   : > { %2107 = vmatprep.subr.bf16.mxu0 (!%p192_p3), %v2415_v2  ;;  %2371 = vmatprep.subr.bf16.mxu1 (!%p192_p3), %v2415_v2  ;;  %v2420_v7 = vld [vmem:[%s2966_s1 + $0x18] sm:$0xff] (!%p192_p3)   ;;  %v2422_v9 = vld [vmem:[%s2966_s1 + $0x20] sm:$0xff] (!%p192_p3)   ;;  %v2424_v13 = vld [vmem:[%s2966_s1 + $0x28] sm:$0xff] (!%p192_p3)  }
   0xa   : > { %v2425_v14 = vld [vmem:[%s2966_s1 + $0x70] sm:$0xff] (!%p192_p3)   ;;  %v2427_v16 = vld [vmem:[%s2966_s1 + $0x78] sm:$0xff] (!%p192_p3)   ;;  %v2436_v18 = vld [vmem:[%s2966_s1 + $0xc0] sm:$0xff] (!%p192_p3)  }
   0xb   : > { %v2426_v15 = vld [vmem:[%s2966_s1 + $0x30] sm:$0xff] (!%p192_p3)   ;;  %v2428_v17 = vld [vmem:[%s2966_s1 + $0x38] sm:$0xff] (!%p192_p3)   ;;  %v2435_v21 = vld [vmem:[%s2966_s1 + $0x100] sm:$0xff] (!%p192_p3)  }
   0xc   : > { %2108 = vmatpush3.bf16.msra.mxu0 (!%p192_p3), %v2416_v3  ;;  %2379 = vmatpush3.bf16.msra.mxu1 (!%p192_p3), %v2416_v3  ;;  %v2437_v22 = vld [vmem:[%s2966_s1 + $0x80] sm:$0xff] (!%p192_p3)   ;;  %v2444_v26 = vld [vmem:[%s2966_s1 + $0xc8] sm:$0xff] (!%p192_p3)   ;;  %v2450_v31 = vld [vmem:[%s2966_s1 + $0xd0] sm:$0xff] (!%p192_p3)  }
   0xd   : > { %2109 = vmatprep.subr.bf16.mxu0 (!%p192_p3), %v2417_v4  ;;  %2372 = vmatprep.subr.bf16.mxu1 (!%p192_p3), %v2417_v4  ;;  %v2445_v27 = vld [vmem:[%s2966_s1 + $0x88] sm:$0xff] (!%p192_p3)   ;;  %v2454_v34 = vld [vmem:[%s2966_s1 + $0x90] sm:$0xff] (!%p192_p3)   ;;  %v2455_v36 = vld [vmem:[%s2966_s1 + $0xd8] sm:$0xff] (!%p192_p3)  }
   0xe   : > { %s2974_s18 = smov (!%p236_p4, %s234_s18), 51  ;;  %v2451_v28 = vld [vmem:[%s2966_s1 + $0x108] sm:$0xff]   ;;  %v2465_v35 = vld [vmem:[%s2966_s1 + $0x110] sm:$0xff]   ;;  %v2456_v38 = vld [vmem:[%s2966_s1 + $0x98] sm:$0xff]  }
   0xf   : > { %s2386_s4 = smul.u32 20, %s2974_s18  ;;  %v2463_v39 = vld [vmem:[%s2966_s1 + $0xe0] sm:$0xff]   ;;  %v2472_v44 = vld [vmem:[%s2966_s1 + $0xe8] sm:$0xff]   ;;  %v2482_v45 = vld [vmem:[%s2966_s1 + $0x118] sm:$0xff]   ;;  %s1858_s27 = sshll.u32 %s2974_s18, 2 }
  0x10   : > { %2110 = vmatpush3.bf16.msra.mxu0 %v2418_v5  ;;  %2380 = vmatpush3.bf16.msra.mxu1 %v2418_v5  ;;  %v2464_v43 = vld [vmem:[%s2966_s1 + $0xa0] sm:$0xff]   ;;  %v2473_v46 = vld [vmem:[%s2966_s1 + $0xa8] sm:$0xff]   ;;  %v2478_v47 = vld [vmem:[%s2966_s1 + $0xf0] sm:$0xff]   ;;  %s2895_s30 = scalar_lea.vmem %s2968_s3, %s1858_s27 }
  0x11   : > { %2111 = vmatprep.subr.bf16.mxu0 %v2419_v6  ;;  %2373 = vmatprep.subr.bf16.mxu1 %v2419_v6  ;;  %s2637_s11 = scalar_lea.vmem %s2965_s0, %s2386_s4  ;;  %v2481_v52 = vld [vmem:[%s2966_s1 + $0xb0] sm:$0xff]   ;;  %v2483_v53 = vld [vmem:[%s2966_s1 + $0xf8] sm:$0xff]  }
  0x12   : > { %v2431_v11 = vld [vmem:[%s2637_s11 + $0x4] ss:$20 sps:$4 sm:$0xff]   ;;  %v2434_v12 = vld [vmem:[%s2637_s11 + $0x11c] ss:$20 sps:$4 sm:$0xff]   ;;  %v2429_v19 = vld [vmem:[%s2637_s11] ss:$20 sps:$4 sm:$0xff]  }
  0x13   : > { %1087 = vmatprep.mubr.bf16.mxu0 %v2431_v11  ;;  %1143 = vmatprep.mubr.bf16.mxu1 %v2434_v12  ;;  %v2432_v20 = vld [vmem:[%s2637_s11 + $0x118] ss:$20 sps:$4 sm:$0xff]   ;;  %v2442_v29 = vld [vmem:[%s2637_s11 + $0x28] ss:$20 sps:$4 sm:$0xff]   ;;  %v2443_v30 = vld [vmem:[%s2637_s11 + $0x140] ss:$20 sps:$4 sm:$0xff]  }
  0x14   : > { %2112 = vmatpush3.bf16.msra.mxu0 %v2420_v7  ;;  %2381 = vmatpush3.bf16.msra.mxu1 %v2420_v7  ;;  %v2438_v23 = vld [vmem:[%s2637_s11 + $0x2c] ss:$20 sps:$4 sm:$0xff]   ;;  %v2440_v25 = vld [vmem:[%s2637_s11 + $0x144] ss:$20 sps:$4 sm:$0xff]   ;;  %v2446_v32 = vld [vmem:[%s2637_s11 + $0x54] ss:$20 sps:$4 sm:$0xff]  }
  0x15   : > { %2113 = vmatprep.subr.bf16.mxu0 %v2421_v8  ;;  %2374 = vmatprep.subr.bf16.mxu1 %v2421_v8  ;;  %v2448_v33 = vld [vmem:[%s2637_s11 + $0x16c] ss:$20 sps:$4 sm:$0xff]   ;;  %v2452_v37 = vld [vmem:[%s2637_s11 + $0x50] ss:$20 sps:$4 sm:$0xff]   ;;  %v2453_v40 = vld [vmem:[%s2637_s11 + $0x168] ss:$20 sps:$4 sm:$0xff]  }
  0x16   : > { %v2457_v41 = vld [vmem:[%s2637_s11 + $0x7c] ss:$20 sps:$4 sm:$0xff]   ;;  %v2459_v42 = vld [vmem:[%s2637_s11 + $0x194] ss:$20 sps:$4 sm:$0xff]   ;;  %v2461_v48 = vld [vmem:[%s2637_s11 + $0x78] ss:$20 sps:$4 sm:$0xff]  }
  0x17   : > { %v2462_v49 = vld [vmem:[%s2637_s11 + $0x190] ss:$20 sps:$4 sm:$0xff]   ;;  %v2484_v54 = vld [vmem:[%s2966_s1 + $0xb8] sm:$0xff]   ;;  %v2470_v55 = vld [vmem:[%s2637_s11 + $0xa0] ss:$20 sps:$4 sm:$0xff]  }
  0x18   : > { %2114 = vmatpush3.bf16.msra.mxu0 %v2422_v9  ;;  %2382 = vmatpush3.bf16.msra.mxu1 %v2422_v9  ;;  %v2466_v50 = vld [vmem:[%s2637_s11 + $0xa4] ss:$20 sps:$4 sm:$0xff]   ;;  %v2468_v51 = vld [vmem:[%s2637_s11 + $0x1bc] ss:$20 sps:$4 sm:$0xff]   ;;  %v2474_v57 = vld [vmem:[%s2637_s11 + $0xcc] ss:$20 sps:$4 sm:$0xff]  }
  0x19   : > { %2115 = vmatprep.subr.bf16.mxu0 %v2423_v10  ;;  %2375 = vmatprep.subr.bf16.mxu1 %v2423_v10  ;;  %v2471_v56 = vld [vmem:[%s2637_s11 + $0x1b8] ss:$20 sps:$4 sm:$0xff]   ;;  %v2479_v59 = vld [vmem:[%s2637_s11 + $0xc8] ss:$20 sps:$4 sm:$0xff]   ;;  %v2480_v60 = vld [vmem:[%s2637_s11 + $0x1e0] ss:$20 sps:$4 sm:$0xff]  }
  0x1a   : > { %v2476_v58 = vld [vmem:[%s2637_s11 + $0x1e4] ss:$20 sps:$4 sm:$0xff]   ;;  %v2485_v61 = vld [vmem:[%s2637_s11 + $0xf4] ss:$20 sps:$4 sm:$0xff]   ;;  %v2489_v62 = vld [vmem:[%s2637_s11 + $0xc] ss:$20 sps:$4 sm:$0xff]  }
  0x1b   : > { %v2487_v63 = vld [vmem:[%s2637_s11 + $0x8] ss:$20 sps:$4 sm:$0xff]   ;;  %v2490_v0 = vld [vmem:[%s2637_s11 + $0xf0] ss:$20 sps:$4 sm:$0xff]   ;;  %v2497_v5 = vld [vmem:[%s2637_s11 + $0x58] ss:$20 sps:$4 sm:$0xff]  }
  0x1c   : > { %2116 = vmatpush3.bf16.msra.mxu0 %v2424_v13  ;;  %2383 = vmatpush3.bf16.msra.mxu1 %v2424_v13  ;;  %v2491_v1 = vld [vmem:[%s2637_s11 + $0x34] ss:$20 sps:$4 sm:$0xff]   ;;  %v2493_v2 = vld [vmem:[%s2637_s11 + $0x30] ss:$20 sps:$4 sm:$0xff]   ;;  %v2498_v6 = vld [vmem:[%s2637_s11 + $0x38] ss:$20 sps:$4 sm:$0xff]  }
  0x1d   : > { %2117 = vmatprep.subr.bf16.mxu0 %v2425_v14  ;;  %2376 = vmatprep.subr.bf16.mxu1 %v2425_v14  ;;  %v2494_v3 = vld [vmem:[%s2637_s11 + $0x10] ss:$20 sps:$4 sm:$0xff]   ;;  %v2501_v8 = vld [vmem:[%s2637_s11 + $0x80] ss:$20 sps:$4 sm:$0xff]   ;;  %v2505_v11 = vld [vmem:[%s2637_s11 + $0xa8] ss:$20 sps:$4 sm:$0xff]  }
  0x1e   : > { %v2495_v4 = vld [vmem:[%s2637_s11 + $0x5c] ss:$20 sps:$4 sm:$0xff]   ;;  %v2499_v7 = vld [vmem:[%s2637_s11 + $0x84] ss:$20 sps:$4 sm:$0xff]   ;;  %v2502_v9 = vld [vmem:[%s2637_s11 + $0x60] ss:$20 sps:$4 sm:$0xff]  }
  0x1f   : > { %v2503_v10 = vld [vmem:[%s2637_s11 + $0xac] ss:$20 sps:$4 sm:$0xff]   ;;  %v2506_v12 = vld [vmem:[%s2637_s11 + $0x88] ss:$20 sps:$4 sm:$0xff]   ;;  %v2509_v14 = vld [vmem:[%s2637_s11 + $0xd0] ss:$20 sps:$4 sm:$0xff]  }
  0x20   : > { %2118 = vmatpush3.bf16.msra.mxu0 %v2426_v15  ;;  %2384 = vmatpush3.bf16.msra.mxu1 %v2426_v15  ;;  %v2507_v13 = vld [vmem:[%s2637_s11 + $0xd4] ss:$20 sps:$4 sm:$0xff]   ;;  %v2510_v15 = vld [vmem:[%s2637_s11 + $0xb0] ss:$20 sps:$4 sm:$0xff]  }
  0x21   : > { %2119 = vmatprep.subr.bf16.mxu0 %v2427_v16  ;;  %2377 = vmatprep.subr.bf16.mxu1 %v2427_v16  ;;  %v2511_v16 = vld [vmem:[%s2637_s11 + $0xfc] ss:$20 sps:$4 sm:$0xff]  }
  0x24   : > { %2120 = vmatpush3.bf16.msra.mxu0 %v2428_v17  ;;  %2385 = vmatpush3.bf16.msra.mxu1 %v2428_v17  ;;  %v2513_v17 = vld [vmem:[%s2637_s11 + $0xf8] ss:$20 sps:$4 sm:$0xff]  }
  0x25   : > { %2310 = vmatprep.subr.bf16.mxu0 %v2564_v24  ;;  %2199 = vmatprep.subr.bf16.mxu1 %v2436_v18  ;;  %v2514_v18 = vld [vmem:[%s2637_s11 + $0xd8] ss:$20 sps:$4 sm:$0xff]  }
  0x27   : > { %1088 = vmatmul.mubr.bf16.vlgmr.msra.gmra.mrb[0].mxu0 %v2429_v19  ;;  %1144 = vmatmul.mubr.bf16.vlgmr.msra.gmra.mrb[0].mxu1 %v2432_v20  ;;  %v2515_v19 = vld [vmem:[%s2637_s11 + $0x124] ss:$20 sps:$4 sm:$0xff]   ;;  %v2517_v20 = vld [vmem:[%s2637_s11 + $0x120] ss:$20 sps:$4 sm:$0xff]  }
  0x28   : > { %2311 = vmatpush3.bf16.msra.mxu0 %v2435_v21  ;;  %2200 = vmatpush3.bf16.msra.mxu1 %v2437_v22  ;;  %v2518_v21 = vld [vmem:[%s2637_s11 + $0x100] ss:$20 sps:$4 sm:$0xff]  }
  0x29   : > { %1095 = vmatprep.mubr.bf16.mxu0 %v2438_v23  ;;  %1151 = vmatprep.mubr.bf16.mxu1 %v2440_v25  ;;  %v2519_v22 = vld [vmem:[%s2637_s11 + $0x14c] ss:$20 sps:$4 sm:$0xff]   ;;  %v2521_v23 = vld [vmem:[%s2637_s11 + $0x148] ss:$20 sps:$4 sm:$0xff]  }
  0x2a   : > { %2201 = vmatprep.subr.bf16.mxu1 %v2444_v26  ;;  %2312 = vmatprep.subr.bf16.mxu0 %v2564_v24  ;;  %v2522_v25 = vld [vmem:[%s2637_s11 + $0x128] ss:$20 sps:$4 sm:$0xff]  }
  0x2b   : > { %v2523_v26 = vld [vmem:[%s2637_s11 + $0x174] ss:$20 sps:$4 sm:$0xff]  }
  0x2c   : > { %2202 = vmatpush3.bf16.msra.mxu1 %v2445_v27  ;;  %2313 = vmatpush3.bf16.msra.mxu0 %v2451_v28  ;;  %v2525_v27 = vld [vmem:[%s2637_s11 + $0x170] ss:$20 sps:$4 sm:$0xff]  }
  0x2d   : > { %2203 = vmatprep.subr.bf16.mxu1 %v2450_v31  ;;  %2314 = vmatprep.subr.bf16.mxu0 %v2564_v24  ;;  %v2526_v28 = vld [vmem:[%s2637_s11 + $0x150] ss:$20 sps:$4 sm:$0xff]   ;;  %v2530_v31 = vld [vmem:[%s2637_s11 + $0x178] ss:$20 sps:$4 sm:$0xff]  }
  0x2f   : > { %1096 = vmatmul.mubr.bf16.gmra.mrb[4].mxu0 %v2442_v29  ;;  %1152 = vmatmul.mubr.bf16.gmra.mrb[4].mxu1 %v2443_v30  ;;  %v2527_v29 = vld [vmem:[%s2637_s11 + $0x19c] ss:$20 sps:$4 sm:$0xff]   ;;  %v2529_v30 = vld [vmem:[%s2637_s11 + $0x198] ss:$20 sps:$4 sm:$0xff]  }
  0x30   : > { %1103 = vmatprep.mubr.bf16.mxu0 %v2446_v32  ;;  %1159 = vmatprep.mubr.bf16.mxu1 %v2448_v33  ;;  %v2531_v32 = vld [vmem:[%s2637_s11 + $0x1c4] ss:$20 sps:$4 sm:$0xff]   ;;  %v2533_v33 = vld [vmem:[%s2637_s11 + $0x1c0] ss:$20 sps:$4 sm:$0xff]  }
  0x31   : > { %2204 = vmatpush3.bf16.msra.mxu1 %v2454_v34  ;;  %2315 = vmatpush3.bf16.msra.mxu0 %v2465_v35  ;;  %v2534_v34 = vld [vmem:[%s2637_s11 + $0x1a0] ss:$20 sps:$4 sm:$0xff]  }
  0x32   : > { %2205 = vmatprep.subr.bf16.mxu1 %v2455_v36  ;;  %2316 = vmatprep.subr.bf16.mxu0 %v2564_v24  ;;  %v2535_v35 = vld [vmem:[%s2637_s11 + $0x1ec] ss:$20 sps:$4 sm:$0xff]   ;;  %v2537_v36 = vld [vmem:[%s2637_s11 + $0x1e8] ss:$20 sps:$4 sm:$0xff]  }
  0x35   : > { %2206 = vmatpush3.bf16.msra.mxu1 %v2456_v38  ;;  %2317 = vmatpush3.bf16.msra.mxu0 %v2482_v45  ;;  %v2539_v38 = vld [vmem:[%s2637_s11 + $0x1f0] ss:$20 sps:$4 sm:$0xff]  }
  0x36   : > { %2207 = vmatprep.subr.bf16.mxu1 %v2463_v39 }
  0x37   : > { %1104 = vmatmul.mubr.bf16.gmra.mrb[8].mxu0 %v2452_v37  ;;  %1160 = vmatmul.mubr.bf16.gmra.mrb[8].mxu1 %v2453_v40  ;;  %v2538_v37 = vld [vmem:[%s2637_s11 + $0x1c8] ss:$20 sps:$4 sm:$0xff]  }
  0x38   : > { %1111 = vmatprep.mubr.bf16.mxu0 %v2457_v41  ;;  %1167 = vmatprep.mubr.bf16.mxu1 %v2459_v42 }
  0x39   : > { %2208 = vmatpush3.bf16.msra.mxu1 %v2464_v43 }
  0x3a   : > { %2209 = vmatprep.subr.bf16.mxu1 %v2472_v44 }
  0x3d   : > { %2210 = vmatpush3.bf16.msra.mxu1 %v2473_v46 }
  0x3e   : > { %2211 = vmatprep.subr.bf16.mxu1 %v2478_v47 }
  0x3f   : > { %1112 = vmatmul.mubr.bf16.gmra.mrb[12].mxu0 %v2461_v48  ;;  %1168 = vmatmul.mubr.bf16.gmra.mrb[12].mxu1 %v2462_v49 }
  0x40   : > { %1119 = vmatprep.mubr.bf16.mxu0 %v2466_v50  ;;  %1175 = vmatprep.mubr.bf16.mxu1 %v2468_v51 }
  0x41   : > { %2212 = vmatpush3.bf16.msra.mxu1 %v2481_v52 }
  0x42   : > { %2213 = vmatprep.subr.bf16.mxu1 %v2483_v53 }
  0x45   : > { %2214 = vmatpush3.bf16.msra.mxu1 %v2484_v54 }
  0x47   : > { %1120 = vmatmul.mubr.bf16.gmra.mrb[16].mxu0 %v2470_v55  ;;  %1176 = vmatmul.mubr.bf16.gmra.mrb[16].mxu1 %v2471_v56 }
  0x48   : > { %1127 = vmatprep.mubr.bf16.mxu0 %v2474_v57  ;;  %1183 = vmatprep.mubr.bf16.mxu1 %v2476_v58 }
  0x4f   : > { %1128 = vmatmul.mubr.bf16.gmra.mrb[20].mxu0 %v2479_v59  ;;  %1184 = vmatmul.mubr.bf16.gmra.mrb[20].mxu1 %v2480_v60 }
  0x50   : > { %1135 = vmatprep.mubr.bf16.mxu0 %v2485_v61  ;;  %1224 = vmatprep.mubr.bf16.mxu1 %v2489_v62 }
  0x57   : > { %1136 = vmatmul.mubr.bf16.gmra.mrb[24].mxu0 %v2490_v0  ;;  %1225 = vmatmul.mubr.bf16.vlgmr.msra.gmra.mrb[24].mxu1 %v2487_v63 }
  0x58   : > { %1232 = vmatprep.mubr.bf16.mxu1 %v2491_v1  ;;  %2318 = vmatprep.mubr.msk.bf16.mxu0 %vm2565_vm0, %v2564_v24 }
  0x5f   : > { %1233 = vmatmul.mubr.bf16.gmra.mrb[28].mxu1 %v2493_v2  ;;  %2319 = vmatmul.mubr.msk.bf16.vlgmr.msra.gmra.mrb[28].mxu0 %vm1015_vm1, %v2494_v3 }
  0x60   : > { %1240 = vmatprep.mubr.bf16.mxu1 %v2495_v4  ;;  %2322 = vmatprep.mubr.msk.bf16.mxu0 %vm2565_vm0, %v2564_v24 }
  0x67   : > { %1241 = vmatmul.mubr.bf16.gmra.mrb[32].mxu1 %v2497_v5  ;;  %2323 = vmatmul.mubr.msk.bf16.gmra.mrb[32].mxu0 %vm1015_vm1, %v2498_v6 }
  0x68   : > { %1248 = vmatprep.mubr.bf16.mxu1 %v2499_v7  ;;  %2326 = vmatprep.mubr.msk.bf16.mxu0 %vm2565_vm0, %v2564_v24 }
  0x6f   : > { %1249 = vmatmul.mubr.bf16.gmra.mrb[36].mxu1 %v2501_v8  ;;  %2327 = vmatmul.mubr.msk.bf16.gmra.mrb[36].mxu0 %vm1015_vm1, %v2502_v9 }
  0x70   : > { %1256 = vmatprep.mubr.bf16.mxu1 %v2503_v10  ;;  %2330 = vmatprep.mubr.msk.bf16.mxu0 %vm2565_vm0, %v2564_v24 }
  0x77   : > { %1257 = vmatmul.mubr.bf16.gmra.mrb[40].mxu1 %v2505_v11  ;;  %2331 = vmatmul.mubr.msk.bf16.gmra.mrb[40].mxu0 %vm1015_vm1, %v2506_v12 }
  0x78   : > { %1264 = vmatprep.mubr.bf16.mxu1 %v2507_v13  ;;  %2334 = vmatprep.mubr.msk.bf16.mxu0 %vm2565_vm0, %v2564_v24 }
  0x7f   : > { %1265 = vmatmul.mubr.bf16.gmra.mrb[44].mxu1 %v2509_v14  ;;  %2335 = vmatmul.mubr.msk.bf16.gmra.mrb[44].mxu0 %vm1015_vm1, %v2510_v15 }
  0x80   : > { %1272 = vmatprep.mubr.bf16.mxu1 %v2511_v16  ;;  %2338 = vmatprep.mubr.msk.bf16.mxu0 %vm2565_vm0, %v2564_v24 }
  0x87   : > { %1273 = vmatmul.mubr.bf16.gmra.mrb[48].mxu1 %v2513_v17  ;;  %2339 = vmatmul.mubr.msk.bf16.gmra.mrb[48].mxu0 %vm1015_vm1, %v2514_v18 }
  0x88   : > { %1280 = vmatprep.mubr.bf16.mxu1 %v2515_v19  ;;  %2342 = vmatprep.mubr.msk.bf16.mxu0 %vm2565_vm0, %v2564_v24 }
  0x8f   : > { %1281 = vmatmul.mubr.bf16.gmra.mrb[52].mxu1 %v2517_v20  ;;  %2343 = vmatmul.mubr.msk.bf16.gmra.mrb[52].mxu0 %vm1015_vm1, %v2518_v21 }
  0x90   : > { %1288 = vmatprep.mubr.bf16.mxu1 %v2519_v22  ;;  %2346 = vmatprep.mubr.msk.bf16.mxu0 %vm2565_vm0, %v2564_v24 }
  0x97   : > { %1289 = vmatmul.mubr.bf16.gmra.mrb[56].mxu1 %v2521_v23  ;;  %2347 = vmatmul.mubr.msk.bf16.gmra.mrb[56].mxu0 %vm1015_vm1, %v2522_v25 }
  0x98   : > { %1296 = vmatprep.mubr.bf16.mxu1 %v2523_v26  ;;  %2350 = vmatprep.mubr.msk.bf16.mxu0 %vm2565_vm0, %v2564_v24 }
  0x9f   : > { %1297 = vmatmul.mubr.bf16.gmra.mrb[60].mxu1 %v2525_v27  ;;  %2351 = vmatmul.mubr.msk.bf16.gmra.mrb[60].mxu0 %vm1015_vm1, %v2526_v28 }
  0xa0   : > { %1304 = vmatprep.mubr.bf16.mxu1 %v2527_v29  ;;  %2354 = vmatprep.mubr.msk.bf16.mxu0 %vm2565_vm0, %v2564_v24 }
  0xa7   : > { %1305 = vmatmul.mubr.bf16.gmra.mrb[64].mxu1 %v2529_v30  ;;  %2355 = vmatmul.mubr.msk.bf16.gmra.mrb[64].mxu0 %vm1015_vm1, %v2530_v31 }
  0xa8   : > { %1312 = vmatprep.mubr.bf16.mxu1 %v2531_v32  ;;  %2358 = vmatprep.mubr.msk.bf16.mxu0 %vm2565_vm0, %v2564_v24 }
  0xaf   : > { %1313 = vmatmul.mubr.bf16.gmra.mrb[68].mxu1 %v2533_v33  ;;  %2359 = vmatmul.mubr.msk.bf16.gmra.mrb[68].mxu0 %vm1015_vm1, %v2534_v34 }
  0xb0   : > { %1320 = vmatprep.mubr.bf16.mxu1 %v2535_v35  ;;  %2362 = vmatprep.mubr.msk.bf16.mxu0 %vm2565_vm0, %v2564_v24 }
  0xb7   : > { %1321 = vmatmul.mubr.bf16.gmra.mrb[72].mxu1 %v2537_v36  ;;  %2363 = vmatmul.mubr.msk.bf16.gmra.mrb[72].mxu0 %vm1015_vm1, %v2538_v37 }
  0xb8   : > { %2366 = vmatprep.mubr.msk.bf16.mxu0 %vm2565_vm0, %v2564_v24 }
  0xbf   : > { %2367 = vmatmul.mubr.msk.bf16.gmra.mrb[76].mxu0 %vm1015_vm1, %v2539_v38 }
  0xfa   : > { %v2121_v39 = vpop.f32.mrb[0].mxu0  ;;  %v2163_v40 = vpop.f32.mrb[0].mxu1 }
  0xfb   : > { %v2122_v41 = vpop.f32.mrb[1].mxu0  ;;  %v2164_v42 = vpop.f32.mrb[1].mxu1 }
  0xfc   : > { %v2828_v43 = vadd.f32 %v2122_v41, %v2121_v39  ;;  %v2124_v44 = vpop.f32.mrb[2].mxu0  ;;  %v2830_v45 = vadd.f32 %v2164_v42, %v2163_v40  ;;  %v2166_v46 = vpop.f32.mrb[2].mxu1 }
  0xfd   : > { %v2125_v47 = vpop.f32.mrb[3].mxu0  ;;  %v2167_v48 = vpop.f32.mrb[3].mxu1 }
  0xfe   : > { %v2832_v49 = vadd.f32 %v2125_v47, %v2124_v44  ;;  %v2834_v50 = vadd.f32 %v2167_v48, %v2166_v46 }
 0x102   : > { %v2127_v24 = vpop.f32.mrb[4].mxu0  ;;  %v2169_v51 = vpop.f32.mrb[4].mxu1 }
 0x103   : > { %v2128_v52 = vpop.f32.mrb[5].mxu0  ;;  %v2170_v53 = vpop.f32.mrb[5].mxu1 }
 0x104   : > { %v2836_v54 = vadd.f32 %v2128_v52, %v2127_v24  ;;  %v2130_v55 = vpop.f32.mrb[6].mxu0  ;;  %v2838_v56 = vadd.f32 %v2170_v53, %v2169_v51  ;;  %v2172_v57 = vpop.f32.mrb[6].mxu1 }
 0x105   : > { %v2131_v58 = vpop.f32.mrb[7].mxu0  ;;  %v2173_v59 = vpop.f32.mrb[7].mxu1 }
 0x106   : > { %v2840_v60 = vadd.f32 %v2131_v58, %v2130_v55  ;;  %v2842_v61 = vadd.f32 %v2173_v59, %v2172_v57 }
 0x10a   : > { %v2133_v62 = vpop.f32.mrb[8].mxu0  ;;  %v2175_v63 = vpop.f32.mrb[8].mxu1 }
 0x10b   : > { %v2134_v0 = vpop.f32.mrb[9].mxu0  ;;  %v2176_v1 = vpop.f32.mrb[9].mxu1 }
 0x10c   : > { %v2844_v2 = vadd.f32 %v2134_v0, %v2133_v62  ;;  %v2136_v3 = vpop.f32.mrb[10].mxu0  ;;  %v2846_v4 = vadd.f32 %v2176_v1, %v2175_v63  ;;  %v2178_v5 = vpop.f32.mrb[10].mxu1 }
 0x10d   : > { %v2137_v6 = vpop.f32.mrb[11].mxu0  ;;  %v2179_v7 = vpop.f32.mrb[11].mxu1 }
 0x10e   : > { %v2848_v8 = vadd.f32 %v2137_v6, %v2136_v3  ;;  %v2850_v9 = vadd.f32 %v2179_v7, %v2178_v5 }
 0x112   : > { %v2139_v10 = vpop.f32.mrb[12].mxu0  ;;  %v2181_v11 = vpop.f32.mrb[12].mxu1 }
 0x113   : > { %v2140_v12 = vpop.f32.mrb[13].mxu0  ;;  %v2182_v13 = vpop.f32.mrb[13].mxu1 }
 0x114   : > { %v2852_v14 = vadd.f32 %v2140_v12, %v2139_v10  ;;  %v2142_v15 = vpop.f32.mrb[14].mxu0  ;;  %v2854_v16 = vadd.f32 %v2182_v13, %v2181_v11  ;;  %v2184_v17 = vpop.f32.mrb[14].mxu1  ;;  %v2885_v10 = vld [vmem:[%s2967_s2] ss:$0 sm:$0xff] }
 0x115   : > { %v2143_v18 = vpop.f32.mrb[15].mxu0  ;;  %v2185_v19 = vpop.f32.mrb[15].mxu1 }
 0x116   : > { %v2856_v20 = vadd.f32 %v2143_v18, %v2142_v15  ;;  %v2858_v21 = vadd.f32 %v2185_v19, %v2184_v17 }
 0x11a   : > { %v2145_v22 = vpop.f32.mrb[16].mxu0  ;;  %v2187_v23 = vpop.f32.mrb[16].mxu1 }
 0x11b   : > { %v2146_v25 = vpop.f32.mrb[17].mxu0  ;;  %v2188_v26 = vpop.f32.mrb[17].mxu1 }
 0x11c   : > { %v2860_v27 = vadd.f32 %v2146_v25, %v2145_v22  ;;  %v2148_v28 = vpop.f32.mrb[18].mxu0  ;;  %v2862_v29 = vadd.f32 %v2188_v26, %v2187_v23  ;;  %v2190_v30 = vpop.f32.mrb[18].mxu1 }
 0x11d   : > { %v2149_v31 = vpop.f32.mrb[19].mxu0  ;;  %v2191_v32 = vpop.f32.mrb[19].mxu1 }
 0x11e   : > { %v2864_v33 = vadd.f32 %v2149_v31, %v2148_v28  ;;  %v2866_v34 = vadd.f32 %v2191_v32, %v2190_v30 }
 0x122   : > { %v2151_v35 = vpop.f32.mrb[20].mxu0  ;;  %v2193_v36 = vpop.f32.mrb[20].mxu1 }
 0x123   : > { %v2152_v37 = vpop.f32.mrb[21].mxu0  ;;  %v2194_v38 = vpop.f32.mrb[21].mxu1 }
 0x124   : > { %v2868_v39 = vadd.f32 %v2152_v37, %v2151_v35  ;;  %v2154_v40 = vpop.f32.mrb[22].mxu0  ;;  %v2870_v41 = vadd.f32 %v2194_v38, %v2193_v36  ;;  %v2196_v42 = vpop.f32.mrb[22].mxu1 }
 0x125   : > { %v2155_v44 = vpop.f32.mrb[23].mxu0  ;;  %v2197_v46 = vpop.f32.mrb[23].mxu1 }
 0x126   : > { %v2872_v47 = vadd.f32 %v2155_v44, %v2154_v40  ;;  %v2874_v48 = vadd.f32 %v2197_v46, %v2196_v42 }
 0x12a   : > { %v2157_v24 = vpop.f32.mrb[24].mxu0  ;;  %v2215_v51 = vpop.f32.mrb[24].mxu1 }
 0x12b   : > { %v2158_v52 = vpop.f32.mrb[25].mxu0  ;;  %v2216_v53 = vpop.f32.mrb[25].mxu1 }
 0x12c   : > { %v2876_v55 = vadd.f32 %v2158_v52, %v2157_v24  ;;  %v2217_v57 = vadd.f32 %v2216_v53, %v2215_v51  ;;  %v2160_v58 = vpop.f32.mrb[26].mxu0  ;;  %v2218_v59 = vpop.f32.mrb[26].mxu1 }
 0x12d   : > { %v2161_v62 = vpop.f32.mrb[27].mxu0  ;;  %v2219_v63 = vpop.f32.mrb[27].mxu1 }
 0x12e   : > { %v2878_v0 = vadd.f32 %v2161_v62, %v2160_v58  ;;  %v2220_v1 = vadd.f32 %v2219_v63, %v2218_v59  ;;  %v1227_v3 = vadd.f32 %v2217_v57, %v2828_v43 }
 0x130   : > { %v1230_v5 = vadd.f32 %v2220_v1, %v2832_v49 }
 0x132   : > { %v2221_v6 = vpop.f32.mrb[28].mxu1  ;;  %v1363_v7 = vpop.f32.mrb[28].mxu0 }
 0x133   : > { %v1364_v11 = vadd.f32 %v1363_v7, %v1227_v3  ;;  %v2222_v12 = vpop.f32.mrb[29].mxu1  ;;  %v2320_v13 = vpop.f32.mrb[29].mxu0 }
 0x134   : > { %v2223_v15 = vadd.f32 %v2222_v12, %v2221_v6  ;;  %v2224_v17 = vpop.f32.mrb[30].mxu1  ;;  %v1366_v18 = vpop.f32.mrb[30].mxu0 }
 0x135   : > { %v1554_v19 = vadd.f32 %v2885_v10, %v1364_v11  ;;  %v1367_v22 = vadd.f32 %v1366_v18, %v1230_v5  ;;  %v2225_v43 = vpop.f32.mrb[31].mxu1  ;;  %v2321_v23 = vpop.f32.mrb[31].mxu0 }
 0x136   : > { %v2226_v49 = vadd.f32 %v2225_v43, %v2224_v17  ;;  %v1235_v25 = vadd.f32 %v2223_v15, %v2836_v54 }
 0x137   : > { %v1555_v26 = vadd.f32 %v2885_v10, %v1367_v22  ;;  %v1580_v30 = vmax.f32 %v1554_v19, 0.0 }
 0x138   : > { %v1238_v28 = vadd.f32 %v2226_v49, %v2840_v60 }
 0x139   : > { %v1581_v31 = vmax.f32 %v1555_v26, 0.0 }
 0x13a   : > { %v2227_v32 = vpop.f32.mrb[32].mxu1  ;;  %v1371_v35 = vpop.f32.mrb[32].mxu0 }
 0x13b   : > { %v2031_v36 = vpack.c.bf16 %v1581_v31, %v1580_v30  ;;  %v1372_v37 = vadd.f32 %v1371_v35, %v1235_v25  ;;  %v2228_v38 = vpop.f32.mrb[33].mxu1  ;;  %v2324_v40 = vpop.f32.mrb[33].mxu0 }
 0x13c   : > { %v2229_v54 = vadd.f32 %v2228_v38, %v2227_v32  ;;  %v2230_v42 = vpop.f32.mrb[34].mxu1  ;;  %v1374_v44 = vpop.f32.mrb[34].mxu0 }
 0x13d   : > { %2032 = vst [vmem:[%s2895_s30] sm:$0xff] %v2031_v36   ;;  %v1556_v60 = vadd.f32 %v2885_v10, %v1372_v37  ;;  %v1375_v46 = vadd.f32 %v1374_v44, %v1238_v28  ;;  %v2231_v24 = vpop.f32.mrb[35].mxu1  ;;  %v2325_v51 = vpop.f32.mrb[35].mxu0 }
 0x13e   : > { %v2232_v52 = vadd.f32 %v2231_v24, %v2230_v42  ;;  %v1243_v53 = vadd.f32 %v2229_v54, %v2844_v2 }
 0x13f   : > { %v1557_v57 = vadd.f32 %v2885_v10, %v1375_v46  ;;  %v1582_v59 = vmax.f32 %v1556_v60, 0.0 }
 0x140   : > { %v1246_v58 = vadd.f32 %v2232_v52, %v2848_v8 }
 0x141   : > { %v1583_v62 = vmax.f32 %v1557_v57, 0.0 }
 0x142   : > { %v2233_v63 = vpop.f32.mrb[36].mxu1  ;;  %v1379_v1 = vpop.f32.mrb[36].mxu0 }
 0x143   : > { %v2036_v3 = vpack.c.bf16 %v1583_v62, %v1582_v59  ;;  %v1380_v5 = vadd.f32 %v1379_v1, %v1243_v53  ;;  %v2234_v6 = vpop.f32.mrb[37].mxu1  ;;  %v2328_v7 = vpop.f32.mrb[37].mxu0 }
 0x144   : > { %v2235_v11 = vadd.f32 %v2234_v6, %v2233_v63  ;;  %v2236_v12 = vpop.f32.mrb[38].mxu1  ;;  %v1382_v13 = vpop.f32.mrb[38].mxu0 }
 0x145   : > { %2093 = vst [vmem:[%s2895_s30 + $0x8] sm:$0xff] %v2036_v3   ;;  %v1558_v15 = vadd.f32 %v2885_v10, %v1380_v5  ;;  %v1383_v17 = vadd.f32 %v1382_v13, %v1246_v58  ;;  %v2237_v2 = vpop.f32.mrb[39].mxu1  ;;  %v2329_v18 = vpop.f32.mrb[39].mxu0 }
 0x146   : > { %v2238_v19 = vadd.f32 %v2237_v2, %v2236_v12  ;;  %v1251_v8 = vadd.f32 %v2235_v11, %v2852_v14 }
 0x147   : > { %v1559_v22 = vadd.f32 %v2885_v10, %v1383_v17  ;;  %v1584_v23 = vmax.f32 %v1558_v15, 0.0 }
 0x148   : > { %v1254_v43 = vadd.f32 %v2238_v19, %v2856_v20 }
 0x149   : > { %v1585_v49 = vmax.f32 %v1559_v22, 0.0 }
 0x14a   : > { %v2239_v25 = vpop.f32.mrb[40].mxu1  ;;  %v1387_v26 = vpop.f32.mrb[40].mxu0 }
 0x14b   : > { %v2041_v28 = vpack.c.bf16 %v1585_v49, %v1584_v23  ;;  %v1388_v30 = vadd.f32 %v1387_v26, %v1251_v8  ;;  %v2240_v31 = vpop.f32.mrb[41].mxu1  ;;  %v2332_v32 = vpop.f32.mrb[41].mxu0 }
 0x14c   : > { %v2241_v35 = vadd.f32 %v2240_v31, %v2239_v25  ;;  %v2242_v36 = vpop.f32.mrb[42].mxu1  ;;  %v1390_v37 = vpop.f32.mrb[42].mxu0 }
 0x14d   : > { %2094 = vst [vmem:[%s2895_s30 + $0x10] sm:$0xff] %v2041_v28   ;;  %v1560_v38 = vadd.f32 %v2885_v10, %v1388_v30  ;;  %v1391_v40 = vadd.f32 %v1390_v37, %v1254_v43  ;;  %v2243_v14 = vpop.f32.mrb[43].mxu1  ;;  %v2333_v54 = vpop.f32.mrb[43].mxu0 }
 0x14e   : > { %v2244_v42 = vadd.f32 %v2243_v14, %v2242_v36  ;;  %v1259_v20 = vadd.f32 %v2241_v35, %v2860_v27 }
 0x14f   : > { %v1561_v44 = vadd.f32 %v2885_v10, %v1391_v40  ;;  %v1586_v46 = vmax.f32 %v1560_v38, 0.0 }
 0x150   : > { %v1262_v60 = vadd.f32 %v2244_v42, %v2864_v33 }
 0x151   : > { %v1587_v24 = vmax.f32 %v1561_v44, 0.0 }
 0x152   : > { %v2245_v51 = vpop.f32.mrb[44].mxu1  ;;  %v1395_v52 = vpop.f32.mrb[44].mxu0 }
 0x153   : > { %v2046_v53 = vpack.c.bf16 %v1587_v24, %v1586_v46  ;;  %v1396_v57 = vadd.f32 %v1395_v52, %v1259_v20  ;;  %v2246_v58 = vpop.f32.mrb[45].mxu1  ;;  %v2336_v59 = vpop.f32.mrb[45].mxu0 }
 0x154   : > { %v2247_v62 = vadd.f32 %v2246_v58, %v2245_v51  ;;  %v2248_v63 = vpop.f32.mrb[46].mxu1  ;;  %v1398_v1 = vpop.f32.mrb[46].mxu0 }
 0x155   : > { %2095 = vst [vmem:[%s2895_s30 + $0x18] sm:$0xff] %v2046_v53   ;;  %v1562_v3 = vadd.f32 %v2885_v10, %v1396_v57  ;;  %v1399_v5 = vadd.f32 %v1398_v1, %v1262_v60  ;;  %v2249_v27 = vpop.f32.mrb[47].mxu1  ;;  %v2337_v6 = vpop.f32.mrb[47].mxu0 }
 0x156   : > { %v2250_v7 = vadd.f32 %v2249_v27, %v2248_v63  ;;  %v1267_v33 = vadd.f32 %v2247_v62, %v2868_v39 }
 0x157   : > { %v1563_v11 = vadd.f32 %v2885_v10, %v1399_v5  ;;  %v1588_v13 = vmax.f32 %v1562_v3, 0.0 }
 0x158   : > { %v1270_v12 = vadd.f32 %v2250_v7, %v2872_v47 }
 0x159   : > { %v1589_v15 = vmax.f32 %v1563_v11, 0.0 }
 0x15a   : > { %v2251_v17 = vpop.f32.mrb[48].mxu1  ;;  %v1403_v2 = vpop.f32.mrb[48].mxu0 }
 0x15b   : > { %v2051_v18 = vpack.c.bf16 %v1589_v15, %v1588_v13  ;;  %v1404_v19 = vadd.f32 %v1403_v2, %v1267_v33  ;;  %v2252_v8 = vpop.f32.mrb[49].mxu1  ;;  %v2340_v22 = vpop.f32.mrb[49].mxu0 }
 0x15c   : > { %v2253_v43 = vadd.f32 %v2252_v8, %v2251_v17  ;;  %v2254_v23 = vpop.f32.mrb[50].mxu1  ;;  %v1406_v49 = vpop.f32.mrb[50].mxu0 }
 0x15d   : > { %2096 = vst [vmem:[%s2895_s30 + $0x20] sm:$0xff] %v2051_v18   ;;  %v1564_v25 = vadd.f32 %v2885_v10, %v1404_v19  ;;  %v1407_v26 = vadd.f32 %v1406_v49, %v1270_v12  ;;  %v2255_v39 = vpop.f32.mrb[51].mxu1  ;;  %v2341_v28 = vpop.f32.mrb[51].mxu0 }
 0x15e   : > { %v2256_v30 = vadd.f32 %v2255_v39, %v2254_v23  ;;  %v1275_v47 = vadd.f32 %v2253_v43, %v2876_v55 }
 0x15f   : > { %v1565_v31 = vadd.f32 %v2885_v10, %v1407_v26  ;;  %v1590_v35 = vmax.f32 %v1564_v25, 0.0 }
 0x160   : > { %v1278_v32 = vadd.f32 %v2256_v30, %v2878_v0 }
 0x161   : > { %v1591_v36 = vmax.f32 %v1565_v31, 0.0 }
 0x162   : > { %v2257_v37 = vpop.f32.mrb[52].mxu1  ;;  %v1411_v38 = vpop.f32.mrb[52].mxu0 }
 0x163   : > { %v2056_v40 = vpack.c.bf16 %v1591_v36, %v1590_v35  ;;  %v1412_v14 = vadd.f32 %v1411_v38, %v1275_v47  ;;  %v2258_v54 = vpop.f32.mrb[53].mxu1  ;;  %v2344_v42 = vpop.f32.mrb[53].mxu0 }
 0x164   : > { %v2259_v20 = vadd.f32 %v2258_v54, %v2257_v37  ;;  %v2260_v44 = vpop.f32.mrb[54].mxu1  ;;  %v1414_v60 = vpop.f32.mrb[54].mxu0 }
 0x165   : > { %2097 = vst [vmem:[%s2895_s30 + $0x28] sm:$0xff] %v2056_v40   ;;  %v1566_v46 = vadd.f32 %v2885_v10, %v1412_v14  ;;  %v1415_v24 = vadd.f32 %v1414_v60, %v1278_v32  ;;  %v2261_v55 = vpop.f32.mrb[55].mxu1  ;;  %v2345_v51 = vpop.f32.mrb[55].mxu0 }
 0x166   : > { %v2262_v52 = vadd.f32 %v2261_v55, %v2260_v44  ;;  %v1283_v0 = vadd.f32 %v2259_v20, %v2830_v45 }
 0x167   : > { %v1567_v53 = vadd.f32 %v2885_v10, %v1415_v24  ;;  %v1592_v58 = vmax.f32 %v1566_v46, 0.0 }
 0x168   : > { %v1286_v57 = vadd.f32 %v2262_v52, %v2834_v50 }
 0x169   : > { %v1593_v59 = vmax.f32 %v1567_v53, 0.0 }
 0x16a   : > { %v2263_v62 = vpop.f32.mrb[56].mxu1  ;;  %v1419_v63 = vpop.f32.mrb[56].mxu0 }
 0x16b   : > { %v2061_v1 = vpack.c.bf16 %v1593_v59, %v1592_v58  ;;  %v1420_v3 = vadd.f32 %v1419_v63, %v1283_v0  ;;  %v2264_v5 = vpop.f32.mrb[57].mxu1  ;;  %v2348_v27 = vpop.f32.mrb[57].mxu0 }
 0x16c   : > { %v2265_v6 = vadd.f32 %v2264_v5, %v2263_v62  ;;  %v2266_v7 = vpop.f32.mrb[58].mxu1  ;;  %v1422_v33 = vpop.f32.mrb[58].mxu0 }
 0x16d   : > { %2098 = vst [vmem:[%s2895_s30 + $0x30] sm:$0xff] %v2061_v1   ;;  %v1568_v11 = vadd.f32 %v2885_v10, %v1420_v3  ;;  %v1423_v12 = vadd.f32 %v1422_v33, %v1286_v57  ;;  %v2267_v45 = vpop.f32.mrb[59].mxu1  ;;  %v2349_v13 = vpop.f32.mrb[59].mxu0 }
 0x16e   : > { %v2268_v15 = vadd.f32 %v2267_v45, %v2266_v7  ;;  %v1291_v50 = vadd.f32 %v2265_v6, %v2838_v56 }
 0x16f   : > { %v1569_v17 = vadd.f32 %v2885_v10, %v1423_v12  ;;  %v1594_v18 = vmax.f32 %v1568_v11, 0.0 }
 0x170   : > { %v1294_v2 = vadd.f32 %v2268_v15, %v2842_v61 }
 0x171   : > { %v1595_v19 = vmax.f32 %v1569_v17, 0.0 }
 0x172   : > { %v2269_v8 = vpop.f32.mrb[60].mxu1  ;;  %v1427_v22 = vpop.f32.mrb[60].mxu0 }
 0x173   : > { %v2066_v43 = vpack.c.bf16 %v1595_v19, %v1594_v18  ;;  %v1428_v23 = vadd.f32 %v1427_v22, %v1291_v50  ;;  %v2270_v49 = vpop.f32.mrb[61].mxu1  ;;  %v2352_v25 = vpop.f32.mrb[61].mxu0 }
 0x174   : > { %v2271_v26 = vadd.f32 %v2270_v49, %v2269_v8  ;;  %v2272_v39 = vpop.f32.mrb[62].mxu1  ;;  %v1430_v28 = vpop.f32.mrb[62].mxu0 }
 0x175   : > { %2099 = vst [vmem:[%s2895_s30 + $0x38] sm:$0xff] %v2066_v43   ;;  %v1570_v30 = vadd.f32 %v2885_v10, %v1428_v23  ;;  %v1431_v47 = vadd.f32 %v1430_v28, %v1294_v2  ;;  %v2273_v56 = vpop.f32.mrb[63].mxu1  ;;  %v2353_v31 = vpop.f32.mrb[63].mxu0 }
 0x176   : > { %v2274_v32 = vadd.f32 %v2273_v56, %v2272_v39  ;;  %v1299_v61 = vadd.f32 %v2271_v26, %v2846_v4 }
 0x177   : > { %v1571_v35 = vadd.f32 %v2885_v10, %v1431_v47  ;;  %v1596_v37 = vmax.f32 %v1570_v30, 0.0 }
 0x178   : > { %v1302_v36 = vadd.f32 %v2274_v32, %v2850_v9 }
 0x179   : > { %v1597_v38 = vmax.f32 %v1571_v35, 0.0 }
 0x17a   : > { %v2275_v40 = vpop.f32.mrb[64].mxu1  ;;  %v1435_v14 = vpop.f32.mrb[64].mxu0 }
 0x17b   : > { %v2071_v54 = vpack.c.bf16 %v1597_v38, %v1596_v37  ;;  %v1436_v42 = vadd.f32 %v1435_v14, %v1299_v61  ;;  %v2276_v20 = vpop.f32.mrb[65].mxu1  ;;  %v2356_v44 = vpop.f32.mrb[65].mxu0 }
 0x17c   : > { %v2277_v60 = vadd.f32 %v2276_v20, %v2275_v40  ;;  %v2278_v46 = vpop.f32.mrb[66].mxu1  ;;  %v1438_v24 = vpop.f32.mrb[66].mxu0 }
 0x17d   : > { %2100 = vst [vmem:[%s2895_s30 + $0x40] sm:$0xff] %v2071_v54   ;;  %v1572_v55 = vadd.f32 %v2885_v10, %v1436_v42  ;;  %v1439_v51 = vadd.f32 %v1438_v24, %v1302_v36  ;;  %v2279_v4 = vpop.f32.mrb[67].mxu1  ;;  %v2357_v52 = vpop.f32.mrb[67].mxu0 }
 0x17e   : > { %v2280_v0 = vadd.f32 %v2279_v4, %v2278_v46  ;;  %v1307_v9 = vadd.f32 %v2277_v60, %v2854_v16 }
 0x17f   : > { %v1573_v53 = vadd.f32 %v2885_v10, %v1439_v51  ;;  %v1598_v58 = vmax.f32 %v1572_v55, 0.0 }
 0x180   : > { %v1310_v57 = vadd.f32 %v2280_v0, %v2858_v21 }
 0x181   : > { %v1599_v59 = vmax.f32 %v1573_v53, 0.0 }
 0x182   : > { %v2281_v62 = vpop.f32.mrb[68].mxu1  ;;  %v1443_v63 = vpop.f32.mrb[68].mxu0 }
 0x183   : > { %v2076_v1 = vpack.c.bf16 %v1599_v59, %v1598_v58  ;;  %v1444_v3 = vadd.f32 %v1443_v63, %v1307_v9  ;;  %v2282_v5 = vpop.f32.mrb[69].mxu1  ;;  %v2360_v27 = vpop.f32.mrb[69].mxu0 }
 0x184   : > { %v2283_v6 = vadd.f32 %v2282_v5, %v2281_v62  ;;  %v2284_v7 = vpop.f32.mrb[70].mxu1  ;;  %v1446_v33 = vpop.f32.mrb[70].mxu0 }
 0x185   : > { %2101 = vst [vmem:[%s2895_s30 + $0x48] sm:$0xff] %v2076_v1   ;;  %v1574_v11 = vadd.f32 %v2885_v10, %v1444_v3  ;;  %v1447_v12 = vadd.f32 %v1446_v33, %v1310_v57  ;;  %v2285_v16 = vpop.f32.mrb[71].mxu1  ;;  %v2361_v45 = vpop.f32.mrb[71].mxu0 }
 0x186   : > { %v2286_v13 = vadd.f32 %v2285_v16, %v2284_v7  ;;  %v1315_v21 = vadd.f32 %v2283_v6, %v2862_v29 }
 0x187   : > { %v1575_v15 = vadd.f32 %v2885_v10, %v1447_v12  ;;  %v1600_v17 = vmax.f32 %v1574_v11, 0.0 }
 0x188   : > { %v1318_v50 = vadd.f32 %v2286_v13, %v2866_v34 }
 0x189   : > { %v1601_v2 = vmax.f32 %v1575_v15, 0.0 }
 0x18a   : > { %v2287_v18 = vpop.f32.mrb[72].mxu1  ;;  %v1451_v19 = vpop.f32.mrb[72].mxu0 }
 0x18b   : > { %v2081_v8 = vpack.c.bf16 %v1601_v2, %v1600_v17  ;;  %v1452_v22 = vadd.f32 %v1451_v19, %v1315_v21  ;;  %v2288_v43 = vpop.f32.mrb[73].mxu1  ;;  %v2364_v23 = vpop.f32.mrb[73].mxu0 }
 0x18c   : > { %v2289_v49 = vadd.f32 %v2288_v43, %v2287_v18  ;;  %v2290_v25 = vpop.f32.mrb[74].mxu1  ;;  %v1454_v26 = vpop.f32.mrb[74].mxu0 }
 0x18d   : > { %2102 = vst [vmem:[%s2895_s30 + $0x50] sm:$0xff] %v2081_v8   ;;  %v1576_v39 = vadd.f32 %v2885_v10, %v1452_v22  ;;  %v1455_v29 = vadd.f32 %v1454_v26, %v1318_v50  ;;  %v2291_v28 = vpop.f32.mrb[75].mxu1  ;;  %v2365_v30 = vpop.f32.mrb[75].mxu0 }
 0x18e   : > { %v2292_v47 = vadd.f32 %v2291_v28, %v2290_v25  ;;  %v1323_v34 = vadd.f32 %v2289_v49, %v2870_v41 }
 0x18f   : > { %v1577_v56 = vadd.f32 %v2885_v10, %v1455_v29  ;;  %v1602_v32 = vmax.f32 %v1576_v39, 0.0 }
 0x190   : > { %v1326_v31 = vadd.f32 %v2292_v47, %v2874_v48 }
 0x191   : > { %v1603_v61 = vmax.f32 %v1577_v56, 0.0 }
 0x192   : > { %v1459_v35 = vpop.f32.mrb[76].mxu0 }
 0x193   : > { %v2086_v36 = vpack.c.bf16 %v1603_v61, %v1602_v32  ;;  %v1460_v37 = vadd.f32 %v1459_v35, %v1323_v34  ;;  %v2368_v38 = vpop.f32.mrb[77].mxu0 }
 0x194   : > { %v1462_v40 = vpop.f32.mrb[78].mxu0 }
 0x195   : > { %2103 = vst [vmem:[%s2895_s30 + $0x58] sm:$0xff] %v2086_v36   ;;  %v1578_v14 = vadd.f32 %v2885_v10, %v1460_v37  ;;  %v1463_v54 = vadd.f32 %v1462_v40, %v1326_v31  ;;  %v2369_v42 = vpop.f32.mrb[79].mxu0 }
 0x197   : > { %v1579_v20 = vadd.f32 %v2885_v10, %v1463_v54  ;;  %v1604_v41 = vmax.f32 %v1578_v14, 0.0 }
 0x199   : > { %v1605_v44 = vmax.f32 %v1579_v20, 0.0 }
 0x19b   : > { %v2091_v60 = vpack.c.bf16 %v1605_v44, %v1604_v41 }
 0x19d   : > { %2104 = vst [vmem:[%s2895_s30 + $0x60] sm:$0xff] %v2091_v60  }
 0x19e PF: > { %s13_s14 = sadd.s32 1, %s2562_s14   ;;  %s2969_s12 = smov %s2558_s13 }
 0x19f   : > { %p10_p5 = scmp.ge.s32.totalorder %s13_s14, 4   ;;  %s2970_s13 = smov %s2972_s15 }
 0x1a1   :  { %12 = sbr.rel (!%p10_p5) target bundleno = 2 (0x2), region = 76 }

// kernel: cnn_forward.10
= control target key start
LH: loop header
LB: loop body
LE: loop exit
PB: predicated region body
PF: predicated region fallthrough
CT: control target
= control target key end

     0   :  { %vm106_vm0 = vcmask 1043456   ;;  %vm107_vm1 = vsmask.f32 3328  ;;  %s365_s0 = inlined_call_operand.vmem [shape: bf16[14,2,7,256], index: 0, kind: input, shape index: {}]   ;;  %s366_s1 = inlined_call_operand.vmem [shape: bf16[14,7,128], index: 1, kind: output, shape index: {}]  }
   0x1   :  { %v8_v0 = vld [vmem:[%s365_s0] sm:$0xff]  ;;  %v9_v1 = vld [vmem:[%s365_s0 + $0x8] sm:$0xff]  ;;  %v10_v3 = vld [vmem:[%s365_s0 + $0x10] sm:$0xff] }
   0x2   :  { %v36_v2 = vmax.bf16 %v9_v1, %v8_v0  ;;  %v11_v4 = vld [vmem:[%s365_s0 + $0x18] sm:$0xff]  ;;  %v12_v6 = vld [vmem:[%s365_s0 + $0x20] sm:$0xff]  ;;  %v13_v7 = vld [vmem:[%s365_s0 + $0x28] sm:$0xff] }
   0x3   :  { %v37_v5 = vmax.bf16 %v11_v4, %v10_v3  ;;  %vm183_vm2 = vmand %vm106_vm0, %vm107_vm1  ;;  %v38_v10 = vmax.bf16 %v13_v7, %v12_v6  ;;  %v14_v11 = vld [vmem:[%s365_s0 + $0x30] sm:$0xff]  ;;  %v15_v12 = vld [vmem:[%s365_s0 + $0x38] sm:$0xff] }
   0x4   :  { %v64_v8 = vrot.slane %v36_v2, 4  ;;  %v109_v13 = vld [vmem:[%s366_s1] sm:$0xf]  ;;  %v39_v15 = vmax.bf16 %v15_v12, %v14_v11  ;;  %v17_v17 = vld [vmem:[%s365_s0 + $0x48] sm:$0xff]  ;;  %v112_v19 = vld [vmem:[%s366_s1 + $0x4] sm:$0xf] }
   0x5   :  { %v65_v14 = vrot.slane %v37_v5, 4  ;;  %v16_v16 = vld [vmem:[%s365_s0 + $0x40] sm:$0xff]  ;;  %v66_v20 = vrot.slane %v38_v10, 4  ;;  %v18_v22 = vld [vmem:[%s365_s0 + $0x50] sm:$0xff]  ;;  %v19_v23 = vld [vmem:[%s365_s0 + $0x58] sm:$0xff] }
   0x6   :  { %v92_v18 = vmax.bf16 %v64_v8, %v36_v2  ;;  %v40_v21 = vmax.bf16 %v17_v17, %v16_v16  ;;  %v115_v25 = vld [vmem:[%s366_s1 + $0x8] sm:$0xf]  ;;  %v67_v26 = vrot.slane %v39_v15, 4  ;;  %v41_v27 = vmax.bf16 %v19_v23, %v18_v22  ;;  %v20_v28 = vld [vmem:[%s365_s0 + $0x60] sm:$0xff]  ;;  %v118_v32 = vld [vmem:[%s366_s1 + $0xc] sm:$0xf] }
   0x7   :  { %v93_v24 = vmax.bf16 %v65_v14, %v37_v5  ;;  %v21_v29 = vld [vmem:[%s365_s0 + $0x68] sm:$0xff]  ;;  %v94_v31 = vmax.bf16 %v66_v20, %v38_v10  ;;  %v22_v35 = vld [vmem:[%s365_s0 + $0x70] sm:$0xff]  ;;  %v23_v36 = vld [vmem:[%s365_s0 + $0x78] sm:$0xff] }
   0x8   :  { %v110_v30 = vsel %vm183_vm2, %v92_v18, %v109_v13  ;;  %v68_v33 = vrot.slane %v40_v21, 4  ;;  %v42_v34 = vmax.bf16 %v21_v29, %v20_v28  ;;  %v95_v38 = vmax.bf16 %v67_v26, %v39_v15  ;;  %v121_v39 = vld [vmem:[%s366_s1 + $0x10] sm:$0xf]  ;;  %v24_v42 = vld [vmem:[%s365_s0 + $0x80] sm:$0xff]  ;;  %v25_v43 = vld [vmem:[%s365_s0 + $0x88] sm:$0xff] }
   0x9   :  { %111 = vst [vmem:[%s366_s1] sm:$0xf] %v110_v30  ;;  %v113_v37 = vsel %vm183_vm2, %v93_v24, %v112_v19  ;;  %v69_v40 = vrot.slane %v41_v27, 4  ;;  %v43_v41 = vmax.bf16 %v23_v36, %v22_v35  ;;  %v116_v44 = vsel %vm183_vm2, %v94_v31, %v115_v25  ;;  %v124_v46 = vld [vmem:[%s366_s1 + $0x14] sm:$0xf]  ;;  %v27_v50 = vld [vmem:[%s365_s0 + $0x98] sm:$0xff]  ;;  %v28_v56 = vld [vmem:[%s365_s0 + $0xa0] sm:$0xff] }
   0xa   :  { %114 = vst [vmem:[%s366_s1 + $0x4] sm:$0xf] %v113_v37  ;;  %v96_v45 = vmax.bf16 %v68_v33, %v40_v21  ;;  %v70_v47 = vrot.slane %v42_v34, 4  ;;  %v44_v48 = vmax.bf16 %v25_v43, %v24_v42  ;;  %v26_v49 = vld [vmem:[%s365_s0 + $0x90] sm:$0xff]  ;;  %117 = vst [vmem:[%s366_s1 + $0x8] sm:$0xf] %v116_v44  ;;  %v119_v51 = vsel %vm183_vm2, %v95_v38, %v118_v32 }
   0xb   :  { %v97_v52 = vmax.bf16 %v69_v40, %v41_v27  ;;  %v127_v53 = vld [vmem:[%s366_s1 + $0x18] sm:$0xf]  ;;  %v71_v54 = vrot.slane %v43_v41, 4  ;;  %v45_v55 = vmax.bf16 %v27_v50, %v26_v49  ;;  %v29_v57 = vld [vmem:[%s365_s0 + $0xa8] sm:$0xff]  ;;  %120 = vst [vmem:[%s366_s1 + $0xc] sm:$0xf] %v119_v51 }
   0xc   :  { %v122_v58 = vsel %vm183_vm2, %v96_v45, %v121_v39  ;;  %v98_v59 = vmax.bf16 %v70_v47, %v42_v34  ;;  %v130_v60 = vld [vmem:[%s366_s1 + $0x1c] sm:$0xf]  ;;  %v72_v61 = vrot.slane %v44_v48, 4  ;;  %v46_v62 = vmax.bf16 %v29_v57, %v28_v56  ;;  %v30_v63 = vld [vmem:[%s365_s0 + $0xb0] sm:$0xff]  ;;  %v133_v3 = vld [vmem:[%s366_s1 + $0x20] sm:$0xf] }
   0xd   :  { %v31_v0 = vld [vmem:[%s365_s0 + $0xb8] sm:$0xff]  ;;  %123 = vst [vmem:[%s366_s1 + $0x10] sm:$0xf] %v122_v58  ;;  %v125_v1 = vsel %vm183_vm2, %v97_v52, %v124_v46  ;;  %v99_v2 = vmax.bf16 %v71_v54, %v43_v41  ;;  %v73_v4 = vrot.slane %v45_v55, 4  ;;  %v32_v6 = vld [vmem:[%s365_s0 + $0xc0] sm:$0xff]  ;;  %v33_v7 = vld [vmem:[%s365_s0 + $0xc8] sm:$0xff] }
   0xe   :  { %v47_v5 = vmax.bf16 %v31_v0, %v30_v63  ;;  %126 = vst [vmem:[%s366_s1 + $0x14] sm:$0xf] %v125_v1  ;;  %v128_v8 = vsel %vm183_vm2, %v98_v59, %v127_v53  ;;  %v100_v10 = vmax.bf16 %v72_v61, %v44_v48  ;;  %v136_v11 = vld [vmem:[%s366_s1 + $0x24] sm:$0xf]  ;;  %v74_v12 = vrot.slane %v46_v62, 4  ;;  %v34_v14 = vld [vmem:[%s365_s0 + $0xd0] sm:$0xff] }
   0xf   :  { %v48_v13 = vmax.bf16 %v33_v7, %v32_v6  ;;  %v35_v15 = vld [vmem:[%s365_s0 + $0xd8] sm:$0xff]  ;;  %129 = vst [vmem:[%s366_s1 + $0x18] sm:$0xf] %v128_v8  ;;  %v131_v16 = vsel %vm183_vm2, %v99_v2, %v130_v60  ;;  %v101_v17 = vmax.bf16 %v73_v4, %v45_v55  ;;  %v139_v18 = vld [vmem:[%s366_s1 + $0x28] sm:$0xf] }
  0x10   :  { %v75_v19 = vrot.slane %v47_v5, 4  ;;  %v49_v20 = vmax.bf16 %v35_v15, %v34_v14  ;;  %132 = vst [vmem:[%s366_s1 + $0x1c] sm:$0xf] %v131_v16  ;;  %v134_v21 = vsel %vm183_vm2, %v100_v10, %v133_v3  ;;  %v102_v22 = vmax.bf16 %v74_v12, %v46_v62  ;;  %v142_v23 = vld [vmem:[%s366_s1 + $0x2c] sm:$0xf] }
  0x11   :  { %v76_v24 = vrot.slane %v48_v13, 4  ;;  %135 = vst [vmem:[%s366_s1 + $0x20] sm:$0xf] %v134_v21  ;;  %v137_v25 = vsel %vm183_vm2, %v101_v17, %v136_v11  ;;  %v145_v27 = vld [vmem:[%s366_s1 + $0x30] sm:$0xf] }
  0x12   :  { %v103_v26 = vmax.bf16 %v75_v19, %v47_v5  ;;  %v77_v28 = vrot.slane %v49_v20, 4  ;;  %138 = vst [vmem:[%s366_s1 + $0x24] sm:$0xf] %v137_v25  ;;  %v140_v29 = vsel %vm183_vm2, %v102_v22, %v139_v18  ;;  %v148_v31 = vld [vmem:[%s366_s1 + $0x34] sm:$0xf] }
  0x13   :  { %v104_v30 = vmax.bf16 %v76_v24, %v48_v13  ;;  %141 = vst [vmem:[%s366_s1 + $0x28] sm:$0xf] %v140_v29 }
  0x14   :  { %v143_v32 = vsel %vm183_vm2, %v103_v26, %v142_v23  ;;  %v105_v33 = vmax.bf16 %v77_v28, %v49_v20 }
  0x15   :  { %144 = vst [vmem:[%s366_s1 + $0x2c] sm:$0xf] %v143_v32  ;;  %v146_v34 = vsel %vm183_vm2, %v104_v30, %v145_v27 }
  0x16   :  { %147 = vst [vmem:[%s366_s1 + $0x30] sm:$0xf] %v146_v34  ;;  %v149_v35 = vsel %vm183_vm2, %v105_v33, %v148_v31 }
  0x17   :  { %150 = vst [vmem:[%s366_s1 + $0x34] sm:$0xf] %v149_v35 }

// kernel: cnn_forward.11
= control target key start
LH: loop header
LB: loop body
LE: loop exit
PB: predicated region body
PF: predicated region fallthrough
CT: control target
= control target key end

     0   :  { %s9347_s18 = smov 0   ;;  %s9349_s19 = smov 0   ;;  %s10407_s0 = inlined_call_operand.vmem [shape: bf16[16,6400], index: 0, kind: input, shape index: {}]   ;;  %s10408_s1 = inlined_call_operand.vmem [shape: bf16[6400,512], index: 1, kind: input, shape index: {}]   ;;  %s10409_s2 = inlined_call_operand.vmem [shape: f32[1,512], index: 2, kind: input, shape index: {}]   ;;  %s10410_s3 = inlined_call_operand.vmem [shape: bf16[512,10], index: 3, kind: input, shape index: {}]   ;;  %s10411_s4 = inlined_call_operand.vmem [shape: f32[1,10], index: 4, kind: input, shape index: {}]   ;;  %s10412_s5 = inlined_call_operand.vmem [shape: f32[16,10], index: 5, kind: output, shape index: {}]  }
   0x1   :  { %s9351_s20 = smov 0   ;;  %s9353_s21 = smov 0  }
   0x2   :  { %s9355_s22 = smov 0  }
   0x3 LB: > { %s24_s23 = sadd.s32 1, %s9309_s21  ;;  %p43_p1 = scmp.ne.s32.totalorder %s9301_s19, %s9297_s18  ;;  %s9313_s22 = sphi %s9355_s22, %s15_s22   ;;  %s9309_s21 = sphi %s9353_s21, %s10416_s21   ;;  %s9305_s20 = sphi %s9351_s20, %s10415_s20   ;;  %s9301_s19 = sphi %s9349_s19, %s10414_s19   ;;  %s9297_s18 = sphi %s9347_s18, %s10413_s18  }
   0x4   : > { %p25_p0 = scmp.ge.s32.totalorder %s24_s23, 2  ;;  %p44_p2 = scmp.eq.s32.totalorder %s9313_s22, 0 }
   0x5   : > { %s36_s25 = sadd.s32 1, %s9301_s19  ;;  %p6947_p5 = scmp.ge.s32.totalorder %s9313_s22, 2 }
   0x6   : > { %s10418_s23 = smov (%p25_p0, %s24_s23), 0  ;;  %p45_p3 = por %p44_p2, %p43_p1 }
   0x7   : > { %s32_s24 = ssub.s32 %s9309_s21, %s10418_s23  ;;  %193 = sbr.rel (%p6947_p5) target bundleno = 32 (0x20), region = 28 }
   0x8   : > { %p34_p4 = scmp.eq.s32.totalorder %s32_s24, 0 }
   0xa   : > { %s9382_s26 = scalar_select %p34_p4, %s9301_s19, %s36_s25  }
   0xe   : > { %196 = sbr.rel (!%p45_p3) target bundleno = 32 (0x20), region = 32  ;;  %s198_s27 = sand.u32 (%p45_p3), 1, %s9301_s19  }
   0xf   : > { %s7820_s28 = smul.u32 (%p45_p3), 100, %s9309_s21 }
  0x10   : > { %s7962_s29 = smul.u32 (%p45_p3), 200, %s198_s27 }
  0x11   : > { %s9390_s7 = scalar_lea.vmem (%p45_p3), %s10407_s0, %s7820_s28 }
  0x12   : > { %v221_v0 = vld [vmem:[%s9390_s7] sm:$0xff] (%p45_p3)  ;;  %v223_v1 = vld [vmem:[%s9390_s7 + $0x8] sm:$0xff] (%p45_p3)  ;;  %v225_v2 = vld [vmem:[%s9390_s7 + $0x10] sm:$0xff] (%p45_p3)  ;;  %s9395_s8 = scalar_lea.vmem (%p45_p3), [#allocation3], %s7962_s29 }
  0x13   : > { %222 = vst [vmem:[%s9395_s8] sm:$0xff] (%p45_p3), %v221_v0  ;;  %224 = vst [vmem:[%s9395_s8 + $0x8] sm:$0xff] (%p45_p3), %v223_v1  ;;  %v227_v3 = vld [vmem:[%s9390_s7 + $0x18] sm:$0xff] (%p45_p3)  ;;  %v229_v4 = vld [vmem:[%s9390_s7 + $0x20] sm:$0xff] (%p45_p3) }
  0x14   : > { %226 = vst [vmem:[%s9395_s8 + $0x10] sm:$0xff] (%p45_p3), %v225_v2  ;;  %v231_v5 = vld [vmem:[%s9390_s7 + $0x28] sm:$0xff] (%p45_p3)  ;;  %228 = vst [vmem:[%s9395_s8 + $0x18] sm:$0xff] (%p45_p3), %v227_v3  ;;  %v233_v6 = vld [vmem:[%s9390_s7 + $0x30] sm:$0xff] (%p45_p3) }
  0x15   : > { %230 = vst [vmem:[%s9395_s8 + $0x20] sm:$0xff] %v229_v4  ;;  %232 = vst [vmem:[%s9395_s8 + $0x28] sm:$0xff] %v231_v5  ;;  %v235_v7 = vld [vmem:[%s9390_s7 + $0x38] sm:$0xff]  ;;  %v237_v8 = vld [vmem:[%s9390_s7 + $0x40] sm:$0xff] }
  0x16   : > { %234 = vst [vmem:[%s9395_s8 + $0x30] sm:$0xff] %v233_v6  ;;  %236 = vst [vmem:[%s9395_s8 + $0x38] sm:$0xff] %v235_v7  ;;  %v239_v9 = vld [vmem:[%s9390_s7 + $0x48] sm:$0xff]  ;;  %v241_v10 = vld [vmem:[%s9390_s7 + $0x50] sm:$0xff] }
  0x17   : > { %238 = vst [vmem:[%s9395_s8 + $0x40] sm:$0xff] %v237_v8  ;;  %v243_v11 = vld [vmem:[%s9390_s7 + $0x58] sm:$0xff]  ;;  %240 = vst [vmem:[%s9395_s8 + $0x48] sm:$0xff] %v239_v9  ;;  %v245_v12 = vld [vmem:[%s9390_s7 + $0xc8] sm:$0xff] }
  0x18   : > { %242 = vst [vmem:[%s9395_s8 + $0x50] sm:$0xff] %v241_v10  ;;  %244 = vst [vmem:[%s9395_s8 + $0x58] sm:$0xff] %v243_v11  ;;  %v247_v13 = vld [vmem:[%s9390_s7 + $0xd0] sm:$0xff]  ;;  %v249_v14 = vld [vmem:[%s9390_s7 + $0xd8] sm:$0xff] }
  0x19   : > { %246 = vst [vmem:[%s9395_s8 + $0x64] sm:$0xff] %v245_v12  ;;  %248 = vst [vmem:[%s9395_s8 + $0x6c] sm:$0xff] %v247_v13  ;;  %v251_v15 = vld [vmem:[%s9390_s7 + $0xe0] sm:$0xff]  ;;  %v253_v16 = vld [vmem:[%s9390_s7 + $0xe8] sm:$0xff] }
  0x1a   : > { %250 = vst [vmem:[%s9395_s8 + $0x74] sm:$0xff] %v249_v14  ;;  %v255_v17 = vld [vmem:[%s9390_s7 + $0xf0] sm:$0xff]  ;;  %252 = vst [vmem:[%s9395_s8 + $0x7c] sm:$0xff] %v251_v15  ;;  %v257_v18 = vld [vmem:[%s9390_s7 + $0xf8] sm:$0xff] }
  0x1b   : > { %254 = vst [vmem:[%s9395_s8 + $0x84] sm:$0xff] %v253_v16  ;;  %256 = vst [vmem:[%s9395_s8 + $0x8c] sm:$0xff] %v255_v17  ;;  %v259_v19 = vld [vmem:[%s9390_s7 + $0x100] sm:$0xff]  ;;  %v261_v20 = vld [vmem:[%s9390_s7 + $0x108] sm:$0xff] }
  0x1c   : > { %258 = vst [vmem:[%s9395_s8 + $0x94] sm:$0xff] %v257_v18  ;;  %260 = vst [vmem:[%s9395_s8 + $0x9c] sm:$0xff] %v259_v19  ;;  %v263_v21 = vld [vmem:[%s9390_s7 + $0x110] sm:$0xff]  ;;  %v265_v22 = vld [vmem:[%s9390_s7 + $0x118] sm:$0xff] }
  0x1d   : > { %262 = vst [vmem:[%s9395_s8 + $0xa4] sm:$0xff] %v261_v20  ;;  %v267_v23 = vld [vmem:[%s9390_s7 + $0x120] sm:$0xff]  ;;  %264 = vst [vmem:[%s9395_s8 + $0xac] sm:$0xff] %v263_v21  ;;  %v6951_v25 = vld [vmem:[%s9390_s7 + $0x128] sm:$0xf] }
  0x1e   : > { %266 = vst [vmem:[%s9395_s8 + $0xb4] sm:$0xff] %v265_v22  ;;  %268 = vst [vmem:[%s9395_s8 + $0xbc] sm:$0xff] %v267_v23  ;;  %v6949_v24 = vld [vmem:[%s9390_s7 + $0x60] sm:$0xf] }
  0x1f   : > { %6950 = vst [vmem:[%s9395_s8 + $0x60] sm:$0xf] %v6949_v24  ;;  %6952 = vst [vmem:[%s9395_s8 + $0xc4] sm:$0xf] %v6951_v25 }
  0x20 PF: > { %p6953_p6 = scmp.ge.s32.totalorder %s9313_s22, 1  ;;  %p294_p7 = scmp.lt.s32.totalorder %s9313_s22, 3 }
  0x22   : > { %p295_p8 = pnand %p6953_p6, %p294_p7 }
  0x23   : > { %s301_s9 = sand.u32 (!%p295_p8), 1, %s9297_s18   ;;  %s336_s10 = smul.u32 (!%p295_p8), 400, %s9305_s20 }
  0x24   : > { %298 = sbr.rel (%p295_p8) target bundleno = 1305 (0x519), region = 62  ;;  %p6956_p10 = scmp.ne.s32.totalorder (!%p295_p8), %s9305_s20, 0 }
  0x25   : > { %s7963_s11 = smul.u32 (!%p295_p8), 200, %s301_s9  ;;  %p337_p9 = scmp.lt.s32.totalorder (!%p295_p8), %s336_s10, 799 }
  0x27   : > { %s9455_s16 = scalar_lea.vmem (!%p295_p8), [#allocation3], %s7963_s11 }
  0x2b   : > { %s10420_s10 = smov (!%p337_p9, %s336_s10), 799  ;;  %353 = sbr.rel (%p6956_p10) target bundleno = 50 (0x32), region = 70 }
  0x2c   : > { %s7821_s12 = sshll.u32 %s10420_s10, 4  ;;  %v9315_v26 = vmov (!%p6956_p10), 0.0  }
  0x2d   : > { %s9453_s15 = scalar_lea.vmem %s10408_s1, %s7821_s12  ;;  %354 = vst [vmem:[#allocation2] sm:$0xff] (!%p6956_p10), %v9315_v26  ;;  %355 = vst [vmem:[#allocation2 + $0x8] sm:$0xff] (!%p6956_p10), %v9315_v26 }
  0x2e   : > { %356 = vst [vmem:[#allocation2 + $0x10] sm:$0xff] (!%p6956_p10), %v9315_v26  ;;  %357 = vst [vmem:[#allocation2 + $0x18] sm:$0xff] (!%p6956_p10), %v9315_v26 }
  0x2f   : > { %358 = vst [vmem:[#allocation2 + $0x20] sm:$0xff] (!%p6956_p10), %v9315_v26  ;;  %359 = vst [vmem:[#allocation2 + $0x28] sm:$0xff] (!%p6956_p10), %v9315_v26 }
  0x30   : > { %360 = vst [vmem:[#allocation2 + $0x30] sm:$0xff] (!%p6956_p10), %v9315_v26  ;;  %361 = vst [vmem:[#allocation2 + $0x38] sm:$0xff] (!%p6956_p10), %v9315_v26 }
  0x32 PF: > { %v8006_v27 = vld [vmem:[%s9453_s15 + $0x4] ss:$16 sps:$4 sm:$0xff]   ;;  %v8008_v28 = vld [vmem:[%s9453_s15 + $0xc] ss:$16 sps:$4 sm:$0xff]   ;;  %v8010_v29 = vld [vmem:[%s9453_s15] ss:$16 sps:$4 sm:$0xff]  }
  0x33   : > { %5322 = vmatprep.subr.bf16.mxu0 %v8006_v27  ;;  %v8011_v30 = vld [vmem:[%s9453_s15 + $0x8] ss:$16 sps:$4 sm:$0xff]   ;;  %5881 = vmatprep.subr.bf16.mxu1 %v8008_v28  ;;  %v8012_v31 = vld [vmem:[%s9453_s15 + $0x24] ss:$16 sps:$4 sm:$0xff]   ;;  %v8014_v32 = vld [vmem:[%s9453_s15 + $0x2c] ss:$16 sps:$4 sm:$0xff]  }
  0x34   : > { %5323 = vmatpush1.bf16.msra.mxu0 %v8010_v29  ;;  %5882 = vmatpush1.bf16.msra.mxu1 %v8011_v30  ;;  %v8016_v33 = vld [vmem:[%s9453_s15 + $0x20] ss:$16 sps:$4 sm:$0xff]   ;;  %v8017_v34 = vld [vmem:[%s9453_s15 + $0x28] ss:$16 sps:$4 sm:$0xff]   ;;  %v8018_v35 = vld [vmem:[%s9453_s15 + $0x44] ss:$16 sps:$4 sm:$0xff]  }
  0x35   : > { %5324 = vmatprep.subr.bf16.mxu0 %v8012_v31  ;;  %5883 = vmatprep.subr.bf16.mxu1 %v8014_v32  ;;  %v8020_v36 = vld [vmem:[%s9453_s15 + $0x4c] ss:$16 sps:$4 sm:$0xff]   ;;  %v8022_v37 = vld [vmem:[%s9453_s15 + $0x40] ss:$16 sps:$4 sm:$0xff]   ;;  %v8023_v38 = vld [vmem:[%s9453_s15 + $0x48] ss:$16 sps:$4 sm:$0xff]  }
  0x36   : > { %v8024_v39 = vld [vmem:[%s9453_s15 + $0x64] ss:$16 sps:$4 sm:$0xff]   ;;  %v8026_v40 = vld [vmem:[%s9453_s15 + $0x6c] ss:$16 sps:$4 sm:$0xff]   ;;  %v8028_v41 = vld [vmem:[%s9453_s15 + $0x60] ss:$16 sps:$4 sm:$0xff]  }
  0x37   : > { %v8029_v42 = vld [vmem:[%s9453_s15 + $0x68] ss:$16 sps:$4 sm:$0xff]   ;;  %v8030_v43 = vld [vmem:[%s9453_s15 + $0x84] ss:$16 sps:$4 sm:$0xff]   ;;  %v8032_v44 = vld [vmem:[%s9453_s15 + $0x8c] ss:$16 sps:$4 sm:$0xff]  }
  0x38   : > { %5325 = vmatpush1.bf16.msra.mxu0 %v8016_v33  ;;  %5884 = vmatpush1.bf16.msra.mxu1 %v8017_v34  ;;  %v8034_v45 = vld [vmem:[%s9453_s15 + $0x80] ss:$16 sps:$4 sm:$0xff]   ;;  %v8035_v46 = vld [vmem:[%s9453_s15 + $0x88] ss:$16 sps:$4 sm:$0xff]   ;;  %v8036_v47 = vld [vmem:[%s9453_s15 + $0xa4] ss:$16 sps:$4 sm:$0xff]  }
  0x39   : > { %5326 = vmatprep.subr.bf16.mxu0 %v8018_v35  ;;  %5885 = vmatprep.subr.bf16.mxu1 %v8020_v36  ;;  %v8038_v48 = vld [vmem:[%s9453_s15 + $0xac] ss:$16 sps:$4 sm:$0xff]   ;;  %v8040_v49 = vld [vmem:[%s9453_s15 + $0xa0] ss:$16 sps:$4 sm:$0xff]   ;;  %v8041_v50 = vld [vmem:[%s9453_s15 + $0xa8] ss:$16 sps:$4 sm:$0xff]  }
  0x3a   : > { %v8042_v51 = vld [vmem:[%s9453_s15 + $0xc4] ss:$16 sps:$4 sm:$0xff]   ;;  %v8044_v52 = vld [vmem:[%s9453_s15 + $0xcc] ss:$16 sps:$4 sm:$0xff]   ;;  %v8046_v53 = vld [vmem:[%s9453_s15 + $0xc0] ss:$16 sps:$4 sm:$0xff]  }
  0x3b   : > { %v8047_v54 = vld [vmem:[%s9453_s15 + $0xc8] ss:$16 sps:$4 sm:$0xff]   ;;  %v8048_v55 = vld [vmem:[%s9453_s15 + $0xe4] ss:$16 sps:$4 sm:$0xff]   ;;  %v8050_v56 = vld [vmem:[%s9453_s15 + $0xec] ss:$16 sps:$4 sm:$0xff]  }
  0x3c   : > { %5327 = vmatpush1.bf16.msra.mxu0 %v8022_v37  ;;  %5886 = vmatpush1.bf16.msra.mxu1 %v8023_v38  ;;  %v8052_v57 = vld [vmem:[%s9453_s15 + $0xe0] ss:$16 sps:$4 sm:$0xff]   ;;  %v8053_v58 = vld [vmem:[%s9453_s15 + $0xe8] ss:$16 sps:$4 sm:$0xff]   ;;  %v8054_v59 = vld [vmem:[%s9453_s15 + $0x104] ss:$16 sps:$4 sm:$0xff]  }
  0x3d   : > { %5328 = vmatprep.subr.bf16.mxu0 %v8024_v39  ;;  %5887 = vmatprep.subr.bf16.mxu1 %v8026_v40  ;;  %v8056_v60 = vld [vmem:[%s9453_s15 + $0x10c] ss:$16 sps:$4 sm:$0xff]   ;;  %v8058_v61 = vld [vmem:[%s9453_s15 + $0x100] ss:$16 sps:$4 sm:$0xff]   ;;  %v8059_v62 = vld [vmem:[%s9453_s15 + $0x108] ss:$16 sps:$4 sm:$0xff]  }
  0x3e   : > { %v8060_v63 = vld [vmem:[%s9453_s15 + $0x124] ss:$16 sps:$4 sm:$0xff]   ;;  %v8062_v0 = vld [vmem:[%s9453_s15 + $0x12c] ss:$16 sps:$4 sm:$0xff]   ;;  %v8064_v1 = vld [vmem:[%s9453_s15 + $0x120] ss:$16 sps:$4 sm:$0xff]  }
  0x3f   : > { %v8065_v2 = vld [vmem:[%s9453_s15 + $0x128] ss:$16 sps:$4 sm:$0xff]   ;;  %v8066_v3 = vld [vmem:[%s9453_s15 + $0x144] ss:$16 sps:$4 sm:$0xff]   ;;  %v8068_v4 = vld [vmem:[%s9453_s15 + $0x14c] ss:$16 sps:$4 sm:$0xff]  }
  0x40   : > { %5329 = vmatpush1.bf16.msra.mxu0 %v8028_v41  ;;  %5888 = vmatpush1.bf16.msra.mxu1 %v8029_v42  ;;  %v8070_v5 = vld [vmem:[%s9453_s15 + $0x140] ss:$16 sps:$4 sm:$0xff]   ;;  %v8071_v6 = vld [vmem:[%s9453_s15 + $0x148] ss:$16 sps:$4 sm:$0xff]   ;;  %v8072_v7 = vld [vmem:[%s9453_s15 + $0x164] ss:$16 sps:$4 sm:$0xff]  }
  0x41   : > { %5330 = vmatprep.subr.bf16.mxu0 %v8030_v43  ;;  %5889 = vmatprep.subr.bf16.mxu1 %v8032_v44  ;;  %v8074_v8 = vld [vmem:[%s9453_s15 + $0x16c] ss:$16 sps:$4 sm:$0xff]   ;;  %v8076_v9 = vld [vmem:[%s9453_s15 + $0x160] ss:$16 sps:$4 sm:$0xff]   ;;  %v8077_v10 = vld [vmem:[%s9453_s15 + $0x168] ss:$16 sps:$4 sm:$0xff]  }
  0x42   : > { %v8104_v11 = vld [vmem:[%s9455_s16 + $0x4] ss:$100 sps:$4 sm:$0xff]   ;;  %p7782_p11 = scmp.ne.s32.totalorder %s9305_s20, 1 }
  0x43   : > { %v8078_v12 = vld [vmem:[%s9453_s15 + $0x184] ss:$16 sps:$4 sm:$0xff]   ;;  %v8080_v13 = vld [vmem:[%s9453_s15 + $0x18c] ss:$16 sps:$4 sm:$0xff]   ;;  %5354 = vmatprep.mubr.bf16.mxu0 %v8104_v11  ;;  %5913 = vmatprep.mubr.bf16.mxu1 %v8104_v11  ;;  %v8082_v14 = vld [vmem:[%s9453_s15 + $0x180] ss:$16 sps:$4 sm:$0xff]  }
  0x44   : > { %5331 = vmatpush1.bf16.msra.mxu0 %v8034_v45  ;;  %5890 = vmatpush1.bf16.msra.mxu1 %v8035_v46  ;;  %v8083_v15 = vld [vmem:[%s9453_s15 + $0x188] ss:$16 sps:$4 sm:$0xff]   ;;  %v8084_v16 = vld [vmem:[%s9453_s15 + $0x1a4] ss:$16 sps:$4 sm:$0xff]   ;;  %v8086_v17 = vld [vmem:[%s9453_s15 + $0x1ac] ss:$16 sps:$4 sm:$0xff]  }
  0x45   : > { %5332 = vmatprep.subr.bf16.mxu0 %v8036_v47  ;;  %5891 = vmatprep.subr.bf16.mxu1 %v8038_v48  ;;  %v8088_v18 = vld [vmem:[%s9453_s15 + $0x1a0] ss:$16 sps:$4 sm:$0xff]   ;;  %v8089_v19 = vld [vmem:[%s9453_s15 + $0x1a8] ss:$16 sps:$4 sm:$0xff]   ;;  %v8090_v20 = vld [vmem:[%s9453_s15 + $0x1c4] ss:$16 sps:$4 sm:$0xff]  }
  0x46   : > { %v8092_v21 = vld [vmem:[%s9453_s15 + $0x1cc] ss:$16 sps:$4 sm:$0xff]   ;;  %v8094_v22 = vld [vmem:[%s9453_s15 + $0x1c0] ss:$16 sps:$4 sm:$0xff]   ;;  %v8095_v23 = vld [vmem:[%s9453_s15 + $0x1c8] ss:$16 sps:$4 sm:$0xff]  }
  0x47   : > { %v8096_v24 = vld [vmem:[%s9453_s15 + $0x1e4] ss:$16 sps:$4 sm:$0xff]   ;;  %v8098_v25 = vld [vmem:[%s9453_s15 + $0x1ec] ss:$16 sps:$4 sm:$0xff]   ;;  %v8100_v26 = vld [vmem:[%s9453_s15 + $0x1e0] ss:$16 sps:$4 sm:$0xff]  }
  0x48   : > { %5333 = vmatpush1.bf16.msra.mxu0 %v8040_v49  ;;  %5892 = vmatpush1.bf16.msra.mxu1 %v8041_v50  ;;  %v8101_v27 = vld [vmem:[%s9453_s15 + $0x1e8] ss:$16 sps:$4 sm:$0xff]   ;;  %v8107_v28 = vld [vmem:[%s9453_s15 + $0x204] ss:$16 sps:$4 sm:$0xff]   ;;  %v8110_v29 = vld [vmem:[%s9453_s15 + $0x20c] ss:$16 sps:$4 sm:$0xff]  }
  0x49   : > { %5334 = vmatprep.subr.bf16.mxu0 %v8042_v51  ;;  %5893 = vmatprep.subr.bf16.mxu1 %v8044_v52  ;;  %v8102_v30 = vld [vmem:[%s9455_s16] ss:$100 sps:$4 sm:$0xff]   ;;  %vm6855_vm0 = vcmask (!%p7782_p11), 80896  }
  0x4a   : > { %v8105_v31 = vld [vmem:[%s9453_s15 + $0x200] ss:$16 sps:$4 sm:$0xff]   ;;  %v8108_v32 = vld [vmem:[%s9453_s15 + $0x208] ss:$16 sps:$4 sm:$0xff]   ;;  %v8113_v33 = vld [vmem:[%s9453_s15 + $0x224] ss:$16 sps:$4 sm:$0xff]  }
  0x4b   : > { %v8116_v34 = vld [vmem:[%s9453_s15 + $0x22c] ss:$16 sps:$4 sm:$0xff]   ;;  %v8111_v35 = vld [vmem:[%s9453_s15 + $0x220] ss:$16 sps:$4 sm:$0xff]   ;;  %v8114_v36 = vld [vmem:[%s9453_s15 + $0x228] ss:$16 sps:$4 sm:$0xff]  }
  0x4c   : > { %5335 = vmatpush1.bf16.msra.mxu0 %v8046_v53  ;;  %5894 = vmatpush1.bf16.msra.mxu1 %v8047_v54  ;;  %v8119_v37 = vld [vmem:[%s9453_s15 + $0x244] ss:$16 sps:$4 sm:$0xff]   ;;  %v8122_v38 = vld [vmem:[%s9453_s15 + $0x24c] ss:$16 sps:$4 sm:$0xff]   ;;  %v8117_v39 = vld [vmem:[%s9453_s15 + $0x240] ss:$16 sps:$4 sm:$0xff]  }
  0x4d   : > { %5336 = vmatprep.subr.bf16.mxu0 %v8048_v55  ;;  %5895 = vmatprep.subr.bf16.mxu1 %v8050_v56  ;;  %v8120_v40 = vld [vmem:[%s9453_s15 + $0x248] ss:$16 sps:$4 sm:$0xff]   ;;  %v8125_v41 = vld [vmem:[%s9453_s15 + $0x264] ss:$16 sps:$4 sm:$0xff]   ;;  %v8128_v42 = vld [vmem:[%s9453_s15 + $0x26c] ss:$16 sps:$4 sm:$0xff]  }
  0x4e   : > { %v8123_v43 = vld [vmem:[%s9453_s15 + $0x260] ss:$16 sps:$4 sm:$0xff]   ;;  %v8126_v44 = vld [vmem:[%s9453_s15 + $0x268] ss:$16 sps:$4 sm:$0xff]   ;;  %v8131_v45 = vld [vmem:[%s9453_s15 + $0x284] ss:$16 sps:$4 sm:$0xff]  }
  0x4f   : > { %v8134_v46 = vld [vmem:[%s9453_s15 + $0x28c] ss:$16 sps:$4 sm:$0xff]   ;;  %v8129_v47 = vld [vmem:[%s9453_s15 + $0x280] ss:$16 sps:$4 sm:$0xff]   ;;  %v8132_v48 = vld [vmem:[%s9453_s15 + $0x288] ss:$16 sps:$4 sm:$0xff]  }
  0x50   : > { %5337 = vmatpush1.bf16.msra.mxu0 %v8052_v57  ;;  %5896 = vmatpush1.bf16.msra.mxu1 %v8053_v58  ;;  %v8137_v49 = vld [vmem:[%s9453_s15 + $0x2a4] ss:$16 sps:$4 sm:$0xff]   ;;  %v8140_v50 = vld [vmem:[%s9453_s15 + $0x2ac] ss:$16 sps:$4 sm:$0xff]   ;;  %v8135_v51 = vld [vmem:[%s9453_s15 + $0x2a0] ss:$16 sps:$4 sm:$0xff]  }
  0x51   : > { %5338 = vmatprep.subr.bf16.mxu0 %v8054_v59  ;;  %5897 = vmatprep.subr.bf16.mxu1 %v8056_v60  ;;  %v8138_v52 = vld [vmem:[%s9453_s15 + $0x2a8] ss:$16 sps:$4 sm:$0xff]   ;;  %v8143_v53 = vld [vmem:[%s9453_s15 + $0x2c4] ss:$16 sps:$4 sm:$0xff]   ;;  %v8146_v54 = vld [vmem:[%s9453_s15 + $0x2cc] ss:$16 sps:$4 sm:$0xff]  }
  0x52   : > { %v8141_v55 = vld [vmem:[%s9453_s15 + $0x2c0] ss:$16 sps:$4 sm:$0xff]   ;;  %v8144_v56 = vld [vmem:[%s9453_s15 + $0x2c8] ss:$16 sps:$4 sm:$0xff]   ;;  %v8149_v58 = vld [vmem:[%s9453_s15 + $0x2e4] ss:$16 sps:$4 sm:$0xff]  }
  0x53   : > { %v8203_v57 = vld [vmem:[%s9455_s16 + $0xc] ss:$100 sps:$4 sm:$0xff]  }
  0x54   : > { %5339 = vmatpush1.bf16.msra.mxu0 %v8058_v61  ;;  %5898 = vmatpush1.bf16.msra.mxu1 %v8059_v62  ;;  %v8152_v59 = vld [vmem:[%s9453_s15 + $0x2ec] ss:$16 sps:$4 sm:$0xff]   ;;  %v8147_v60 = vld [vmem:[%s9453_s15 + $0x2e0] ss:$16 sps:$4 sm:$0xff]   ;;  %v8150_v61 = vld [vmem:[%s9453_s15 + $0x2e8] ss:$16 sps:$4 sm:$0xff]  }
  0x55   : > { %5340 = vmatprep.subr.bf16.mxu0 %v8060_v63  ;;  %5899 = vmatprep.subr.bf16.mxu1 %v8062_v0  ;;  %v8155_v62 = vld [vmem:[%s9453_s15 + $0x304] ss:$16 sps:$4 sm:$0xff]   ;;  %v8158_v63 = vld [vmem:[%s9453_s15 + $0x30c] ss:$16 sps:$4 sm:$0xff]   ;;  %v8153_v0 = vld [vmem:[%s9453_s15 + $0x300] ss:$16 sps:$4 sm:$0xff]  }
  0x56   : > { %v8176_v11 = vld [vmem:[%s9453_s15 + $0x36c] ss:$16 sps:$4 sm:$0xff]  }
  0x58   : > { %5341 = vmatpush1.bf16.msra.mxu0 %v8064_v1  ;;  %5900 = vmatpush1.bf16.msra.mxu1 %v8065_v2  ;;  %v8156_v1 = vld [vmem:[%s9453_s15 + $0x308] ss:$16 sps:$4 sm:$0xff]   ;;  %v8161_v2 = vld [vmem:[%s9453_s15 + $0x324] ss:$16 sps:$4 sm:$0xff]  }
  0x59   : > { %5342 = vmatprep.subr.bf16.mxu0 %v8066_v3  ;;  %5901 = vmatprep.subr.bf16.mxu1 %v8068_v4  ;;  %v8164_v3 = vld [vmem:[%s9453_s15 + $0x32c] ss:$16 sps:$4 sm:$0xff]   ;;  %v8159_v4 = vld [vmem:[%s9453_s15 + $0x320] ss:$16 sps:$4 sm:$0xff]  }
  0x5c   : > { %5343 = vmatpush1.bf16.msra.mxu0 %v8070_v5  ;;  %5902 = vmatpush1.bf16.msra.mxu1 %v8071_v6  ;;  %v8162_v5 = vld [vmem:[%s9453_s15 + $0x328] ss:$16 sps:$4 sm:$0xff]   ;;  %v8167_v6 = vld [vmem:[%s9453_s15 + $0x344] ss:$16 sps:$4 sm:$0xff]  }
  0x5d   : > { %5344 = vmatprep.subr.bf16.mxu0 %v8072_v7  ;;  %5903 = vmatprep.subr.bf16.mxu1 %v8074_v8  ;;  %v8170_v7 = vld [vmem:[%s9453_s15 + $0x34c] ss:$16 sps:$4 sm:$0xff]   ;;  %v8165_v8 = vld [vmem:[%s9453_s15 + $0x340] ss:$16 sps:$4 sm:$0xff]  }
  0x60   : > { %5345 = vmatpush1.bf16.msra.mxu0 %v8076_v9  ;;  %5904 = vmatpush1.bf16.msra.mxu1 %v8077_v10  ;;  %v8168_v9 = vld [vmem:[%s9453_s15 + $0x348] ss:$16 sps:$4 sm:$0xff]   ;;  %v8173_v10 = vld [vmem:[%s9453_s15 + $0x364] ss:$16 sps:$4 sm:$0xff]  }
  0x61   : > { %5346 = vmatprep.subr.bf16.mxu0 %v8078_v12  ;;  %5905 = vmatprep.subr.bf16.mxu1 %v8080_v13  ;;  %v8171_v12 = vld [vmem:[%s9453_s15 + $0x360] ss:$16 sps:$4 sm:$0xff]   ;;  %v8174_v13 = vld [vmem:[%s9453_s15 + $0x368] ss:$16 sps:$4 sm:$0xff]  }
  0x64   : > { %5347 = vmatpush1.bf16.msra.mxu0 %v8082_v14  ;;  %5906 = vmatpush1.bf16.msra.mxu1 %v8083_v15  ;;  %v8179_v14 = vld [vmem:[%s9453_s15 + $0x384] ss:$16 sps:$4 sm:$0xff]   ;;  %v8182_v15 = vld [vmem:[%s9453_s15 + $0x38c] ss:$16 sps:$4 sm:$0xff]  }
  0x65   : > { %5348 = vmatprep.subr.bf16.mxu0 %v8084_v16  ;;  %5907 = vmatprep.subr.bf16.mxu1 %v8086_v17  ;;  %v8177_v16 = vld [vmem:[%s9453_s15 + $0x380] ss:$16 sps:$4 sm:$0xff]   ;;  %v8180_v17 = vld [vmem:[%s9453_s15 + $0x388] ss:$16 sps:$4 sm:$0xff]  }
  0x68   : > { %5349 = vmatpush1.bf16.msra.mxu0 %v8088_v18  ;;  %5908 = vmatpush1.bf16.msra.mxu1 %v8089_v19  ;;  %v8185_v18 = vld [vmem:[%s9453_s15 + $0x3a4] ss:$16 sps:$4 sm:$0xff]   ;;  %v8188_v19 = vld [vmem:[%s9453_s15 + $0x3ac] ss:$16 sps:$4 sm:$0xff]  }
  0x69   : > { %5350 = vmatprep.subr.bf16.mxu0 %v8090_v20  ;;  %5909 = vmatprep.subr.bf16.mxu1 %v8092_v21  ;;  %v8183_v20 = vld [vmem:[%s9453_s15 + $0x3a0] ss:$16 sps:$4 sm:$0xff]   ;;  %v8186_v21 = vld [vmem:[%s9453_s15 + $0x3a8] ss:$16 sps:$4 sm:$0xff]  }
  0x6c   : > { %5351 = vmatpush1.bf16.msra.mxu0 %v8094_v22  ;;  %5910 = vmatpush1.bf16.msra.mxu1 %v8095_v23  ;;  %v8191_v22 = vld [vmem:[%s9453_s15 + $0x3c4] ss:$16 sps:$4 sm:$0xff]   ;;  %v8194_v23 = vld [vmem:[%s9453_s15 + $0x3cc] ss:$16 sps:$4 sm:$0xff]  }
  0x6d   : > { %5352 = vmatprep.subr.bf16.mxu0 %v8096_v24  ;;  %5911 = vmatprep.subr.bf16.mxu1 %v8098_v25  ;;  %v8189_v24 = vld [vmem:[%s9453_s15 + $0x3c0] ss:$16 sps:$4 sm:$0xff]   ;;  %v8192_v25 = vld [vmem:[%s9453_s15 + $0x3c8] ss:$16 sps:$4 sm:$0xff]  }
  0x70   : > { %5353 = vmatpush1.bf16.msra.mxu0 %v8100_v26  ;;  %5912 = vmatpush1.bf16.msra.mxu1 %v8101_v27  ;;  %v8197_v26 = vld [vmem:[%s9453_s15 + $0x3e4] ss:$16 sps:$4 sm:$0xff]   ;;  %v8200_v27 = vld [vmem:[%s9453_s15 + $0x3ec] ss:$16 sps:$4 sm:$0xff]  }
  0x71   : > { %5365 = vmatprep.subr.bf16.mxu0 %v8107_v28  ;;  %5924 = vmatprep.subr.bf16.mxu1 %v8110_v29  ;;  %v8195_v28 = vld [vmem:[%s9453_s15 + $0x3e0] ss:$16 sps:$4 sm:$0xff]   ;;  %v8198_v29 = vld [vmem:[%s9453_s15 + $0x3e8] ss:$16 sps:$4 sm:$0xff]  }
  0x73   : > { %5355 = vmatmul.mubr.bf16.vlgmr.msra.gmra.mrb[0].mxu0 %v8102_v30  ;;  %5914 = vmatmul.mubr.bf16.vlgmr.msra.gmra.mrb[0].mxu1 %v8102_v30  ;;  %v8206_v30 = vld [vmem:[%s9453_s15 + $0x404] ss:$16 sps:$4 sm:$0xff]  }
  0x74   : > { %5366 = vmatpush1.bf16.msra.mxu0 %v8105_v31  ;;  %5925 = vmatpush1.bf16.msra.mxu1 %v8108_v32  ;;  %v8209_v31 = vld [vmem:[%s9453_s15 + $0x40c] ss:$16 sps:$4 sm:$0xff]  }
  0x75   : > { %5367 = vmatprep.subr.bf16.mxu0 %v8113_v33  ;;  %5926 = vmatprep.subr.bf16.mxu1 %v8116_v34  ;;  %v8201_v32 = vld [vmem:[%s9455_s16 + $0x8] ss:$100 sps:$4 sm:$0xff]  }
  0x76   : > { %5397 = vmatprep.mubr.bf16.mxu0 %v8203_v57  ;;  %5956 = vmatprep.mubr.bf16.mxu1 %v8203_v57  ;;  %v8204_v33 = vld [vmem:[%s9453_s15 + $0x400] ss:$16 sps:$4 sm:$0xff]   ;;  %v8207_v34 = vld [vmem:[%s9453_s15 + $0x408] ss:$16 sps:$4 sm:$0xff]   ;;  %v8245_v57 = vld [vmem:[%s9453_s15 + $0x4cc] ss:$16 sps:$4 sm:$0xff]  }
  0x78   : > { %5368 = vmatpush1.bf16.msra.mxu0 %v8111_v35  ;;  %5927 = vmatpush1.bf16.msra.mxu1 %v8114_v36  ;;  %v8212_v35 = vld [vmem:[%s9453_s15 + $0x424] ss:$16 sps:$4 sm:$0xff]   ;;  %v8215_v36 = vld [vmem:[%s9453_s15 + $0x42c] ss:$16 sps:$4 sm:$0xff]  }
  0x79   : > { %5369 = vmatprep.subr.bf16.mxu0 %v8119_v37  ;;  %5928 = vmatprep.subr.bf16.mxu1 %v8122_v38  ;;  %v8210_v37 = vld [vmem:[%s9453_s15 + $0x420] ss:$16 sps:$4 sm:$0xff]   ;;  %v8213_v38 = vld [vmem:[%s9453_s15 + $0x428] ss:$16 sps:$4 sm:$0xff]  }
  0x7c   : > { %5370 = vmatpush1.bf16.msra.mxu0 %v8117_v39  ;;  %5929 = vmatpush1.bf16.msra.mxu1 %v8120_v40  ;;  %v8302_v39 = vld [vmem:[%s9455_s16 + $0x14] ss:$100 sps:$4 sm:$0xff]  }
  0x7d   : > { %5371 = vmatprep.subr.bf16.mxu0 %v8125_v41  ;;  %5930 = vmatprep.subr.bf16.mxu1 %v8128_v42  ;;  %v8218_v40 = vld [vmem:[%s9453_s15 + $0x444] ss:$16 sps:$4 sm:$0xff]   ;;  %v8221_v41 = vld [vmem:[%s9453_s15 + $0x44c] ss:$16 sps:$4 sm:$0xff]   ;;  %v8216_v42 = vld [vmem:[%s9453_s15 + $0x440] ss:$16 sps:$4 sm:$0xff]  }
  0x80   : > { %5372 = vmatpush1.bf16.msra.mxu0 %v8123_v43  ;;  %5931 = vmatpush1.bf16.msra.mxu1 %v8126_v44  ;;  %v8219_v43 = vld [vmem:[%s9453_s15 + $0x448] ss:$16 sps:$4 sm:$0xff]   ;;  %v8224_v44 = vld [vmem:[%s9453_s15 + $0x464] ss:$16 sps:$4 sm:$0xff]  }
  0x81   : > { %5373 = vmatprep.subr.bf16.mxu0 %v8131_v45  ;;  %5932 = vmatprep.subr.bf16.mxu1 %v8134_v46  ;;  %v8227_v45 = vld [vmem:[%s9453_s15 + $0x46c] ss:$16 sps:$4 sm:$0xff]   ;;  %v8222_v46 = vld [vmem:[%s9453_s15 + $0x460] ss:$16 sps:$4 sm:$0xff]  }
  0x84   : > { %5374 = vmatpush1.bf16.msra.mxu0 %v8129_v47  ;;  %5933 = vmatpush1.bf16.msra.mxu1 %v8132_v48  ;;  %v8225_v47 = vld [vmem:[%s9453_s15 + $0x468] ss:$16 sps:$4 sm:$0xff]   ;;  %v8230_v48 = vld [vmem:[%s9453_s15 + $0x484] ss:$16 sps:$4 sm:$0xff]  }
  0x85   : > { %5375 = vmatprep.subr.bf16.mxu0 %v8137_v49  ;;  %5934 = vmatprep.subr.bf16.mxu1 %v8140_v50  ;;  %v8233_v49 = vld [vmem:[%s9453_s15 + $0x48c] ss:$16 sps:$4 sm:$0xff]   ;;  %v8228_v50 = vld [vmem:[%s9453_s15 + $0x480] ss:$16 sps:$4 sm:$0xff]  }
  0x88   : > { %5376 = vmatpush1.bf16.msra.mxu0 %v8135_v51  ;;  %5935 = vmatpush1.bf16.msra.mxu1 %v8138_v52  ;;  %v8231_v51 = vld [vmem:[%s9453_s15 + $0x488] ss:$16 sps:$4 sm:$0xff]   ;;  %v8236_v52 = vld [vmem:[%s9453_s15 + $0x4a4] ss:$16 sps:$4 sm:$0xff]  }
  0x89   : > { %5377 = vmatprep.subr.bf16.mxu0 %v8143_v53  ;;  %5936 = vmatprep.subr.bf16.mxu1 %v8146_v54  ;;  %v8239_v53 = vld [vmem:[%s9453_s15 + $0x4ac] ss:$16 sps:$4 sm:$0xff]   ;;  %v8234_v54 = vld [vmem:[%s9453_s15 + $0x4a0] ss:$16 sps:$4 sm:$0xff]  }
  0x8c   : > { %5378 = vmatpush1.bf16.msra.mxu0 %v8141_v55  ;;  %5937 = vmatpush1.bf16.msra.mxu1 %v8144_v56  ;;  %v8237_v55 = vld [vmem:[%s9453_s15 + $0x4a8] ss:$16 sps:$4 sm:$0xff]   ;;  %v8242_v56 = vld [vmem:[%s9453_s15 + $0x4c4] ss:$16 sps:$4 sm:$0xff]  }
  0x8d   : > { %5379 = vmatprep.subr.bf16.mxu0 %v8149_v58  ;;  %5938 = vmatprep.subr.bf16.mxu1 %v8152_v59  ;;  %v8240_v58 = vld [vmem:[%s9453_s15 + $0x4c0] ss:$16 sps:$4 sm:$0xff]   ;;  %v8243_v59 = vld [vmem:[%s9453_s15 + $0x4c8] ss:$16 sps:$4 sm:$0xff]  }
  0x90   : > { %5380 = vmatpush1.bf16.msra.mxu0 %v8147_v60  ;;  %5939 = vmatpush1.bf16.msra.mxu1 %v8150_v61  ;;  %v8248_v60 = vld [vmem:[%s9453_s15 + $0x4e4] ss:$16 sps:$4 sm:$0xff]   ;;  %v8251_v61 = vld [vmem:[%s9453_s15 + $0x4ec] ss:$16 sps:$4 sm:$0xff]  }
  0x91   : > { %5381 = vmatprep.subr.bf16.mxu0 %v8155_v62  ;;  %5940 = vmatprep.subr.bf16.mxu1 %v8158_v63  ;;  %v8246_v62 = vld [vmem:[%s9453_s15 + $0x4e0] ss:$16 sps:$4 sm:$0xff]   ;;  %v8249_v63 = vld [vmem:[%s9453_s15 + $0x4e8] ss:$16 sps:$4 sm:$0xff]  }
  0x94   : > { %5382 = vmatpush1.bf16.msra.mxu0 %v8153_v0  ;;  %5941 = vmatpush1.bf16.msra.mxu1 %v8156_v1  ;;  %v8254_v0 = vld [vmem:[%s9453_s15 + $0x504] ss:$16 sps:$4 sm:$0xff]   ;;  %v8257_v1 = vld [vmem:[%s9453_s15 + $0x50c] ss:$16 sps:$4 sm:$0xff]  }
  0x95   : > { %5383 = vmatprep.subr.bf16.mxu0 %v8161_v2  ;;  %5942 = vmatprep.subr.bf16.mxu1 %v8164_v3  ;;  %v8252_v2 = vld [vmem:[%s9453_s15 + $0x500] ss:$16 sps:$4 sm:$0xff]   ;;  %v8255_v3 = vld [vmem:[%s9453_s15 + $0x508] ss:$16 sps:$4 sm:$0xff]  }
  0x98   : > { %5384 = vmatpush1.bf16.msra.mxu0 %v8159_v4  ;;  %5943 = vmatpush1.bf16.msra.mxu1 %v8162_v5  ;;  %v8260_v4 = vld [vmem:[%s9453_s15 + $0x524] ss:$16 sps:$4 sm:$0xff]   ;;  %v8263_v5 = vld [vmem:[%s9453_s15 + $0x52c] ss:$16 sps:$4 sm:$0xff]  }
  0x99   : > { %5385 = vmatprep.subr.bf16.mxu0 %v8167_v6  ;;  %5944 = vmatprep.subr.bf16.mxu1 %v8170_v7  ;;  %v8258_v6 = vld [vmem:[%s9453_s15 + $0x520] ss:$16 sps:$4 sm:$0xff]   ;;  %v8261_v7 = vld [vmem:[%s9453_s15 + $0x528] ss:$16 sps:$4 sm:$0xff]  }
  0x9c   : > { %5386 = vmatpush1.bf16.msra.mxu0 %v8165_v8  ;;  %5945 = vmatpush1.bf16.msra.mxu1 %v8168_v9  ;;  %v8266_v8 = vld [vmem:[%s9453_s15 + $0x544] ss:$16 sps:$4 sm:$0xff]   ;;  %v8269_v9 = vld [vmem:[%s9453_s15 + $0x54c] ss:$16 sps:$4 sm:$0xff]  }
  0x9d   : > { %5387 = vmatprep.subr.bf16.mxu0 %v8173_v10  ;;  %5946 = vmatprep.subr.bf16.mxu1 %v8176_v11  ;;  %v8264_v10 = vld [vmem:[%s9453_s15 + $0x540] ss:$16 sps:$4 sm:$0xff]   ;;  %v8267_v11 = vld [vmem:[%s9453_s15 + $0x548] ss:$16 sps:$4 sm:$0xff]  }
  0xa0   : > { %5388 = vmatpush1.bf16.msra.mxu0 %v8171_v12  ;;  %5947 = vmatpush1.bf16.msra.mxu1 %v8174_v13  ;;  %v8272_v12 = vld [vmem:[%s9453_s15 + $0x564] ss:$16 sps:$4 sm:$0xff]   ;;  %v8275_v13 = vld [vmem:[%s9453_s15 + $0x56c] ss:$16 sps:$4 sm:$0xff]  }
  0xa1   : > { %5389 = vmatprep.subr.bf16.mxu0 %v8179_v14  ;;  %5948 = vmatprep.subr.bf16.mxu1 %v8182_v15  ;;  %v8270_v14 = vld [vmem:[%s9453_s15 + $0x560] ss:$16 sps:$4 sm:$0xff]   ;;  %v8273_v15 = vld [vmem:[%s9453_s15 + $0x568] ss:$16 sps:$4 sm:$0xff]  }
  0xa4   : > { %5390 = vmatpush1.bf16.msra.mxu0 %v8177_v16  ;;  %5949 = vmatpush1.bf16.msra.mxu1 %v8180_v17  ;;  %v8278_v16 = vld [vmem:[%s9453_s15 + $0x584] ss:$16 sps:$4 sm:$0xff]   ;;  %v8281_v17 = vld [vmem:[%s9453_s15 + $0x58c] ss:$16 sps:$4 sm:$0xff]  }
  0xa5   : > { %5391 = vmatprep.subr.bf16.mxu0 %v8185_v18  ;;  %5950 = vmatprep.subr.bf16.mxu1 %v8188_v19  ;;  %v8276_v18 = vld [vmem:[%s9453_s15 + $0x580] ss:$16 sps:$4 sm:$0xff]   ;;  %v8279_v19 = vld [vmem:[%s9453_s15 + $0x588] ss:$16 sps:$4 sm:$0xff]  }
  0xa8   : > { %5392 = vmatpush1.bf16.msra.mxu0 %v8183_v20  ;;  %5951 = vmatpush1.bf16.msra.mxu1 %v8186_v21  ;;  %v8284_v20 = vld [vmem:[%s9453_s15 + $0x5a4] ss:$16 sps:$4 sm:$0xff]   ;;  %v8287_v21 = vld [vmem:[%s9453_s15 + $0x5ac] ss:$16 sps:$4 sm:$0xff]  }
  0xa9   : > { %5393 = vmatprep.subr.bf16.mxu0 %v8191_v22  ;;  %5952 = vmatprep.subr.bf16.mxu1 %v8194_v23  ;;  %v8282_v22 = vld [vmem:[%s9453_s15 + $0x5a0] ss:$16 sps:$4 sm:$0xff]   ;;  %v8285_v23 = vld [vmem:[%s9453_s15 + $0x5a8] ss:$16 sps:$4 sm:$0xff]  }
  0xac   : > { %5394 = vmatpush1.bf16.msra.mxu0 %v8189_v24  ;;  %5953 = vmatpush1.bf16.msra.mxu1 %v8192_v25  ;;  %v8290_v24 = vld [vmem:[%s9453_s15 + $0x5c4] ss:$16 sps:$4 sm:$0xff]   ;;  %v8293_v25 = vld [vmem:[%s9453_s15 + $0x5cc] ss:$16 sps:$4 sm:$0xff]  }
  0xad   : > { %5395 = vmatprep.subr.bf16.mxu0 %v8197_v26  ;;  %5954 = vmatprep.subr.bf16.mxu1 %v8200_v27  ;;  %v8288_v26 = vld [vmem:[%s9453_s15 + $0x5c0] ss:$16 sps:$4 sm:$0xff]   ;;  %v8291_v27 = vld [vmem:[%s9453_s15 + $0x5c8] ss:$16 sps:$4 sm:$0xff]  }
  0xb0   : > { %5396 = vmatpush1.bf16.msra.mxu0 %v8195_v28  ;;  %5955 = vmatpush1.bf16.msra.mxu1 %v8198_v29  ;;  %v8296_v28 = vld [vmem:[%s9453_s15 + $0x5e4] ss:$16 sps:$4 sm:$0xff]   ;;  %v8299_v29 = vld [vmem:[%s9453_s15 + $0x5ec] ss:$16 sps:$4 sm:$0xff]  }
  0xb1   : > { %5408 = vmatprep.subr.bf16.mxu0 %v8206_v30  ;;  %5967 = vmatprep.subr.bf16.mxu1 %v8209_v31  ;;  %v8294_v30 = vld [vmem:[%s9453_s15 + $0x5e0] ss:$16 sps:$4 sm:$0xff]   ;;  %v8297_v31 = vld [vmem:[%s9453_s15 + $0x5e8] ss:$16 sps:$4 sm:$0xff]  }
  0xb3   : > { %5398 = vmatmul.mubr.bf16.vlgmr.msra.gmra.mrb[0].mxu0 %v8201_v32  ;;  %5957 = vmatmul.mubr.bf16.vlgmr.msra.gmra.mrb[0].mxu1 %v8201_v32  ;;  %v8305_v32 = vld [vmem:[%s9453_s15 + $0x604] ss:$16 sps:$4 sm:$0xff]  }
  0xb4   : > { %5409 = vmatpush1.bf16.msra.mxu0 %v8204_v33  ;;  %5968 = vmatpush1.bf16.msra.mxu1 %v8207_v34  ;;  %v8308_v33 = vld [vmem:[%s9453_s15 + $0x60c] ss:$16 sps:$4 sm:$0xff]  }
  0xb5   : > { %5410 = vmatprep.subr.bf16.mxu0 %v8212_v35  ;;  %5969 = vmatprep.subr.bf16.mxu1 %v8215_v36  ;;  %v8300_v34 = vld [vmem:[%s9455_s16 + $0x10] ss:$100 sps:$4 sm:$0xff]  }
  0xb6   : > { %5440 = vmatprep.mubr.bf16.mxu0 %v8302_v39  ;;  %5999 = vmatprep.mubr.bf16.mxu1 %v8302_v39  ;;  %v8303_v35 = vld [vmem:[%s9453_s15 + $0x600] ss:$16 sps:$4 sm:$0xff]   ;;  %v8306_v36 = vld [vmem:[%s9453_s15 + $0x608] ss:$16 sps:$4 sm:$0xff]  }
  0xb7   : > { %v8401_v39 = vld [vmem:[%s9455_s16 + $0x1c] ss:$100 sps:$4 sm:$0xff]  }
  0xb8   : > { %5411 = vmatpush1.bf16.msra.mxu0 %v8210_v37  ;;  %5970 = vmatpush1.bf16.msra.mxu1 %v8213_v38  ;;  %v8311_v37 = vld [vmem:[%s9453_s15 + $0x624] ss:$16 sps:$4 sm:$0xff]   ;;  %v8314_v38 = vld [vmem:[%s9453_s15 + $0x62c] ss:$16 sps:$4 sm:$0xff]  }
  0xb9   : > { %5412 = vmatprep.subr.bf16.mxu0 %v8218_v40  ;;  %5971 = vmatprep.subr.bf16.mxu1 %v8221_v41  ;;  %v8309_v40 = vld [vmem:[%s9453_s15 + $0x620] ss:$16 sps:$4 sm:$0xff]   ;;  %v8312_v41 = vld [vmem:[%s9453_s15 + $0x628] ss:$16 sps:$4 sm:$0xff]  }
  0xbc   : > { %5413 = vmatpush1.bf16.msra.mxu0 %v8216_v42  ;;  %5972 = vmatpush1.bf16.msra.mxu1 %v8219_v43  ;;  %v8317_v42 = vld [vmem:[%s9453_s15 + $0x644] ss:$16 sps:$4 sm:$0xff]   ;;  %v8320_v43 = vld [vmem:[%s9453_s15 + $0x64c] ss:$16 sps:$4 sm:$0xff]  }
  0xbd   : > { %5414 = vmatprep.subr.bf16.mxu0 %v8224_v44  ;;  %5973 = vmatprep.subr.bf16.mxu1 %v8227_v45  ;;  %v8315_v44 = vld [vmem:[%s9453_s15 + $0x640] ss:$16 sps:$4 sm:$0xff]   ;;  %v8318_v45 = vld [vmem:[%s9453_s15 + $0x648] ss:$16 sps:$4 sm:$0xff]  }
  0xc0   : > { %5415 = vmatpush1.bf16.msra.mxu0 %v8222_v46  ;;  %5974 = vmatpush1.bf16.msra.mxu1 %v8225_v47  ;;  %v8323_v46 = vld [vmem:[%s9453_s15 + $0x664] ss:$16 sps:$4 sm:$0xff]   ;;  %v8326_v47 = vld [vmem:[%s9453_s15 + $0x66c] ss:$16 sps:$4 sm:$0xff]  }
  0xc1   : > { %5416 = vmatprep.subr.bf16.mxu0 %v8230_v48  ;;  %5975 = vmatprep.subr.bf16.mxu1 %v8233_v49  ;;  %v8321_v48 = vld [vmem:[%s9453_s15 + $0x660] ss:$16 sps:$4 sm:$0xff]   ;;  %v8324_v49 = vld [vmem:[%s9453_s15 + $0x668] ss:$16 sps:$4 sm:$0xff]  }
  0xc4   : > { %5417 = vmatpush1.bf16.msra.mxu0 %v8228_v50  ;;  %5976 = vmatpush1.bf16.msra.mxu1 %v8231_v51  ;;  %v8329_v50 = vld [vmem:[%s9453_s15 + $0x684] ss:$16 sps:$4 sm:$0xff]   ;;  %v8332_v51 = vld [vmem:[%s9453_s15 + $0x68c] ss:$16 sps:$4 sm:$0xff]  }
  0xc5   : > { %5418 = vmatprep.subr.bf16.mxu0 %v8236_v52  ;;  %5977 = vmatprep.subr.bf16.mxu1 %v8239_v53  ;;  %v8327_v52 = vld [vmem:[%s9453_s15 + $0x680] ss:$16 sps:$4 sm:$0xff]   ;;  %v8330_v53 = vld [vmem:[%s9453_s15 + $0x688] ss:$16 sps:$4 sm:$0xff]  }
  0xc8   : > { %5419 = vmatpush1.bf16.msra.mxu0 %v8234_v54  ;;  %5978 = vmatpush1.bf16.msra.mxu1 %v8237_v55  ;;  %v8335_v54 = vld [vmem:[%s9453_s15 + $0x6a4] ss:$16 sps:$4 sm:$0xff]   ;;  %v8338_v55 = vld [vmem:[%s9453_s15 + $0x6ac] ss:$16 sps:$4 sm:$0xff]  }
  0xc9   : > { %5420 = vmatprep.subr.bf16.mxu0 %v8242_v56  ;;  %5979 = vmatprep.subr.bf16.mxu1 %v8245_v57  ;;  %v8333_v56 = vld [vmem:[%s9453_s15 + $0x6a0] ss:$16 sps:$4 sm:$0xff]   ;;  %v8336_v57 = vld [vmem:[%s9453_s15 + $0x6a8] ss:$16 sps:$4 sm:$0xff]  }
  0xcc   : > { %5421 = vmatpush1.bf16.msra.mxu0 %v8240_v58  ;;  %5980 = vmatpush1.bf16.msra.mxu1 %v8243_v59  ;;  %v8341_v58 = vld [vmem:[%s9453_s15 + $0x6c4] ss:$16 sps:$4 sm:$0xff]   ;;  %v8344_v59 = vld [vmem:[%s9453_s15 + $0x6cc] ss:$16 sps:$4 sm:$0xff]  }
  0xcd   : > { %5422 = vmatprep.subr.bf16.mxu0 %v8248_v60  ;;  %5981 = vmatprep.subr.bf16.mxu1 %v8251_v61  ;;  %v8339_v60 = vld [vmem:[%s9453_s15 + $0x6c0] ss:$16 sps:$4 sm:$0xff]   ;;  %v8342_v61 = vld [vmem:[%s9453_s15 + $0x6c8] ss:$16 sps:$4 sm:$0xff]  }
  0xd0   : > { %5423 = vmatpush1.bf16.msra.mxu0 %v8246_v62  ;;  %5982 = vmatpush1.bf16.msra.mxu1 %v8249_v63  ;;  %v8347_v62 = vld [vmem:[%s9453_s15 + $0x6e4] ss:$16 sps:$4 sm:$0xff]   ;;  %v8350_v63 = vld [vmem:[%s9453_s15 + $0x6ec] ss:$16 sps:$4 sm:$0xff]  }
  0xd1   : > { %5424 = vmatprep.subr.bf16.mxu0 %v8254_v0  ;;  %5983 = vmatprep.subr.bf16.mxu1 %v8257_v1  ;;  %v8345_v0 = vld [vmem:[%s9453_s15 + $0x6e0] ss:$16 sps:$4 sm:$0xff]   ;;  %v8348_v1 = vld [vmem:[%s9453_s15 + $0x6e8] ss:$16 sps:$4 sm:$0xff]  }
  0xd4   : > { %5425 = vmatpush1.bf16.msra.mxu0 %v8252_v2  ;;  %5984 = vmatpush1.bf16.msra.mxu1 %v8255_v3  ;;  %v8353_v2 = vld [vmem:[%s9453_s15 + $0x704] ss:$16 sps:$4 sm:$0xff]   ;;  %v8356_v3 = vld [vmem:[%s9453_s15 + $0x70c] ss:$16 sps:$4 sm:$0xff]  }
  0xd5   : > { %5426 = vmatprep.subr.bf16.mxu0 %v8260_v4  ;;  %5985 = vmatprep.subr.bf16.mxu1 %v8263_v5  ;;  %v8351_v4 = vld [vmem:[%s9453_s15 + $0x700] ss:$16 sps:$4 sm:$0xff]   ;;  %v8354_v5 = vld [vmem:[%s9453_s15 + $0x708] ss:$16 sps:$4 sm:$0xff]  }
  0xd8   : > { %5427 = vmatpush1.bf16.msra.mxu0 %v8258_v6  ;;  %5986 = vmatpush1.bf16.msra.mxu1 %v8261_v7  ;;  %v8359_v6 = vld [vmem:[%s9453_s15 + $0x724] ss:$16 sps:$4 sm:$0xff]   ;;  %v8362_v7 = vld [vmem:[%s9453_s15 + $0x72c] ss:$16 sps:$4 sm:$0xff]  }
  0xd9   : > { %5428 = vmatprep.subr.bf16.mxu0 %v8266_v8  ;;  %5987 = vmatprep.subr.bf16.mxu1 %v8269_v9  ;;  %v8357_v8 = vld [vmem:[%s9453_s15 + $0x720] ss:$16 sps:$4 sm:$0xff]   ;;  %v8360_v9 = vld [vmem:[%s9453_s15 + $0x728] ss:$16 sps:$4 sm:$0xff]  }
  0xdc   : > { %5429 = vmatpush1.bf16.msra.mxu0 %v8264_v10  ;;  %5988 = vmatpush1.bf16.msra.mxu1 %v8267_v11  ;;  %v8365_v10 = vld [vmem:[%s9453_s15 + $0x744] ss:$16 sps:$4 sm:$0xff]   ;;  %v8368_v11 = vld [vmem:[%s9453_s15 + $0x74c] ss:$16 sps:$4 sm:$0xff]  }
  0xdd   : > { %5430 = vmatprep.subr.bf16.mxu0 %v8272_v12  ;;  %5989 = vmatprep.subr.bf16.mxu1 %v8275_v13  ;;  %v8363_v12 = vld [vmem:[%s9453_s15 + $0x740] ss:$16 sps:$4 sm:$0xff]   ;;  %v8366_v13 = vld [vmem:[%s9453_s15 + $0x748] ss:$16 sps:$4 sm:$0xff]  }
  0xe0   : > { %5431 = vmatpush1.bf16.msra.mxu0 %v8270_v14  ;;  %5990 = vmatpush1.bf16.msra.mxu1 %v8273_v15  ;;  %v8371_v14 = vld [vmem:[%s9453_s15 + $0x764] ss:$16 sps:$4 sm:$0xff]   ;;  %v8374_v15 = vld [vmem:[%s9453_s15 + $0x76c] ss:$16 sps:$4 sm:$0xff]  }
  0xe1   : > { %5432 = vmatprep.subr.bf16.mxu0 %v8278_v16  ;;  %5991 = vmatprep.subr.bf16.mxu1 %v8281_v17  ;;  %v8369_v16 = vld [vmem:[%s9453_s15 + $0x760] ss:$16 sps:$4 sm:$0xff]   ;;  %v8372_v17 = vld [vmem:[%s9453_s15 + $0x768] ss:$16 sps:$4 sm:$0xff]  }
  0xe4   : > { %5433 = vmatpush1.bf16.msra.mxu0 %v8276_v18  ;;  %5992 = vmatpush1.bf16.msra.mxu1 %v8279_v19  ;;  %v8377_v18 = vld [vmem:[%s9453_s15 + $0x784] ss:$16 sps:$4 sm:$0xff]   ;;  %v8380_v19 = vld [vmem:[%s9453_s15 + $0x78c] ss:$16 sps:$4 sm:$0xff]  }
  0xe5   : > { %5434 = vmatprep.subr.bf16.mxu0 %v8284_v20  ;;  %5993 = vmatprep.subr.bf16.mxu1 %v8287_v21  ;;  %v8375_v20 = vld [vmem:[%s9453_s15 + $0x780] ss:$16 sps:$4 sm:$0xff]   ;;  %v8378_v21 = vld [vmem:[%s9453_s15 + $0x788] ss:$16 sps:$4 sm:$0xff]  }
  0xe8   : > { %5435 = vmatpush1.bf16.msra.mxu0 %v8282_v22  ;;  %5994 = vmatpush1.bf16.msra.mxu1 %v8285_v23  ;;  %v8383_v22 = vld [vmem:[%s9453_s15 + $0x7a4] ss:$16 sps:$4 sm:$0xff]   ;;  %v8386_v23 = vld [vmem:[%s9453_s15 + $0x7ac] ss:$16 sps:$4 sm:$0xff]  }
  0xe9   : > { %5436 = vmatprep.subr.bf16.mxu0 %v8290_v24  ;;  %5995 = vmatprep.subr.bf16.mxu1 %v8293_v25  ;;  %v8381_v24 = vld [vmem:[%s9453_s15 + $0x7a0] ss:$16 sps:$4 sm:$0xff]   ;;  %v8384_v25 = vld [vmem:[%s9453_s15 + $0x7a8] ss:$16 sps:$4 sm:$0xff]  }
  0xec   : > { %5437 = vmatpush1.bf16.msra.mxu0 %v8288_v26  ;;  %5996 = vmatpush1.bf16.msra.mxu1 %v8291_v27  ;;  %v8389_v26 = vld [vmem:[%s9453_s15 + $0x7c4] ss:$16 sps:$4 sm:$0xff]   ;;  %v8392_v27 = vld [vmem:[%s9453_s15 + $0x7cc] ss:$16 sps:$4 sm:$0xff]  }
  0xed   : > { %5438 = vmatprep.subr.bf16.mxu0 %v8296_v28  ;;  %5997 = vmatprep.subr.bf16.mxu1 %v8299_v29  ;;  %v8387_v28 = vld [vmem:[%s9453_s15 + $0x7c0] ss:$16 sps:$4 sm:$0xff]   ;;  %v8390_v29 = vld [vmem:[%s9453_s15 + $0x7c8] ss:$16 sps:$4 sm:$0xff]  }
  0xf0   : > { %5439 = vmatpush1.bf16.msra.mxu0 %v8294_v30  ;;  %5998 = vmatpush1.bf16.msra.mxu1 %v8297_v31  ;;  %v8395_v30 = vld [vmem:[%s9453_s15 + $0x7e4] ss:$16 sps:$4 sm:$0xff]   ;;  %v8398_v31 = vld [vmem:[%s9453_s15 + $0x7ec] ss:$16 sps:$4 sm:$0xff]  }
  0xf1   : > { %5451 = vmatprep.subr.bf16.mxu0 %v8305_v32  ;;  %6010 = vmatprep.subr.bf16.mxu1 %v8308_v33  ;;  %v8393_v32 = vld [vmem:[%s9453_s15 + $0x7e0] ss:$16 sps:$4 sm:$0xff]   ;;  %v8396_v33 = vld [vmem:[%s9453_s15 + $0x7e8] ss:$16 sps:$4 sm:$0xff]  }
  0xf3   : > { %5441 = vmatmul.mubr.bf16.vlgmr.msra.gmra.mrb[0].mxu0 %v8300_v34  ;;  %6000 = vmatmul.mubr.bf16.vlgmr.msra.gmra.mrb[0].mxu1 %v8300_v34  ;;  %v8404_v34 = vld [vmem:[%s9453_s15 + $0x804] ss:$16 sps:$4 sm:$0xff]  }
  0xf4   : > { %5452 = vmatpush1.bf16.msra.mxu0 %v8303_v35  ;;  %6011 = vmatpush1.bf16.msra.mxu1 %v8306_v36  ;;  %v8407_v35 = vld [vmem:[%s9453_s15 + $0x80c] ss:$16 sps:$4 sm:$0xff]  }
  0xf5   : > { %5453 = vmatprep.subr.bf16.mxu0 %v8311_v37  ;;  %6012 = vmatprep.subr.bf16.mxu1 %v8314_v38  ;;  %v8399_v36 = vld [vmem:[%s9455_s16 + $0x18] ss:$100 sps:$4 sm:$0xff]  }
  0xf6   : > { %5483 = vmatprep.mubr.bf16.mxu0 %v8401_v39  ;;  %6042 = vmatprep.mubr.bf16.mxu1 %v8401_v39  ;;  %v8402_v37 = vld [vmem:[%s9453_s15 + $0x800] ss:$16 sps:$4 sm:$0xff]   ;;  %v8405_v38 = vld [vmem:[%s9453_s15 + $0x808] ss:$16 sps:$4 sm:$0xff]   ;;  %v8410_v39 = vld [vmem:[%s9453_s15 + $0x824] ss:$16 sps:$4 sm:$0xff]  }
  0xf8   : > { %5454 = vmatpush1.bf16.msra.mxu0 %v8309_v40  ;;  %6013 = vmatpush1.bf16.msra.mxu1 %v8312_v41  ;;  %v8413_v40 = vld [vmem:[%s9453_s15 + $0x82c] ss:$16 sps:$4 sm:$0xff]  }
  0xf9   : > { %5455 = vmatprep.subr.bf16.mxu0 %v8317_v42  ;;  %6014 = vmatprep.subr.bf16.mxu1 %v8320_v43  ;;  %v8500_v41 = vld [vmem:[%s9455_s16 + $0x24] ss:$100 sps:$4 sm:$0xff]  }
  0xfa   : > { %v8408_v42 = vld [vmem:[%s9453_s15 + $0x820] ss:$16 sps:$4 sm:$0xff]   ;;  %v8411_v43 = vld [vmem:[%s9453_s15 + $0x828] ss:$16 sps:$4 sm:$0xff]  }
  0xfc   : > { %5456 = vmatpush1.bf16.msra.mxu0 %v8315_v44  ;;  %6015 = vmatpush1.bf16.msra.mxu1 %v8318_v45  ;;  %v8416_v44 = vld [vmem:[%s9453_s15 + $0x844] ss:$16 sps:$4 sm:$0xff]   ;;  %v8419_v45 = vld [vmem:[%s9453_s15 + $0x84c] ss:$16 sps:$4 sm:$0xff]  }
  0xfd   : > { %5457 = vmatprep.subr.bf16.mxu0 %v8323_v46  ;;  %6016 = vmatprep.subr.bf16.mxu1 %v8326_v47  ;;  %v8414_v46 = vld [vmem:[%s9453_s15 + $0x840] ss:$16 sps:$4 sm:$0xff]   ;;  %v8417_v47 = vld [vmem:[%s9453_s15 + $0x848] ss:$16 sps:$4 sm:$0xff]  }
 0x100   : > { %5458 = vmatpush1.bf16.msra.mxu0 %v8321_v48  ;;  %6017 = vmatpush1.bf16.msra.mxu1 %v8324_v49  ;;  %v8422_v48 = vld [vmem:[%s9453_s15 + $0x864] ss:$16 sps:$4 sm:$0xff]   ;;  %v8425_v49 = vld [vmem:[%s9453_s15 + $0x86c] ss:$16 sps:$4 sm:$0xff]  }
 0x101   : > { %5459 = vmatprep.subr.bf16.mxu0 %v8329_v50  ;;  %6018 = vmatprep.subr.bf16.mxu1 %v8332_v51  ;;  %v8420_v50 = vld [vmem:[%s9453_s15 + $0x860] ss:$16 sps:$4 sm:$0xff]   ;;  %v8423_v51 = vld [vmem:[%s9453_s15 + $0x868] ss:$16 sps:$4 sm:$0xff]  }
 0x104   : > { %5460 = vmatpush1.bf16.msra.mxu0 %v8327_v52  ;;  %6019 = vmatpush1.bf16.msra.mxu1 %v8330_v53  ;;  %v8428_v52 = vld [vmem:[%s9453_s15 + $0x884] ss:$16 sps:$4 sm:$0xff]   ;;  %v8431_v53 = vld [vmem:[%s9453_s15 + $0x88c] ss:$16 sps:$4 sm:$0xff]  }
 0x105   : > { %5461 = vmatprep.subr.bf16.mxu0 %v8335_v54  ;;  %6020 = vmatprep.subr.bf16.mxu1 %v8338_v55  ;;  %v8426_v54 = vld [vmem:[%s9453_s15 + $0x880] ss:$16 sps:$4 sm:$0xff]   ;;  %v8429_v55 = vld [vmem:[%s9453_s15 + $0x888] ss:$16 sps:$4 sm:$0xff]  }
 0x108   : > { %5462 = vmatpush1.bf16.msra.mxu0 %v8333_v56  ;;  %6021 = vmatpush1.bf16.msra.mxu1 %v8336_v57  ;;  %v8434_v56 = vld [vmem:[%s9453_s15 + $0x8a4] ss:$16 sps:$4 sm:$0xff]   ;;  %v8437_v57 = vld [vmem:[%s9453_s15 + $0x8ac] ss:$16 sps:$4 sm:$0xff]  }
 0x109   : > { %5463 = vmatprep.subr.bf16.mxu0 %v8341_v58  ;;  %6022 = vmatprep.subr.bf16.mxu1 %v8344_v59  ;;  %v8432_v58 = vld [vmem:[%s9453_s15 + $0x8a0] ss:$16 sps:$4 sm:$0xff]   ;;  %v8435_v59 = vld [vmem:[%s9453_s15 + $0x8a8] ss:$16 sps:$4 sm:$0xff]  }
 0x10c   : > { %5464 = vmatpush1.bf16.msra.mxu0 %v8339_v60  ;;  %6023 = vmatpush1.bf16.msra.mxu1 %v8342_v61  ;;  %v8440_v60 = vld [vmem:[%s9453_s15 + $0x8c4] ss:$16 sps:$4 sm:$0xff]   ;;  %v8443_v61 = vld [vmem:[%s9453_s15 + $0x8cc] ss:$16 sps:$4 sm:$0xff]  }
 0x10d   : > { %5465 = vmatprep.subr.bf16.mxu0 %v8347_v62  ;;  %6024 = vmatprep.subr.bf16.mxu1 %v8350_v63  ;;  %v8438_v62 = vld [vmem:[%s9453_s15 + $0x8c0] ss:$16 sps:$4 sm:$0xff]   ;;  %v8441_v63 = vld [vmem:[%s9453_s15 + $0x8c8] ss:$16 sps:$4 sm:$0xff]  }
 0x110   : > { %5466 = vmatpush1.bf16.msra.mxu0 %v8345_v0  ;;  %6025 = vmatpush1.bf16.msra.mxu1 %v8348_v1  ;;  %v8446_v0 = vld [vmem:[%s9453_s15 + $0x8e4] ss:$16 sps:$4 sm:$0xff]   ;;  %v8449_v1 = vld [vmem:[%s9453_s15 + $0x8ec] ss:$16 sps:$4 sm:$0xff]  }
 0x111   : > { %5467 = vmatprep.subr.bf16.mxu0 %v8353_v2  ;;  %6026 = vmatprep.subr.bf16.mxu1 %v8356_v3  ;;  %v8444_v2 = vld [vmem:[%s9453_s15 + $0x8e0] ss:$16 sps:$4 sm:$0xff]   ;;  %v8447_v3 = vld [vmem:[%s9453_s15 + $0x8e8] ss:$16 sps:$4 sm:$0xff]  }
 0x114   : > { %5468 = vmatpush1.bf16.msra.mxu0 %v8351_v4  ;;  %6027 = vmatpush1.bf16.msra.mxu1 %v8354_v5  ;;  %v8452_v4 = vld [vmem:[%s9453_s15 + $0x904] ss:$16 sps:$4 sm:$0xff]   ;;  %v8455_v5 = vld [vmem:[%s9453_s15 + $0x90c] ss:$16 sps:$4 sm:$0xff]  }
 0x115   : > { %5469 = vmatprep.subr.bf16.mxu0 %v8359_v6  ;;  %6028 = vmatprep.subr.bf16.mxu1 %v8362_v7  ;;  %v8450_v6 = vld [vmem:[%s9453_s15 + $0x900] ss:$16 sps:$4 sm:$0xff]   ;;  %v8453_v7 = vld [vmem:[%s9453_s15 + $0x908] ss:$16 sps:$4 sm:$0xff]  }
 0x118   : > { %5470 = vmatpush1.bf16.msra.mxu0 %v8357_v8  ;;  %6029 = vmatpush1.bf16.msra.mxu1 %v8360_v9  ;;  %v8458_v8 = vld [vmem:[%s9453_s15 + $0x924] ss:$16 sps:$4 sm:$0xff]   ;;  %v8461_v9 = vld [vmem:[%s9453_s15 + $0x92c] ss:$16 sps:$4 sm:$0xff]  }
 0x119   : > { %5471 = vmatprep.subr.bf16.mxu0 %v8365_v10  ;;  %6030 = vmatprep.subr.bf16.mxu1 %v8368_v11  ;;  %v8456_v10 = vld [vmem:[%s9453_s15 + $0x920] ss:$16 sps:$4 sm:$0xff]   ;;  %v8459_v11 = vld [vmem:[%s9453_s15 + $0x928] ss:$16 sps:$4 sm:$0xff]  }
 0x11c   : > { %5472 = vmatpush1.bf16.msra.mxu0 %v8363_v12  ;;  %6031 = vmatpush1.bf16.msra.mxu1 %v8366_v13  ;;  %v8464_v12 = vld [vmem:[%s9453_s15 + $0x944] ss:$16 sps:$4 sm:$0xff]   ;;  %v8467_v13 = vld [vmem:[%s9453_s15 + $0x94c] ss:$16 sps:$4 sm:$0xff]  }
 0x11d   : > { %5473 = vmatprep.subr.bf16.mxu0 %v8371_v14  ;;  %6032 = vmatprep.subr.bf16.mxu1 %v8374_v15  ;;  %v8462_v14 = vld [vmem:[%s9453_s15 + $0x940] ss:$16 sps:$4 sm:$0xff]   ;;  %v8465_v15 = vld [vmem:[%s9453_s15 + $0x948] ss:$16 sps:$4 sm:$0xff]  }
 0x120   : > { %5474 = vmatpush1.bf16.msra.mxu0 %v8369_v16  ;;  %6033 = vmatpush1.bf16.msra.mxu1 %v8372_v17  ;;  %v8470_v16 = vld [vmem:[%s9453_s15 + $0x964] ss:$16 sps:$4 sm:$0xff]   ;;  %v8473_v17 = vld [vmem:[%s9453_s15 + $0x96c] ss:$16 sps:$4 sm:$0xff]  }
 0x121   : > { %5475 = vmatprep.subr.bf16.mxu0 %v8377_v18  ;;  %6034 = vmatprep.subr.bf16.mxu1 %v8380_v19  ;;  %v8468_v18 = vld [vmem:[%s9453_s15 + $0x960] ss:$16 sps:$4 sm:$0xff]   ;;  %v8471_v19 = vld [vmem:[%s9453_s15 + $0x968] ss:$16 sps:$4 sm:$0xff]  }
 0x124   : > { %5476 = vmatpush1.bf16.msra.mxu0 %v8375_v20  ;;  %6035 = vmatpush1.bf16.msra.mxu1 %v8378_v21  ;;  %v8476_v20 = vld [vmem:[%s9453_s15 + $0x984] ss:$16 sps:$4 sm:$0xff]   ;;  %v8479_v21 = vld [vmem:[%s9453_s15 + $0x98c] ss:$16 sps:$4 sm:$0xff]  }
 0x125   : > { %5477 = vmatprep.subr.bf16.mxu0 %v8383_v22  ;;  %6036 = vmatprep.subr.bf16.mxu1 %v8386_v23  ;;  %v8474_v22 = vld [vmem:[%s9453_s15 + $0x980] ss:$16 sps:$4 sm:$0xff]   ;;  %v8477_v23 = vld [vmem:[%s9453_s15 + $0x988] ss:$16 sps:$4 sm:$0xff]  }
 0x128   : > { %5478 = vmatpush1.bf16.msra.mxu0 %v8381_v24  ;;  %6037 = vmatpush1.bf16.msra.mxu1 %v8384_v25  ;;  %v8482_v24 = vld [vmem:[%s9453_s15 + $0x9a4] ss:$16 sps:$4 sm:$0xff]   ;;  %v8485_v25 = vld [vmem:[%s9453_s15 + $0x9ac] ss:$16 sps:$4 sm:$0xff]  }
 0x129   : > { %5479 = vmatprep.subr.bf16.mxu0 %v8389_v26  ;;  %6038 = vmatprep.subr.bf16.mxu1 %v8392_v27  ;;  %v8480_v26 = vld [vmem:[%s9453_s15 + $0x9a0] ss:$16 sps:$4 sm:$0xff]   ;;  %v8483_v27 = vld [vmem:[%s9453_s15 + $0x9a8] ss:$16 sps:$4 sm:$0xff]  }
 0x12c   : > { %5480 = vmatpush1.bf16.msra.mxu0 %v8387_v28  ;;  %6039 = vmatpush1.bf16.msra.mxu1 %v8390_v29  ;;  %v8488_v28 = vld [vmem:[%s9453_s15 + $0x9c4] ss:$16 sps:$4 sm:$0xff]   ;;  %v8491_v29 = vld [vmem:[%s9453_s15 + $0x9cc] ss:$16 sps:$4 sm:$0xff]  }
 0x12d   : > { %5481 = vmatprep.subr.bf16.mxu0 %v8395_v30  ;;  %6040 = vmatprep.subr.bf16.mxu1 %v8398_v31  ;;  %v8486_v30 = vld [vmem:[%s9453_s15 + $0x9c0] ss:$16 sps:$4 sm:$0xff]   ;;  %v8489_v31 = vld [vmem:[%s9453_s15 + $0x9c8] ss:$16 sps:$4 sm:$0xff]  }
 0x130   : > { %5482 = vmatpush1.bf16.msra.mxu0 %v8393_v32  ;;  %6041 = vmatpush1.bf16.msra.mxu1 %v8396_v33  ;;  %v8494_v32 = vld [vmem:[%s9453_s15 + $0x9e4] ss:$16 sps:$4 sm:$0xff]   ;;  %v8497_v33 = vld [vmem:[%s9453_s15 + $0x9ec] ss:$16 sps:$4 sm:$0xff]  }
 0x131   : > { %5494 = vmatprep.subr.bf16.mxu0 %v8404_v34  ;;  %6053 = vmatprep.subr.bf16.mxu1 %v8407_v35  ;;  %v8492_v34 = vld [vmem:[%s9453_s15 + $0x9e0] ss:$16 sps:$4 sm:$0xff]   ;;  %v8495_v35 = vld [vmem:[%s9453_s15 + $0x9e8] ss:$16 sps:$4 sm:$0xff]  }
 0x133   : > { %5484 = vmatmul.mubr.bf16.vlgmr.msra.gmra.mrb[0].mxu0 %v8399_v36  ;;  %6043 = vmatmul.mubr.bf16.vlgmr.msra.gmra.mrb[0].mxu1 %v8399_v36  ;;  %v8498_v36 = vld [vmem:[%s9455_s16 + $0x20] ss:$100 sps:$4 sm:$0xff]  }
 0x134   : > { %5495 = vmatpush1.bf16.msra.mxu0 %v8402_v37  ;;  %6054 = vmatpush1.bf16.msra.mxu1 %v8405_v38  ;;  %v8503_v37 = vld [vmem:[%s9453_s15 + $0xa04] ss:$16 sps:$4 sm:$0xff]   ;;  %v8506_v38 = vld [vmem:[%s9453_s15 + $0xa0c] ss:$16 sps:$4 sm:$0xff]  }
 0x135   : > { %5496 = vmatprep.subr.bf16.mxu0 %v8410_v39  ;;  %6055 = vmatprep.subr.bf16.mxu1 %v8413_v40  ;;  %v8501_v39 = vld [vmem:[%s9453_s15 + $0xa00] ss:$16 sps:$4 sm:$0xff]   ;;  %v8504_v40 = vld [vmem:[%s9453_s15 + $0xa08] ss:$16 sps:$4 sm:$0xff]  }
 0x136   : > { %5526 = vmatprep.mubr.bf16.mxu0 %v8500_v41  ;;  %6085 = vmatprep.mubr.bf16.mxu1 %v8500_v41  ;;  %v8509_v41 = vld [vmem:[%s9453_s15 + $0xa24] ss:$16 sps:$4 sm:$0xff]  }
 0x138   : > { %5497 = vmatpush1.bf16.msra.mxu0 %v8408_v42  ;;  %6056 = vmatpush1.bf16.msra.mxu1 %v8411_v43  ;;  %v8512_v42 = vld [vmem:[%s9453_s15 + $0xa2c] ss:$16 sps:$4 sm:$0xff]  }
 0x139   : > { %5498 = vmatprep.subr.bf16.mxu0 %v8416_v44  ;;  %6057 = vmatprep.subr.bf16.mxu1 %v8419_v45  ;;  %v8599_v43 = vld [vmem:[%s9455_s16 + $0x2c] ss:$100 sps:$4 sm:$0xff]  }
 0x13a   : > { %v8507_v44 = vld [vmem:[%s9453_s15 + $0xa20] ss:$16 sps:$4 sm:$0xff]   ;;  %v8510_v45 = vld [vmem:[%s9453_s15 + $0xa28] ss:$16 sps:$4 sm:$0xff]  }
 0x13c   : > { %5499 = vmatpush1.bf16.msra.mxu0 %v8414_v46  ;;  %6058 = vmatpush1.bf16.msra.mxu1 %v8417_v47  ;;  %v8515_v46 = vld [vmem:[%s9453_s15 + $0xa44] ss:$16 sps:$4 sm:$0xff]   ;;  %v8518_v47 = vld [vmem:[%s9453_s15 + $0xa4c] ss:$16 sps:$4 sm:$0xff]  }
 0x13d   : > { %5500 = vmatprep.subr.bf16.mxu0 %v8422_v48  ;;  %6059 = vmatprep.subr.bf16.mxu1 %v8425_v49  ;;  %v8513_v48 = vld [vmem:[%s9453_s15 + $0xa40] ss:$16 sps:$4 sm:$0xff]   ;;  %v8516_v49 = vld [vmem:[%s9453_s15 + $0xa48] ss:$16 sps:$4 sm:$0xff]  }
 0x140   : > { %5501 = vmatpush1.bf16.msra.mxu0 %v8420_v50  ;;  %6060 = vmatpush1.bf16.msra.mxu1 %v8423_v51  ;;  %v8521_v50 = vld [vmem:[%s9453_s15 + $0xa64] ss:$16 sps:$4 sm:$0xff]   ;;  %v8524_v51 = vld [vmem:[%s9453_s15 + $0xa6c] ss:$16 sps:$4 sm:$0xff]  }
 0x141   : > { %5502 = vmatprep.subr.bf16.mxu0 %v8428_v52  ;;  %6061 = vmatprep.subr.bf16.mxu1 %v8431_v53  ;;  %v8519_v52 = vld [vmem:[%s9453_s15 + $0xa60] ss:$16 sps:$4 sm:$0xff]   ;;  %v8522_v53 = vld [vmem:[%s9453_s15 + $0xa68] ss:$16 sps:$4 sm:$0xff]  }
 0x144   : > { %5503 = vmatpush1.bf16.msra.mxu0 %v8426_v54  ;;  %6062 = vmatpush1.bf16.msra.mxu1 %v8429_v55  ;;  %v8527_v54 = vld [vmem:[%s9453_s15 + $0xa84] ss:$16 sps:$4 sm:$0xff]   ;;  %v8530_v55 = vld [vmem:[%s9453_s15 + $0xa8c] ss:$16 sps:$4 sm:$0xff]  }
 0x145   : > { %5504 = vmatprep.subr.bf16.mxu0 %v8434_v56  ;;  %6063 = vmatprep.subr.bf16.mxu1 %v8437_v57  ;;  %v8525_v56 = vld [vmem:[%s9453_s15 + $0xa80] ss:$16 sps:$4 sm:$0xff]   ;;  %v8528_v57 = vld [vmem:[%s9453_s15 + $0xa88] ss:$16 sps:$4 sm:$0xff]  }
 0x148   : > { %5505 = vmatpush1.bf16.msra.mxu0 %v8432_v58  ;;  %6064 = vmatpush1.bf16.msra.mxu1 %v8435_v59  ;;  %v8533_v58 = vld [vmem:[%s9453_s15 + $0xaa4] ss:$16 sps:$4 sm:$0xff]   ;;  %v8536_v59 = vld [vmem:[%s9453_s15 + $0xaac] ss:$16 sps:$4 sm:$0xff]  }
 0x149   : > { %5506 = vmatprep.subr.bf16.mxu0 %v8440_v60  ;;  %6065 = vmatprep.subr.bf16.mxu1 %v8443_v61  ;;  %v8531_v60 = vld [vmem:[%s9453_s15 + $0xaa0] ss:$16 sps:$4 sm:$0xff]   ;;  %v8534_v61 = vld [vmem:[%s9453_s15 + $0xaa8] ss:$16 sps:$4 sm:$0xff]  }
 0x14c   : > { %5507 = vmatpush1.bf16.msra.mxu0 %v8438_v62  ;;  %6066 = vmatpush1.bf16.msra.mxu1 %v8441_v63  ;;  %v8539_v62 = vld [vmem:[%s9453_s15 + $0xac4] ss:$16 sps:$4 sm:$0xff]   ;;  %v8542_v63 = vld [vmem:[%s9453_s15 + $0xacc] ss:$16 sps:$4 sm:$0xff]  }
 0x14d   : > { %5508 = vmatprep.subr.bf16.mxu0 %v8446_v0  ;;  %6067 = vmatprep.subr.bf16.mxu1 %v8449_v1  ;;  %v8537_v0 = vld [vmem:[%s9453_s15 + $0xac0] ss:$16 sps:$4 sm:$0xff]   ;;  %v8540_v1 = vld [vmem:[%s9453_s15 + $0xac8] ss:$16 sps:$4 sm:$0xff]  }
 0x150   : > { %5509 = vmatpush1.bf16.msra.mxu0 %v8444_v2  ;;  %6068 = vmatpush1.bf16.msra.mxu1 %v8447_v3  ;;  %v8545_v2 = vld [vmem:[%s9453_s15 + $0xae4] ss:$16 sps:$4 sm:$0xff]   ;;  %v8548_v3 = vld [vmem:[%s9453_s15 + $0xaec] ss:$16 sps:$4 sm:$0xff]  }
 0x151   : > { %5510 = vmatprep.subr.bf16.mxu0 %v8452_v4  ;;  %6069 = vmatprep.subr.bf16.mxu1 %v8455_v5  ;;  %v8543_v4 = vld [vmem:[%s9453_s15 + $0xae0] ss:$16 sps:$4 sm:$0xff]   ;;  %v8546_v5 = vld [vmem:[%s9453_s15 + $0xae8] ss:$16 sps:$4 sm:$0xff]  }
 0x154   : > { %5511 = vmatpush1.bf16.msra.mxu0 %v8450_v6  ;;  %6070 = vmatpush1.bf16.msra.mxu1 %v8453_v7  ;;  %v8551_v6 = vld [vmem:[%s9453_s15 + $0xb04] ss:$16 sps:$4 sm:$0xff]   ;;  %v8554_v7 = vld [vmem:[%s9453_s15 + $0xb0c] ss:$16 sps:$4 sm:$0xff]  }
 0x155   : > { %5512 = vmatprep.subr.bf16.mxu0 %v8458_v8  ;;  %6071 = vmatprep.subr.bf16.mxu1 %v8461_v9  ;;  %v8549_v8 = vld [vmem:[%s9453_s15 + $0xb00] ss:$16 sps:$4 sm:$0xff]   ;;  %v8552_v9 = vld [vmem:[%s9453_s15 + $0xb08] ss:$16 sps:$4 sm:$0xff]  }
 0x158   : > { %5513 = vmatpush1.bf16.msra.mxu0 %v8456_v10  ;;  %6072 = vmatpush1.bf16.msra.mxu1 %v8459_v11  ;;  %v8557_v10 = vld [vmem:[%s9453_s15 + $0xb24] ss:$16 sps:$4 sm:$0xff]   ;;  %v8560_v11 = vld [vmem:[%s9453_s15 + $0xb2c] ss:$16 sps:$4 sm:$0xff]  }
 0x159   : > { %5514 = vmatprep.subr.bf16.mxu0 %v8464_v12  ;;  %6073 = vmatprep.subr.bf16.mxu1 %v8467_v13  ;;  %v8555_v12 = vld [vmem:[%s9453_s15 + $0xb20] ss:$16 sps:$4 sm:$0xff]   ;;  %v8558_v13 = vld [vmem:[%s9453_s15 + $0xb28] ss:$16 sps:$4 sm:$0xff]  }
 0x15c   : > { %5515 = vmatpush1.bf16.msra.mxu0 %v8462_v14  ;;  %6074 = vmatpush1.bf16.msra.mxu1 %v8465_v15  ;;  %v8563_v14 = vld [vmem:[%s9453_s15 + $0xb44] ss:$16 sps:$4 sm:$0xff]   ;;  %v8566_v15 = vld [vmem:[%s9453_s15 + $0xb4c] ss:$16 sps:$4 sm:$0xff]  }
 0x15d   : > { %5516 = vmatprep.subr.bf16.mxu0 %v8470_v16  ;;  %6075 = vmatprep.subr.bf16.mxu1 %v8473_v17  ;;  %v8561_v16 = vld [vmem:[%s9453_s15 + $0xb40] ss:$16 sps:$4 sm:$0xff]   ;;  %v8564_v17 = vld [vmem:[%s9453_s15 + $0xb48] ss:$16 sps:$4 sm:$0xff]  }
 0x160   : > { %5517 = vmatpush1.bf16.msra.mxu0 %v8468_v18  ;;  %6076 = vmatpush1.bf16.msra.mxu1 %v8471_v19  ;;  %v8569_v18 = vld [vmem:[%s9453_s15 + $0xb64] ss:$16 sps:$4 sm:$0xff]   ;;  %v8572_v19 = vld [vmem:[%s9453_s15 + $0xb6c] ss:$16 sps:$4 sm:$0xff]  }
 0x161   : > { %5518 = vmatprep.subr.bf16.mxu0 %v8476_v20  ;;  %6077 = vmatprep.subr.bf16.mxu1 %v8479_v21  ;;  %v8567_v20 = vld [vmem:[%s9453_s15 + $0xb60] ss:$16 sps:$4 sm:$0xff]   ;;  %v8570_v21 = vld [vmem:[%s9453_s15 + $0xb68] ss:$16 sps:$4 sm:$0xff]  }
 0x164   : > { %5519 = vmatpush1.bf16.msra.mxu0 %v8474_v22  ;;  %6078 = vmatpush1.bf16.msra.mxu1 %v8477_v23  ;;  %v8575_v22 = vld [vmem:[%s9453_s15 + $0xb84] ss:$16 sps:$4 sm:$0xff]   ;;  %v8578_v23 = vld [vmem:[%s9453_s15 + $0xb8c] ss:$16 sps:$4 sm:$0xff]  }
 0x165   : > { %5520 = vmatprep.subr.bf16.mxu0 %v8482_v24  ;;  %6079 = vmatprep.subr.bf16.mxu1 %v8485_v25  ;;  %v8573_v24 = vld [vmem:[%s9453_s15 + $0xb80] ss:$16 sps:$4 sm:$0xff]   ;;  %v8576_v25 = vld [vmem:[%s9453_s15 + $0xb88] ss:$16 sps:$4 sm:$0xff]  }
 0x168   : > { %5521 = vmatpush1.bf16.msra.mxu0 %v8480_v26  ;;  %6080 = vmatpush1.bf16.msra.mxu1 %v8483_v27  ;;  %v8581_v26 = vld [vmem:[%s9453_s15 + $0xba4] ss:$16 sps:$4 sm:$0xff]   ;;  %v8584_v27 = vld [vmem:[%s9453_s15 + $0xbac] ss:$16 sps:$4 sm:$0xff]  }
 0x169   : > { %5522 = vmatprep.subr.bf16.mxu0 %v8488_v28  ;;  %6081 = vmatprep.subr.bf16.mxu1 %v8491_v29  ;;  %v8579_v28 = vld [vmem:[%s9453_s15 + $0xba0] ss:$16 sps:$4 sm:$0xff]   ;;  %v8582_v29 = vld [vmem:[%s9453_s15 + $0xba8] ss:$16 sps:$4 sm:$0xff]  }
 0x16c   : > { %5523 = vmatpush1.bf16.msra.mxu0 %v8486_v30  ;;  %6082 = vmatpush1.bf16.msra.mxu1 %v8489_v31  ;;  %v8587_v30 = vld [vmem:[%s9453_s15 + $0xbc4] ss:$16 sps:$4 sm:$0xff]   ;;  %v8590_v31 = vld [vmem:[%s9453_s15 + $0xbcc] ss:$16 sps:$4 sm:$0xff]  }
 0x16d   : > { %5524 = vmatprep.subr.bf16.mxu0 %v8494_v32  ;;  %6083 = vmatprep.subr.bf16.mxu1 %v8497_v33  ;;  %v8585_v32 = vld [vmem:[%s9453_s15 + $0xbc0] ss:$16 sps:$4 sm:$0xff]   ;;  %v8588_v33 = vld [vmem:[%s9453_s15 + $0xbc8] ss:$16 sps:$4 sm:$0xff]  }
 0x170   : > { %5525 = vmatpush1.bf16.msra.mxu0 %v8492_v34  ;;  %6084 = vmatpush1.bf16.msra.mxu1 %v8495_v35  ;;  %v8593_v34 = vld [vmem:[%s9453_s15 + $0xbe4] ss:$16 sps:$4 sm:$0xff]   ;;  %v8596_v35 = vld [vmem:[%s9453_s15 + $0xbec] ss:$16 sps:$4 sm:$0xff]  }
 0x171   : > { %5537 = vmatprep.subr.bf16.mxu0 %v8503_v37  ;;  %6096 = vmatprep.subr.bf16.mxu1 %v8506_v38  ;;  %v8594_v37 = vld [vmem:[%s9453_s15 + $0xbe8] ss:$16 sps:$4 sm:$0xff]  }
 0x172   : > { %v8597_v38 = vld [vmem:[%s9455_s16 + $0x28] ss:$100 sps:$4 sm:$0xff]  }
 0x173   : > { %5527 = vmatmul.mubr.bf16.vlgmr.msra.gmra.mrb[0].mxu0 %v8498_v36  ;;  %6086 = vmatmul.mubr.bf16.vlgmr.msra.gmra.mrb[0].mxu1 %v8498_v36  ;;  %v8591_v36 = vld [vmem:[%s9453_s15 + $0xbe0] ss:$16 sps:$4 sm:$0xff]  }
 0x174   : > { %5538 = vmatpush1.bf16.msra.mxu0 %v8501_v39  ;;  %6097 = vmatpush1.bf16.msra.mxu1 %v8504_v40  ;;  %v8602_v39 = vld [vmem:[%s9453_s15 + $0xc04] ss:$16 sps:$4 sm:$0xff]   ;;  %v8605_v40 = vld [vmem:[%s9453_s15 + $0xc0c] ss:$16 sps:$4 sm:$0xff]  }
 0x175   : > { %5539 = vmatprep.subr.bf16.mxu0 %v8509_v41  ;;  %6098 = vmatprep.subr.bf16.mxu1 %v8512_v42  ;;  %v8600_v41 = vld [vmem:[%s9453_s15 + $0xc00] ss:$16 sps:$4 sm:$0xff]   ;;  %v8603_v42 = vld [vmem:[%s9453_s15 + $0xc08] ss:$16 sps:$4 sm:$0xff]  }
 0x176   : > { %5569 = vmatprep.mubr.bf16.mxu0 %v8599_v43  ;;  %6128 = vmatprep.mubr.bf16.mxu1 %v8599_v43  ;;  %v8608_v43 = vld [vmem:[%s9453_s15 + $0xc24] ss:$16 sps:$4 sm:$0xff]  }
 0x178   : > { %5540 = vmatpush1.bf16.msra.mxu0 %v8507_v44  ;;  %6099 = vmatpush1.bf16.msra.mxu1 %v8510_v45  ;;  %v8611_v44 = vld [vmem:[%s9453_s15 + $0xc2c] ss:$16 sps:$4 sm:$0xff]  }
 0x179   : > { %5541 = vmatprep.subr.bf16.mxu0 %v8515_v46  ;;  %6100 = vmatprep.subr.bf16.mxu1 %v8518_v47  ;;  %v8698_v45 = vld [vmem:[%s9455_s16 + $0x34] ss:$100 sps:$4 sm:$0xff]  }
 0x17a   : > { %v8606_v46 = vld [vmem:[%s9453_s15 + $0xc20] ss:$16 sps:$4 sm:$0xff]   ;;  %v8609_v47 = vld [vmem:[%s9453_s15 + $0xc28] ss:$16 sps:$4 sm:$0xff]  }
 0x17c   : > { %5542 = vmatpush1.bf16.msra.mxu0 %v8513_v48  ;;  %6101 = vmatpush1.bf16.msra.mxu1 %v8516_v49  ;;  %v8614_v48 = vld [vmem:[%s9453_s15 + $0xc44] ss:$16 sps:$4 sm:$0xff]   ;;  %v8617_v49 = vld [vmem:[%s9453_s15 + $0xc4c] ss:$16 sps:$4 sm:$0xff]  }
 0x17d   : > { %5543 = vmatprep.subr.bf16.mxu0 %v8521_v50  ;;  %6102 = vmatprep.subr.bf16.mxu1 %v8524_v51  ;;  %v8612_v50 = vld [vmem:[%s9453_s15 + $0xc40] ss:$16 sps:$4 sm:$0xff]   ;;  %v8615_v51 = vld [vmem:[%s9453_s15 + $0xc48] ss:$16 sps:$4 sm:$0xff]  }
 0x180   : > { %5544 = vmatpush1.bf16.msra.mxu0 %v8519_v52  ;;  %6103 = vmatpush1.bf16.msra.mxu1 %v8522_v53  ;;  %v8620_v52 = vld [vmem:[%s9453_s15 + $0xc64] ss:$16 sps:$4 sm:$0xff]   ;;  %v8623_v53 = vld [vmem:[%s9453_s15 + $0xc6c] ss:$16 sps:$4 sm:$0xff]  }
 0x181   : > { %5545 = vmatprep.subr.bf16.mxu0 %v8527_v54  ;;  %6104 = vmatprep.subr.bf16.mxu1 %v8530_v55  ;;  %v8618_v54 = vld [vmem:[%s9453_s15 + $0xc60] ss:$16 sps:$4 sm:$0xff]   ;;  %v8621_v55 = vld [vmem:[%s9453_s15 + $0xc68] ss:$16 sps:$4 sm:$0xff]  }
 0x184   : > { %5546 = vmatpush1.bf16.msra.mxu0 %v8525_v56  ;;  %6105 = vmatpush1.bf16.msra.mxu1 %v8528_v57  ;;  %v8626_v56 = vld [vmem:[%s9453_s15 + $0xc84] ss:$16 sps:$4 sm:$0xff]   ;;  %v8629_v57 = vld [vmem:[%s9453_s15 + $0xc8c] ss:$16 sps:$4 sm:$0xff]  }
 0x185   : > { %5547 = vmatprep.subr.bf16.mxu0 %v8533_v58  ;;  %6106 = vmatprep.subr.bf16.mxu1 %v8536_v59  ;;  %v8624_v58 = vld [vmem:[%s9453_s15 + $0xc80] ss:$16 sps:$4 sm:$0xff]   ;;  %v8627_v59 = vld [vmem:[%s9453_s15 + $0xc88] ss:$16 sps:$4 sm:$0xff]  }
 0x188   : > { %5548 = vmatpush1.bf16.msra.mxu0 %v8531_v60  ;;  %6107 = vmatpush1.bf16.msra.mxu1 %v8534_v61  ;;  %v8632_v60 = vld [vmem:[%s9453_s15 + $0xca4] ss:$16 sps:$4 sm:$0xff]   ;;  %v8635_v61 = vld [vmem:[%s9453_s15 + $0xcac] ss:$16 sps:$4 sm:$0xff]  }
 0x189   : > { %5549 = vmatprep.subr.bf16.mxu0 %v8539_v62  ;;  %6108 = vmatprep.subr.bf16.mxu1 %v8542_v63  ;;  %v8630_v62 = vld [vmem:[%s9453_s15 + $0xca0] ss:$16 sps:$4 sm:$0xff]   ;;  %v8633_v63 = vld [vmem:[%s9453_s15 + $0xca8] ss:$16 sps:$4 sm:$0xff]  }
 0x18c   : > { %5550 = vmatpush1.bf16.msra.mxu0 %v8537_v0  ;;  %6109 = vmatpush1.bf16.msra.mxu1 %v8540_v1  ;;  %v8638_v0 = vld [vmem:[%s9453_s15 + $0xcc4] ss:$16 sps:$4 sm:$0xff]   ;;  %v8641_v1 = vld [vmem:[%s9453_s15 + $0xccc] ss:$16 sps:$4 sm:$0xff]  }
 0x18d   : > { %5551 = vmatprep.subr.bf16.mxu0 %v8545_v2  ;;  %6110 = vmatprep.subr.bf16.mxu1 %v8548_v3  ;;  %v8636_v2 = vld [vmem:[%s9453_s15 + $0xcc0] ss:$16 sps:$4 sm:$0xff]   ;;  %v8639_v3 = vld [vmem:[%s9453_s15 + $0xcc8] ss:$16 sps:$4 sm:$0xff]  }
 0x190   : > { %5552 = vmatpush1.bf16.msra.mxu0 %v8543_v4  ;;  %6111 = vmatpush1.bf16.msra.mxu1 %v8546_v5  ;;  %v8644_v4 = vld [vmem:[%s9453_s15 + $0xce4] ss:$16 sps:$4 sm:$0xff]   ;;  %v8647_v5 = vld [vmem:[%s9453_s15 + $0xcec] ss:$16 sps:$4 sm:$0xff]  }
 0x191   : > { %5553 = vmatprep.subr.bf16.mxu0 %v8551_v6  ;;  %6112 = vmatprep.subr.bf16.mxu1 %v8554_v7  ;;  %v8642_v6 = vld [vmem:[%s9453_s15 + $0xce0] ss:$16 sps:$4 sm:$0xff]   ;;  %v8645_v7 = vld [vmem:[%s9453_s15 + $0xce8] ss:$16 sps:$4 sm:$0xff]  }
 0x194   : > { %5554 = vmatpush1.bf16.msra.mxu0 %v8549_v8  ;;  %6113 = vmatpush1.bf16.msra.mxu1 %v8552_v9  ;;  %v8650_v8 = vld [vmem:[%s9453_s15 + $0xd04] ss:$16 sps:$4 sm:$0xff]   ;;  %v8653_v9 = vld [vmem:[%s9453_s15 + $0xd0c] ss:$16 sps:$4 sm:$0xff]  }
 0x195   : > { %5555 = vmatprep.subr.bf16.mxu0 %v8557_v10  ;;  %6114 = vmatprep.subr.bf16.mxu1 %v8560_v11  ;;  %v8648_v10 = vld [vmem:[%s9453_s15 + $0xd00] ss:$16 sps:$4 sm:$0xff]   ;;  %v8651_v11 = vld [vmem:[%s9453_s15 + $0xd08] ss:$16 sps:$4 sm:$0xff]  }
 0x198   : > { %5556 = vmatpush1.bf16.msra.mxu0 %v8555_v12  ;;  %6115 = vmatpush1.bf16.msra.mxu1 %v8558_v13  ;;  %v8656_v12 = vld [vmem:[%s9453_s15 + $0xd24] ss:$16 sps:$4 sm:$0xff]   ;;  %v8659_v13 = vld [vmem:[%s9453_s15 + $0xd2c] ss:$16 sps:$4 sm:$0xff]  }
 0x199   : > { %5557 = vmatprep.subr.bf16.mxu0 %v8563_v14  ;;  %6116 = vmatprep.subr.bf16.mxu1 %v8566_v15  ;;  %v8654_v14 = vld [vmem:[%s9453_s15 + $0xd20] ss:$16 sps:$4 sm:$0xff]   ;;  %v8657_v15 = vld [vmem:[%s9453_s15 + $0xd28] ss:$16 sps:$4 sm:$0xff]  }
 0x19c   : > { %5558 = vmatpush1.bf16.msra.mxu0 %v8561_v16  ;;  %6117 = vmatpush1.bf16.msra.mxu1 %v8564_v17  ;;  %v8662_v16 = vld [vmem:[%s9453_s15 + $0xd44] ss:$16 sps:$4 sm:$0xff]   ;;  %v8665_v17 = vld [vmem:[%s9453_s15 + $0xd4c] ss:$16 sps:$4 sm:$0xff]  }
 0x19d   : > { %5559 = vmatprep.subr.bf16.mxu0 %v8569_v18  ;;  %6118 = vmatprep.subr.bf16.mxu1 %v8572_v19  ;;  %v8660_v18 = vld [vmem:[%s9453_s15 + $0xd40] ss:$16 sps:$4 sm:$0xff]   ;;  %v8663_v19 = vld [vmem:[%s9453_s15 + $0xd48] ss:$16 sps:$4 sm:$0xff]  }
 0x1a0   : > { %5560 = vmatpush1.bf16.msra.mxu0 %v8567_v20  ;;  %6119 = vmatpush1.bf16.msra.mxu1 %v8570_v21  ;;  %v8668_v20 = vld [vmem:[%s9453_s15 + $0xd64] ss:$16 sps:$4 sm:$0xff]   ;;  %v8671_v21 = vld [vmem:[%s9453_s15 + $0xd6c] ss:$16 sps:$4 sm:$0xff]  }
 0x1a1   : > { %5561 = vmatprep.subr.bf16.mxu0 %v8575_v22  ;;  %6120 = vmatprep.subr.bf16.mxu1 %v8578_v23  ;;  %v8666_v22 = vld [vmem:[%s9453_s15 + $0xd60] ss:$16 sps:$4 sm:$0xff]   ;;  %v8669_v23 = vld [vmem:[%s9453_s15 + $0xd68] ss:$16 sps:$4 sm:$0xff]  }
 0x1a4   : > { %5562 = vmatpush1.bf16.msra.mxu0 %v8573_v24  ;;  %6121 = vmatpush1.bf16.msra.mxu1 %v8576_v25  ;;  %v8674_v24 = vld [vmem:[%s9453_s15 + $0xd84] ss:$16 sps:$4 sm:$0xff]   ;;  %v8677_v25 = vld [vmem:[%s9453_s15 + $0xd8c] ss:$16 sps:$4 sm:$0xff]  }
 0x1a5   : > { %5563 = vmatprep.subr.bf16.mxu0 %v8581_v26  ;;  %6122 = vmatprep.subr.bf16.mxu1 %v8584_v27  ;;  %v8672_v26 = vld [vmem:[%s9453_s15 + $0xd80] ss:$16 sps:$4 sm:$0xff]   ;;  %v8675_v27 = vld [vmem:[%s9453_s15 + $0xd88] ss:$16 sps:$4 sm:$0xff]  }
 0x1a8   : > { %5564 = vmatpush1.bf16.msra.mxu0 %v8579_v28  ;;  %6123 = vmatpush1.bf16.msra.mxu1 %v8582_v29  ;;  %v8680_v28 = vld [vmem:[%s9453_s15 + $0xda4] ss:$16 sps:$4 sm:$0xff]   ;;  %v8683_v29 = vld [vmem:[%s9453_s15 + $0xdac] ss:$16 sps:$4 sm:$0xff]  }
 0x1a9   : > { %5565 = vmatprep.subr.bf16.mxu0 %v8587_v30  ;;  %6124 = vmatprep.subr.bf16.mxu1 %v8590_v31  ;;  %v8678_v30 = vld [vmem:[%s9453_s15 + $0xda0] ss:$16 sps:$4 sm:$0xff]   ;;  %v8681_v31 = vld [vmem:[%s9453_s15 + $0xda8] ss:$16 sps:$4 sm:$0xff]  }
 0x1ac   : > { %5566 = vmatpush1.bf16.msra.mxu0 %v8585_v32  ;;  %6125 = vmatpush1.bf16.msra.mxu1 %v8588_v33  ;;  %v8686_v32 = vld [vmem:[%s9453_s15 + $0xdc4] ss:$16 sps:$4 sm:$0xff]   ;;  %v8689_v33 = vld [vmem:[%s9453_s15 + $0xdcc] ss:$16 sps:$4 sm:$0xff]  }
 0x1ad   : > { %5567 = vmatprep.subr.bf16.mxu0 %v8593_v34  ;;  %6126 = vmatprep.subr.bf16.mxu1 %v8596_v35  ;;  %v8684_v34 = vld [vmem:[%s9453_s15 + $0xdc0] ss:$16 sps:$4 sm:$0xff]   ;;  %v8687_v35 = vld [vmem:[%s9453_s15 + $0xdc8] ss:$16 sps:$4 sm:$0xff]  }
 0x1b0   : > { %5568 = vmatpush1.bf16.msra.mxu0 %v8591_v36  ;;  %6127 = vmatpush1.bf16.msra.mxu1 %v8594_v37  ;;  %v8692_v36 = vld [vmem:[%s9453_s15 + $0xde4] ss:$16 sps:$4 sm:$0xff]   ;;  %v8695_v37 = vld [vmem:[%s9453_s15 + $0xdec] ss:$16 sps:$4 sm:$0xff]  }
 0x1b1   : > { %5580 = vmatprep.subr.bf16.mxu0 %v8602_v39  ;;  %6139 = vmatprep.subr.bf16.mxu1 %v8605_v40  ;;  %v8693_v39 = vld [vmem:[%s9453_s15 + $0xde8] ss:$16 sps:$4 sm:$0xff]  }
 0x1b2   : > { %v8696_v40 = vld [vmem:[%s9455_s16 + $0x30] ss:$100 sps:$4 sm:$0xff]  }
 0x1b3   : > { %5570 = vmatmul.mubr.bf16.vlgmr.msra.gmra.mrb[0].mxu0 %v8597_v38  ;;  %6129 = vmatmul.mubr.bf16.vlgmr.msra.gmra.mrb[0].mxu1 %v8597_v38  ;;  %v8690_v38 = vld [vmem:[%s9453_s15 + $0xde0] ss:$16 sps:$4 sm:$0xff]  }
 0x1b4   : > { %5581 = vmatpush1.bf16.msra.mxu0 %v8600_v41  ;;  %6140 = vmatpush1.bf16.msra.mxu1 %v8603_v42  ;;  %v8701_v41 = vld [vmem:[%s9453_s15 + $0xe04] ss:$16 sps:$4 sm:$0xff]   ;;  %v8704_v42 = vld [vmem:[%s9453_s15 + $0xe0c] ss:$16 sps:$4 sm:$0xff]  }
 0x1b5   : > { %5582 = vmatprep.subr.bf16.mxu0 %v8608_v43  ;;  %6141 = vmatprep.subr.bf16.mxu1 %v8611_v44  ;;  %v8699_v43 = vld [vmem:[%s9453_s15 + $0xe00] ss:$16 sps:$4 sm:$0xff]   ;;  %v8702_v44 = vld [vmem:[%s9453_s15 + $0xe08] ss:$16 sps:$4 sm:$0xff]  }
 0x1b6   : > { %5612 = vmatprep.mubr.bf16.mxu0 %v8698_v45  ;;  %6171 = vmatprep.mubr.bf16.mxu1 %v8698_v45  ;;  %v8707_v45 = vld [vmem:[%s9453_s15 + $0xe24] ss:$16 sps:$4 sm:$0xff]  }
 0x1b8   : > { %5583 = vmatpush1.bf16.msra.mxu0 %v8606_v46  ;;  %6142 = vmatpush1.bf16.msra.mxu1 %v8609_v47  ;;  %v8710_v46 = vld [vmem:[%s9453_s15 + $0xe2c] ss:$16 sps:$4 sm:$0xff]  }
 0x1b9   : > { %5584 = vmatprep.subr.bf16.mxu0 %v8614_v48  ;;  %6143 = vmatprep.subr.bf16.mxu1 %v8617_v49  ;;  %v8797_v47 = vld [vmem:[%s9455_s16 + $0x3c] ss:$100 sps:$4 sm:$0xff]  }
 0x1ba   : > { %v8705_v48 = vld [vmem:[%s9453_s15 + $0xe20] ss:$16 sps:$4 sm:$0xff]   ;;  %v8708_v49 = vld [vmem:[%s9453_s15 + $0xe28] ss:$16 sps:$4 sm:$0xff]  }
 0x1bc   : > { %5585 = vmatpush1.bf16.msra.mxu0 %v8612_v50  ;;  %6144 = vmatpush1.bf16.msra.mxu1 %v8615_v51  ;;  %v8713_v50 = vld [vmem:[%s9453_s15 + $0xe44] ss:$16 sps:$4 sm:$0xff]   ;;  %v8716_v51 = vld [vmem:[%s9453_s15 + $0xe4c] ss:$16 sps:$4 sm:$0xff]  }
 0x1bd   : > { %5586 = vmatprep.subr.bf16.mxu0 %v8620_v52  ;;  %6145 = vmatprep.subr.bf16.mxu1 %v8623_v53  ;;  %v8711_v52 = vld [vmem:[%s9453_s15 + $0xe40] ss:$16 sps:$4 sm:$0xff]   ;;  %v8714_v53 = vld [vmem:[%s9453_s15 + $0xe48] ss:$16 sps:$4 sm:$0xff]  }
 0x1c0   : > { %5587 = vmatpush1.bf16.msra.mxu0 %v8618_v54  ;;  %6146 = vmatpush1.bf16.msra.mxu1 %v8621_v55  ;;  %v8719_v54 = vld [vmem:[%s9453_s15 + $0xe64] ss:$16 sps:$4 sm:$0xff]   ;;  %v8722_v55 = vld [vmem:[%s9453_s15 + $0xe6c] ss:$16 sps:$4 sm:$0xff]  }
 0x1c1   : > { %5588 = vmatprep.subr.bf16.mxu0 %v8626_v56  ;;  %6147 = vmatprep.subr.bf16.mxu1 %v8629_v57  ;;  %v8717_v56 = vld [vmem:[%s9453_s15 + $0xe60] ss:$16 sps:$4 sm:$0xff]   ;;  %v8720_v57 = vld [vmem:[%s9453_s15 + $0xe68] ss:$16 sps:$4 sm:$0xff]  }
 0x1c4   : > { %5589 = vmatpush1.bf16.msra.mxu0 %v8624_v58  ;;  %6148 = vmatpush1.bf16.msra.mxu1 %v8627_v59  ;;  %v8725_v58 = vld [vmem:[%s9453_s15 + $0xe84] ss:$16 sps:$4 sm:$0xff]   ;;  %v8728_v59 = vld [vmem:[%s9453_s15 + $0xe8c] ss:$16 sps:$4 sm:$0xff]  }
 0x1c5   : > { %5590 = vmatprep.subr.bf16.mxu0 %v8632_v60  ;;  %6149 = vmatprep.subr.bf16.mxu1 %v8635_v61  ;;  %v8723_v60 = vld [vmem:[%s9453_s15 + $0xe80] ss:$16 sps:$4 sm:$0xff]   ;;  %v8726_v61 = vld [vmem:[%s9453_s15 + $0xe88] ss:$16 sps:$4 sm:$0xff]  }
 0x1c8   : > { %5591 = vmatpush1.bf16.msra.mxu0 %v8630_v62  ;;  %6150 = vmatpush1.bf16.msra.mxu1 %v8633_v63  ;;  %v8731_v62 = vld [vmem:[%s9453_s15 + $0xea4] ss:$16 sps:$4 sm:$0xff]   ;;  %v8734_v63 = vld [vmem:[%s9453_s15 + $0xeac] ss:$16 sps:$4 sm:$0xff]  }
 0x1c9   : > { %5592 = vmatprep.subr.bf16.mxu0 %v8638_v0  ;;  %6151 = vmatprep.subr.bf16.mxu1 %v8641_v1  ;;  %v8729_v0 = vld [vmem:[%s9453_s15 + $0xea0] ss:$16 sps:$4 sm:$0xff]   ;;  %v8732_v1 = vld [vmem:[%s9453_s15 + $0xea8] ss:$16 sps:$4 sm:$0xff]  }
 0x1cc   : > { %5593 = vmatpush1.bf16.msra.mxu0 %v8636_v2  ;;  %6152 = vmatpush1.bf16.msra.mxu1 %v8639_v3  ;;  %v8737_v2 = vld [vmem:[%s9453_s15 + $0xec4] ss:$16 sps:$4 sm:$0xff]   ;;  %v8740_v3 = vld [vmem:[%s9453_s15 + $0xecc] ss:$16 sps:$4 sm:$0xff]  }
 0x1cd   : > { %5594 = vmatprep.subr.bf16.mxu0 %v8644_v4  ;;  %6153 = vmatprep.subr.bf16.mxu1 %v8647_v5  ;;  %v8735_v4 = vld [vmem:[%s9453_s15 + $0xec0] ss:$16 sps:$4 sm:$0xff]   ;;  %v8738_v5 = vld [vmem:[%s9453_s15 + $0xec8] ss:$16 sps:$4 sm:$0xff]  }
 0x1d0   : > { %5595 = vmatpush1.bf16.msra.mxu0 %v8642_v6  ;;  %6154 = vmatpush1.bf16.msra.mxu1 %v8645_v7  ;;  %v8743_v6 = vld [vmem:[%s9453_s15 + $0xee4] ss:$16 sps:$4 sm:$0xff]   ;;  %v8746_v7 = vld [vmem:[%s9453_s15 + $0xeec] ss:$16 sps:$4 sm:$0xff]  }
 0x1d1   : > { %5596 = vmatprep.subr.bf16.mxu0 %v8650_v8  ;;  %6155 = vmatprep.subr.bf16.mxu1 %v8653_v9  ;;  %v8741_v8 = vld [vmem:[%s9453_s15 + $0xee0] ss:$16 sps:$4 sm:$0xff]   ;;  %v8744_v9 = vld [vmem:[%s9453_s15 + $0xee8] ss:$16 sps:$4 sm:$0xff]  }
 0x1d4   : > { %5597 = vmatpush1.bf16.msra.mxu0 %v8648_v10  ;;  %6156 = vmatpush1.bf16.msra.mxu1 %v8651_v11  ;;  %v8749_v10 = vld [vmem:[%s9453_s15 + $0xf04] ss:$16 sps:$4 sm:$0xff]   ;;  %v8752_v11 = vld [vmem:[%s9453_s15 + $0xf0c] ss:$16 sps:$4 sm:$0xff]  }
 0x1d5   : > { %5598 = vmatprep.subr.bf16.mxu0 %v8656_v12  ;;  %6157 = vmatprep.subr.bf16.mxu1 %v8659_v13  ;;  %v8747_v12 = vld [vmem:[%s9453_s15 + $0xf00] ss:$16 sps:$4 sm:$0xff]   ;;  %v8750_v13 = vld [vmem:[%s9453_s15 + $0xf08] ss:$16 sps:$4 sm:$0xff]  }
 0x1d8   : > { %5599 = vmatpush1.bf16.msra.mxu0 %v8654_v14  ;;  %6158 = vmatpush1.bf16.msra.mxu1 %v8657_v15  ;;  %v8755_v14 = vld [vmem:[%s9453_s15 + $0xf24] ss:$16 sps:$4 sm:$0xff]   ;;  %v8758_v15 = vld [vmem:[%s9453_s15 + $0xf2c] ss:$16 sps:$4 sm:$0xff]  }
 0x1d9   : > { %5600 = vmatprep.subr.bf16.mxu0 %v8662_v16  ;;  %6159 = vmatprep.subr.bf16.mxu1 %v8665_v17  ;;  %v8753_v16 = vld [vmem:[%s9453_s15 + $0xf20] ss:$16 sps:$4 sm:$0xff]   ;;  %v8756_v17 = vld [vmem:[%s9453_s15 + $0xf28] ss:$16 sps:$4 sm:$0xff]  }
 0x1dc   : > { %5601 = vmatpush1.bf16.msra.mxu0 %v8660_v18  ;;  %6160 = vmatpush1.bf16.msra.mxu1 %v8663_v19  ;;  %v8761_v18 = vld [vmem:[%s9453_s15 + $0xf44] ss:$16 sps:$4 sm:$0xff]   ;;  %v8764_v19 = vld [vmem:[%s9453_s15 + $0xf4c] ss:$16 sps:$4 sm:$0xff]  }
 0x1dd   : > { %5602 = vmatprep.subr.bf16.mxu0 %v8668_v20  ;;  %6161 = vmatprep.subr.bf16.mxu1 %v8671_v21  ;;  %v8759_v20 = vld [vmem:[%s9453_s15 + $0xf40] ss:$16 sps:$4 sm:$0xff]   ;;  %v8762_v21 = vld [vmem:[%s9453_s15 + $0xf48] ss:$16 sps:$4 sm:$0xff]  }
 0x1e0   : > { %5603 = vmatpush1.bf16.msra.mxu0 %v8666_v22  ;;  %6162 = vmatpush1.bf16.msra.mxu1 %v8669_v23  ;;  %v8767_v22 = vld [vmem:[%s9453_s15 + $0xf64] ss:$16 sps:$4 sm:$0xff]   ;;  %v8770_v23 = vld [vmem:[%s9453_s15 + $0xf6c] ss:$16 sps:$4 sm:$0xff]  }
 0x1e1   : > { %5604 = vmatprep.subr.bf16.mxu0 %v8674_v24  ;;  %6163 = vmatprep.subr.bf16.mxu1 %v8677_v25  ;;  %v8765_v24 = vld [vmem:[%s9453_s15 + $0xf60] ss:$16 sps:$4 sm:$0xff]   ;;  %v8768_v25 = vld [vmem:[%s9453_s15 + $0xf68] ss:$16 sps:$4 sm:$0xff]  }
 0x1e4   : > { %5605 = vmatpush1.bf16.msra.mxu0 %v8672_v26  ;;  %6164 = vmatpush1.bf16.msra.mxu1 %v8675_v27  ;;  %v8773_v26 = vld [vmem:[%s9453_s15 + $0xf84] ss:$16 sps:$4 sm:$0xff]   ;;  %v8776_v27 = vld [vmem:[%s9453_s15 + $0xf8c] ss:$16 sps:$4 sm:$0xff]  }
 0x1e5   : > { %5606 = vmatprep.subr.bf16.mxu0 %v8680_v28  ;;  %6165 = vmatprep.subr.bf16.mxu1 %v8683_v29  ;;  %v8771_v28 = vld [vmem:[%s9453_s15 + $0xf80] ss:$16 sps:$4 sm:$0xff]   ;;  %v8774_v29 = vld [vmem:[%s9453_s15 + $0xf88] ss:$16 sps:$4 sm:$0xff]  }
 0x1e8   : > { %5607 = vmatpush1.bf16.msra.mxu0 %v8678_v30  ;;  %6166 = vmatpush1.bf16.msra.mxu1 %v8681_v31  ;;  %v8779_v30 = vld [vmem:[%s9453_s15 + $0xfa4] ss:$16 sps:$4 sm:$0xff]   ;;  %v8782_v31 = vld [vmem:[%s9453_s15 + $0xfac] ss:$16 sps:$4 sm:$0xff]  }
 0x1e9   : > { %5608 = vmatprep.subr.bf16.mxu0 %v8686_v32  ;;  %6167 = vmatprep.subr.bf16.mxu1 %v8689_v33  ;;  %v8777_v32 = vld [vmem:[%s9453_s15 + $0xfa0] ss:$16 sps:$4 sm:$0xff]   ;;  %v8780_v33 = vld [vmem:[%s9453_s15 + $0xfa8] ss:$16 sps:$4 sm:$0xff]  }
 0x1ec   : > { %5609 = vmatpush1.bf16.msra.mxu0 %v8684_v34  ;;  %6168 = vmatpush1.bf16.msra.mxu1 %v8687_v35  ;;  %v8785_v34 = vld [vmem:[%s9453_s15 + $0xfc4] ss:$16 sps:$4 sm:$0xff]   ;;  %v8788_v35 = vld [vmem:[%s9453_s15 + $0xfcc] ss:$16 sps:$4 sm:$0xff]  }
 0x1ed   : > { %5610 = vmatprep.subr.bf16.mxu0 %v8692_v36  ;;  %6169 = vmatprep.subr.bf16.mxu1 %v8695_v37  ;;  %v8783_v36 = vld [vmem:[%s9453_s15 + $0xfc0] ss:$16 sps:$4 sm:$0xff]   ;;  %v8786_v37 = vld [vmem:[%s9453_s15 + $0xfc8] ss:$16 sps:$4 sm:$0xff]  }
 0x1f0   : > { %5611 = vmatpush1.bf16.msra.mxu0 %v8690_v38  ;;  %6170 = vmatpush1.bf16.msra.mxu1 %v8693_v39  ;;  %v8791_v38 = vld [vmem:[%s9453_s15 + $0xfe4] ss:$16 sps:$4 sm:$0xff]   ;;  %v8794_v39 = vld [vmem:[%s9453_s15 + $0xfec] ss:$16 sps:$4 sm:$0xff]  }
 0x1f1   : > { %5623 = vmatprep.subr.bf16.mxu0 %v8701_v41  ;;  %6182 = vmatprep.subr.bf16.mxu1 %v8704_v42  ;;  %v8792_v41 = vld [vmem:[%s9453_s15 + $0xfe8] ss:$16 sps:$4 sm:$0xff]   ;;  %v8800_v42 = vld [vmem:[%s9453_s15 + $0x1004] ss:$16 sps:$4 sm:$0xff]  }
 0x1f3   : > { %5613 = vmatmul.mubr.bf16.vlgmr.msra.gmra.mrb[0].mxu0 %v8696_v40  ;;  %6172 = vmatmul.mubr.bf16.vlgmr.msra.gmra.mrb[0].mxu1 %v8696_v40  ;;  %v8789_v40 = vld [vmem:[%s9453_s15 + $0xfe0] ss:$16 sps:$4 sm:$0xff]  }
 0x1f4   : > { %5624 = vmatpush1.bf16.msra.mxu0 %v8699_v43  ;;  %6183 = vmatpush1.bf16.msra.mxu1 %v8702_v44  ;;  %v8803_v43 = vld [vmem:[%s9453_s15 + $0x100c] ss:$16 sps:$4 sm:$0xff]  }
 0x1f5   : > { %5625 = vmatprep.subr.bf16.mxu0 %v8707_v45  ;;  %6184 = vmatprep.subr.bf16.mxu1 %v8710_v46  ;;  %v8795_v44 = vld [vmem:[%s9455_s16 + $0x38] ss:$100 sps:$4 sm:$0xff]  }
 0x1f6   : > { %5655 = vmatprep.mubr.bf16.mxu0 %v8797_v47  ;;  %6214 = vmatprep.mubr.bf16.mxu1 %v8797_v47  ;;  %v8798_v45 = vld [vmem:[%s9453_s15 + $0x1000] ss:$16 sps:$4 sm:$0xff]   ;;  %v8801_v46 = vld [vmem:[%s9453_s15 + $0x1008] ss:$16 sps:$4 sm:$0xff]   ;;  %v8806_v47 = vld [vmem:[%s9453_s15 + $0x1024] ss:$16 sps:$4 sm:$0xff]  }
 0x1f8   : > { %5626 = vmatpush1.bf16.msra.mxu0 %v8705_v48  ;;  %6185 = vmatpush1.bf16.msra.mxu1 %v8708_v49  ;;  %v8809_v48 = vld [vmem:[%s9453_s15 + $0x102c] ss:$16 sps:$4 sm:$0xff]  }
 0x1f9   : > { %5627 = vmatprep.subr.bf16.mxu0 %v8713_v50  ;;  %6186 = vmatprep.subr.bf16.mxu1 %v8716_v51  ;;  %v8896_v49 = vld [vmem:[%s9455_s16 + $0x44] ss:$100 sps:$4 sm:$0xff]  }
 0x1fa   : > { %v8804_v50 = vld [vmem:[%s9453_s15 + $0x1020] ss:$16 sps:$4 sm:$0xff]   ;;  %v8807_v51 = vld [vmem:[%s9453_s15 + $0x1028] ss:$16 sps:$4 sm:$0xff]  }
 0x1fc   : > { %5628 = vmatpush1.bf16.msra.mxu0 %v8711_v52  ;;  %6187 = vmatpush1.bf16.msra.mxu1 %v8714_v53  ;;  %v8812_v52 = vld [vmem:[%s9453_s15 + $0x1044] ss:$16 sps:$4 sm:$0xff]   ;;  %v8815_v53 = vld [vmem:[%s9453_s15 + $0x104c] ss:$16 sps:$4 sm:$0xff]  }
 0x1fd   : > { %5629 = vmatprep.subr.bf16.mxu0 %v8719_v54  ;;  %6188 = vmatprep.subr.bf16.mxu1 %v8722_v55  ;;  %v8810_v54 = vld [vmem:[%s9453_s15 + $0x1040] ss:$16 sps:$4 sm:$0xff]   ;;  %v8813_v55 = vld [vmem:[%s9453_s15 + $0x1048] ss:$16 sps:$4 sm:$0xff]  }
 0x200   : > { %5630 = vmatpush1.bf16.msra.mxu0 %v8717_v56  ;;  %6189 = vmatpush1.bf16.msra.mxu1 %v8720_v57  ;;  %v8818_v56 = vld [vmem:[%s9453_s15 + $0x1064] ss:$16 sps:$4 sm:$0xff]   ;;  %v8821_v57 = vld [vmem:[%s9453_s15 + $0x106c] ss:$16 sps:$4 sm:$0xff]  }
 0x201   : > { %5631 = vmatprep.subr.bf16.mxu0 %v8725_v58  ;;  %6190 = vmatprep.subr.bf16.mxu1 %v8728_v59  ;;  %v8816_v58 = vld [vmem:[%s9453_s15 + $0x1060] ss:$16 sps:$4 sm:$0xff]   ;;  %v8819_v59 = vld [vmem:[%s9453_s15 + $0x1068] ss:$16 sps:$4 sm:$0xff]  }
 0x204   : > { %5632 = vmatpush1.bf16.msra.mxu0 %v8723_v60  ;;  %6191 = vmatpush1.bf16.msra.mxu1 %v8726_v61  ;;  %v8824_v60 = vld [vmem:[%s9453_s15 + $0x1084] ss:$16 sps:$4 sm:$0xff]   ;;  %v8827_v61 = vld [vmem:[%s9453_s15 + $0x108c] ss:$16 sps:$4 sm:$0xff]  }
 0x205   : > { %5633 = vmatprep.subr.bf16.mxu0 %v8731_v62  ;;  %6192 = vmatprep.subr.bf16.mxu1 %v8734_v63  ;;  %v8822_v62 = vld [vmem:[%s9453_s15 + $0x1080] ss:$16 sps:$4 sm:$0xff]   ;;  %v8825_v63 = vld [vmem:[%s9453_s15 + $0x1088] ss:$16 sps:$4 sm:$0xff]  }
 0x208   : > { %5634 = vmatpush1.bf16.msra.mxu0 %v8729_v0  ;;  %6193 = vmatpush1.bf16.msra.mxu1 %v8732_v1  ;;  %v8830_v0 = vld [vmem:[%s9453_s15 + $0x10a4] ss:$16 sps:$4 sm:$0xff]   ;;  %v8833_v1 = vld [vmem:[%s9453_s15 + $0x10ac] ss:$16 sps:$4 sm:$0xff]  }
 0x209   : > { %5635 = vmatprep.subr.bf16.mxu0 %v8737_v2  ;;  %6194 = vmatprep.subr.bf16.mxu1 %v8740_v3  ;;  %v8828_v2 = vld [vmem:[%s9453_s15 + $0x10a0] ss:$16 sps:$4 sm:$0xff]   ;;  %v8831_v3 = vld [vmem:[%s9453_s15 + $0x10a8] ss:$16 sps:$4 sm:$0xff]  }
 0x20c   : > { %5636 = vmatpush1.bf16.msra.mxu0 %v8735_v4  ;;  %6195 = vmatpush1.bf16.msra.mxu1 %v8738_v5  ;;  %v8836_v4 = vld [vmem:[%s9453_s15 + $0x10c4] ss:$16 sps:$4 sm:$0xff]   ;;  %v8839_v5 = vld [vmem:[%s9453_s15 + $0x10cc] ss:$16 sps:$4 sm:$0xff]  }
 0x20d   : > { %5637 = vmatprep.subr.bf16.mxu0 %v8743_v6  ;;  %6196 = vmatprep.subr.bf16.mxu1 %v8746_v7  ;;  %v8834_v6 = vld [vmem:[%s9453_s15 + $0x10c0] ss:$16 sps:$4 sm:$0xff]   ;;  %v8837_v7 = vld [vmem:[%s9453_s15 + $0x10c8] ss:$16 sps:$4 sm:$0xff]  }
 0x210   : > { %5638 = vmatpush1.bf16.msra.mxu0 %v8741_v8  ;;  %6197 = vmatpush1.bf16.msra.mxu1 %v8744_v9  ;;  %v8842_v8 = vld [vmem:[%s9453_s15 + $0x10e4] ss:$16 sps:$4 sm:$0xff]   ;;  %v8845_v9 = vld [vmem:[%s9453_s15 + $0x10ec] ss:$16 sps:$4 sm:$0xff]  }
 0x211   : > { %5639 = vmatprep.subr.bf16.mxu0 %v8749_v10  ;;  %6198 = vmatprep.subr.bf16.mxu1 %v8752_v11  ;;  %v8840_v10 = vld [vmem:[%s9453_s15 + $0x10e0] ss:$16 sps:$4 sm:$0xff]   ;;  %v8843_v11 = vld [vmem:[%s9453_s15 + $0x10e8] ss:$16 sps:$4 sm:$0xff]  }
 0x214   : > { %5640 = vmatpush1.bf16.msra.mxu0 %v8747_v12  ;;  %6199 = vmatpush1.bf16.msra.mxu1 %v8750_v13  ;;  %v8848_v12 = vld [vmem:[%s9453_s15 + $0x1104] ss:$16 sps:$4 sm:$0xff]   ;;  %v8851_v13 = vld [vmem:[%s9453_s15 + $0x110c] ss:$16 sps:$4 sm:$0xff]  }
 0x215   : > { %5641 = vmatprep.subr.bf16.mxu0 %v8755_v14  ;;  %6200 = vmatprep.subr.bf16.mxu1 %v8758_v15  ;;  %v8846_v14 = vld [vmem:[%s9453_s15 + $0x1100] ss:$16 sps:$4 sm:$0xff]   ;;  %v8849_v15 = vld [vmem:[%s9453_s15 + $0x1108] ss:$16 sps:$4 sm:$0xff]  }
 0x218   : > { %5642 = vmatpush1.bf16.msra.mxu0 %v8753_v16  ;;  %6201 = vmatpush1.bf16.msra.mxu1 %v8756_v17  ;;  %v8854_v16 = vld [vmem:[%s9453_s15 + $0x1124] ss:$16 sps:$4 sm:$0xff]   ;;  %v8857_v17 = vld [vmem:[%s9453_s15 + $0x112c] ss:$16 sps:$4 sm:$0xff]  }
 0x219   : > { %5643 = vmatprep.subr.bf16.mxu0 %v8761_v18  ;;  %6202 = vmatprep.subr.bf16.mxu1 %v8764_v19  ;;  %v8852_v18 = vld [vmem:[%s9453_s15 + $0x1120] ss:$16 sps:$4 sm:$0xff]   ;;  %v8855_v19 = vld [vmem:[%s9453_s15 + $0x1128] ss:$16 sps:$4 sm:$0xff]  }
 0x21c   : > { %5644 = vmatpush1.bf16.msra.mxu0 %v8759_v20  ;;  %6203 = vmatpush1.bf16.msra.mxu1 %v8762_v21  ;;  %v8860_v20 = vld [vmem:[%s9453_s15 + $0x1144] ss:$16 sps:$4 sm:$0xff]   ;;  %v8863_v21 = vld [vmem:[%s9453_s15 + $0x114c] ss:$16 sps:$4 sm:$0xff]  }
 0x21d   : > { %5645 = vmatprep.subr.bf16.mxu0 %v8767_v22  ;;  %6204 = vmatprep.subr.bf16.mxu1 %v8770_v23  ;;  %v8858_v22 = vld [vmem:[%s9453_s15 + $0x1140] ss:$16 sps:$4 sm:$0xff]   ;;  %v8861_v23 = vld [vmem:[%s9453_s15 + $0x1148] ss:$16 sps:$4 sm:$0xff]  }
 0x220   : > { %5646 = vmatpush1.bf16.msra.mxu0 %v8765_v24  ;;  %6205 = vmatpush1.bf16.msra.mxu1 %v8768_v25  ;;  %v8866_v24 = vld [vmem:[%s9453_s15 + $0x1164] ss:$16 sps:$4 sm:$0xff]   ;;  %v8869_v25 = vld [vmem:[%s9453_s15 + $0x116c] ss:$16 sps:$4 sm:$0xff]  }
 0x221   : > { %5647 = vmatprep.subr.bf16.mxu0 %v8773_v26  ;;  %6206 = vmatprep.subr.bf16.mxu1 %v8776_v27  ;;  %v8864_v26 = vld [vmem:[%s9453_s15 + $0x1160] ss:$16 sps:$4 sm:$0xff]   ;;  %v8867_v27 = vld [vmem:[%s9453_s15 + $0x1168] ss:$16 sps:$4 sm:$0xff]  }
 0x224   : > { %5648 = vmatpush1.bf16.msra.mxu0 %v8771_v28  ;;  %6207 = vmatpush1.bf16.msra.mxu1 %v8774_v29  ;;  %v8872_v28 = vld [vmem:[%s9453_s15 + $0x1184] ss:$16 sps:$4 sm:$0xff]   ;;  %v8875_v29 = vld [vmem:[%s9453_s15 + $0x118c] ss:$16 sps:$4 sm:$0xff]  }
 0x225   : > { %5649 = vmatprep.subr.bf16.mxu0 %v8779_v30  ;;  %6208 = vmatprep.subr.bf16.mxu1 %v8782_v31  ;;  %v8870_v30 = vld [vmem:[%s9453_s15 + $0x1180] ss:$16 sps:$4 sm:$0xff]   ;;  %v8873_v31 = vld [vmem:[%s9453_s15 + $0x1188] ss:$16 sps:$4 sm:$0xff]  }
 0x228   : > { %5650 = vmatpush1.bf16.msra.mxu0 %v8777_v32  ;;  %6209 = vmatpush1.bf16.msra.mxu1 %v8780_v33  ;;  %v8878_v32 = vld [vmem:[%s9453_s15 + $0x11a4] ss:$16 sps:$4 sm:$0xff]   ;;  %v8881_v33 = vld [vmem:[%s9453_s15 + $0x11ac] ss:$16 sps:$4 sm:$0xff]  }
 0x229   : > { %5651 = vmatprep.subr.bf16.mxu0 %v8785_v34  ;;  %6210 = vmatprep.subr.bf16.mxu1 %v8788_v35  ;;  %v8876_v34 = vld [vmem:[%s9453_s15 + $0x11a0] ss:$16 sps:$4 sm:$0xff]   ;;  %v8879_v35 = vld [vmem:[%s9453_s15 + $0x11a8] ss:$16 sps:$4 sm:$0xff]  }
 0x22c   : > { %5652 = vmatpush1.bf16.msra.mxu0 %v8783_v36  ;;  %6211 = vmatpush1.bf16.msra.mxu1 %v8786_v37  ;;  %v8884_v36 = vld [vmem:[%s9453_s15 + $0x11c4] ss:$16 sps:$4 sm:$0xff]   ;;  %v8887_v37 = vld [vmem:[%s9453_s15 + $0x11cc] ss:$16 sps:$4 sm:$0xff]  }
 0x22d   : > { %5653 = vmatprep.subr.bf16.mxu0 %v8791_v38  ;;  %6212 = vmatprep.subr.bf16.mxu1 %v8794_v39  ;;  %v8882_v38 = vld [vmem:[%s9453_s15 + $0x11c0] ss:$16 sps:$4 sm:$0xff]   ;;  %v8885_v39 = vld [vmem:[%s9453_s15 + $0x11c8] ss:$16 sps:$4 sm:$0xff]  }
 0x230   : > { %5654 = vmatpush1.bf16.msra.mxu0 %v8789_v40  ;;  %6213 = vmatpush1.bf16.msra.mxu1 %v8792_v41  ;;  %v8890_v40 = vld [vmem:[%s9453_s15 + $0x11e4] ss:$16 sps:$4 sm:$0xff]   ;;  %v8893_v41 = vld [vmem:[%s9453_s15 + $0x11ec] ss:$16 sps:$4 sm:$0xff]  }
 0x231   : > { %5666 = vmatprep.subr.bf16.mxu0 %v8800_v42  ;;  %6225 = vmatprep.subr.bf16.mxu1 %v8803_v43  ;;  %v8888_v42 = vld [vmem:[%s9453_s15 + $0x11e0] ss:$16 sps:$4 sm:$0xff]   ;;  %v8891_v43 = vld [vmem:[%s9453_s15 + $0x11e8] ss:$16 sps:$4 sm:$0xff]  }
 0x233   : > { %5656 = vmatmul.mubr.bf16.vlgmr.msra.gmra.mrb[0].mxu0 %v8795_v44  ;;  %6215 = vmatmul.mubr.bf16.vlgmr.msra.gmra.mrb[0].mxu1 %v8795_v44  ;;  %v8899_v44 = vld [vmem:[%s9453_s15 + $0x1204] ss:$16 sps:$4 sm:$0xff]  }
 0x234   : > { %5667 = vmatpush1.bf16.msra.mxu0 %v8798_v45  ;;  %6226 = vmatpush1.bf16.msra.mxu1 %v8801_v46  ;;  %v8902_v45 = vld [vmem:[%s9453_s15 + $0x120c] ss:$16 sps:$4 sm:$0xff]  }
 0x235   : > { %5668 = vmatprep.subr.bf16.mxu0 %v8806_v47  ;;  %6227 = vmatprep.subr.bf16.mxu1 %v8809_v48  ;;  %v8894_v46 = vld [vmem:[%s9455_s16 + $0x40] ss:$100 sps:$4 sm:$0xff]  }
 0x236   : > { %5698 = vmatprep.mubr.bf16.mxu0 %v8896_v49  ;;  %6257 = vmatprep.mubr.bf16.mxu1 %v8896_v49  ;;  %v8897_v47 = vld [vmem:[%s9453_s15 + $0x1200] ss:$16 sps:$4 sm:$0xff]   ;;  %v8900_v48 = vld [vmem:[%s9453_s15 + $0x1208] ss:$16 sps:$4 sm:$0xff]   ;;  %v8905_v49 = vld [vmem:[%s9453_s15 + $0x1224] ss:$16 sps:$4 sm:$0xff]  }
 0x238   : > { %5669 = vmatpush1.bf16.msra.mxu0 %v8804_v50  ;;  %6228 = vmatpush1.bf16.msra.mxu1 %v8807_v51  ;;  %v8908_v50 = vld [vmem:[%s9453_s15 + $0x122c] ss:$16 sps:$4 sm:$0xff]  }
 0x239   : > { %5670 = vmatprep.subr.bf16.mxu0 %v8812_v52  ;;  %6229 = vmatprep.subr.bf16.mxu1 %v8815_v53  ;;  %v8995_v51 = vld [vmem:[%s9455_s16 + $0x4c] ss:$100 sps:$4 sm:$0xff]  }
 0x23a   : > { %v8903_v52 = vld [vmem:[%s9453_s15 + $0x1220] ss:$16 sps:$4 sm:$0xff]   ;;  %v8906_v53 = vld [vmem:[%s9453_s15 + $0x1228] ss:$16 sps:$4 sm:$0xff]  }
 0x23c   : > { %5671 = vmatpush1.bf16.msra.mxu0 %v8810_v54  ;;  %6230 = vmatpush1.bf16.msra.mxu1 %v8813_v55  ;;  %v8911_v54 = vld [vmem:[%s9453_s15 + $0x1244] ss:$16 sps:$4 sm:$0xff]   ;;  %v8914_v55 = vld [vmem:[%s9453_s15 + $0x124c] ss:$16 sps:$4 sm:$0xff]  }
 0x23d   : > { %5672 = vmatprep.subr.bf16.mxu0 %v8818_v56  ;;  %6231 = vmatprep.subr.bf16.mxu1 %v8821_v57  ;;  %v8909_v56 = vld [vmem:[%s9453_s15 + $0x1240] ss:$16 sps:$4 sm:$0xff]   ;;  %v8912_v57 = vld [vmem:[%s9453_s15 + $0x1248] ss:$16 sps:$4 sm:$0xff]  }
 0x240   : > { %5673 = vmatpush1.bf16.msra.mxu0 %v8816_v58  ;;  %6232 = vmatpush1.bf16.msra.mxu1 %v8819_v59  ;;  %v8917_v58 = vld [vmem:[%s9453_s15 + $0x1264] ss:$16 sps:$4 sm:$0xff]   ;;  %v8920_v59 = vld [vmem:[%s9453_s15 + $0x126c] ss:$16 sps:$4 sm:$0xff]  }
 0x241   : > { %5674 = vmatprep.subr.bf16.mxu0 %v8824_v60  ;;  %6233 = vmatprep.subr.bf16.mxu1 %v8827_v61  ;;  %v8915_v60 = vld [vmem:[%s9453_s15 + $0x1260] ss:$16 sps:$4 sm:$0xff]   ;;  %v8918_v61 = vld [vmem:[%s9453_s15 + $0x1268] ss:$16 sps:$4 sm:$0xff]  }
 0x244   : > { %5675 = vmatpush1.bf16.msra.mxu0 %v8822_v62  ;;  %6234 = vmatpush1.bf16.msra.mxu1 %v8825_v63  ;;  %v8923_v62 = vld [vmem:[%s9453_s15 + $0x1284] ss:$16 sps:$4 sm:$0xff]   ;;  %v8926_v63 = vld [vmem:[%s9453_s15 + $0x128c] ss:$16 sps:$4 sm:$0xff]  }
 0x245   : > { %5676 = vmatprep.subr.bf16.mxu0 %v8830_v0  ;;  %6235 = vmatprep.subr.bf16.mxu1 %v8833_v1  ;;  %v8921_v0 = vld [vmem:[%s9453_s15 + $0x1280] ss:$16 sps:$4 sm:$0xff]   ;;  %v8924_v1 = vld [vmem:[%s9453_s15 + $0x1288] ss:$16 sps:$4 sm:$0xff]  }
 0x248   : > { %5677 = vmatpush1.bf16.msra.mxu0 %v8828_v2  ;;  %6236 = vmatpush1.bf16.msra.mxu1 %v8831_v3  ;;  %v8929_v2 = vld [vmem:[%s9453_s15 + $0x12a4] ss:$16 sps:$4 sm:$0xff]   ;;  %v8932_v3 = vld [vmem:[%s9453_s15 + $0x12ac] ss:$16 sps:$4 sm:$0xff]  }
 0x249   : > { %5678 = vmatprep.subr.bf16.mxu0 %v8836_v4  ;;  %6237 = vmatprep.subr.bf16.mxu1 %v8839_v5  ;;  %v8927_v4 = vld [vmem:[%s9453_s15 + $0x12a0] ss:$16 sps:$4 sm:$0xff]   ;;  %v8930_v5 = vld [vmem:[%s9453_s15 + $0x12a8] ss:$16 sps:$4 sm:$0xff]  }
 0x24c   : > { %5679 = vmatpush1.bf16.msra.mxu0 %v8834_v6  ;;  %6238 = vmatpush1.bf16.msra.mxu1 %v8837_v7  ;;  %v8935_v6 = vld [vmem:[%s9453_s15 + $0x12c4] ss:$16 sps:$4 sm:$0xff]   ;;  %v8938_v7 = vld [vmem:[%s9453_s15 + $0x12cc] ss:$16 sps:$4 sm:$0xff]  }
 0x24d   : > { %5680 = vmatprep.subr.bf16.mxu0 %v8842_v8  ;;  %6239 = vmatprep.subr.bf16.mxu1 %v8845_v9  ;;  %v8933_v8 = vld [vmem:[%s9453_s15 + $0x12c0] ss:$16 sps:$4 sm:$0xff]   ;;  %v8936_v9 = vld [vmem:[%s9453_s15 + $0x12c8] ss:$16 sps:$4 sm:$0xff]  }
 0x250   : > { %5681 = vmatpush1.bf16.msra.mxu0 %v8840_v10  ;;  %6240 = vmatpush1.bf16.msra.mxu1 %v8843_v11  ;;  %v8941_v10 = vld [vmem:[%s9453_s15 + $0x12e4] ss:$16 sps:$4 sm:$0xff]   ;;  %v8944_v11 = vld [vmem:[%s9453_s15 + $0x12ec] ss:$16 sps:$4 sm:$0xff]  }
 0x251   : > { %5682 = vmatprep.subr.bf16.mxu0 %v8848_v12  ;;  %6241 = vmatprep.subr.bf16.mxu1 %v8851_v13  ;;  %v8939_v12 = vld [vmem:[%s9453_s15 + $0x12e0] ss:$16 sps:$4 sm:$0xff]   ;;  %v8942_v13 = vld [vmem:[%s9453_s15 + $0x12e8] ss:$16 sps:$4 sm:$0xff]  }
 0x254   : > { %5683 = vmatpush1.bf16.msra.mxu0 %v8846_v14  ;;  %6242 = vmatpush1.bf16.msra.mxu1 %v8849_v15  ;;  %v8947_v14 = vld [vmem:[%s9453_s15 + $0x1304] ss:$16 sps:$4 sm:$0xff]   ;;  %v8950_v15 = vld [vmem:[%s9453_s15 + $0x130c] ss:$16 sps:$4 sm:$0xff]  }
 0x255   : > { %5684 = vmatprep.subr.bf16.mxu0 %v8854_v16  ;;  %6243 = vmatprep.subr.bf16.mxu1 %v8857_v17  ;;  %v8945_v16 = vld [vmem:[%s9453_s15 + $0x1300] ss:$16 sps:$4 sm:$0xff]   ;;  %v8948_v17 = vld [vmem:[%s9453_s15 + $0x1308] ss:$16 sps:$4 sm:$0xff]  }
 0x258   : > { %5685 = vmatpush1.bf16.msra.mxu0 %v8852_v18  ;;  %6244 = vmatpush1.bf16.msra.mxu1 %v8855_v19  ;;  %v8953_v18 = vld [vmem:[%s9453_s15 + $0x1324] ss:$16 sps:$4 sm:$0xff]   ;;  %v8956_v19 = vld [vmem:[%s9453_s15 + $0x132c] ss:$16 sps:$4 sm:$0xff]  }
 0x259   : > { %5686 = vmatprep.subr.bf16.mxu0 %v8860_v20  ;;  %6245 = vmatprep.subr.bf16.mxu1 %v8863_v21  ;;  %v8951_v20 = vld [vmem:[%s9453_s15 + $0x1320] ss:$16 sps:$4 sm:$0xff]   ;;  %v8954_v21 = vld [vmem:[%s9453_s15 + $0x1328] ss:$16 sps:$4 sm:$0xff]  }
 0x25c   : > { %5687 = vmatpush1.bf16.msra.mxu0 %v8858_v22  ;;  %6246 = vmatpush1.bf16.msra.mxu1 %v8861_v23  ;;  %v8959_v22 = vld [vmem:[%s9453_s15 + $0x1344] ss:$16 sps:$4 sm:$0xff]   ;;  %v8962_v23 = vld [vmem:[%s9453_s15 + $0x134c] ss:$16 sps:$4 sm:$0xff]  }
 0x25d   : > { %5688 = vmatprep.subr.bf16.mxu0 %v8866_v24  ;;  %6247 = vmatprep.subr.bf16.mxu1 %v8869_v25  ;;  %v8957_v24 = vld [vmem:[%s9453_s15 + $0x1340] ss:$16 sps:$4 sm:$0xff]   ;;  %v8960_v25 = vld [vmem:[%s9453_s15 + $0x1348] ss:$16 sps:$4 sm:$0xff]  }
 0x260   : > { %5689 = vmatpush1.bf16.msra.mxu0 %v8864_v26  ;;  %6248 = vmatpush1.bf16.msra.mxu1 %v8867_v27  ;;  %v8965_v26 = vld [vmem:[%s9453_s15 + $0x1364] ss:$16 sps:$4 sm:$0xff]   ;;  %v8968_v27 = vld [vmem:[%s9453_s15 + $0x136c] ss:$16 sps:$4 sm:$0xff]  }
 0x261   : > { %5690 = vmatprep.subr.bf16.mxu0 %v8872_v28  ;;  %6249 = vmatprep.subr.bf16.mxu1 %v8875_v29  ;;  %v8963_v28 = vld [vmem:[%s9453_s15 + $0x1360] ss:$16 sps:$4 sm:$0xff]   ;;  %v8966_v29 = vld [vmem:[%s9453_s15 + $0x1368] ss:$16 sps:$4 sm:$0xff]  }
 0x264   : > { %5691 = vmatpush1.bf16.msra.mxu0 %v8870_v30  ;;  %6250 = vmatpush1.bf16.msra.mxu1 %v8873_v31  ;;  %v8971_v30 = vld [vmem:[%s9453_s15 + $0x1384] ss:$16 sps:$4 sm:$0xff]   ;;  %v8974_v31 = vld [vmem:[%s9453_s15 + $0x138c] ss:$16 sps:$4 sm:$0xff]  }
 0x265   : > { %5692 = vmatprep.subr.bf16.mxu0 %v8878_v32  ;;  %6251 = vmatprep.subr.bf16.mxu1 %v8881_v33  ;;  %v8969_v32 = vld [vmem:[%s9453_s15 + $0x1380] ss:$16 sps:$4 sm:$0xff]   ;;  %v8972_v33 = vld [vmem:[%s9453_s15 + $0x1388] ss:$16 sps:$4 sm:$0xff]  }
 0x268   : > { %5693 = vmatpush1.bf16.msra.mxu0 %v8876_v34  ;;  %6252 = vmatpush1.bf16.msra.mxu1 %v8879_v35  ;;  %v8977_v34 = vld [vmem:[%s9453_s15 + $0x13a4] ss:$16 sps:$4 sm:$0xff]   ;;  %v8980_v35 = vld [vmem:[%s9453_s15 + $0x13ac] ss:$16 sps:$4 sm:$0xff]  }
 0x269   : > { %5694 = vmatprep.subr.bf16.mxu0 %v8884_v36  ;;  %6253 = vmatprep.subr.bf16.mxu1 %v8887_v37  ;;  %v8975_v36 = vld [vmem:[%s9453_s15 + $0x13a0] ss:$16 sps:$4 sm:$0xff]   ;;  %v8978_v37 = vld [vmem:[%s9453_s15 + $0x13a8] ss:$16 sps:$4 sm:$0xff]  }
 0x26c   : > { %5695 = vmatpush1.bf16.msra.mxu0 %v8882_v38  ;;  %6254 = vmatpush1.bf16.msra.mxu1 %v8885_v39  ;;  %v8983_v38 = vld [vmem:[%s9453_s15 + $0x13c4] ss:$16 sps:$4 sm:$0xff]   ;;  %v8986_v39 = vld [vmem:[%s9453_s15 + $0x13cc] ss:$16 sps:$4 sm:$0xff]  }
 0x26d   : > { %5696 = vmatprep.subr.bf16.mxu0 %v8890_v40  ;;  %6255 = vmatprep.subr.bf16.mxu1 %v8893_v41  ;;  %v8981_v40 = vld [vmem:[%s9453_s15 + $0x13c0] ss:$16 sps:$4 sm:$0xff]   ;;  %v8984_v41 = vld [vmem:[%s9453_s15 + $0x13c8] ss:$16 sps:$4 sm:$0xff]  }
 0x270   : > { %5697 = vmatpush1.bf16.msra.mxu0 %v8888_v42  ;;  %6256 = vmatpush1.bf16.msra.mxu1 %v8891_v43  ;;  %v8989_v42 = vld [vmem:[%s9453_s15 + $0x13e4] ss:$16 sps:$4 sm:$0xff]   ;;  %v8992_v43 = vld [vmem:[%s9453_s15 + $0x13ec] ss:$16 sps:$4 sm:$0xff]  }
 0x271   : > { %5709 = vmatprep.subr.bf16.mxu0 %v8899_v44  ;;  %6268 = vmatprep.subr.bf16.mxu1 %v8902_v45  ;;  %v8987_v44 = vld [vmem:[%s9453_s15 + $0x13e0] ss:$16 sps:$4 sm:$0xff]   ;;  %v8990_v45 = vld [vmem:[%s9453_s15 + $0x13e8] ss:$16 sps:$4 sm:$0xff]  }
 0x273   : > { %5699 = vmatmul.mubr.bf16.vlgmr.msra.gmra.mrb[0].mxu0 %v8894_v46  ;;  %6258 = vmatmul.mubr.bf16.vlgmr.msra.gmra.mrb[0].mxu1 %v8894_v46  ;;  %v8998_v46 = vld [vmem:[%s9453_s15 + $0x1404] ss:$16 sps:$4 sm:$0xff]  }
 0x274   : > { %5710 = vmatpush1.bf16.msra.mxu0 %v8897_v47  ;;  %6269 = vmatpush1.bf16.msra.mxu1 %v8900_v48  ;;  %v9001_v47 = vld [vmem:[%s9453_s15 + $0x140c] ss:$16 sps:$4 sm:$0xff]  }
 0x275   : > { %5711 = vmatprep.subr.bf16.mxu0 %v8905_v49  ;;  %6270 = vmatprep.subr.bf16.mxu1 %v8908_v50  ;;  %v8993_v48 = vld [vmem:[%s9455_s16 + $0x48] ss:$100 sps:$4 sm:$0xff]  }
 0x276   : > { %5741 = vmatprep.mubr.bf16.mxu0 %v8995_v51  ;;  %6300 = vmatprep.mubr.bf16.mxu1 %v8995_v51  ;;  %v8996_v49 = vld [vmem:[%s9453_s15 + $0x1400] ss:$16 sps:$4 sm:$0xff]   ;;  %v8999_v50 = vld [vmem:[%s9453_s15 + $0x1408] ss:$16 sps:$4 sm:$0xff]   ;;  %v9004_v51 = vld [vmem:[%s9453_s15 + $0x1424] ss:$16 sps:$4 sm:$0xff]  }
 0x278   : > { %5712 = vmatpush1.bf16.msra.mxu0 %v8903_v52  ;;  %6271 = vmatpush1.bf16.msra.mxu1 %v8906_v53  ;;  %v9007_v52 = vld [vmem:[%s9453_s15 + $0x142c] ss:$16 sps:$4 sm:$0xff]  }
 0x279   : > { %5713 = vmatprep.subr.bf16.mxu0 %v8911_v54  ;;  %6272 = vmatprep.subr.bf16.mxu1 %v8914_v55  ;;  %v9094_v53 = vld [vmem:[%s9455_s16 + $0x54] ss:$100 sps:$4 sm:$0xff]  }
 0x27a   : > { %v9002_v54 = vld [vmem:[%s9453_s15 + $0x1420] ss:$16 sps:$4 sm:$0xff]   ;;  %v9005_v55 = vld [vmem:[%s9453_s15 + $0x1428] ss:$16 sps:$4 sm:$0xff]  }
 0x27c   : > { %5714 = vmatpush1.bf16.msra.mxu0 %v8909_v56  ;;  %6273 = vmatpush1.bf16.msra.mxu1 %v8912_v57  ;;  %v9010_v56 = vld [vmem:[%s9453_s15 + $0x1444] ss:$16 sps:$4 sm:$0xff]   ;;  %v9013_v57 = vld [vmem:[%s9453_s15 + $0x144c] ss:$16 sps:$4 sm:$0xff]  }
 0x27d   : > { %5715 = vmatprep.subr.bf16.mxu0 %v8917_v58  ;;  %6274 = vmatprep.subr.bf16.mxu1 %v8920_v59  ;;  %v9008_v58 = vld [vmem:[%s9453_s15 + $0x1440] ss:$16 sps:$4 sm:$0xff]   ;;  %v9011_v59 = vld [vmem:[%s9453_s15 + $0x1448] ss:$16 sps:$4 sm:$0xff]  }
 0x280   : > { %5716 = vmatpush1.bf16.msra.mxu0 %v8915_v60  ;;  %6275 = vmatpush1.bf16.msra.mxu1 %v8918_v61  ;;  %v9016_v60 = vld [vmem:[%s9453_s15 + $0x1464] ss:$16 sps:$4 sm:$0xff]   ;;  %v9019_v61 = vld [vmem:[%s9453_s15 + $0x146c] ss:$16 sps:$4 sm:$0xff]  }
 0x281   : > { %5717 = vmatprep.subr.bf16.mxu0 %v8923_v62  ;;  %6276 = vmatprep.subr.bf16.mxu1 %v8926_v63  ;;  %v9014_v62 = vld [vmem:[%s9453_s15 + $0x1460] ss:$16 sps:$4 sm:$0xff]   ;;  %v9017_v63 = vld [vmem:[%s9453_s15 + $0x1468] ss:$16 sps:$4 sm:$0xff]  }
 0x284   : > { %5718 = vmatpush1.bf16.msra.mxu0 %v8921_v0  ;;  %6277 = vmatpush1.bf16.msra.mxu1 %v8924_v1  ;;  %v9022_v0 = vld [vmem:[%s9453_s15 + $0x1484] ss:$16 sps:$4 sm:$0xff]   ;;  %v9025_v1 = vld [vmem:[%s9453_s15 + $0x148c] ss:$16 sps:$4 sm:$0xff]  }
 0x285   : > { %5719 = vmatprep.subr.bf16.mxu0 %v8929_v2  ;;  %6278 = vmatprep.subr.bf16.mxu1 %v8932_v3  ;;  %v9020_v2 = vld [vmem:[%s9453_s15 + $0x1480] ss:$16 sps:$4 sm:$0xff]   ;;  %v9023_v3 = vld [vmem:[%s9453_s15 + $0x1488] ss:$16 sps:$4 sm:$0xff]  }
 0x288   : > { %5720 = vmatpush1.bf16.msra.mxu0 %v8927_v4  ;;  %6279 = vmatpush1.bf16.msra.mxu1 %v8930_v5  ;;  %v9028_v4 = vld [vmem:[%s9453_s15 + $0x14a4] ss:$16 sps:$4 sm:$0xff]   ;;  %v9031_v5 = vld [vmem:[%s9453_s15 + $0x14ac] ss:$16 sps:$4 sm:$0xff]  }
 0x289   : > { %5721 = vmatprep.subr.bf16.mxu0 %v8935_v6  ;;  %6280 = vmatprep.subr.bf16.mxu1 %v8938_v7  ;;  %v9026_v6 = vld [vmem:[%s9453_s15 + $0x14a0] ss:$16 sps:$4 sm:$0xff]   ;;  %v9029_v7 = vld [vmem:[%s9453_s15 + $0x14a8] ss:$16 sps:$4 sm:$0xff]  }
 0x28c   : > { %5722 = vmatpush1.bf16.msra.mxu0 %v8933_v8  ;;  %6281 = vmatpush1.bf16.msra.mxu1 %v8936_v9  ;;  %v9034_v8 = vld [vmem:[%s9453_s15 + $0x14c4] ss:$16 sps:$4 sm:$0xff]   ;;  %v9037_v9 = vld [vmem:[%s9453_s15 + $0x14cc] ss:$16 sps:$4 sm:$0xff]  }
 0x28d   : > { %5723 = vmatprep.subr.bf16.mxu0 %v8941_v10  ;;  %6282 = vmatprep.subr.bf16.mxu1 %v8944_v11  ;;  %v9032_v10 = vld [vmem:[%s9453_s15 + $0x14c0] ss:$16 sps:$4 sm:$0xff]   ;;  %v9035_v11 = vld [vmem:[%s9453_s15 + $0x14c8] ss:$16 sps:$4 sm:$0xff]  }
 0x290   : > { %5724 = vmatpush1.bf16.msra.mxu0 %v8939_v12  ;;  %6283 = vmatpush1.bf16.msra.mxu1 %v8942_v13  ;;  %v9040_v12 = vld [vmem:[%s9453_s15 + $0x14e4] ss:$16 sps:$4 sm:$0xff]   ;;  %v9043_v13 = vld [vmem:[%s9453_s15 + $0x14ec] ss:$16 sps:$4 sm:$0xff]  }
 0x291   : > { %5725 = vmatprep.subr.bf16.mxu0 %v8947_v14  ;;  %6284 = vmatprep.subr.bf16.mxu1 %v8950_v15  ;;  %v9038_v14 = vld [vmem:[%s9453_s15 + $0x14e0] ss:$16 sps:$4 sm:$0xff]   ;;  %v9041_v15 = vld [vmem:[%s9453_s15 + $0x14e8] ss:$16 sps:$4 sm:$0xff]  }
 0x294   : > { %5726 = vmatpush1.bf16.msra.mxu0 %v8945_v16  ;;  %6285 = vmatpush1.bf16.msra.mxu1 %v8948_v17  ;;  %v9046_v16 = vld [vmem:[%s9453_s15 + $0x1504] ss:$16 sps:$4 sm:$0xff]   ;;  %v9049_v17 = vld [vmem:[%s9453_s15 + $0x150c] ss:$16 sps:$4 sm:$0xff]  }
 0x295   : > { %5727 = vmatprep.subr.bf16.mxu0 %v8953_v18  ;;  %6286 = vmatprep.subr.bf16.mxu1 %v8956_v19  ;;  %v9044_v18 = vld [vmem:[%s9453_s15 + $0x1500] ss:$16 sps:$4 sm:$0xff]   ;;  %v9047_v19 = vld [vmem:[%s9453_s15 + $0x1508] ss:$16 sps:$4 sm:$0xff]  }
 0x298   : > { %5728 = vmatpush1.bf16.msra.mxu0 %v8951_v20  ;;  %6287 = vmatpush1.bf16.msra.mxu1 %v8954_v21  ;;  %v9052_v20 = vld [vmem:[%s9453_s15 + $0x1524] ss:$16 sps:$4 sm:$0xff]   ;;  %v9055_v21 = vld [vmem:[%s9453_s15 + $0x152c] ss:$16 sps:$4 sm:$0xff]  }
 0x299   : > { %5729 = vmatprep.subr.bf16.mxu0 %v8959_v22  ;;  %6288 = vmatprep.subr.bf16.mxu1 %v8962_v23  ;;  %v9050_v22 = vld [vmem:[%s9453_s15 + $0x1520] ss:$16 sps:$4 sm:$0xff]   ;;  %v9053_v23 = vld [vmem:[%s9453_s15 + $0x1528] ss:$16 sps:$4 sm:$0xff]  }
 0x29c   : > { %5730 = vmatpush1.bf16.msra.mxu0 %v8957_v24  ;;  %6289 = vmatpush1.bf16.msra.mxu1 %v8960_v25  ;;  %v9058_v24 = vld [vmem:[%s9453_s15 + $0x1544] ss:$16 sps:$4 sm:$0xff]   ;;  %v9061_v25 = vld [vmem:[%s9453_s15 + $0x154c] ss:$16 sps:$4 sm:$0xff]  }
 0x29d   : > { %5731 = vmatprep.subr.bf16.mxu0 %v8965_v26  ;;  %6290 = vmatprep.subr.bf16.mxu1 %v8968_v27  ;;  %v9056_v26 = vld [vmem:[%s9453_s15 + $0x1540] ss:$16 sps:$4 sm:$0xff]   ;;  %v9059_v27 = vld [vmem:[%s9453_s15 + $0x1548] ss:$16 sps:$4 sm:$0xff]  }
 0x2a0   : > { %5732 = vmatpush1.bf16.msra.mxu0 %v8963_v28  ;;  %6291 = vmatpush1.bf16.msra.mxu1 %v8966_v29  ;;  %v9064_v28 = vld [vmem:[%s9453_s15 + $0x1564] ss:$16 sps:$4 sm:$0xff]   ;;  %v9067_v29 = vld [vmem:[%s9453_s15 + $0x156c] ss:$16 sps:$4 sm:$0xff]  }
 0x2a1   : > { %5733 = vmatprep.subr.bf16.mxu0 %v8971_v30  ;;  %6292 = vmatprep.subr.bf16.mxu1 %v8974_v31  ;;  %v9062_v30 = vld [vmem:[%s9453_s15 + $0x1560] ss:$16 sps:$4 sm:$0xff]   ;;  %v9065_v31 = vld [vmem:[%s9453_s15 + $0x1568] ss:$16 sps:$4 sm:$0xff]  }
 0x2a4   : > { %5734 = vmatpush1.bf16.msra.mxu0 %v8969_v32  ;;  %6293 = vmatpush1.bf16.msra.mxu1 %v8972_v33  ;;  %v9070_v32 = vld [vmem:[%s9453_s15 + $0x1584] ss:$16 sps:$4 sm:$0xff]   ;;  %v9073_v33 = vld [vmem:[%s9453_s15 + $0x158c] ss:$16 sps:$4 sm:$0xff]  }
 0x2a5   : > { %5735 = vmatprep.subr.bf16.mxu0 %v8977_v34  ;;  %6294 = vmatprep.subr.bf16.mxu1 %v8980_v35  ;;  %v9068_v34 = vld [vmem:[%s9453_s15 + $0x1580] ss:$16 sps:$4 sm:$0xff]   ;;  %v9071_v35 = vld [vmem:[%s9453_s15 + $0x1588] ss:$16 sps:$4 sm:$0xff]  }
 0x2a8   : > { %5736 = vmatpush1.bf16.msra.mxu0 %v8975_v36  ;;  %6295 = vmatpush1.bf16.msra.mxu1 %v8978_v37  ;;  %v9076_v36 = vld [vmem:[%s9453_s15 + $0x15a4] ss:$16 sps:$4 sm:$0xff]   ;;  %v9079_v37 = vld [vmem:[%s9453_s15 + $0x15ac] ss:$16 sps:$4 sm:$0xff]  }
 0x2a9   : > { %5737 = vmatprep.subr.bf16.mxu0 %v8983_v38  ;;  %6296 = vmatprep.subr.bf16.mxu1 %v8986_v39  ;;  %v9074_v38 = vld [vmem:[%s9453_s15 + $0x15a0] ss:$16 sps:$4 sm:$0xff]   ;;  %v9077_v39 = vld [vmem:[%s9453_s15 + $0x15a8] ss:$16 sps:$4 sm:$0xff]  }
 0x2ac   : > { %5738 = vmatpush1.bf16.msra.mxu0 %v8981_v40  ;;  %6297 = vmatpush1.bf16.msra.mxu1 %v8984_v41  ;;  %v9082_v40 = vld [vmem:[%s9453_s15 + $0x15c4] ss:$16 sps:$4 sm:$0xff]   ;;  %v9085_v41 = vld [vmem:[%s9453_s15 + $0x15cc] ss:$16 sps:$4 sm:$0xff]  }
 0x2ad   : > { %5739 = vmatprep.subr.bf16.mxu0 %v8989_v42  ;;  %6298 = vmatprep.subr.bf16.mxu1 %v8992_v43  ;;  %v9080_v42 = vld [vmem:[%s9453_s15 + $0x15c0] ss:$16 sps:$4 sm:$0xff]   ;;  %v9083_v43 = vld [vmem:[%s9453_s15 + $0x15c8] ss:$16 sps:$4 sm:$0xff]  }
 0x2b0   : > { %5740 = vmatpush1.bf16.msra.mxu0 %v8987_v44  ;;  %6299 = vmatpush1.bf16.msra.mxu1 %v8990_v45  ;;  %v9088_v44 = vld [vmem:[%s9453_s15 + $0x15e4] ss:$16 sps:$4 sm:$0xff]   ;;  %v9091_v45 = vld [vmem:[%s9453_s15 + $0x15ec] ss:$16 sps:$4 sm:$0xff]  }
 0x2b1   : > { %5752 = vmatprep.subr.bf16.mxu0 %v8998_v46  ;;  %6311 = vmatprep.subr.bf16.mxu1 %v9001_v47  ;;  %v9086_v46 = vld [vmem:[%s9453_s15 + $0x15e0] ss:$16 sps:$4 sm:$0xff]   ;;  %v9089_v47 = vld [vmem:[%s9453_s15 + $0x15e8] ss:$16 sps:$4 sm:$0xff]  }
 0x2b3   : > { %5742 = vmatmul.mubr.bf16.vlgmr.msra.gmra.mrb[0].mxu0 %v8993_v48  ;;  %6301 = vmatmul.mubr.bf16.vlgmr.msra.gmra.mrb[0].mxu1 %v8993_v48  ;;  %v9097_v48 = vld [vmem:[%s9453_s15 + $0x1604] ss:$16 sps:$4 sm:$0xff]  }
 0x2b4   : > { %5753 = vmatpush1.bf16.msra.mxu0 %v8996_v49  ;;  %6312 = vmatpush1.bf16.msra.mxu1 %v8999_v50  ;;  %v9100_v49 = vld [vmem:[%s9453_s15 + $0x160c] ss:$16 sps:$4 sm:$0xff]  }
 0x2b5   : > { %5754 = vmatprep.subr.bf16.mxu0 %v9004_v51  ;;  %6313 = vmatprep.subr.bf16.mxu1 %v9007_v52  ;;  %v9092_v50 = vld [vmem:[%s9455_s16 + $0x50] ss:$100 sps:$4 sm:$0xff]  }
 0x2b6   : > { %5784 = vmatprep.mubr.bf16.mxu0 %v9094_v53  ;;  %6343 = vmatprep.mubr.bf16.mxu1 %v9094_v53  ;;  %v9095_v51 = vld [vmem:[%s9453_s15 + $0x1600] ss:$16 sps:$4 sm:$0xff]   ;;  %v9098_v52 = vld [vmem:[%s9453_s15 + $0x1608] ss:$16 sps:$4 sm:$0xff]   ;;  %v9103_v53 = vld [vmem:[%s9453_s15 + $0x1624] ss:$16 sps:$4 sm:$0xff]  }
 0x2b8   : > { %5755 = vmatpush1.bf16.msra.mxu0 %v9002_v54  ;;  %6314 = vmatpush1.bf16.msra.mxu1 %v9005_v55  ;;  %v9106_v54 = vld [vmem:[%s9453_s15 + $0x162c] ss:$16 sps:$4 sm:$0xff]  }
 0x2b9   : > { %5756 = vmatprep.subr.bf16.mxu0 %v9010_v56  ;;  %6315 = vmatprep.subr.bf16.mxu1 %v9013_v57  ;;  %v9193_v55 = vld [vmem:[%s9455_s16 + $0x5c] ss:$100 sps:$4 sm:$0xff]  }
 0x2ba   : > { %v9101_v56 = vld [vmem:[%s9453_s15 + $0x1620] ss:$16 sps:$4 sm:$0xff]   ;;  %v9104_v57 = vld [vmem:[%s9453_s15 + $0x1628] ss:$16 sps:$4 sm:$0xff]  }
 0x2bc   : > { %5757 = vmatpush1.bf16.msra.mxu0 %v9008_v58  ;;  %6316 = vmatpush1.bf16.msra.mxu1 %v9011_v59  ;;  %v9109_v58 = vld [vmem:[%s9453_s15 + $0x1644] ss:$16 sps:$4 sm:$0xff]   ;;  %v9112_v59 = vld [vmem:[%s9453_s15 + $0x164c] ss:$16 sps:$4 sm:$0xff]  }
 0x2bd   : > { %5758 = vmatprep.subr.bf16.mxu0 %v9016_v60  ;;  %6317 = vmatprep.subr.bf16.mxu1 %v9019_v61  ;;  %v9107_v60 = vld [vmem:[%s9453_s15 + $0x1640] ss:$16 sps:$4 sm:$0xff]   ;;  %v9110_v61 = vld [vmem:[%s9453_s15 + $0x1648] ss:$16 sps:$4 sm:$0xff]  }
 0x2c0   : > { %5759 = vmatpush1.bf16.msra.mxu0 %v9014_v62  ;;  %6318 = vmatpush1.bf16.msra.mxu1 %v9017_v63  ;;  %v9115_v62 = vld [vmem:[%s9453_s15 + $0x1664] ss:$16 sps:$4 sm:$0xff]   ;;  %v9118_v63 = vld [vmem:[%s9453_s15 + $0x166c] ss:$16 sps:$4 sm:$0xff]  }
 0x2c1   : > { %5760 = vmatprep.subr.bf16.mxu0 %v9022_v0  ;;  %6319 = vmatprep.subr.bf16.mxu1 %v9025_v1  ;;  %v9113_v0 = vld [vmem:[%s9453_s15 + $0x1660] ss:$16 sps:$4 sm:$0xff]   ;;  %v9116_v1 = vld [vmem:[%s9453_s15 + $0x1668] ss:$16 sps:$4 sm:$0xff]  }
 0x2c4   : > { %5761 = vmatpush1.bf16.msra.mxu0 %v9020_v2  ;;  %6320 = vmatpush1.bf16.msra.mxu1 %v9023_v3  ;;  %v9121_v2 = vld [vmem:[%s9453_s15 + $0x1684] ss:$16 sps:$4 sm:$0xff]   ;;  %v9124_v3 = vld [vmem:[%s9453_s15 + $0x168c] ss:$16 sps:$4 sm:$0xff]  }
 0x2c5   : > { %5762 = vmatprep.subr.bf16.mxu0 %v9028_v4  ;;  %6321 = vmatprep.subr.bf16.mxu1 %v9031_v5  ;;  %v9119_v4 = vld [vmem:[%s9453_s15 + $0x1680] ss:$16 sps:$4 sm:$0xff]   ;;  %v9122_v5 = vld [vmem:[%s9453_s15 + $0x1688] ss:$16 sps:$4 sm:$0xff]  }
 0x2c8   : > { %5763 = vmatpush1.bf16.msra.mxu0 %v9026_v6  ;;  %6322 = vmatpush1.bf16.msra.mxu1 %v9029_v7  ;;  %v9127_v6 = vld [vmem:[%s9453_s15 + $0x16a4] ss:$16 sps:$4 sm:$0xff]   ;;  %v9130_v7 = vld [vmem:[%s9453_s15 + $0x16ac] ss:$16 sps:$4 sm:$0xff]  }
 0x2c9   : > { %5764 = vmatprep.subr.bf16.mxu0 %v9034_v8  ;;  %6323 = vmatprep.subr.bf16.mxu1 %v9037_v9  ;;  %v9125_v8 = vld [vmem:[%s9453_s15 + $0x16a0] ss:$16 sps:$4 sm:$0xff]   ;;  %v9128_v9 = vld [vmem:[%s9453_s15 + $0x16a8] ss:$16 sps:$4 sm:$0xff]  }
 0x2cc   : > { %5765 = vmatpush1.bf16.msra.mxu0 %v9032_v10  ;;  %6324 = vmatpush1.bf16.msra.mxu1 %v9035_v11  ;;  %v9133_v10 = vld [vmem:[%s9453_s15 + $0x16c4] ss:$16 sps:$4 sm:$0xff]   ;;  %v9136_v11 = vld [vmem:[%s9453_s15 + $0x16cc] ss:$16 sps:$4 sm:$0xff]  }
 0x2cd   : > { %5766 = vmatprep.subr.bf16.mxu0 %v9040_v12  ;;  %6325 = vmatprep.subr.bf16.mxu1 %v9043_v13  ;;  %v9131_v12 = vld [vmem:[%s9453_s15 + $0x16c0] ss:$16 sps:$4 sm:$0xff]   ;;  %v9134_v13 = vld [vmem:[%s9453_s15 + $0x16c8] ss:$16 sps:$4 sm:$0xff]  }
 0x2d0   : > { %5767 = vmatpush1.bf16.msra.mxu0 %v9038_v14  ;;  %6326 = vmatpush1.bf16.msra.mxu1 %v9041_v15  ;;  %v9139_v14 = vld [vmem:[%s9453_s15 + $0x16e4] ss:$16 sps:$4 sm:$0xff]   ;;  %v9142_v15 = vld [vmem:[%s9453_s15 + $0x16ec] ss:$16 sps:$4 sm:$0xff]  }
 0x2d1   : > { %5768 = vmatprep.subr.bf16.mxu0 %v9046_v16  ;;  %6327 = vmatprep.subr.bf16.mxu1 %v9049_v17  ;;  %v9137_v16 = vld [vmem:[%s9453_s15 + $0x16e0] ss:$16 sps:$4 sm:$0xff]   ;;  %v9140_v17 = vld [vmem:[%s9453_s15 + $0x16e8] ss:$16 sps:$4 sm:$0xff]  }
 0x2d4   : > { %5769 = vmatpush1.bf16.msra.mxu0 %v9044_v18  ;;  %6328 = vmatpush1.bf16.msra.mxu1 %v9047_v19  ;;  %v9145_v18 = vld [vmem:[%s9453_s15 + $0x1704] ss:$16 sps:$4 sm:$0xff]   ;;  %v9148_v19 = vld [vmem:[%s9453_s15 + $0x170c] ss:$16 sps:$4 sm:$0xff]  }
 0x2d5   : > { %5770 = vmatprep.subr.bf16.mxu0 %v9052_v20  ;;  %6329 = vmatprep.subr.bf16.mxu1 %v9055_v21  ;;  %v9143_v20 = vld [vmem:[%s9453_s15 + $0x1700] ss:$16 sps:$4 sm:$0xff]   ;;  %v9146_v21 = vld [vmem:[%s9453_s15 + $0x1708] ss:$16 sps:$4 sm:$0xff]  }
 0x2d8   : > { %5771 = vmatpush1.bf16.msra.mxu0 %v9050_v22  ;;  %6330 = vmatpush1.bf16.msra.mxu1 %v9053_v23  ;;  %v9151_v22 = vld [vmem:[%s9453_s15 + $0x1724] ss:$16 sps:$4 sm:$0xff]   ;;  %v9154_v23 = vld [vmem:[%s9453_s15 + $0x172c] ss:$16 sps:$4 sm:$0xff]  }
 0x2d9   : > { %5772 = vmatprep.subr.bf16.mxu0 %v9058_v24  ;;  %6331 = vmatprep.subr.bf16.mxu1 %v9061_v25  ;;  %v9149_v24 = vld [vmem:[%s9453_s15 + $0x1720] ss:$16 sps:$4 sm:$0xff]   ;;  %v9152_v25 = vld [vmem:[%s9453_s15 + $0x1728] ss:$16 sps:$4 sm:$0xff]  }
 0x2dc   : > { %5773 = vmatpush1.bf16.msra.mxu0 %v9056_v26  ;;  %6332 = vmatpush1.bf16.msra.mxu1 %v9059_v27  ;;  %v9157_v26 = vld [vmem:[%s9453_s15 + $0x1744] ss:$16 sps:$4 sm:$0xff]   ;;  %v9160_v27 = vld [vmem:[%s9453_s15 + $0x174c] ss:$16 sps:$4 sm:$0xff]  }
 0x2dd   : > { %5774 = vmatprep.subr.bf16.mxu0 %v9064_v28  ;;  %6333 = vmatprep.subr.bf16.mxu1 %v9067_v29  ;;  %v9155_v28 = vld [vmem:[%s9453_s15 + $0x1740] ss:$16 sps:$4 sm:$0xff]   ;;  %v9158_v29 = vld [vmem:[%s9453_s15 + $0x1748] ss:$16 sps:$4 sm:$0xff]  }
 0x2e0   : > { %5775 = vmatpush1.bf16.msra.mxu0 %v9062_v30  ;;  %6334 = vmatpush1.bf16.msra.mxu1 %v9065_v31  ;;  %v9163_v30 = vld [vmem:[%s9453_s15 + $0x1764] ss:$16 sps:$4 sm:$0xff]   ;;  %v9166_v31 = vld [vmem:[%s9453_s15 + $0x176c] ss:$16 sps:$4 sm:$0xff]  }
 0x2e1   : > { %5776 = vmatprep.subr.bf16.mxu0 %v9070_v32  ;;  %6335 = vmatprep.subr.bf16.mxu1 %v9073_v33  ;;  %v9161_v32 = vld [vmem:[%s9453_s15 + $0x1760] ss:$16 sps:$4 sm:$0xff]   ;;  %v9164_v33 = vld [vmem:[%s9453_s15 + $0x1768] ss:$16 sps:$4 sm:$0xff]  }
 0x2e4   : > { %5777 = vmatpush1.bf16.msra.mxu0 %v9068_v34  ;;  %6336 = vmatpush1.bf16.msra.mxu1 %v9071_v35  ;;  %v9169_v34 = vld [vmem:[%s9453_s15 + $0x1784] ss:$16 sps:$4 sm:$0xff]   ;;  %v9172_v35 = vld [vmem:[%s9453_s15 + $0x178c] ss:$16 sps:$4 sm:$0xff]  }
 0x2e5   : > { %5778 = vmatprep.subr.bf16.mxu0 %v9076_v36  ;;  %6337 = vmatprep.subr.bf16.mxu1 %v9079_v37  ;;  %v9167_v36 = vld [vmem:[%s9453_s15 + $0x1780] ss:$16 sps:$4 sm:$0xff]   ;;  %v9170_v37 = vld [vmem:[%s9453_s15 + $0x1788] ss:$16 sps:$4 sm:$0xff]  }
 0x2e8   : > { %5779 = vmatpush1.bf16.msra.mxu0 %v9074_v38  ;;  %6338 = vmatpush1.bf16.msra.mxu1 %v9077_v39  ;;  %v9175_v38 = vld [vmem:[%s9453_s15 + $0x17a4] ss:$16 sps:$4 sm:$0xff]   ;;  %v9178_v39 = vld [vmem:[%s9453_s15 + $0x17ac] ss:$16 sps:$4 sm:$0xff]  }
 0x2e9   : > { %5780 = vmatprep.subr.bf16.mxu0 %v9082_v40  ;;  %6339 = vmatprep.subr.bf16.mxu1 %v9085_v41  ;;  %v9173_v40 = vld [vmem:[%s9453_s15 + $0x17a0] ss:$16 sps:$4 sm:$0xff]   ;;  %v9176_v41 = vld [vmem:[%s9453_s15 + $0x17a8] ss:$16 sps:$4 sm:$0xff]  }
 0x2ec   : > { %5781 = vmatpush1.bf16.msra.mxu0 %v9080_v42  ;;  %6340 = vmatpush1.bf16.msra.mxu1 %v9083_v43  ;;  %v9181_v42 = vld [vmem:[%s9453_s15 + $0x17c4] ss:$16 sps:$4 sm:$0xff]   ;;  %v9184_v43 = vld [vmem:[%s9453_s15 + $0x17cc] ss:$16 sps:$4 sm:$0xff]  }
 0x2ed   : > { %5782 = vmatprep.subr.bf16.mxu0 %v9088_v44  ;;  %6341 = vmatprep.subr.bf16.mxu1 %v9091_v45  ;;  %v9179_v44 = vld [vmem:[%s9453_s15 + $0x17c0] ss:$16 sps:$4 sm:$0xff]   ;;  %v9182_v45 = vld [vmem:[%s9453_s15 + $0x17c8] ss:$16 sps:$4 sm:$0xff]  }
 0x2f0   : > { %5783 = vmatpush1.bf16.msra.mxu0 %v9086_v46  ;;  %6342 = vmatpush1.bf16.msra.mxu1 %v9089_v47  ;;  %v9187_v46 = vld [vmem:[%s9453_s15 + $0x17e4] ss:$16 sps:$4 sm:$0xff]   ;;  %v9190_v47 = vld [vmem:[%s9453_s15 + $0x17ec] ss:$16 sps:$4 sm:$0xff]  }
 0x2f1   : > { %5795 = vmatprep.subr.bf16.mxu0 %v9097_v48  ;;  %6354 = vmatprep.subr.bf16.mxu1 %v9100_v49  ;;  %v9185_v48 = vld [vmem:[%s9453_s15 + $0x17e0] ss:$16 sps:$4 sm:$0xff]   ;;  %v9188_v49 = vld [vmem:[%s9453_s15 + $0x17e8] ss:$16 sps:$4 sm:$0xff]  }
 0x2f3   : > { %5785 = vmatmul.mubr.bf16.vlgmr.msra.gmra.mrb[0].mxu0 %v9092_v50  ;;  %6344 = vmatmul.mubr.bf16.vlgmr.msra.gmra.mrb[0].mxu1 %v9092_v50  ;;  %v9196_v50 = vld [vmem:[%s9453_s15 + $0x1804] ss:$16 sps:$4 sm:$0xff]  }
 0x2f4   : > { %5796 = vmatpush1.bf16.msra.mxu0 %v9095_v51  ;;  %6355 = vmatpush1.bf16.msra.mxu1 %v9098_v52  ;;  %v9199_v51 = vld [vmem:[%s9453_s15 + $0x180c] ss:$16 sps:$4 sm:$0xff]  }
 0x2f5   : > { %5797 = vmatprep.subr.bf16.mxu0 %v9103_v53  ;;  %6356 = vmatprep.subr.bf16.mxu1 %v9106_v54  ;;  %v9191_v52 = vld [vmem:[%s9455_s16 + $0x58] ss:$100 sps:$4 sm:$0xff]  }
 0x2f6   : > { %5827 = vmatprep.mubr.bf16.mxu0 %v9193_v55  ;;  %6386 = vmatprep.mubr.bf16.mxu1 %v9193_v55  ;;  %v9194_v53 = vld [vmem:[%s9453_s15 + $0x1800] ss:$16 sps:$4 sm:$0xff]   ;;  %v9197_v54 = vld [vmem:[%s9453_s15 + $0x1808] ss:$16 sps:$4 sm:$0xff]   ;;  %v9202_v55 = vld [vmem:[%s9453_s15 + $0x1824] ss:$16 sps:$4 sm:$0xff]  }
 0x2f8   : > { %5798 = vmatpush1.bf16.msra.mxu0 %v9101_v56  ;;  %6357 = vmatpush1.bf16.msra.mxu1 %v9104_v57  ;;  %v9205_v56 = vld [vmem:[%s9453_s15 + $0x182c] ss:$16 sps:$4 sm:$0xff]   ;;  %v9200_v57 = vld [vmem:[%s9453_s15 + $0x1820] ss:$16 sps:$4 sm:$0xff]  }
 0x2f9   : > { %5799 = vmatprep.subr.bf16.mxu0 %v9109_v58  ;;  %6358 = vmatprep.subr.bf16.mxu1 %v9112_v59  ;;  %v9203_v58 = vld [vmem:[%s9453_s15 + $0x1828] ss:$16 sps:$4 sm:$0xff]   ;;  %v9208_v59 = vld [vmem:[%s9453_s15 + $0x1844] ss:$16 sps:$4 sm:$0xff]  }
 0x2fc   : > { %5800 = vmatpush1.bf16.msra.mxu0 %v9107_v60  ;;  %6359 = vmatpush1.bf16.msra.mxu1 %v9110_v61  ;;  %v9211_v60 = vld [vmem:[%s9453_s15 + $0x184c] ss:$16 sps:$4 sm:$0xff]   ;;  %v9316_v61 = vmov 0  }
 0x2fd   : > { %5801 = vmatprep.subr.bf16.mxu0 %v9115_v62  ;;  %6360 = vmatprep.subr.bf16.mxu1 %v9118_v63  ;;  %v9206_v62 = vld [vmem:[%s9453_s15 + $0x1840] ss:$16 sps:$4 sm:$0xff]   ;;  %v9209_v63 = vld [vmem:[%s9453_s15 + $0x1848] ss:$16 sps:$4 sm:$0xff]  }
 0x300   : > { %5802 = vmatpush1.bf16.msra.mxu0 %v9113_v0  ;;  %6361 = vmatpush1.bf16.msra.mxu1 %v9116_v1  ;;  %v9214_v0 = vld [vmem:[%s9453_s15 + $0x1864] ss:$16 sps:$4 sm:$0xff]   ;;  %v9217_v1 = vld [vmem:[%s9453_s15 + $0x186c] ss:$16 sps:$4 sm:$0xff]  }
 0x301   : > { %5803 = vmatprep.subr.bf16.mxu0 %v9121_v2  ;;  %6362 = vmatprep.subr.bf16.mxu1 %v9124_v3  ;;  %v9212_v2 = vld [vmem:[%s9453_s15 + $0x1860] ss:$16 sps:$4 sm:$0xff]   ;;  %v9215_v3 = vld [vmem:[%s9453_s15 + $0x1868] ss:$16 sps:$4 sm:$0xff]  }
 0x304   : > { %5804 = vmatpush1.bf16.msra.mxu0 %v9119_v4  ;;  %6363 = vmatpush1.bf16.msra.mxu1 %v9122_v5  ;;  %v9220_v4 = vld [vmem:[%s9453_s15 + $0x1884] ss:$16 sps:$4 sm:$0xff]   ;;  %v9223_v5 = vld [vmem:[%s9453_s15 + $0x188c] ss:$16 sps:$4 sm:$0xff]  }
 0x305   : > { %5805 = vmatprep.subr.bf16.mxu0 %v9127_v6  ;;  %6364 = vmatprep.subr.bf16.mxu1 %v9130_v7  ;;  %v9218_v6 = vld [vmem:[%s9453_s15 + $0x1880] ss:$16 sps:$4 sm:$0xff]   ;;  %v9221_v7 = vld [vmem:[%s9453_s15 + $0x1888] ss:$16 sps:$4 sm:$0xff]  }
 0x308   : > { %5806 = vmatpush1.bf16.msra.mxu0 %v9125_v8  ;;  %6365 = vmatpush1.bf16.msra.mxu1 %v9128_v9  ;;  %v9226_v8 = vld [vmem:[%s9453_s15 + $0x18a4] ss:$16 sps:$4 sm:$0xff]   ;;  %v9229_v9 = vld [vmem:[%s9453_s15 + $0x18ac] ss:$16 sps:$4 sm:$0xff]  }
 0x309   : > { %5807 = vmatprep.subr.bf16.mxu0 %v9133_v10  ;;  %6366 = vmatprep.subr.bf16.mxu1 %v9136_v11  ;;  %v9224_v10 = vld [vmem:[%s9453_s15 + $0x18a0] ss:$16 sps:$4 sm:$0xff]   ;;  %v9227_v11 = vld [vmem:[%s9453_s15 + $0x18a8] ss:$16 sps:$4 sm:$0xff]  }
 0x30c   : > { %5808 = vmatpush1.bf16.msra.mxu0 %v9131_v12  ;;  %6367 = vmatpush1.bf16.msra.mxu1 %v9134_v13  ;;  %v9232_v12 = vld [vmem:[%s9453_s15 + $0x18c4] ss:$16 sps:$4 sm:$0xff]   ;;  %v9235_v13 = vld [vmem:[%s9453_s15 + $0x18cc] ss:$16 sps:$4 sm:$0xff]  }
 0x30d   : > { %5809 = vmatprep.subr.bf16.mxu0 %v9139_v14  ;;  %6368 = vmatprep.subr.bf16.mxu1 %v9142_v15  ;;  %v9230_v14 = vld [vmem:[%s9453_s15 + $0x18c0] ss:$16 sps:$4 sm:$0xff]   ;;  %v9233_v15 = vld [vmem:[%s9453_s15 + $0x18c8] ss:$16 sps:$4 sm:$0xff]  }
 0x310   : > { %5810 = vmatpush1.bf16.msra.mxu0 %v9137_v16  ;;  %6369 = vmatpush1.bf16.msra.mxu1 %v9140_v17  ;;  %v9238_v16 = vld [vmem:[%s9453_s15 + $0x18e4] ss:$16 sps:$4 sm:$0xff]   ;;  %v9241_v17 = vld [vmem:[%s9453_s15 + $0x18ec] ss:$16 sps:$4 sm:$0xff]  }
 0x311   : > { %5811 = vmatprep.subr.bf16.mxu0 %v9145_v18  ;;  %6370 = vmatprep.subr.bf16.mxu1 %v9148_v19  ;;  %v9236_v18 = vld [vmem:[%s9453_s15 + $0x18e0] ss:$16 sps:$4 sm:$0xff]   ;;  %v9239_v19 = vld [vmem:[%s9453_s15 + $0x18e8] ss:$16 sps:$4 sm:$0xff]  }
 0x314   : > { %5812 = vmatpush1.bf16.msra.mxu0 %v9143_v20  ;;  %6371 = vmatpush1.bf16.msra.mxu1 %v9146_v21  ;;  %v9242_v20 = vld [vmem:[%s9455_s16 + $0x60] ss:$100 sps:$4 sm:$0xff]  }
 0x315   : > { %5813 = vmatprep.subr.bf16.mxu0 %v9151_v22  ;;  %6372 = vmatprep.subr.bf16.mxu1 %v9154_v23  ;;  %v362_v21 = vld [vmem:[#allocation2] sm:$0xff]  ;;  %v364_v22 = vld [vmem:[#allocation2 + $0x10] sm:$0xff]  ;;  %v363_v23 = vld [vmem:[#allocation2 + $0x8] sm:$0xff] }
 0x318   : > { %5814 = vmatpush1.bf16.msra.mxu0 %v9149_v24  ;;  %6373 = vmatpush1.bf16.msra.mxu1 %v9152_v25  ;;  %v365_v24 = vld [vmem:[#allocation2 + $0x18] sm:$0xff] }
 0x319   : > { %5815 = vmatprep.subr.bf16.mxu0 %v9157_v26  ;;  %6374 = vmatprep.subr.bf16.mxu1 %v9160_v27  ;;  %v366_v27 = vld [vmem:[#allocation2 + $0x20] sm:$0xff] }
 0x31c   : > { %5816 = vmatpush1.bf16.msra.mxu0 %v9155_v28  ;;  %6375 = vmatpush1.bf16.msra.mxu1 %v9158_v29  ;;  %v368_v28 = vld [vmem:[#allocation2 + $0x30] sm:$0xff] }
 0x31d   : > { %5817 = vmatprep.subr.bf16.mxu0 %v9163_v30  ;;  %6376 = vmatprep.subr.bf16.mxu1 %v9166_v31 }
 0x320   : > { %5818 = vmatpush1.bf16.msra.mxu0 %v9161_v32  ;;  %6377 = vmatpush1.bf16.msra.mxu1 %v9164_v33  ;;  %v367_v33 = vld [vmem:[#allocation2 + $0x28] sm:$0xff] }
 0x321   : > { %5819 = vmatprep.subr.bf16.mxu0 %v9169_v34  ;;  %6378 = vmatprep.subr.bf16.mxu1 %v9172_v35  ;;  %v369_v34 = vld [vmem:[#allocation2 + $0x38] sm:$0xff] }
 0x324   : > { %5820 = vmatpush1.bf16.msra.mxu0 %v9167_v36  ;;  %6379 = vmatpush1.bf16.msra.mxu1 %v9170_v37 }
 0x325   : > { %5821 = vmatprep.subr.bf16.mxu0 %v9175_v38  ;;  %6380 = vmatprep.subr.bf16.mxu1 %v9178_v39 }
 0x328   : > { %5822 = vmatpush1.bf16.msra.mxu0 %v9173_v40  ;;  %6381 = vmatpush1.bf16.msra.mxu1 %v9176_v41 }
 0x329   : > { %5823 = vmatprep.subr.bf16.mxu0 %v9181_v42  ;;  %6382 = vmatprep.subr.bf16.mxu1 %v9184_v43 }
 0x32c   : > { %5824 = vmatpush1.bf16.msra.mxu0 %v9179_v44  ;;  %6383 = vmatpush1.bf16.msra.mxu1 %v9182_v45  ;;  %v9243_v45 = vld [vmem:[%s10410_s3 + $0x40] sm:$0xff] (!%p7782_p11)  }
 0x32d   : > { %5825 = vmatprep.subr.bf16.mxu0 %v9187_v46  ;;  %6384 = vmatprep.subr.bf16.mxu1 %v9190_v47  ;;  %v9244_v46 = vld [vmem:[%s10410_s3 + $0xc0] sm:$0xff] (!%p7782_p11)  }
 0x32e   : > { %v9245_v47 = vld [vmem:[%s10410_s3] sm:$0xff] (!%p7782_p11)  }
 0x330   : > { %5826 = vmatpush1.bf16.msra.mxu0 %v9185_v48  ;;  %6385 = vmatpush1.bf16.msra.mxu1 %v9188_v49  ;;  %v9246_v48 = vld [vmem:[%s10410_s3 + $0x80] sm:$0xff] (!%p7782_p11)   ;;  %v9247_v49 = vld [vmem:[%s10410_s3 + $0x48] sm:$0xff] (!%p7782_p11)  }
 0x331   : > { %5838 = vmatprep.subr.bf16.mxu0 %v9196_v50  ;;  %6397 = vmatprep.subr.bf16.mxu1 %v9199_v51  ;;  %v9248_v50 = vld [vmem:[%s10410_s3 + $0xc8] sm:$0xff] (!%p7782_p11)  }
 0x332   : > { %v9249_v51 = vld [vmem:[%s10410_s3 + $0x8] sm:$0xff] (!%p7782_p11)  }
 0x333   : > { %5828 = vmatmul.mubr.bf16.vlgmr.msra.gmra.mrb[0].mxu0 %v9191_v52  ;;  %6387 = vmatmul.mubr.bf16.vlgmr.msra.gmra.mrb[0].mxu1 %v9191_v52  ;;  %v9250_v52 = vld [vmem:[%s10410_s3 + $0x88] sm:$0xff] (!%p7782_p11)  }
 0x334   : > { %5839 = vmatpush1.bf16.msra.mxu0 %v9194_v53  ;;  %6398 = vmatpush1.bf16.msra.mxu1 %v9197_v54  ;;  %v9251_v53 = vld [vmem:[%s10410_s3 + $0x50] sm:$0xff] (!%p7782_p11)  }
 0x335   : > { %5840 = vmatprep.subr.bf16.mxu0 %v9202_v55  ;;  %6399 = vmatprep.subr.bf16.mxu1 %v9205_v56  ;;  %v9252_v54 = vld [vmem:[%s10410_s3 + $0xd0] sm:$0xff] (!%p7782_p11)  }
 0x336   : > { %5870 = vmatprep.mubr.bf16.mxu0 %v9316_v61  ;;  %6429 = vmatprep.mubr.bf16.mxu1 %v9316_v61  ;;  %v9253_v55 = vld [vmem:[%s10410_s3 + $0x10] sm:$0xff] (!%p7782_p11)   ;;  %v9259_v61 = vld [vmem:[%s10410_s3 + $0x60] sm:$0xff] (!%p7782_p11)  }
 0x337   : > { %v9254_v56 = vld [vmem:[%s10410_s3 + $0x90] sm:$0xff] (!%p7782_p11)  }
 0x338   : > { %5841 = vmatpush1.bf16.msra.mxu0 %v9200_v57  ;;  %6400 = vmatpush1.bf16.msra.mxu1 %v9203_v58  ;;  %v9255_v57 = vld [vmem:[%s10410_s3 + $0x58] sm:$0xff] (!%p7782_p11)  }
 0x339   : > { %5842 = vmatprep.subr.bf16.mxu0 %v9208_v59  ;;  %6401 = vmatprep.subr.bf16.mxu1 %v9211_v60  ;;  %v9256_v58 = vld [vmem:[%s10410_s3 + $0xd8] sm:$0xff] (!%p7782_p11)  }
 0x33a   : > { %v9257_v59 = vld [vmem:[%s10410_s3 + $0x18] sm:$0xff] (!%p7782_p11)  }
 0x33b   : > { %v9258_v60 = vld [vmem:[%s10410_s3 + $0x98] sm:$0xff] (!%p7782_p11)  }
 0x33c   : > { %5843 = vmatpush1.bf16.msra.mxu0 %v9206_v62  ;;  %6402 = vmatpush1.bf16.msra.mxu1 %v9209_v63  ;;  %v9260_v62 = vld [vmem:[%s10410_s3 + $0xe0] sm:$0xff] (!%p7782_p11)  }
 0x33d   : > { %5844 = vmatprep.subr.bf16.mxu0 %v9214_v0  ;;  %6403 = vmatprep.subr.bf16.mxu1 %v9217_v1  ;;  %v9261_v63 = vld [vmem:[%s10410_s3 + $0x20] sm:$0xff] (!%p7782_p11)   ;;  %v6470_v0 = vlaneseq (!%p7782_p11) }
 0x33e   : > { %v9262_v1 = vld [vmem:[%s10410_s3 + $0xa0] sm:$0xff] (!%p7782_p11)  }
 0x340   : > { %5845 = vmatpush1.bf16.msra.mxu0 %v9212_v2  ;;  %6404 = vmatpush1.bf16.msra.mxu1 %v9215_v3  ;;  %v9263_v2 = vld [vmem:[%s10410_s3 + $0x68] sm:$0xff] (!%p7782_p11)  }
 0x341   : > { %5846 = vmatprep.subr.bf16.mxu0 %v9220_v4  ;;  %6405 = vmatprep.subr.bf16.mxu1 %v9223_v5  ;;  %v9264_v3 = vld [vmem:[%s10410_s3 + $0xe8] sm:$0xff] (!%p7782_p11)   ;;  %v6471_v5 = vshrl.u32 (!%p7782_p11), %v6470_v0, 7 }
 0x342   : > { %v9265_v4 = vld [vmem:[%s10410_s3 + $0x28] sm:$0xff] (!%p7782_p11)  }
 0x344   : > { %5847 = vmatpush1.bf16.msra.mxu0 %v9218_v6  ;;  %6406 = vmatpush1.bf16.msra.mxu1 %v9221_v7  ;;  %v9266_v6 = vld [vmem:[%s10410_s3 + $0xa8] sm:$0xff] (!%p7782_p11)   ;;  %v9267_v7 = vld [vmem:[%s10410_s3 + $0x70] sm:$0xff] (!%p7782_p11)  }
 0x345   : > { %5848 = vmatprep.subr.bf16.mxu0 %v9226_v8  ;;  %6407 = vmatprep.subr.bf16.mxu1 %v9229_v9  ;;  %v9268_v8 = vld [vmem:[%s10410_s3 + $0xf0] sm:$0xff] (!%p7782_p11)  }
 0x346   : > { %v9269_v9 = vld [vmem:[%s10410_s3 + $0x30] sm:$0xff] (!%p7782_p11)  }
 0x348   : > { %5849 = vmatpush1.bf16.msra.mxu0 %v9224_v10  ;;  %6408 = vmatpush1.bf16.msra.mxu1 %v9227_v11  ;;  %v6476_v10 = vsub.s32 (!%p7782_p11), 1, %v6471_v5  ;;  %v9270_v11 = vld [vmem:[%s10410_s3 + $0xb0] sm:$0xff] (!%p7782_p11)  }
 0x349   : > { %5850 = vmatprep.subr.bf16.mxu0 %v9232_v12  ;;  %6409 = vmatprep.subr.bf16.mxu1 %v9235_v13  ;;  %v6484_v12 = vsub.s32 (!%p7782_p11), 3, %v6471_v5  ;;  %v9271_v13 = vld [vmem:[%s10410_s3 + $0x78] sm:$0xff] (!%p7782_p11)  }
 0x34c   : > { %5851 = vmatpush1.bf16.msra.mxu0 %v9230_v14  ;;  %6410 = vmatpush1.bf16.msra.mxu1 %v9233_v15  ;;  %v6472_v14 = vsub.s32 (!%p7782_p11), 0, %v6471_v5  ;;  %v9272_v15 = vld [vmem:[%s10410_s3 + $0xf8] sm:$0xff] (!%p7782_p11)  }
 0x34d   : > { %5852 = vmatprep.subr.bf16.mxu0 %v9238_v16  ;;  %6411 = vmatprep.subr.bf16.mxu1 %v9241_v17  ;;  %v6480_v16 = vsub.s32 (!%p7782_p11), 2, %v6471_v5  ;;  %v9273_v17 = vld [vmem:[%s10410_s3 + $0x38] sm:$0xff] (!%p7782_p11)  }
 0x350   : > { %5853 = vmatpush1.bf16.msra.mxu0 %v9236_v18  ;;  %6412 = vmatpush1.bf16.msra.mxu1 %v9239_v19  ;;  %v9274_v18 = vld [vmem:[%s10410_s3 + $0xb8] sm:$0xff] (!%p7782_p11)  }
 0x351   : > { %7822 = vmatprep.subr.bf16.mxu0 (!%p7782_p11), %v9243_v45  ;;  %7844 = vmatprep.subr.bf16.mxu1 (!%p7782_p11), %v9244_v46 }
 0x353   : > { %5871 = vmatmul.mubr.bf16.vlgmr.msra.gmra.mrb[0].mxu0 %v9242_v20  ;;  %6430 = vmatmul.mubr.bf16.vlgmr.msra.gmra.mrb[0].mxu1 %v9242_v20 }
 0x354   : > { %7823 = vmatpush3.bf16.msra.mxu0 (!%p7782_p11), %v9245_v47  ;;  %7845 = vmatpush3.bf16.msra.mxu1 (!%p7782_p11), %v9246_v48 }
 0x355   : > { %7824 = vmatprep.subr.bf16.mxu0 (!%p7782_p11), %v9247_v49  ;;  %7846 = vmatprep.subr.bf16.mxu1 (!%p7782_p11), %v9248_v50 }
 0x358   : > { %7825 = vmatpush3.bf16.msra.mxu0 (!%p7782_p11), %v9249_v51  ;;  %7847 = vmatpush3.bf16.msra.mxu1 (!%p7782_p11), %v9250_v52 }
 0x359   : > { %7826 = vmatprep.subr.bf16.mxu0 (!%p7782_p11), %v9251_v53  ;;  %7848 = vmatprep.subr.bf16.mxu1 (!%p7782_p11), %v9252_v54  ;;  %v7783_v54 = vld [vmem:[%s10411_s4] ss:$0 sm:$0xff] (!%p7782_p11) }
 0x35c   : > { %7827 = vmatpush3.bf16.msra.mxu0 (!%p7782_p11), %v9253_v55  ;;  %7849 = vmatpush3.bf16.msra.mxu1 (!%p7782_p11), %v9254_v56 }
 0x35d   : > { %7828 = vmatprep.subr.bf16.mxu0 (!%p7782_p11), %v9255_v57  ;;  %7850 = vmatprep.subr.bf16.mxu1 (!%p7782_p11), %v9256_v58 }
 0x360   : > { %7829 = vmatpush3.bf16.msra.mxu0 (!%p7782_p11), %v9257_v59  ;;  %7851 = vmatpush3.bf16.msra.mxu1 (!%p7782_p11), %v9258_v60 }
 0x361   : > { %7830 = vmatprep.subr.bf16.mxu0 (!%p7782_p11), %v9259_v61  ;;  %7852 = vmatprep.subr.bf16.mxu1 (!%p7782_p11), %v9260_v62 }
 0x364   : > { %7831 = vmatpush3.bf16.msra.mxu0 (!%p7782_p11), %v9261_v63  ;;  %7853 = vmatpush3.bf16.msra.mxu1 (!%p7782_p11), %v9262_v1 }
 0x365   : > { %7832 = vmatprep.subr.bf16.mxu0 (!%p7782_p11), %v9263_v2  ;;  %7854 = vmatprep.subr.bf16.mxu1 (!%p7782_p11), %v9264_v3 }
 0x368   : > { %7833 = vmatpush3.bf16.msra.mxu0 (!%p7782_p11), %v9265_v4  ;;  %7855 = vmatpush3.bf16.msra.mxu1 (!%p7782_p11), %v9266_v6 }
 0x369   : > { %7834 = vmatprep.subr.bf16.mxu0 (!%p7782_p11), %v9267_v7  ;;  %7856 = vmatprep.subr.bf16.mxu1 (!%p7782_p11), %v9268_v8 }
 0x36c   : > { %7835 = vmatpush3.bf16.msra.mxu0 (!%p7782_p11), %v9269_v9  ;;  %7857 = vmatpush3.bf16.msra.mxu1 (!%p7782_p11), %v9270_v11 }
 0x36d   : > { %7836 = vmatprep.subr.bf16.mxu0 (!%p7782_p11), %v9271_v13  ;;  %7858 = vmatprep.subr.bf16.mxu1 (!%p7782_p11), %v9272_v15 }
 0x370   : > { %7837 = vmatpush3.bf16.msra.mxu0 (!%p7782_p11), %v9273_v17  ;;  %7859 = vmatpush3.bf16.msra.mxu1 (!%p7782_p11), %v9274_v18 }
 0x426   : > { %v5872_v25 = vpop.f32.mrb[0].mxu0  ;;  %v6431_v26 = vpop.f32.mrb[0].mxu1  ;;  %6459 = sbr.rel (%p7782_p11) target bundleno = 1305 (0x519), region = 74 }
 0x427   : > { %v6440_v29 = vadd.f32 %v5872_v25, %v362_v21  ;;  %v6442_v30 = vadd.f32 %v6431_v26, %v364_v22  ;;  %v5874_v31 = vpop.f32.mrb[1].mxu0  ;;  %v6433_v32 = vpop.f32.mrb[1].mxu1  ;;  %v6468_v21 = vld [vmem:[%s10409_s2] sm:$0xf] (!%p7782_p11) }
 0x428   : > { %v6441_v35 = vadd.f32 %v5874_v31, %v363_v23  ;;  %v6443_v36 = vadd.f32 %v6433_v32, %v365_v24  ;;  %v5876_v37 = vpop.f32.mrb[2].mxu0  ;;  %v6435_v38 = vpop.f32.mrb[2].mxu1  ;;  %v6477_v22 = vrot.slane (!%p7782_p11), %v6468_v21, %v6476_v10  ;;  %v6485_v25 = vrot.slane (!%p7782_p11), %v6468_v21, %v6484_v12 }
 0x429   : > { %6448 = vst [vmem:[#allocation2] sm:$0xff] %v6440_v29  ;;  %6450 = vst [vmem:[#allocation2 + $0x10] sm:$0xff] %v6442_v30  ;;  %v6444_v39 = vadd.f32 %v5876_v37, %v366_v27  ;;  %v6446_v40 = vadd.f32 %v6435_v38, %v368_v28  ;;  %v5878_v41 = vpop.f32.mrb[3].mxu0  ;;  %v6437_v42 = vpop.f32.mrb[3].mxu1  ;;  %v6473_v27 = vrot.slane (!%p7782_p11), %v6468_v21, %v6472_v14 }
 0x42a   : > { %6449 = vst [vmem:[#allocation2 + $0x8] sm:$0xff] %v6441_v35  ;;  %6451 = vst [vmem:[#allocation2 + $0x18] sm:$0xff] %v6443_v36  ;;  %v6445_v43 = vadd.f32 %v5878_v41, %v367_v33  ;;  %v6447_v44 = vadd.f32 %v6437_v42, %v369_v34  ;;  %v6481_v28 = vrot.slane (!%p7782_p11), %v6468_v21, %v6480_v16 }
 0x42b   : > { %6452 = vst [vmem:[#allocation2 + $0x20] sm:$0xff] %v6444_v39  ;;  %6454 = vst [vmem:[#allocation2 + $0x30] sm:$0xff] %v6446_v40 }
 0x42c   : > { %6453 = vst [vmem:[#allocation2 + $0x28] sm:$0xff] %v6445_v43  ;;  %6455 = vst [vmem:[#allocation2 + $0x38] sm:$0xff] %v6447_v44 }
 0x430   : > { %v6460_v26 = vld [vmem:[#allocation2] sm:$0xff]  ;;  %v6462_v30 = vld [vmem:[#allocation2 + $0x10] sm:$0xff] }
 0x431   : > { %v6461_v19 = vld [vmem:[#allocation2 + $0x8] sm:$0xff]  ;;  %v6463_v23 = vld [vmem:[#allocation2 + $0x18] sm:$0xff]  ;;  %v6490_v36 = vadd.f32 %v6473_v27, %v6460_v26  ;;  %v6492_v38 = vadd.f32 %v6481_v28, %v6462_v30 }
 0x432   : > { %v6464_v29 = vld [vmem:[#allocation2 + $0x20] sm:$0xff]  ;;  %v6466_v31 = vld [vmem:[#allocation2 + $0x30] sm:$0xff]  ;;  %v6491_v32 = vadd.f32 %v6477_v22, %v6461_v19  ;;  %v6493_v34 = vadd.f32 %v6485_v25, %v6463_v23 }
 0x433   : > { %v6465_v20 = vld [vmem:[#allocation2 + $0x28] sm:$0xff]  ;;  %v6467_v24 = vld [vmem:[#allocation2 + $0x38] sm:$0xff]  ;;  %v6494_v37 = vadd.f32 %v6473_v27, %v6464_v29  ;;  %v6496_v39 = vadd.f32 %v6481_v28, %v6466_v31  ;;  %v6498_v44 = vmax.f32 %v6490_v36, 0.0  ;;  %v6500_v46 = vmax.f32 %v6492_v38, 0.0 }
 0x434   : > { %v6495_v33 = vadd.f32 %v6477_v22, %v6465_v20  ;;  %v6497_v35 = vadd.f32 %v6485_v25, %v6467_v24  ;;  %v6499_v40 = vmax.f32 %v6491_v32, 0.0  ;;  %v6501_v42 = vmax.f32 %v6493_v34, 0.0 }
 0x435   : > { %v6502_v45 = vmax.f32 %v6494_v37, 0.0  ;;  %v6504_v47 = vmax.f32 %v6496_v39, 0.0 }
 0x436   : > { %v6503_v41 = vmax.f32 %v6495_v33, 0.0  ;;  %v6505_v43 = vmax.f32 %v6497_v35, 0.0 }
 0x437   : > { %v6506_v50 = vpack.c.bf16 %v6502_v45, %v6498_v44  ;;  %v6508_v51 = vpack.c.bf16 %v6504_v47, %v6500_v46 }
 0x438   : > { %v6507_v48 = vpack.c.bf16 %v6503_v41, %v6499_v40  ;;  %v6509_v49 = vpack.c.bf16 %v6505_v43, %v6501_v42 }
 0x43a   : > { %6805 = vmatprep.mubr.bf16.mxu0 %v6507_v48  ;;  %6846 = vmatprep.mubr.bf16.mxu1 %v6509_v49 }
 0x43b   : > { %6806 = vmatmul.mubr.bf16.vlgmr.msra.gmra.mrb[0].mxu0 %v6506_v50  ;;  %6847 = vmatmul.mubr.bf16.vlgmr.msra.gmra.mrb[0].mxu1 %v6508_v51 }
 0x50e   : > { %v7838_v52 = vpop.f32.mrb[0].mxu0  ;;  %v7860_v53 = vpop.f32.mrb[0].mxu1 }
 0x50f   : > { %v7839_v55 = vpop.f32.mrb[1].mxu0  ;;  %v7861_v56 = vpop.f32.mrb[1].mxu1 }
 0x510   : > { %v7840_v57 = vadd.f32 %v7839_v55, %v7838_v52  ;;  %v7862_v58 = vadd.f32 %v7861_v56, %v7860_v53  ;;  %v7841_v59 = vpop.f32.mrb[2].mxu0  ;;  %v7863_v60 = vpop.f32.mrb[2].mxu1 }
 0x511   : > { %v7842_v61 = vpop.f32.mrb[3].mxu0  ;;  %v7864_v62 = vpop.f32.mrb[3].mxu1 }
 0x512   : > { %v6808_v63 = vadd.f32 %v7840_v57, %v7783_v54  ;;  %v7843_v0 = vadd.f32 %v7842_v61, %v7841_v59  ;;  %v7865_v1 = vadd.f32 %v7864_v62, %v7863_v60 }
 0x514   : > { %v6849_v2 = vadd.f32 %v7862_v58, %v6808_v63  ;;  %v6811_v3 = vadd.f32 %v7843_v0, %v7783_v54 }
 0x516   : > { %6856 = vst.msk [vmem:[%s10412_s5] sm:$0xff] %vm6855_vm0, %v6849_v2  ;;  %v6852_v4 = vadd.f32 %v7865_v1, %v6811_v3 }
 0x518   : > { %6857 = vst.msk [vmem:[%s10412_s5 + $0x8] sm:$0xff] %vm6855_vm0, %v6852_v4 }
 0x519 PF: > { %s15_s22 = sadd.s32 1, %s9313_s22   ;;  %s10413_s18 = smov %s9301_s19 }
 0x51a   : > { %p12_p12 = scmp.ge.s32.totalorder %s15_s22, 4   ;;  %s10414_s19 = smov %s9382_s26 }
 0x51b   : > { %s10415_s20 = smov %s9309_s21  ;;  %s10416_s21 = smov %s10418_s23 }
 0x51c   :  { %14 = sbr.rel (!%p12_p12) target bundleno = 3 (0x3), region = 118 }

</bundles_post_ra>
